<compile_context>
chip_gen: v7x
topology: tpu7x:2x2x1
jax: 0.10.0
libtpu: 0.0.40
codegen_flags: <defaults>
</compile_context>

<pallas_src>
import functools

import jax
import jax.numpy as jnp
import numpy as np
from jax.experimental import pallas as pl
from jax.experimental.pallas import tpu as pltpu


def _round_up(x, m):
    return (x + m - 1) // m * m


def _pick_time_chunk(length, max_chunk):
    """Largest divisor of `length` that is <= max_chunk."""
    best = 1
    for c in range(1, min(length, max_chunk) + 1):
        if length % c == 0:
            best = c
    return best


def _pick_unroll(tc):
    if tc <= 16:
        return True
    for u in (8, 4, 2):
        if tc % u == 0:
            return u
    return 1


# ----------------------------------------------------------------------------
# Pallas kernel: one (direction, time-chunk) grid step of a BiGRU layer.
#
#   grid = (2, n_chunks): direction axis "parallel", time axis "arbitrary".
#
#   x_ref   : (pairs*tc, B, din)  input slab (compute dtype); pyramid layers
#                                 use pairs=2 (adjacent timesteps 2i / 2i+1).
#   wi_ref  : (pairs*din, 3Hp)    input weights of this direction (fused r|z|n
#                                 gates; split-Wi halves when pairs=2).
#   wh_ref  : (Hp, 3Hp)           recurrent weights of this direction.
#   b0_ref  : (1, 3Hp) f32        bi + [bh_r | bh_z | 0]   (folded).
#   bhn_ref : (1, Hp)  f32        bh_n (must stay inside the r * (...) term).
#   y_ref   : (tc, B, Hp)         this direction's half of the (.., 2Hp)
#                                 output, written time-aligned.
#   h_ref   : (2, B, Hp) f32 VMEM per-direction hidden state (across chunks).
#   gx_ref  : (tc, B, 3Hp) f32    VMEM slab holding the chunk's input proj.
# ----------------------------------------------------------------------------
def bigru_recurrence_kernel(x_ref, wi_ref, wh_ref, b0_ref, bhn_ref, y_ref,
                            h_ref, gx_ref, *, tc, pairs, din, hp, unroll):
    d = pl.program_id(0)          # 0 = forward, 1 = backward
    k = pl.program_id(1)          # time-chunk index (reversed by index_map)
    nb = x_ref.shape[1]

    wh = wh_ref[...]              # (Hp, 3Hp) compute dtype -> MXU operand
    b0 = b0_ref[...]              # (1, 3Hp) f32
    bhn = bhn_ref[...]            # (1, Hp)  f32
    cdt = wh.dtype

    # Fused input projection for the whole chunk -- off the serial h-chain.
    for i in range(tc):
        g = b0
        for j in range(pairs):
            g = g + jnp.dot(x_ref[pairs * i + j],
                            wi_ref[pl.ds(j * din, din), :],
                            preferred_element_type=jnp.float32)
        gx_ref[i] = g

    def step(t, h):
        gx = gx_ref[t]                                           # (B, 3Hp) f32
        gh = jnp.dot(h.astype(cdt), wh,
                     preferred_element_type=jnp.float32)         # (B, 3Hp) f32
        # One sigmoid over the combined (lane-aligned) r|z halves.
        rz = jax.nn.sigmoid(gx[:, :2 * hp] + gh[:, :2 * hp])
        z = rz[:, hp:]
        n = jnp.tanh(gx[:, 2 * hp:] + rz[:, :hp] * (gh[:, 2 * hp:] + bhn))
        h_new = (1.0 - z) * n + z * h
        y_ref[t] = h_new.astype(y_ref.dtype)
        return h_new

    def run_direction(slot, order):
        # Only this direction's slice of the scratch is ever touched, so the
        # "parallel" direction axis is safe under any iteration order.
        @pl.when(k == 0)
        def _():
            h_ref[slot] = jnp.zeros((nb, hp), jnp.float32)

        h_ref[slot] = jax.lax.fori_loop(
            0, tc, lambda i, h: step(order(i), h), h_ref[slot], unroll=unroll)

    @pl.when(d == 0)
    def _():
        run_direction(0, lambda i: i)              # forward: 0 .. tc-1

    @pl.when(d == 1)
    def _():
        run_direction(1, lambda i: tc - 1 - i)     # backward: tc-1 .. 0


def bigru_layer_pallas(x, wi_p, wh_p, b0, bhn, *, hp, pairs, max_chunk=32,
                       out_dtype=None):
    """One bidirectional GRU layer, time-major.

    x: (Lin, B, din) in compute dtype; returns (Lin // pairs, B, 2*hp) with
    [..., :hp] forward and [..., hp:] backward (time-aligned).
    """
    lin, nb, din = x.shape
    assert lin % pairs == 0
    lout = lin // pairs
    out_dtype = out_dtype or x.dtype
    tc = _pick_time_chunk(lout, max_chunk)
    nch = lout // tc
    unroll = _pick_unroll(tc)
    time_idx = lambda d, k: k + d * (nch - 1 - 2 * k)   # fwd: k, bwd: nch-1-k

    kernel = functools.partial(bigru_recurrence_kernel, tc=tc, pairs=pairs,
                               din=din, hp=hp, unroll=unroll)

    return pl.pallas_call(
        kernel,
        out_shape=jax.ShapeDtypeStruct((lout, nb, 2 * hp), out_dtype),
        grid_spec=pltpu.PrefetchScalarGridSpec(
            num_scalar_prefetch=0,
            grid=(2, nch),
            in_specs=[
                pl.BlockSpec((pairs * tc, nb, din),
                             lambda d, k: (time_idx(d, k), 0, 0)),
                pl.BlockSpec((None, pairs * din, 3 * hp),
                             lambda d, k: (d, 0, 0)),
                pl.BlockSpec((None, hp, 3 * hp), lambda d, k: (d, 0, 0)),
                pl.BlockSpec((None, 1, 3 * hp), lambda d, k: (d, 0, 0)),
                pl.BlockSpec((None, 1, hp), lambda d, k: (d, 0, 0)),
            ],
            out_specs=pl.BlockSpec((tc, nb, hp),
                                   lambda d, k: (time_idx(d, k), 0, d)),
            scratch_shapes=[
                pltpu.VMEM((2, nb, hp), jnp.float32),       # h, per direction
                pltpu.VMEM((tc, nb, 3 * hp), jnp.float32),  # chunk gx slab
            ],
        ),
        compiler_params=pltpu.CompilerParams(
            dimension_semantics=("parallel", "arbitrary"),
            vmem_limit_bytes=64 * 1024 * 1024),
    )(x, wi_p, wh_p, b0, bhn)


# ----------------------------------------------------------------------------
# Parameter packing / padding for the kernel.
# ----------------------------------------------------------------------------
def prepare_bigru_params(wi, wh, bi, bh, *, hp, in_segments, compute_dtype):
    """wi:(2,Din,3H), wh:(2,H,3H), bi/bh:(2,1,3H); gate order r|z|n.

    in_segments: list of (real, padded) row-segment sizes mapping the raw wi
    input rows onto the padded activation feature layout.
    """
    H = wh.shape[1]

    def pad_gates(a):   # (..., 3H) -> (..., 3Hp): each gate padded to Hp lanes
        widths = [(0, 0)] * (a.ndim - 1) + [(0, hp - H)]
        return jnp.concatenate(
            [jnp.pad(a[..., g * H:(g + 1) * H], widths) for g in range(3)],
            axis=-1)

    wi_g, wh_g = pad_gates(wi), pad_gates(wh)
    bi_g, bh_g = pad_gates(bi), pad_gates(bh)

    wh_p = jnp.pad(wh_g, ((0, 0), (0, hp - H), (0, 0)))      # rows H -> Hp

    pieces, off = [], 0
    for real, padded in in_segments:
        seg = wi_g[:, off:off + real, :]
        pieces.append(jnp.pad(seg, ((0, 0), (0, padded - real), (0, 0))))
        off += real
    wi_p = jnp.concatenate(pieces, axis=1)

    bhn = bh_g[..., 2 * hp:]                                 # (2, 1, Hp)
    b0 = bi_g + jnp.concatenate([bh_g[..., :2 * hp], jnp.zeros_like(bhn)], -1)
    return (wi_p.astype(compute_dtype), wh_p.astype(compute_dtype),
            b0.astype(jnp.float32), bhn.astype(jnp.float32))


# ----------------------------------------------------------------------------
# Pyramidal encoder (mirrors Pyramidal_Encoder.forward), time-major throughout.
# ----------------------------------------------------------------------------
def pyramidal_encoder_pallas(inp_tbd, params, *, stack_size,
                             compute_dtype=jnp.bfloat16, lane=128,
                             max_chunk=32):
    """inp_tbd: (T, B, input_size) -> (T / 2**stack_size, B, hidden_size)."""
    T, B, D = inp_tbd.shape
    H = params["gru0"][1].shape[1]          # per-direction hidden size
    hp = _round_up(H, lane)                 # lane-aligned hidden size
    nb = _round_up(B, 8)                    # sublane-aligned batch

    x = jnp.pad(inp_tbd, ((0, 0), (0, nb - B), (0, 0))).astype(compute_dtype)

    p0 = prepare_bigru_params(*params["gru0"], hp=hp, in_segments=[(D, D)],
                              compute_dtype=compute_dtype)
    x = bigru_layer_pallas(x, *p0, hp=hp, pairs=1, max_chunk=max_chunk)

    for i in range(stack_size):
        assert x.shape[0] % 2 == 0
        # Raw wi rows are [fwd_even | bwd_even | fwd_odd | bwd_odd] (H each),
        # scattered onto the padded 4*Hp-row layout of two stacked 2*Hp steps.
        pi = prepare_bigru_params(*params["pyr"][i], hp=hp,
                                  in_segments=[(H, hp)] * 4,
                                  compute_dtype=compute_dtype)
        x = bigru_layer_pallas(x, *pi, hp=hp, pairs=2, max_chunk=max_chunk)

    # Un-pad once at the end: (Lf, nb, 2*Hp) -> (Lf, B, 2*H) f32.
    out = jnp.concatenate([x[:, :B, :H], x[:, :B, hp:hp + H]], axis=-1)
    return out.astype(jnp.float32)


# ----------------------------------------------------------------------------
# Pure-JAX f32 reference (raw params, same semantics as the torch module).
# ----------------------------------------------------------------------------
def bigru_ref(x_tbd, wi, wh, bi, bh):
    L, B, _ = x_tbd.shape
    H = wh.shape[1]

    def run_dir(xs, wi_d, wh_d, bi_d, bh_d):
        h = jnp.zeros((B, H), jnp.float32)
        ys = []
        for t in range(xs.shape[0]):
            gx = xs[t] @ wi_d + bi_d
            gh = h @ wh_d + bh_d
            r = jax.nn.sigmoid(gx[:, :H] + gh[:, :H])
            z = jax.nn.sigmoid(gx[:, H:2 * H] + gh[:, H:2 * H])
            n = jnp.tanh(gx[:, 2 * H:] + r * gh[:, 2 * H:])
            h = (1.0 - z) * n + z * h
            ys.append(h)
        return jnp.stack(ys, axis=0)

    y_f = run_dir(x_tbd, wi[0], wh[0], bi[0], bh[0])
    y_b = run_dir(x_tbd[::-1], wi[1], wh[1], bi[1], bh[1])[::-1]
    return jnp.concatenate([y_f, y_b], axis=-1)              # (L, B, 2H)


def pyramidal_encoder_ref(inp_tbd, params, *, stack_size):
    x = bigru_ref(inp_tbd, *params["gru0"])
    for i in range(stack_size):
        x = jnp.concatenate([x[0::2], x[1::2]], axis=-1)     # pair adjacent t
        x = bigru_ref(x, *params["pyr"][i])
    return x                                                 # (T/2**s, B, 2H)


# ----------------------------------------------------------------------------
# Deterministic parameter init (shapes follow nn.GRU, fused-gate packing).
# ----------------------------------------------------------------------------
def init_bigru_params(key, in_dim, hidden, scale=0.2):
    k1, k2, k3, k4 = jax.random.split(key, 4)
    wi = scale * jax.random.normal(k1, (2, in_dim, 3 * hidden), jnp.float32)
    wh = scale * jax.random.normal(k2, (2, hidden, 3 * hidden), jnp.float32)
    bi = scale * jax.random.normal(k3, (2, 1, 3 * hidden), jnp.float32)
    bh = scale * jax.random.normal(k4, (2, 1, 3 * hidden), jnp.float32)
    return (wi, wh, bi, bh)


def init_params(key, input_size, hidden_size, stack_size):
    H = hidden_size // 2
    keys = jax.random.split(key, 1 + stack_size)
    params = {"gru0": init_bigru_params(keys[0], input_size, H), "pyr": []}
    for i in range(stack_size):
        params["pyr"].append(init_bigru_params(keys[1 + i], 4 * H, H))
    return params


if __name__ == "__main__":
    # Module contract: input is (seq, batch, input_size).
    T, B, INPUT_SIZE, HIDDEN_SIZE, STACK = 8, 2, 8, 32, 2

    key = jax.random.PRNGKey(0)
    k_in, k_p = jax.random.split(key)
    x = jax.random.normal(k_in, (T, B, INPUT_SIZE), jnp.float32)
    params = init_params(k_p, INPUT_SIZE, HIDDEN_SIZE, STACK)

    fwd = jax.jit(functools.partial(pyramidal_encoder_pallas,
                                    stack_size=STACK,
                                    compute_dtype=jnp.bfloat16))
    out = jax.block_until_ready(fwd(x, params))
    assert out.shape == (T // 2 ** STACK, B, HIDDEN_SIZE), out.shape

    ref = pyramidal_encoder_ref(x, params, stack_size=STACK)

    # f32 kernel path: tight check of the recurrence / packing / padding logic.
    fwd_f32 = jax.jit(functools.partial(pyramidal_encoder_pallas,
                                        stack_size=STACK,
                                        compute_dtype=jnp.float32))
    out_f32 = jax.block_until_ready(fwd_f32(x, params))
    np.testing.assert_allclose(np.asarray(out_f32), np.asarray(ref),
                               rtol=1e-4, atol=1e-5)

    # bf16 MXU path: weights/activations rounded to bf16 -> looser tolerance.
    np.testing.assert_allclose(np.asarray(out), np.asarray(ref),
                               rtol=5e-2, atol=3e-2)

    print("KERNEL_OK")
</pallas_src>

<mosaic_0001>
module attributes {stable_mosaic.version = 11 : i64} {
  func.func @bigru_recurrence_kernel(%arg0: i32, %arg1: i32, %arg2: memref<8x8x8xbf16, #tpu.memory_space<vmem>>, %arg3: memref<1x8x384xbf16, #tpu.memory_space<vmem>>, %arg4: memref<1x128x384xbf16, #tpu.memory_space<vmem>>, %arg5: memref<1x1x384xf32, #tpu.memory_space<vmem>>, %arg6: memref<1x1x128xf32, #tpu.memory_space<vmem>>, %arg7: memref<8x8x128xbf16, #tpu.memory_space<vmem>>, %arg8: memref<2x8x128xf32, #tpu.memory_space<vmem>>, %arg9: memref<8x8x384xf32, #tpu.memory_space<vmem>>) attributes {dimension_semantics = [#tpu.dimension_semantics<parallel>, #tpu.dimension_semantics<arbitrary>], iteration_bounds = array<i64: 2, 1>, scalar_prefetch = 0 : i64, scratch_operands = 2 : i64, tpu.core_type = #tpu.core_type<tc>, window_params = [{transform_indices = @transform_0, window_bounds = array<i64: 8, 8, 8>}, {transform_indices = @transform_1, window_bounds = array<i64: 1, 8, 384>}, {transform_indices = @transform_2, window_bounds = array<i64: 1, 128, 384>}, {transform_indices = @transform_3, window_bounds = array<i64: 1, 1, 384>}, {transform_indices = @transform_4, window_bounds = array<i64: 1, 1, 128>}, {transform_indices = @transform_5, window_bounds = array<i64: 8, 8, 128>}]} {
    %c0 = arith.constant 0 : index
    %c0_0 = arith.constant 0 : index
    %c0_1 = arith.constant 0 : index
    %0 = vector.load %arg4[%c0, %c0_0, %c0_1] : memref<1x128x384xbf16, #tpu.memory_space<vmem>>, vector<1x128x384xbf16>
    %1 = vector.shape_cast %0 : vector<1x128x384xbf16> to vector<128x384xbf16>
    %c0_2 = arith.constant 0 : index
    %c0_3 = arith.constant 0 : index
    %c0_4 = arith.constant 0 : index
    %2 = vector.load %arg5[%c0_2, %c0_3, %c0_4] : memref<1x1x384xf32, #tpu.memory_space<vmem>>, vector<1x1x384xf32>
    %3 = vector.shape_cast %2 : vector<1x1x384xf32> to vector<1x384xf32>
    %c0_5 = arith.constant 0 : index
    %c0_6 = arith.constant 0 : index
    %c0_7 = arith.constant 0 : index
    %4 = vector.load %arg6[%c0_5, %c0_6, %c0_7] : memref<1x1x128xf32, #tpu.memory_space<vmem>>, vector<1x1x128xf32>
    %5 = vector.shape_cast %4 : vector<1x1x128xf32> to vector<1x128xf32>
    %c0_8 = arith.constant 0 : index
    %c0_9 = arith.constant 0 : index
    %c0_10 = arith.constant 0 : index
    %6 = vector.load %arg2[%c0_8, %c0_9, %c0_10] : memref<8x8x8xbf16, #tpu.memory_space<vmem>>, vector<1x8x8xbf16>
    %7 = vector.shape_cast %6 : vector<1x8x8xbf16> to vector<8x8xbf16>
    %c0_11 = arith.constant 0 : index
    %c0_12 = arith.constant 0 : index
    %c0_13 = arith.constant 0 : index
    %8 = vector.load %arg3[%c0_11, %c0_12, %c0_13] : memref<1x8x384xbf16, #tpu.memory_space<vmem>>, vector<1x8x384xbf16>
    %9 = vector.shape_cast %8 : vector<1x8x384xbf16> to vector<8x384xbf16>
    %cst = arith.constant dense<0.000000e+00> : vector<8x384xf32>
    %10 = tpu.matmul %7, %9, %cst {dimension_numbers = #tpu.dot_dimension_numbers<[1], [0], [0], [1], [0, 0, 1, 1], [], []>} : vector<8x8xbf16>, vector<8x384xbf16>, vector<8x384xf32> -> vector<8x384xf32>
    %11 = vector.broadcast %3 : vector<1x384xf32> to vector<8x384xf32>
    %12 = arith.addf %11, %10 : vector<8x384xf32>
    %c0_14 = arith.constant 0 : index
    %c0_15 = arith.constant 0 : index
    %c0_16 = arith.constant 0 : index
    %13 = vector.load %arg9[%c0_14, %c0_15, %c0_16] : memref<8x8x384xf32, #tpu.memory_space<vmem>>, vector<1x8x384xf32>
    %14 = vector.shape_cast %13 : vector<1x8x384xf32> to vector<8x384xf32>
    %15 = vector.shape_cast %12 : vector<8x384xf32> to vector<1x8x384xf32>
    tpu.vector_store %arg9[%c0_14, %c0_15, %c0_16], %15 {strides = array<i32>} : memref<8x8x384xf32, #tpu.memory_space<vmem>>, vector<1x8x384xf32>,
    %c1 = arith.constant 1 : index
    %c0_17 = arith.constant 0 : index
    %c0_18 = arith.constant 0 : index
    %16 = vector.load %arg2[%c1, %c0_17, %c0_18] : memref<8x8x8xbf16, #tpu.memory_space<vmem>>, vector<1x8x8xbf16>
    %17 = vector.shape_cast %16 : vector<1x8x8xbf16> to vector<8x8xbf16>
    %c0_19 = arith.constant 0 : index
    %c0_20 = arith.constant 0 : index
    %c0_21 = arith.constant 0 : index
    %18 = vector.load %arg3[%c0_19, %c0_20, %c0_21] : memref<1x8x384xbf16, #tpu.memory_space<vmem>>, vector<1x8x384xbf16>
    %19 = vector.shape_cast %18 : vector<1x8x384xbf16> to vector<8x384xbf16>
    %cst_22 = arith.constant dense<0.000000e+00> : vector<8x384xf32>
    %20 = tpu.matmul %17, %19, %cst_22 {dimension_numbers = #tpu.dot_dimension_numbers<[1], [0], [0], [1], [0, 0, 1, 1], [], []>} : vector<8x8xbf16>, vector<8x384xbf16>, vector<8x384xf32> -> vector<8x384xf32>
    %21 = vector.broadcast %3 : vector<1x384xf32> to vector<8x384xf32>
    %22 = arith.addf %21, %20 : vector<8x384xf32>
    %c1_23 = arith.constant 1 : index
    %c0_24 = arith.constant 0 : index
    %c0_25 = arith.constant 0 : index
    %23 = vector.load %arg9[%c1_23, %c0_24, %c0_25] : memref<8x8x384xf32, #tpu.memory_space<vmem>>, vector<1x8x384xf32>
    %24 = vector.shape_cast %23 : vector<1x8x384xf32> to vector<8x384xf32>
    %25 = vector.shape_cast %22 : vector<8x384xf32> to vector<1x8x384xf32>
    tpu.vector_store %arg9[%c1_23, %c0_24, %c0_25], %25 {strides = array<i32>} : memref<8x8x384xf32, #tpu.memory_space<vmem>>, vector<1x8x384xf32>,
    %c2 = arith.constant 2 : index
    %c0_26 = arith.constant 0 : index
    %c0_27 = arith.constant 0 : index
    %26 = vector.load %arg2[%c2, %c0_26, %c0_27] : memref<8x8x8xbf16, #tpu.memory_space<vmem>>, vector<1x8x8xbf16>
    %27 = vector.shape_cast %26 : vector<1x8x8xbf16> to vector<8x8xbf16>
    %c0_28 = arith.constant 0 : index
    %c0_29 = arith.constant 0 : index
    %c0_30 = arith.constant 0 : index
    %28 = vector.load %arg3[%c0_28, %c0_29, %c0_30] : memref<1x8x384xbf16, #tpu.memory_space<vmem>>, vector<1x8x384xbf16>
    %29 = vector.shape_cast %28 : vector<1x8x384xbf16> to vector<8x384xbf16>
    %cst_31 = arith.constant dense<0.000000e+00> : vector<8x384xf32>
    %30 = tpu.matmul %27, %29, %cst_31 {dimension_numbers = #tpu.dot_dimension_numbers<[1], [0], [0], [1], [0, 0, 1, 1], [], []>} : vector<8x8xbf16>, vector<8x384xbf16>, vector<8x384xf32> -> vector<8x384xf32>
    %31 = vector.broadcast %3 : vector<1x384xf32> to vector<8x384xf32>
    %32 = arith.addf %31, %30 : vector<8x384xf32>
    %c2_32 = arith.constant 2 : index
    %c0_33 = arith.constant 0 : index
    %c0_34 = arith.constant 0 : index
    %33 = vector.load %arg9[%c2_32, %c0_33, %c0_34] : memref<8x8x384xf32, #tpu.memory_space<vmem>>, vector<1x8x384xf32>
    %34 = vector.shape_cast %33 : vector<1x8x384xf32> to vector<8x384xf32>
    %35 = vector.shape_cast %32 : vector<8x384xf32> to vector<1x8x384xf32>
    tpu.vector_store %arg9[%c2_32, %c0_33, %c0_34], %35 {strides = array<i32>} : memref<8x8x384xf32, #tpu.memory_space<vmem>>, vector<1x8x384xf32>,
    %c3 = arith.constant 3 : index
    %c0_35 = arith.constant 0 : index
    %c0_36 = arith.constant 0 : index
    %36 = vector.load %arg2[%c3, %c0_35, %c0_36] : memref<8x8x8xbf16, #tpu.memory_space<vmem>>, vector<1x8x8xbf16>
    %37 = vector.shape_cast %36 : vector<1x8x8xbf16> to vector<8x8xbf16>
    %c0_37 = arith.constant 0 : index
    %c0_38 = arith.constant 0 : index
    %c0_39 = arith.constant 0 : index
    %38 = vector.load %arg3[%c0_37, %c0_38, %c0_39] : memref<1x8x384xbf16, #tpu.memory_space<vmem>>, vector<1x8x384xbf16>
    %39 = vector.shape_cast %38 : vector<1x8x384xbf16> to vector<8x384xbf16>
    %cst_40 = arith.constant dense<0.000000e+00> : vector<8x384xf32>
    %40 = tpu.matmul %37, %39, %cst_40 {dimension_numbers = #tpu.dot_dimension_numbers<[1], [0], [0], [1], [0, 0, 1, 1], [], []>} : vector<8x8xbf16>, vector<8x384xbf16>, vector<8x384xf32> -> vector<8x384xf32>
    %41 = vector.broadcast %3 : vector<1x384xf32> to vector<8x384xf32>
    %42 = arith.addf %41, %40 : vector<8x384xf32>
    %c3_41 = arith.constant 3 : index
    %c0_42 = arith.constant 0 : index
    %c0_43 = arith.constant 0 : index
    %43 = vector.load %arg9[%c3_41, %c0_42, %c0_43] : memref<8x8x384xf32, #tpu.memory_space<vmem>>, vector<1x8x384xf32>
    %44 = vector.shape_cast %43 : vector<1x8x384xf32> to vector<8x384xf32>
    %45 = vector.shape_cast %42 : vector<8x384xf32> to vector<1x8x384xf32>
    tpu.vector_store %arg9[%c3_41, %c0_42, %c0_43], %45 {strides = array<i32>} : memref<8x8x384xf32, #tpu.memory_space<vmem>>, vector<1x8x384xf32>,
    %c4 = arith.constant 4 : index
    %c0_44 = arith.constant 0 : index
    %c0_45 = arith.constant 0 : index
    %46 = vector.load %arg2[%c4, %c0_44, %c0_45] : memref<8x8x8xbf16, #tpu.memory_space<vmem>>, vector<1x8x8xbf16>
    %47 = vector.shape_cast %46 : vector<1x8x8xbf16> to vector<8x8xbf16>
    %c0_46 = arith.constant 0 : index
    %c0_47 = arith.constant 0 : index
    %c0_48 = arith.constant 0 : index
    %48 = vector.load %arg3[%c0_46, %c0_47, %c0_48] : memref<1x8x384xbf16, #tpu.memory_space<vmem>>, vector<1x8x384xbf16>
    %49 = vector.shape_cast %48 : vector<1x8x384xbf16> to vector<8x384xbf16>
    %cst_49 = arith.constant dense<0.000000e+00> : vector<8x384xf32>
    %50 = tpu.matmul %47, %49, %cst_49 {dimension_numbers = #tpu.dot_dimension_numbers<[1], [0], [0], [1], [0, 0, 1, 1], [], []>} : vector<8x8xbf16>, vector<8x384xbf16>, vector<8x384xf32> -> vector<8x384xf32>
    %51 = vector.broadcast %3 : vector<1x384xf32> to vector<8x384xf32>
    %52 = arith.addf %51, %50 : vector<8x384xf32>
    %c4_50 = arith.constant 4 : index
    %c0_51 = arith.constant 0 : index
    %c0_52 = arith.constant 0 : index
    %53 = vector.load %arg9[%c4_50, %c0_51, %c0_52] : memref<8x8x384xf32, #tpu.memory_space<vmem>>, vector<1x8x384xf32>
    %54 = vector.shape_cast %53 : vector<1x8x384xf32> to vector<8x384xf32>
    %55 = vector.shape_cast %52 : vector<8x384xf32> to vector<1x8x384xf32>
    tpu.vector_store %arg9[%c4_50, %c0_51, %c0_52], %55 {strides = array<i32>} : memref<8x8x384xf32, #tpu.memory_space<vmem>>, vector<1x8x384xf32>,
    %c5 = arith.constant 5 : index
    %c0_53 = arith.constant 0 : index
    %c0_54 = arith.constant 0 : index
    %56 = vector.load %arg2[%c5, %c0_53, %c0_54] : memref<8x8x8xbf16, #tpu.memory_space<vmem>>, vector<1x8x8xbf16>
    %57 = vector.shape_cast %56 : vector<1x8x8xbf16> to vector<8x8xbf16>
    %c0_55 = arith.constant 0 : index
    %c0_56 = arith.constant 0 : index
    %c0_57 = arith.constant 0 : index
    %58 = vector.load %arg3[%c0_55, %c0_56, %c0_57] : memref<1x8x384xbf16, #tpu.memory_space<vmem>>, vector<1x8x384xbf16>
    %59 = vector.shape_cast %58 : vector<1x8x384xbf16> to vector<8x384xbf16>
    %cst_58 = arith.constant dense<0.000000e+00> : vector<8x384xf32>
    %60 = tpu.matmul %57, %59, %cst_58 {dimension_numbers = #tpu.dot_dimension_numbers<[1], [0], [0], [1], [0, 0, 1, 1], [], []>} : vector<8x8xbf16>, vector<8x384xbf16>, vector<8x384xf32> -> vector<8x384xf32>
    %61 = vector.broadcast %3 : vector<1x384xf32> to vector<8x384xf32>
    %62 = arith.addf %61, %60 : vector<8x384xf32>
    %c5_59 = arith.constant 5 : index
    %c0_60 = arith.constant 0 : index
    %c0_61 = arith.constant 0 : index
    %63 = vector.load %arg9[%c5_59, %c0_60, %c0_61] : memref<8x8x384xf32, #tpu.memory_space<vmem>>, vector<1x8x384xf32>
    %64 = vector.shape_cast %63 : vector<1x8x384xf32> to vector<8x384xf32>
    %65 = vector.shape_cast %62 : vector<8x384xf32> to vector<1x8x384xf32>
    tpu.vector_store %arg9[%c5_59, %c0_60, %c0_61], %65 {strides = array<i32>} : memref<8x8x384xf32, #tpu.memory_space<vmem>>, vector<1x8x384xf32>,
    %c6 = arith.constant 6 : index
    %c0_62 = arith.constant 0 : index
    %c0_63 = arith.constant 0 : index
    %66 = vector.load %arg2[%c6, %c0_62, %c0_63] : memref<8x8x8xbf16, #tpu.memory_space<vmem>>, vector<1x8x8xbf16>
    %67 = vector.shape_cast %66 : vector<1x8x8xbf16> to vector<8x8xbf16>
    %c0_64 = arith.constant 0 : index
    %c0_65 = arith.constant 0 : index
    %c0_66 = arith.constant 0 : index
    %68 = vector.load %arg3[%c0_64, %c0_65, %c0_66] : memref<1x8x384xbf16, #tpu.memory_space<vmem>>, vector<1x8x384xbf16>
    %69 = vector.shape_cast %68 : vector<1x8x384xbf16> to vector<8x384xbf16>
    %cst_67 = arith.constant dense<0.000000e+00> : vector<8x384xf32>
    %70 = tpu.matmul %67, %69, %cst_67 {dimension_numbers = #tpu.dot_dimension_numbers<[1], [0], [0], [1], [0, 0, 1, 1], [], []>} : vector<8x8xbf16>, vector<8x384xbf16>, vector<8x384xf32> -> vector<8x384xf32>
    %71 = vector.broadcast %3 : vector<1x384xf32> to vector<8x384xf32>
    %72 = arith.addf %71, %70 : vector<8x384xf32>
    %c6_68 = arith.constant 6 : index
    %c0_69 = arith.constant 0 : index
    %c0_70 = arith.constant 0 : index
    %73 = vector.load %arg9[%c6_68, %c0_69, %c0_70] : memref<8x8x384xf32, #tpu.memory_space<vmem>>, vector<1x8x384xf32>
    %74 = vector.shape_cast %73 : vector<1x8x384xf32> to vector<8x384xf32>
    %75 = vector.shape_cast %72 : vector<8x384xf32> to vector<1x8x384xf32>
    tpu.vector_store %arg9[%c6_68, %c0_69, %c0_70], %75 {strides = array<i32>} : memref<8x8x384xf32, #tpu.memory_space<vmem>>, vector<1x8x384xf32>,
    %c7 = arith.constant 7 : index
    %c0_71 = arith.constant 0 : index
    %c0_72 = arith.constant 0 : index
    %76 = vector.load %arg2[%c7, %c0_71, %c0_72] : memref<8x8x8xbf16, #tpu.memory_space<vmem>>, vector<1x8x8xbf16>
    %77 = vector.shape_cast %76 : vector<1x8x8xbf16> to vector<8x8xbf16>
    %c0_73 = arith.constant 0 : index
    %c0_74 = arith.constant 0 : index
    %c0_75 = arith.constant 0 : index
    %78 = vector.load %arg3[%c0_73, %c0_74, %c0_75] : memref<1x8x384xbf16, #tpu.memory_space<vmem>>, vector<1x8x384xbf16>
    %79 = vector.shape_cast %78 : vector<1x8x384xbf16> to vector<8x384xbf16>
    %cst_76 = arith.constant dense<0.000000e+00> : vector<8x384xf32>
    %80 = tpu.matmul %77, %79, %cst_76 {dimension_numbers = #tpu.dot_dimension_numbers<[1], [0], [0], [1], [0, 0, 1, 1], [], []>} : vector<8x8xbf16>, vector<8x384xbf16>, vector<8x384xf32> -> vector<8x384xf32>
    %81 = vector.broadcast %3 : vector<1x384xf32> to vector<8x384xf32>
    %82 = arith.addf %81, %80 : vector<8x384xf32>
    %c7_77 = arith.constant 7 : index
    %c0_78 = arith.constant 0 : index
    %c0_79 = arith.constant 0 : index
    %83 = vector.load %arg9[%c7_77, %c0_78, %c0_79] : memref<8x8x384xf32, #tpu.memory_space<vmem>>, vector<1x8x384xf32>
    %84 = vector.shape_cast %83 : vector<1x8x384xf32> to vector<8x384xf32>
    %85 = vector.shape_cast %82 : vector<8x384xf32> to vector<1x8x384xf32>
    tpu.vector_store %arg9[%c7_77, %c0_78, %c0_79], %85 {strides = array<i32>} : memref<8x8x384xf32, #tpu.memory_space<vmem>>, vector<1x8x384xf32>,
    %c0_i32 = arith.constant 0 : i32
    %86 = arith.cmpi eq, %arg0, %c0_i32 : i32
    %87 = arith.extui %86 : i1 to i32
    %c0_i32_80 = arith.constant 0 : i32
    %88 = arith.cmpi ne, %87, %c0_i32_80 : i32
    scf.if %88 {
      %c0_i32_82 = arith.constant 0 : i32
      %92 = arith.cmpi eq, %arg1, %c0_i32_82 : i32
      %93 = arith.extui %92 : i1 to i32
      %c0_i32_83 = arith.constant 0 : i32
      %94 = arith.cmpi ne, %93, %c0_i32_83 : i32
      scf.if %94 {
        %cst_148 = arith.constant 0.000000e+00 : f32
        %356 = vector.broadcast %cst_148 : f32 to vector<8x128xf32>
        %c0_149 = arith.constant 0 : index
        %c0_150 = arith.constant 0 : index
        %c0_151 = arith.constant 0 : index
        %357 = vector.load %arg8[%c0_149, %c0_150, %c0_151] : memref<2x8x128xf32, #tpu.memory_space<vmem>>, vector<1x8x128xf32>
        %358 = vector.shape_cast %357 : vector<1x8x128xf32> to vector<8x128xf32>
        %359 = vector.shape_cast %356 : vector<8x128xf32> to vector<1x8x128xf32>
        tpu.vector_store %arg8[%c0_149, %c0_150, %c0_151], %359 {strides = array<i32>} : memref<2x8x128xf32, #tpu.memory_space<vmem>>, vector<1x8x128xf32>,
      } else {
      }
      %c0_84 = arith.constant 0 : index
      %c0_85 = arith.constant 0 : index
      %c0_86 = arith.constant 0 : index
      %95 = vector.load %arg8[%c0_84, %c0_85, %c0_86] : memref<2x8x128xf32, #tpu.memory_space<vmem>>, vector<1x8x128xf32>
      %96 = vector.shape_cast %95 : vector<1x8x128xf32> to vector<8x128xf32>
      %c0_i32_87 = arith.constant 0 : i32
      %97 = arith.index_cast %c0_i32_87 : i32 to index
      %c0_88 = arith.constant 0 : index
      %c0_89 = arith.constant 0 : index
      %98 = vector.load %arg9[%97, %c0_88, %c0_89] : memref<8x8x384xf32, #tpu.memory_space<vmem>>, vector<1x8x384xf32>
      %99 = vector.shape_cast %98 : vector<1x8x384xf32> to vector<8x384xf32>
      %100 = arith.truncf %96 : vector<8x128xf32> to vector<8x128xbf16>
      %cst_90 = arith.constant dense<0.000000e+00> : vector<8x384xf32>
      %101 = tpu.matmul %100, %1, %cst_90 {dimension_numbers = #tpu.dot_dimension_numbers<[1], [0], [0], [1], [0, 0, 1, 1], [], []>} : vector<8x128xbf16>, vector<128x384xbf16>, vector<8x384xf32> -> vector<8x384xf32>
      %102 = vector.extract_strided_slice %99 {offsets = [0, 0], sizes = [8, 256], strides = [1, 1]} : vector<8x384xf32> to vector<8x256xf32>
      %103 = vector.extract_strided_slice %101 {offsets = [0, 0], sizes = [8, 256], strides = [1, 1]} : vector<8x384xf32> to vector<8x256xf32>
      %104 = arith.addf %102, %103 : vector<8x256xf32>
      %105 = arith.negf %104 : vector<8x256xf32>
      %106 = math.exp %105 : vector<8x256xf32>
      %cst_91 = arith.constant 1.000000e+00 : f32
      %107 = vector.broadcast %cst_91 : f32 to vector<8x256xf32>
      %108 = arith.addf %107, %106 : vector<8x256xf32>
      %109 = arith.divf %107, %108 : vector<8x256xf32>
      %110 = vector.extract_strided_slice %109 {offsets = [0, 128], sizes = [8, 128], strides = [1, 1]} : vector<8x256xf32> to vector<8x128xf32>
      %111 = vector.extract_strided_slice %99 {offsets = [0, 256], sizes = [8, 128], strides = [1, 1]} : vector<8x384xf32> to vector<8x128xf32>
      %112 = vector.extract_strided_slice %109 {offsets = [0, 0], sizes = [8, 128], strides = [1, 1]} : vector<8x256xf32> to vector<8x128xf32>
      %113 = vector.extract_strided_slice %101 {offsets = [0, 256], sizes = [8, 128], strides = [1, 1]} : vector<8x384xf32> to vector<8x128xf32>
      %114 = vector.broadcast %5 : vector<1x128xf32> to vector<8x128xf32>
      %115 = arith.addf %113, %114 : vector<8x128xf32>
      %116 = arith.mulf %112, %115 : vector<8x128xf32>
      %117 = arith.addf %111, %116 : vector<8x128xf32>
      %118 = math.tanh %117 : vector<8x128xf32>
      %cst_92 = arith.constant 1.000000e+00 : f32
      %119 = vector.broadcast %cst_92 : f32 to vector<8x128xf32>
      %120 = arith.subf %119, %110 : vector<8x128xf32>
      %121 = arith.mulf %120, %118 : vector<8x128xf32>
      %122 = arith.mulf %110, %96 : vector<8x128xf32>
      %123 = arith.addf %121, %122 : vector<8x128xf32>
      %124 = arith.truncf %123 : vector<8x128xf32> to vector<8x128xbf16>
      %125 = arith.index_cast %c0_i32_87 : i32 to index
      %c0_93 = arith.constant 0 : index
      %c0_94 = arith.constant 0 : index
      %126 = vector.load %arg7[%125, %c0_93, %c0_94] : memref<8x8x128xbf16, #tpu.memory_space<vmem>>, vector<1x8x128xbf16>
      %127 = vector.shape_cast %126 : vector<1x8x128xbf16> to vector<8x128xbf16>
      %128 = vector.shape_cast %124 : vector<8x128xbf16> to vector<1x8x128xbf16>
      tpu.vector_store %arg7[%125, %c0_93, %c0_94], %128 {strides = array<i32>} : memref<8x8x128xbf16, #tpu.memory_space<vmem>>, vector<1x8x128xbf16>,
      %c1_i32_95 = arith.constant 1 : i32
      %129 = arith.index_cast %c1_i32_95 : i32 to index
      %c0_96 = arith.constant 0 : index
      %c0_97 = arith.constant 0 : index
      %130 = vector.load %arg9[%129, %c0_96, %c0_97] : memref<8x8x384xf32, #tpu.memory_space<vmem>>, vector<1x8x384xf32>
      %131 = vector.shape_cast %130 : vector<1x8x384xf32> to vector<8x384xf32>
      %132 = arith.truncf %123 : vector<8x128xf32> to vector<8x128xbf16>
      %cst_98 = arith.constant dense<0.000000e+00> : vector<8x384xf32>
      %133 = tpu.matmul %132, %1, %cst_98 {dimension_numbers = #tpu.dot_dimension_numbers<[1], [0], [0], [1], [0, 0, 1, 1], [], []>} : vector<8x128xbf16>, vector<128x384xbf16>, vector<8x384xf32> -> vector<8x384xf32>
      %134 = vector.extract_strided_slice %131 {offsets = [0, 0], sizes = [8, 256], strides = [1, 1]} : vector<8x384xf32> to vector<8x256xf32>
      %135 = vector.extract_strided_slice %133 {offsets = [0, 0], sizes = [8, 256], strides = [1, 1]} : vector<8x384xf32> to vector<8x256xf32>
      %136 = arith.addf %134, %135 : vector<8x256xf32>
      %137 = arith.negf %136 : vector<8x256xf32>
      %138 = math.exp %137 : vector<8x256xf32>
      %cst_99 = arith.constant 1.000000e+00 : f32
      %139 = vector.broadcast %cst_99 : f32 to vector<8x256xf32>
      %140 = arith.addf %139, %138 : vector<8x256xf32>
      %141 = arith.divf %139, %140 : vector<8x256xf32>
      %142 = vector.extract_strided_slice %141 {offsets = [0, 128], sizes = [8, 128], strides = [1, 1]} : vector<8x256xf32> to vector<8x128xf32>
      %143 = vector.extract_strided_slice %131 {offsets = [0, 256], sizes = [8, 128], strides = [1, 1]} : vector<8x384xf32> to vector<8x128xf32>
      %144 = vector.extract_strided_slice %141 {offsets = [0, 0], sizes = [8, 128], strides = [1, 1]} : vector<8x256xf32> to vector<8x128xf32>
      %145 = vector.extract_strided_slice %133 {offsets = [0, 256], sizes = [8, 128], strides = [1, 1]} : vector<8x384xf32> to vector<8x128xf32>
      %146 = vector.broadcast %5 : vector<1x128xf32> to vector<8x128xf32>
      %147 = arith.addf %145, %146 : vector<8x128xf32>
      %148 = arith.mulf %144, %147 : vector<8x128xf32>
      %149 = arith.addf %143, %148 : vector<8x128xf32>
      %150 = math.tanh %149 : vector<8x128xf32>
      %cst_100 = arith.constant 1.000000e+00 : f32
      %151 = vector.broadcast %cst_100 : f32 to vector<8x128xf32>
      %152 = arith.subf %151, %142 : vector<8x128xf32>
      %153 = arith.mulf %152, %150 : vector<8x128xf32>
      %154 = arith.mulf %142, %123 : vector<8x128xf32>
      %155 = arith.addf %153, %154 : vector<8x128xf32>
      %156 = arith.truncf %155 : vector<8x128xf32> to vector<8x128xbf16>
      %157 = arith.index_cast %c1_i32_95 : i32 to index
      %c0_101 = arith.constant 0 : index
      %c0_102 = arith.constant 0 : index
      %158 = vector.load %arg7[%157, %c0_101, %c0_102] : memref<8x8x128xbf16, #tpu.memory_space<vmem>>, vector<1x8x128xbf16>
      %159 = vector.shape_cast %158 : vector<1x8x128xbf16> to vector<8x128xbf16>
      %160 = vector.shape_cast %156 : vector<8x128xbf16> to vector<1x8x128xbf16>
      tpu.vector_store %arg7[%157, %c0_101, %c0_102], %160 {strides = array<i32>} : memref<8x8x128xbf16, #tpu.memory_space<vmem>>, vector<1x8x128xbf16>,
      %c2_i32 = arith.constant 2 : i32
      %161 = arith.index_cast %c2_i32 : i32 to index
      %c0_103 = arith.constant 0 : index
      %c0_104 = arith.constant 0 : index
      %162 = vector.load %arg9[%161, %c0_103, %c0_104] : memref<8x8x384xf32, #tpu.memory_space<vmem>>, vector<1x8x384xf32>
      %163 = vector.shape_cast %162 : vector<1x8x384xf32> to vector<8x384xf32>
      %164 = arith.truncf %155 : vector<8x128xf32> to vector<8x128xbf16>
      %cst_105 = arith.constant dense<0.000000e+00> : vector<8x384xf32>
      %165 = tpu.matmul %164, %1, %cst_105 {dimension_numbers = #tpu.dot_dimension_numbers<[1], [0], [0], [1], [0, 0, 1, 1], [], []>} : vector<8x128xbf16>, vector<128x384xbf16>, vector<8x384xf32> -> vector<8x384xf32>
      %166 = vector.extract_strided_slice %163 {offsets = [0, 0], sizes = [8, 256], strides = [1, 1]} : vector<8x384xf32> to vector<8x256xf32>
      %167 = vector.extract_strided_slice %165 {offsets = [0, 0], sizes = [8, 256], strides = [1, 1]} : vector<8x384xf32> to vector<8x256xf32>
      %168 = arith.addf %166, %167 : vector<8x256xf32>
      %169 = arith.negf %168 : vector<8x256xf32>
      %170 = math.exp %169 : vector<8x256xf32>
      %cst_106 = arith.constant 1.000000e+00 : f32
      %171 = vector.broadcast %cst_106 : f32 to vector<8x256xf32>
      %172 = arith.addf %171, %170 : vector<8x256xf32>
      %173 = arith.divf %171, %172 : vector<8x256xf32>
      %174 = vector.extract_strided_slice %173 {offsets = [0, 128], sizes = [8, 128], strides = [1, 1]} : vector<8x256xf32> to vector<8x128xf32>
      %175 = vector.extract_strided_slice %163 {offsets = [0, 256], sizes = [8, 128], strides = [1, 1]} : vector<8x384xf32> to vector<8x128xf32>
      %176 = vector.extract_strided_slice %173 {offsets = [0, 0], sizes = [8, 128], strides = [1, 1]} : vector<8x256xf32> to vector<8x128xf32>
      %177 = vector.extract_strided_slice %165 {offsets = [0, 256], sizes = [8, 128], strides = [1, 1]} : vector<8x384xf32> to vector<8x128xf32>
      %178 = vector.broadcast %5 : vector<1x128xf32> to vector<8x128xf32>
      %179 = arith.addf %177, %178 : vector<8x128xf32>
      %180 = arith.mulf %176, %179 : vector<8x128xf32>
      %181 = arith.addf %175, %180 : vector<8x128xf32>
      %182 = math.tanh %181 : vector<8x128xf32>
      %cst_107 = arith.constant 1.000000e+00 : f32
      %183 = vector.broadcast %cst_107 : f32 to vector<8x128xf32>
      %184 = arith.subf %183, %174 : vector<8x128xf32>
      %185 = arith.mulf %184, %182 : vector<8x128xf32>
      %186 = arith.mulf %174, %155 : vector<8x128xf32>
      %187 = arith.addf %185, %186 : vector<8x128xf32>
      %188 = arith.truncf %187 : vector<8x128xf32> to vector<8x128xbf16>
      %189 = arith.index_cast %c2_i32 : i32 to index
      %c0_108 = arith.constant 0 : index
      %c0_109 = arith.constant 0 : index
      %190 = vector.load %arg7[%189, %c0_108, %c0_109] : memref<8x8x128xbf16, #tpu.memory_space<vmem>>, vector<1x8x128xbf16>
      %191 = vector.shape_cast %190 : vector<1x8x128xbf16> to vector<8x128xbf16>
      %192 = vector.shape_cast %188 : vector<8x128xbf16> to vector<1x8x128xbf16>
      tpu.vector_store %arg7[%189, %c0_108, %c0_109], %192 {strides = array<i32>} : memref<8x8x128xbf16, #tpu.memory_space<vmem>>, vector<1x8x128xbf16>,
      %c3_i32 = arith.constant 3 : i32
      %193 = arith.index_cast %c3_i32 : i32 to index
      %c0_110 = arith.constant 0 : index
      %c0_111 = arith.constant 0 : index
      %194 = vector.load %arg9[%193, %c0_110, %c0_111] : memref<8x8x384xf32, #tpu.memory_space<vmem>>, vector<1x8x384xf32>
      %195 = vector.shape_cast %194 : vector<1x8x384xf32> to vector<8x384xf32>
      %196 = arith.truncf %187 : vector<8x128xf32> to vector<8x128xbf16>
      %cst_112 = arith.constant dense<0.000000e+00> : vector<8x384xf32>
      %197 = tpu.matmul %196, %1, %cst_112 {dimension_numbers = #tpu.dot_dimension_numbers<[1], [0], [0], [1], [0, 0, 1, 1], [], []>} : vector<8x128xbf16>, vector<128x384xbf16>, vector<8x384xf32> -> vector<8x384xf32>
      %198 = vector.extract_strided_slice %195 {offsets = [0, 0], sizes = [8, 256], strides = [1, 1]} : vector<8x384xf32> to vector<8x256xf32>
      %199 = vector.extract_strided_slice %197 {offsets = [0, 0], sizes = [8, 256], strides = [1, 1]} : vector<8x384xf32> to vector<8x256xf32>
      %200 = arith.addf %198, %199 : vector<8x256xf32>
      %201 = arith.negf %200 : vector<8x256xf32>
      %202 = math.exp %201 : vector<8x256xf32>
      %cst_113 = arith.constant 1.000000e+00 : f32
      %203 = vector.broadcast %cst_113 : f32 to vector<8x256xf32>
      %204 = arith.addf %203, %202 : vector<8x256xf32>
      %205 = arith.divf %203, %204 : vector<8x256xf32>
      %206 = vector.extract_strided_slice %205 {offsets = [0, 128], sizes = [8, 128], strides = [1, 1]} : vector<8x256xf32> to vector<8x128xf32>
      %207 = vector.extract_strided_slice %195 {offsets = [0, 256], sizes = [8, 128], strides = [1, 1]} : vector<8x384xf32> to vector<8x128xf32>
      %208 = vector.extract_strided_slice %205 {offsets = [0, 0], sizes = [8, 128], strides = [1, 1]} : vector<8x256xf32> to vector<8x128xf32>
      %209 = vector.extract_strided_slice %197 {offsets = [0, 256], sizes = [8, 128], strides = [1, 1]} : vector<8x384xf32> to vector<8x128xf32>
      %210 = vector.broadcast %5 : vector<1x128xf32> to vector<8x128xf32>
      %211 = arith.addf %209, %210 : vector<8x128xf32>
      %212 = arith.mulf %208, %211 : vector<8x128xf32>
      %213 = arith.addf %207, %212 : vector<8x128xf32>
      %214 = math.tanh %213 : vector<8x128xf32>
      %cst_114 = arith.constant 1.000000e+00 : f32
      %215 = vector.broadcast %cst_114 : f32 to vector<8x128xf32>
      %216 = arith.subf %215, %206 : vector<8x128xf32>
      %217 = arith.mulf %216, %214 : vector<8x128xf32>
      %218 = arith.mulf %206, %187 : vector<8x128xf32>
      %219 = arith.addf %217, %218 : vector<8x128xf32>
      %220 = arith.truncf %219 : vector<8x128xf32> to vector<8x128xbf16>
      %221 = arith.index_cast %c3_i32 : i32 to index
      %c0_115 = arith.constant 0 : index
      %c0_116 = arith.constant 0 : index
      %222 = vector.load %arg7[%221, %c0_115, %c0_116] : memref<8x8x128xbf16, #tpu.memory_space<vmem>>, vector<1x8x128xbf16>
      %223 = vector.shape_cast %222 : vector<1x8x128xbf16> to vector<8x128xbf16>
      %224 = vector.shape_cast %220 : vector<8x128xbf16> to vector<1x8x128xbf16>
      tpu.vector_store %arg7[%221, %c0_115, %c0_116], %224 {strides = array<i32>} : memref<8x8x128xbf16, #tpu.memory_space<vmem>>, vector<1x8x128xbf16>,
      %c4_i32 = arith.constant 4 : i32
      %225 = arith.index_cast %c4_i32 : i32 to index
      %c0_117 = arith.constant 0 : index
      %c0_118 = arith.constant 0 : index
      %226 = vector.load %arg9[%225, %c0_117, %c0_118] : memref<8x8x384xf32, #tpu.memory_space<vmem>>, vector<1x8x384xf32>
      %227 = vector.shape_cast %226 : vector<1x8x384xf32> to vector<8x384xf32>
      %228 = arith.truncf %219 : vector<8x128xf32> to vector<8x128xbf16>
      %cst_119 = arith.constant dense<0.000000e+00> : vector<8x384xf32>
      %229 = tpu.matmul %228, %1, %cst_119 {dimension_numbers = #tpu.dot_dimension_numbers<[1], [0], [0], [1], [0, 0, 1, 1], [], []>} : vector<8x128xbf16>, vector<128x384xbf16>, vector<8x384xf32> -> vector<8x384xf32>
      %230 = vector.extract_strided_slice %227 {offsets = [0, 0], sizes = [8, 256], strides = [1, 1]} : vector<8x384xf32> to vector<8x256xf32>
      %231 = vector.extract_strided_slice %229 {offsets = [0, 0], sizes = [8, 256], strides = [1, 1]} : vector<8x384xf32> to vector<8x256xf32>
      %232 = arith.addf %230, %231 : vector<8x256xf32>
      %233 = arith.negf %232 : vector<8x256xf32>
      %234 = math.exp %233 : vector<8x256xf32>
      %cst_120 = arith.constant 1.000000e+00 : f32
      %235 = vector.broadcast %cst_120 : f32 to vector<8x256xf32>
      %236 = arith.addf %235, %234 : vector<8x256xf32>
      %237 = arith.divf %235, %236 : vector<8x256xf32>
      %238 = vector.extract_strided_slice %237 {offsets = [0, 128], sizes = [8, 128], strides = [1, 1]} : vector<8x256xf32> to vector<8x128xf32>
      %239 = vector.extract_strided_slice %227 {offsets = [0, 256], sizes = [8, 128], strides = [1, 1]} : vector<8x384xf32> to vector<8x128xf32>
      %240 = vector.extract_strided_slice %237 {offsets = [0, 0], sizes = [8, 128], strides = [1, 1]} : vector<8x256xf32> to vector<8x128xf32>
      %241 = vector.extract_strided_slice %229 {offsets = [0, 256], sizes = [8, 128], strides = [1, 1]} : vector<8x384xf32> to vector<8x128xf32>
      %242 = vector.broadcast %5 : vector<1x128xf32> to vector<8x128xf32>
      %243 = arith.addf %241, %242 : vector<8x128xf32>
      %244 = arith.mulf %240, %243 : vector<8x128xf32>
      %245 = arith.addf %239, %244 : vector<8x128xf32>
      %246 = math.tanh %245 : vector<8x128xf32>
      %cst_121 = arith.constant 1.000000e+00 : f32
      %247 = vector.broadcast %cst_121 : f32 to vector<8x128xf32>
      %248 = arith.subf %247, %238 : vector<8x128xf32>
      %249 = arith.mulf %248, %246 : vector<8x128xf32>
      %250 = arith.mulf %238, %219 : vector<8x128xf32>
      %251 = arith.addf %249, %250 : vector<8x128xf32>
      %252 = arith.truncf %251 : vector<8x128xf32> to vector<8x128xbf16>
      %253 = arith.index_cast %c4_i32 : i32 to index
      %c0_122 = arith.constant 0 : index
      %c0_123 = arith.constant 0 : index
      %254 = vector.load %arg7[%253, %c0_122, %c0_123] : memref<8x8x128xbf16, #tpu.memory_space<vmem>>, vector<1x8x128xbf16>
      %255 = vector.shape_cast %254 : vector<1x8x128xbf16> to vector<8x128xbf16>
      %256 = vector.shape_cast %252 : vector<8x128xbf16> to vector<1x8x128xbf16>
      tpu.vector_store %arg7[%253, %c0_122, %c0_123], %256 {strides = array<i32>} : memref<8x8x128xbf16, #tpu.memory_space<vmem>>, vector<1x8x128xbf16>,
      %c5_i32 = arith.constant 5 : i32
      %257 = arith.index_cast %c5_i32 : i32 to index
      %c0_124 = arith.constant 0 : index
      %c0_125 = arith.constant 0 : index
      %258 = vector.load %arg9[%257, %c0_124, %c0_125] : memref<8x8x384xf32, #tpu.memory_space<vmem>>, vector<1x8x384xf32>
      %259 = vector.shape_cast %258 : vector<1x8x384xf32> to vector<8x384xf32>
      %260 = arith.truncf %251 : vector<8x128xf32> to vector<8x128xbf16>
      %cst_126 = arith.constant dense<0.000000e+00> : vector<8x384xf32>
      %261 = tpu.matmul %260, %1, %cst_126 {dimension_numbers = #tpu.dot_dimension_numbers<[1], [0], [0], [1], [0, 0, 1, 1], [], []>} : vector<8x128xbf16>, vector<128x384xbf16>, vector<8x384xf32> -> vector<8x384xf32>
      %262 = vector.extract_strided_slice %259 {offsets = [0, 0], sizes = [8, 256], strides = [1, 1]} : vector<8x384xf32> to vector<8x256xf32>
      %263 = vector.extract_strided_slice %261 {offsets = [0, 0], sizes = [8, 256], strides = [1, 1]} : vector<8x384xf32> to vector<8x256xf32>
      %264 = arith.addf %262, %263 : vector<8x256xf32>
      %265 = arith.negf %264 : vector<8x256xf32>
      %266 = math.exp %265 : vector<8x256xf32>
      %cst_127 = arith.constant 1.000000e+00 : f32
      %267 = vector.broadcast %cst_127 : f32 to vector<8x256xf32>
      %268 = arith.addf %267, %266 : vector<8x256xf32>
      %269 = arith.divf %267, %268 : vector<8x256xf32>
      %270 = vector.extract_strided_slice %269 {offsets = [0, 128], sizes = [8, 128], strides = [1, 1]} : vector<8x256xf32> to vector<8x128xf32>
      %271 = vector.extract_strided_slice %259 {offsets = [0, 256], sizes = [8, 128], strides = [1, 1]} : vector<8x384xf32> to vector<8x128xf32>
      %272 = vector.extract_strided_slice %269 {offsets = [0, 0], sizes = [8, 128], strides = [1, 1]} : vector<8x256xf32> to vector<8x128xf32>
      %273 = vector.extract_strided_slice %261 {offsets = [0, 256], sizes = [8, 128], strides = [1, 1]} : vector<8x384xf32> to vector<8x128xf32>
      %274 = vector.broadcast %5 : vector<1x128xf32> to vector<8x128xf32>
      %275 = arith.addf %273, %274 : vector<8x128xf32>
      %276 = arith.mulf %272, %275 : vector<8x128xf32>
      %277 = arith.addf %271, %276 : vector<8x128xf32>
      %278 = math.tanh %277 : vector<8x128xf32>
      %cst_128 = arith.constant 1.000000e+00 : f32
      %279 = vector.broadcast %cst_128 : f32 to vector<8x128xf32>
      %280 = arith.subf %279, %270 : vector<8x128xf32>
      %281 = arith.mulf %280, %278 : vector<8x128xf32>
      %282 = arith.mulf %270, %251 : vector<8x128xf32>
      %283 = arith.addf %281, %282 : vector<8x128xf32>
      %284 = arith.truncf %283 : vector<8x128xf32> to vector<8x128xbf16>
      %285 = arith.index_cast %c5_i32 : i32 to index
      %c0_129 = arith.constant 0 : index
      %c0_130 = arith.constant 0 : index
      %286 = vector.load %arg7[%285, %c0_129, %c0_130] : memref<8x8x128xbf16, #tpu.memory_space<vmem>>, vector<1x8x128xbf16>
      %287 = vector.shape_cast %286 : vector<1x8x128xbf16> to vector<8x128xbf16>
      %288 = vector.shape_cast %284 : vector<8x128xbf16> to vector<1x8x128xbf16>
      tpu.vector_store %arg7[%285, %c0_129, %c0_130], %288 {strides = array<i32>} : memref<8x8x128xbf16, #tpu.memory_space<vmem>>, vector<1x8x128xbf16>,
      %c6_i32 = arith.constant 6 : i32
      %289 = arith.index_cast %c6_i32 : i32 to index
      %c0_131 = arith.constant 0 : index
      %c0_132 = arith.constant 0 : index
      %290 = vector.load %arg9[%289, %c0_131, %c0_132] : memref<8x8x384xf32, #tpu.memory_space<vmem>>, vector<1x8x384xf32>
      %291 = vector.shape_cast %290 : vector<1x8x384xf32> to vector<8x384xf32>
      %292 = arith.truncf %283 : vector<8x128xf32> to vector<8x128xbf16>
      %cst_133 = arith.constant dense<0.000000e+00> : vector<8x384xf32>
      %293 = tpu.matmul %292, %1, %cst_133 {dimension_numbers = #tpu.dot_dimension_numbers<[1], [0], [0], [1], [0, 0, 1, 1], [], []>} : vector<8x128xbf16>, vector<128x384xbf16>, vector<8x384xf32> -> vector<8x384xf32>
      %294 = vector.extract_strided_slice %291 {offsets = [0, 0], sizes = [8, 256], strides = [1, 1]} : vector<8x384xf32> to vector<8x256xf32>
      %295 = vector.extract_strided_slice %293 {offsets = [0, 0], sizes = [8, 256], strides = [1, 1]} : vector<8x384xf32> to vector<8x256xf32>
      %296 = arith.addf %294, %295 : vector<8x256xf32>
      %297 = arith.negf %296 : vector<8x256xf32>
      %298 = math.exp %297 : vector<8x256xf32>
      %cst_134 = arith.constant 1.000000e+00 : f32
      %299 = vector.broadcast %cst_134 : f32 to vector<8x256xf32>
      %300 = arith.addf %299, %298 : vector<8x256xf32>
      %301 = arith.divf %299, %300 : vector<8x256xf32>
      %302 = vector.extract_strided_slice %301 {offsets = [0, 128], sizes = [8, 128], strides = [1, 1]} : vector<8x256xf32> to vector<8x128xf32>
      %303 = vector.extract_strided_slice %291 {offsets = [0, 256], sizes = [8, 128], strides = [1, 1]} : vector<8x384xf32> to vector<8x128xf32>
      %304 = vector.extract_strided_slice %301 {offsets = [0, 0], sizes = [8, 128], strides = [1, 1]} : vector<8x256xf32> to vector<8x128xf32>
      %305 = vector.extract_strided_slice %293 {offsets = [0, 256], sizes = [8, 128], strides = [1, 1]} : vector<8x384xf32> to vector<8x128xf32>
      %306 = vector.broadcast %5 : vector<1x128xf32> to vector<8x128xf32>
      %307 = arith.addf %305, %306 : vector<8x128xf32>
      %308 = arith.mulf %304, %307 : vector<8x128xf32>
      %309 = arith.addf %303, %308 : vector<8x128xf32>
      %310 = math.tanh %309 : vector<8x128xf32>
      %cst_135 = arith.constant 1.000000e+00 : f32
      %311 = vector.broadcast %cst_135 : f32 to vector<8x128xf32>
      %312 = arith.subf %311, %302 : vector<8x128xf32>
      %313 = arith.mulf %312, %310 : vector<8x128xf32>
      %314 = arith.mulf %302, %283 : vector<8x128xf32>
      %315 = arith.addf %313, %314 : vector<8x128xf32>
      %316 = arith.truncf %315 : vector<8x128xf32> to vector<8x128xbf16>
      %317 = arith.index_cast %c6_i32 : i32 to index
      %c0_136 = arith.constant 0 : index
      %c0_137 = arith.constant 0 : index
      %318 = vector.load %arg7[%317, %c0_136, %c0_137] : memref<8x8x128xbf16, #tpu.memory_space<vmem>>, vector<1x8x128xbf16>
      %319 = vector.shape_cast %318 : vector<1x8x128xbf16> to vector<8x128xbf16>
      %320 = vector.shape_cast %316 : vector<8x128xbf16> to vector<1x8x128xbf16>
      tpu.vector_store %arg7[%317, %c0_136, %c0_137], %320 {strides = array<i32>} : memref<8x8x128xbf16, #tpu.memory_space<vmem>>, vector<1x8x128xbf16>,
      %c7_i32 = arith.constant 7 : i32
      %321 = arith.index_cast %c7_i32 : i32 to index
      %c0_138 = arith.constant 0 : index
      %c0_139 = arith.constant 0 : index
      %322 = vector.load %arg9[%321, %c0_138, %c0_139] : memref<8x8x384xf32, #tpu.memory_space<vmem>>, vector<1x8x384xf32>
      %323 = vector.shape_cast %322 : vector<1x8x384xf32> to vector<8x384xf32>
      %324 = arith.truncf %315 : vector<8x128xf32> to vector<8x128xbf16>
      %cst_140 = arith.constant dense<0.000000e+00> : vector<8x384xf32>
      %325 = tpu.matmul %324, %1, %cst_140 {dimension_numbers = #tpu.dot_dimension_numbers<[1], [0], [0], [1], [0, 0, 1, 1], [], []>} : vector<8x128xbf16>, vector<128x384xbf16>, vector<8x384xf32> -> vector<8x384xf32>
      %326 = vector.extract_strided_slice %323 {offsets = [0, 0], sizes = [8, 256], strides = [1, 1]} : vector<8x384xf32> to vector<8x256xf32>
      %327 = vector.extract_strided_slice %325 {offsets = [0, 0], sizes = [8, 256], strides = [1, 1]} : vector<8x384xf32> to vector<8x256xf32>
      %328 = arith.addf %326, %327 : vector<8x256xf32>
      %329 = arith.negf %328 : vector<8x256xf32>
      %330 = math.exp %329 : vector<8x256xf32>
      %cst_141 = arith.constant 1.000000e+00 : f32
      %331 = vector.broadcast %cst_141 : f32 to vector<8x256xf32>
      %332 = arith.addf %331, %330 : vector<8x256xf32>
      %333 = arith.divf %331, %332 : vector<8x256xf32>
      %334 = vector.extract_strided_slice %333 {offsets = [0, 128], sizes = [8, 128], strides = [1, 1]} : vector<8x256xf32> to vector<8x128xf32>
      %335 = vector.extract_strided_slice %323 {offsets = [0, 256], sizes = [8, 128], strides = [1, 1]} : vector<8x384xf32> to vector<8x128xf32>
      %336 = vector.extract_strided_slice %333 {offsets = [0, 0], sizes = [8, 128], strides = [1, 1]} : vector<8x256xf32> to vector<8x128xf32>
      %337 = vector.extract_strided_slice %325 {offsets = [0, 256], sizes = [8, 128], strides = [1, 1]} : vector<8x384xf32> to vector<8x128xf32>
      %338 = vector.broadcast %5 : vector<1x128xf32> to vector<8x128xf32>
      %339 = arith.addf %337, %338 : vector<8x128xf32>
      %340 = arith.mulf %336, %339 : vector<8x128xf32>
      %341 = arith.addf %335, %340 : vector<8x128xf32>
      %342 = math.tanh %341 : vector<8x128xf32>
      %cst_142 = arith.constant 1.000000e+00 : f32
      %343 = vector.broadcast %cst_142 : f32 to vector<8x128xf32>
      %344 = arith.subf %343, %334 : vector<8x128xf32>
      %345 = arith.mulf %344, %342 : vector<8x128xf32>
      %346 = arith.mulf %334, %315 : vector<8x128xf32>
      %347 = arith.addf %345, %346 : vector<8x128xf32>
      %348 = arith.truncf %347 : vector<8x128xf32> to vector<8x128xbf16>
      %349 = arith.index_cast %c7_i32 : i32 to index
      %c0_143 = arith.constant 0 : index
      %c0_144 = arith.constant 0 : index
      %350 = vector.load %arg7[%349, %c0_143, %c0_144] : memref<8x8x128xbf16, #tpu.memory_space<vmem>>, vector<1x8x128xbf16>
      %351 = vector.shape_cast %350 : vector<1x8x128xbf16> to vector<8x128xbf16>
      %352 = vector.shape_cast %348 : vector<8x128xbf16> to vector<1x8x128xbf16>
      tpu.vector_store %arg7[%349, %c0_143, %c0_144], %352 {strides = array<i32>} : memref<8x8x128xbf16, #tpu.memory_space<vmem>>, vector<1x8x128xbf16>,
      %c8_i32 = arith.constant 8 : i32
      %c0_145 = arith.constant 0 : index
      %c0_146 = arith.constant 0 : index
      %c0_147 = arith.constant 0 : index
      %353 = vector.load %arg8[%c0_145, %c0_146, %c0_147] : memref<2x8x128xf32, #tpu.memory_space<vmem>>, vector<1x8x128xf32>
      %354 = vector.shape_cast %353 : vector<1x8x128xf32> to vector<8x128xf32>
      %355 = vector.shape_cast %347 : vector<8x128xf32> to vector<1x8x128xf32>
      tpu.vector_store %arg8[%c0_145, %c0_146, %c0_147], %355 {strides = array<i32>} : memref<2x8x128xf32, #tpu.memory_space<vmem>>, vector<1x8x128xf32>,
    } else {
    }
    %c1_i32 = arith.constant 1 : i32
    %89 = arith.cmpi eq, %arg0, %c1_i32 : i32
    %90 = arith.extui %89 : i1 to i32
    %c0_i32_81 = arith.constant 0 : i32
    %91 = arith.cmpi ne, %90, %c0_i32_81 : i32
    scf.if %91 {
      %c0_i32_82 = arith.constant 0 : i32
      %92 = arith.cmpi eq, %arg1, %c0_i32_82 : i32
      %93 = arith.extui %92 : i1 to i32
      %c0_i32_83 = arith.constant 0 : i32
      %94 = arith.cmpi ne, %93, %c0_i32_83 : i32
      scf.if %94 {
        %cst_156 = arith.constant 0.000000e+00 : f32
        %364 = vector.broadcast %cst_156 : f32 to vector<8x128xf32>
        %c1_157 = arith.constant 1 : index
        %c0_158 = arith.constant 0 : index
        %c0_159 = arith.constant 0 : index
        %365 = vector.load %arg8[%c1_157, %c0_158, %c0_159] : memref<2x8x128xf32, #tpu.memory_space<vmem>>, vector<1x8x128xf32>
        %366 = vector.shape_cast %365 : vector<1x8x128xf32> to vector<8x128xf32>
        %367 = vector.shape_cast %364 : vector<8x128xf32> to vector<1x8x128xf32>
        tpu.vector_store %arg8[%c1_157, %c0_158, %c0_159], %367 {strides = array<i32>} : memref<2x8x128xf32, #tpu.memory_space<vmem>>, vector<1x8x128xf32>,
      } else {
      }
      %c1_84 = arith.constant 1 : index
      %c0_85 = arith.constant 0 : index
      %c0_86 = arith.constant 0 : index
      %95 = vector.load %arg8[%c1_84, %c0_85, %c0_86] : memref<2x8x128xf32, #tpu.memory_space<vmem>>, vector<1x8x128xf32>
      %96 = vector.shape_cast %95 : vector<1x8x128xf32> to vector<8x128xf32>
      %c0_i32_87 = arith.constant 0 : i32
      %c7_i32 = arith.constant 7 : i32
      %97 = arith.subi %c7_i32, %c0_i32_87 : i32
      %98 = arith.index_cast %97 : i32 to index
      %c0_88 = arith.constant 0 : index
      %c0_89 = arith.constant 0 : index
      %99 = vector.load %arg9[%98, %c0_88, %c0_89] : memref<8x8x384xf32, #tpu.memory_space<vmem>>, vector<1x8x384xf32>
      %100 = vector.shape_cast %99 : vector<1x8x384xf32> to vector<8x384xf32>
      %101 = arith.truncf %96 : vector<8x128xf32> to vector<8x128xbf16>
      %cst_90 = arith.constant dense<0.000000e+00> : vector<8x384xf32>
      %102 = tpu.matmul %101, %1, %cst_90 {dimension_numbers = #tpu.dot_dimension_numbers<[1], [0], [0], [1], [0, 0, 1, 1], [], []>} : vector<8x128xbf16>, vector<128x384xbf16>, vector<8x384xf32> -> vector<8x384xf32>
      %103 = vector.extract_strided_slice %100 {offsets = [0, 0], sizes = [8, 256], strides = [1, 1]} : vector<8x384xf32> to vector<8x256xf32>
      %104 = vector.extract_strided_slice %102 {offsets = [0, 0], sizes = [8, 256], strides = [1, 1]} : vector<8x384xf32> to vector<8x256xf32>
      %105 = arith.addf %103, %104 : vector<8x256xf32>
      %106 = arith.negf %105 : vector<8x256xf32>
      %107 = math.exp %106 : vector<8x256xf32>
      %cst_91 = arith.constant 1.000000e+00 : f32
      %108 = vector.broadcast %cst_91 : f32 to vector<8x256xf32>
      %109 = arith.addf %108, %107 : vector<8x256xf32>
      %110 = arith.divf %108, %109 : vector<8x256xf32>
      %111 = vector.extract_strided_slice %110 {offsets = [0, 128], sizes = [8, 128], strides = [1, 1]} : vector<8x256xf32> to vector<8x128xf32>
      %112 = vector.extract_strided_slice %100 {offsets = [0, 256], sizes = [8, 128], strides = [1, 1]} : vector<8x384xf32> to vector<8x128xf32>
      %113 = vector.extract_strided_slice %110 {offsets = [0, 0], sizes = [8, 128], strides = [1, 1]} : vector<8x256xf32> to vector<8x128xf32>
      %114 = vector.extract_strided_slice %102 {offsets = [0, 256], sizes = [8, 128], strides = [1, 1]} : vector<8x384xf32> to vector<8x128xf32>
      %115 = vector.broadcast %5 : vector<1x128xf32> to vector<8x128xf32>
      %116 = arith.addf %114, %115 : vector<8x128xf32>
      %117 = arith.mulf %113, %116 : vector<8x128xf32>
      %118 = arith.addf %112, %117 : vector<8x128xf32>
      %119 = math.tanh %118 : vector<8x128xf32>
      %cst_92 = arith.constant 1.000000e+00 : f32
      %120 = vector.broadcast %cst_92 : f32 to vector<8x128xf32>
      %121 = arith.subf %120, %111 : vector<8x128xf32>
      %122 = arith.mulf %121, %119 : vector<8x128xf32>
      %123 = arith.mulf %111, %96 : vector<8x128xf32>
      %124 = arith.addf %122, %123 : vector<8x128xf32>
      %125 = arith.truncf %124 : vector<8x128xf32> to vector<8x128xbf16>
      %126 = arith.index_cast %97 : i32 to index
      %c0_93 = arith.constant 0 : index
      %c0_94 = arith.constant 0 : index
      %127 = vector.load %arg7[%126, %c0_93, %c0_94] : memref<8x8x128xbf16, #tpu.memory_space<vmem>>, vector<1x8x128xbf16>
      %128 = vector.shape_cast %127 : vector<1x8x128xbf16> to vector<8x128xbf16>
      %129 = vector.shape_cast %125 : vector<8x128xbf16> to vector<1x8x128xbf16>
      tpu.vector_store %arg7[%126, %c0_93, %c0_94], %129 {strides = array<i32>} : memref<8x8x128xbf16, #tpu.memory_space<vmem>>, vector<1x8x128xbf16>,
      %c1_i32_95 = arith.constant 1 : i32
      %c7_i32_96 = arith.constant 7 : i32
      %130 = arith.subi %c7_i32_96, %c1_i32_95 : i32
      %131 = arith.index_cast %130 : i32 to index
      %c0_97 = arith.constant 0 : index
      %c0_98 = arith.constant 0 : index
      %132 = vector.load %arg9[%131, %c0_97, %c0_98] : memref<8x8x384xf32, #tpu.memory_space<vmem>>, vector<1x8x384xf32>
      %133 = vector.shape_cast %132 : vector<1x8x384xf32> to vector<8x384xf32>
      %134 = arith.truncf %124 : vector<8x128xf32> to vector<8x128xbf16>
      %cst_99 = arith.constant dense<0.000000e+00> : vector<8x384xf32>
      %135 = tpu.matmul %134, %1, %cst_99 {dimension_numbers = #tpu.dot_dimension_numbers<[1], [0], [0], [1], [0, 0, 1, 1], [], []>} : vector<8x128xbf16>, vector<128x384xbf16>, vector<8x384xf32> -> vector<8x384xf32>
      %136 = vector.extract_strided_slice %133 {offsets = [0, 0], sizes = [8, 256], strides = [1, 1]} : vector<8x384xf32> to vector<8x256xf32>
      %137 = vector.extract_strided_slice %135 {offsets = [0, 0], sizes = [8, 256], strides = [1, 1]} : vector<8x384xf32> to vector<8x256xf32>
      %138 = arith.addf %136, %137 : vector<8x256xf32>
      %139 = arith.negf %138 : vector<8x256xf32>
      %140 = math.exp %139 : vector<8x256xf32>
      %cst_100 = arith.constant 1.000000e+00 : f32
      %141 = vector.broadcast %cst_100 : f32 to vector<8x256xf32>
      %142 = arith.addf %141, %140 : vector<8x256xf32>
      %143 = arith.divf %141, %142 : vector<8x256xf32>
      %144 = vector.extract_strided_slice %143 {offsets = [0, 128], sizes = [8, 128], strides = [1, 1]} : vector<8x256xf32> to vector<8x128xf32>
      %145 = vector.extract_strided_slice %133 {offsets = [0, 256], sizes = [8, 128], strides = [1, 1]} : vector<8x384xf32> to vector<8x128xf32>
      %146 = vector.extract_strided_slice %143 {offsets = [0, 0], sizes = [8, 128], strides = [1, 1]} : vector<8x256xf32> to vector<8x128xf32>
      %147 = vector.extract_strided_slice %135 {offsets = [0, 256], sizes = [8, 128], strides = [1, 1]} : vector<8x384xf32> to vector<8x128xf32>
      %148 = vector.broadcast %5 : vector<1x128xf32> to vector<8x128xf32>
      %149 = arith.addf %147, %148 : vector<8x128xf32>
      %150 = arith.mulf %146, %149 : vector<8x128xf32>
      %151 = arith.addf %145, %150 : vector<8x128xf32>
      %152 = math.tanh %151 : vector<8x128xf32>
      %cst_101 = arith.constant 1.000000e+00 : f32
      %153 = vector.broadcast %cst_101 : f32 to vector<8x128xf32>
      %154 = arith.subf %153, %144 : vector<8x128xf32>
      %155 = arith.mulf %154, %152 : vector<8x128xf32>
      %156 = arith.mulf %144, %124 : vector<8x128xf32>
      %157 = arith.addf %155, %156 : vector<8x128xf32>
      %158 = arith.truncf %157 : vector<8x128xf32> to vector<8x128xbf16>
      %159 = arith.index_cast %130 : i32 to index
      %c0_102 = arith.constant 0 : index
      %c0_103 = arith.constant 0 : index
      %160 = vector.load %arg7[%159, %c0_102, %c0_103] : memref<8x8x128xbf16, #tpu.memory_space<vmem>>, vector<1x8x128xbf16>
      %161 = vector.shape_cast %160 : vector<1x8x128xbf16> to vector<8x128xbf16>
      %162 = vector.shape_cast %158 : vector<8x128xbf16> to vector<1x8x128xbf16>
      tpu.vector_store %arg7[%159, %c0_102, %c0_103], %162 {strides = array<i32>} : memref<8x8x128xbf16, #tpu.memory_space<vmem>>, vector<1x8x128xbf16>,
      %c2_i32 = arith.constant 2 : i32
      %c7_i32_104 = arith.constant 7 : i32
      %163 = arith.subi %c7_i32_104, %c2_i32 : i32
      %164 = arith.index_cast %163 : i32 to index
      %c0_105 = arith.constant 0 : index
      %c0_106 = arith.constant 0 : index
      %165 = vector.load %arg9[%164, %c0_105, %c0_106] : memref<8x8x384xf32, #tpu.memory_space<vmem>>, vector<1x8x384xf32>
      %166 = vector.shape_cast %165 : vector<1x8x384xf32> to vector<8x384xf32>
      %167 = arith.truncf %157 : vector<8x128xf32> to vector<8x128xbf16>
      %cst_107 = arith.constant dense<0.000000e+00> : vector<8x384xf32>
      %168 = tpu.matmul %167, %1, %cst_107 {dimension_numbers = #tpu.dot_dimension_numbers<[1], [0], [0], [1], [0, 0, 1, 1], [], []>} : vector<8x128xbf16>, vector<128x384xbf16>, vector<8x384xf32> -> vector<8x384xf32>
      %169 = vector.extract_strided_slice %166 {offsets = [0, 0], sizes = [8, 256], strides = [1, 1]} : vector<8x384xf32> to vector<8x256xf32>
      %170 = vector.extract_strided_slice %168 {offsets = [0, 0], sizes = [8, 256], strides = [1, 1]} : vector<8x384xf32> to vector<8x256xf32>
      %171 = arith.addf %169, %170 : vector<8x256xf32>
      %172 = arith.negf %171 : vector<8x256xf32>
      %173 = math.exp %172 : vector<8x256xf32>
      %cst_108 = arith.constant 1.000000e+00 : f32
      %174 = vector.broadcast %cst_108 : f32 to vector<8x256xf32>
      %175 = arith.addf %174, %173 : vector<8x256xf32>
      %176 = arith.divf %174, %175 : vector<8x256xf32>
      %177 = vector.extract_strided_slice %176 {offsets = [0, 128], sizes = [8, 128], strides = [1, 1]} : vector<8x256xf32> to vector<8x128xf32>
      %178 = vector.extract_strided_slice %166 {offsets = [0, 256], sizes = [8, 128], strides = [1, 1]} : vector<8x384xf32> to vector<8x128xf32>
      %179 = vector.extract_strided_slice %176 {offsets = [0, 0], sizes = [8, 128], strides = [1, 1]} : vector<8x256xf32> to vector<8x128xf32>
      %180 = vector.extract_strided_slice %168 {offsets = [0, 256], sizes = [8, 128], strides = [1, 1]} : vector<8x384xf32> to vector<8x128xf32>
      %181 = vector.broadcast %5 : vector<1x128xf32> to vector<8x128xf32>
      %182 = arith.addf %180, %181 : vector<8x128xf32>
      %183 = arith.mulf %179, %182 : vector<8x128xf32>
      %184 = arith.addf %178, %183 : vector<8x128xf32>
      %185 = math.tanh %184 : vector<8x128xf32>
      %cst_109 = arith.constant 1.000000e+00 : f32
      %186 = vector.broadcast %cst_109 : f32 to vector<8x128xf32>
      %187 = arith.subf %186, %177 : vector<8x128xf32>
      %188 = arith.mulf %187, %185 : vector<8x128xf32>
      %189 = arith.mulf %177, %157 : vector<8x128xf32>
      %190 = arith.addf %188, %189 : vector<8x128xf32>
      %191 = arith.truncf %190 : vector<8x128xf32> to vector<8x128xbf16>
      %192 = arith.index_cast %163 : i32 to index
      %c0_110 = arith.constant 0 : index
      %c0_111 = arith.constant 0 : index
      %193 = vector.load %arg7[%192, %c0_110, %c0_111] : memref<8x8x128xbf16, #tpu.memory_space<vmem>>, vector<1x8x128xbf16>
      %194 = vector.shape_cast %193 : vector<1x8x128xbf16> to vector<8x128xbf16>
      %195 = vector.shape_cast %191 : vector<8x128xbf16> to vector<1x8x128xbf16>
      tpu.vector_store %arg7[%192, %c0_110, %c0_111], %195 {strides = array<i32>} : memref<8x8x128xbf16, #tpu.memory_space<vmem>>, vector<1x8x128xbf16>,
      %c3_i32 = arith.constant 3 : i32
      %c7_i32_112 = arith.constant 7 : i32
      %196 = arith.subi %c7_i32_112, %c3_i32 : i32
      %197 = arith.index_cast %196 : i32 to index
      %c0_113 = arith.constant 0 : index
      %c0_114 = arith.constant 0 : index
      %198 = vector.load %arg9[%197, %c0_113, %c0_114] : memref<8x8x384xf32, #tpu.memory_space<vmem>>, vector<1x8x384xf32>
      %199 = vector.shape_cast %198 : vector<1x8x384xf32> to vector<8x384xf32>
      %200 = arith.truncf %190 : vector<8x128xf32> to vector<8x128xbf16>
      %cst_115 = arith.constant dense<0.000000e+00> : vector<8x384xf32>
      %201 = tpu.matmul %200, %1, %cst_115 {dimension_numbers = #tpu.dot_dimension_numbers<[1], [0], [0], [1], [0, 0, 1, 1], [], []>} : vector<8x128xbf16>, vector<128x384xbf16>, vector<8x384xf32> -> vector<8x384xf32>
      %202 = vector.extract_strided_slice %199 {offsets = [0, 0], sizes = [8, 256], strides = [1, 1]} : vector<8x384xf32> to vector<8x256xf32>
      %203 = vector.extract_strided_slice %201 {offsets = [0, 0], sizes = [8, 256], strides = [1, 1]} : vector<8x384xf32> to vector<8x256xf32>
      %204 = arith.addf %202, %203 : vector<8x256xf32>
      %205 = arith.negf %204 : vector<8x256xf32>
      %206 = math.exp %205 : vector<8x256xf32>
      %cst_116 = arith.constant 1.000000e+00 : f32
      %207 = vector.broadcast %cst_116 : f32 to vector<8x256xf32>
      %208 = arith.addf %207, %206 : vector<8x256xf32>
      %209 = arith.divf %207, %208 : vector<8x256xf32>
      %210 = vector.extract_strided_slice %209 {offsets = [0, 128], sizes = [8, 128], strides = [1, 1]} : vector<8x256xf32> to vector<8x128xf32>
      %211 = vector.extract_strided_slice %199 {offsets = [0, 256], sizes = [8, 128], strides = [1, 1]} : vector<8x384xf32> to vector<8x128xf32>
      %212 = vector.extract_strided_slice %209 {offsets = [0, 0], sizes = [8, 128], strides = [1, 1]} : vector<8x256xf32> to vector<8x128xf32>
      %213 = vector.extract_strided_slice %201 {offsets = [0, 256], sizes = [8, 128], strides = [1, 1]} : vector<8x384xf32> to vector<8x128xf32>
      %214 = vector.broadcast %5 : vector<1x128xf32> to vector<8x128xf32>
      %215 = arith.addf %213, %214 : vector<8x128xf32>
      %216 = arith.mulf %212, %215 : vector<8x128xf32>
      %217 = arith.addf %211, %216 : vector<8x128xf32>
      %218 = math.tanh %217 : vector<8x128xf32>
      %cst_117 = arith.constant 1.000000e+00 : f32
      %219 = vector.broadcast %cst_117 : f32 to vector<8x128xf32>
      %220 = arith.subf %219, %210 : vector<8x128xf32>
      %221 = arith.mulf %220, %218 : vector<8x128xf32>
      %222 = arith.mulf %210, %190 : vector<8x128xf32>
      %223 = arith.addf %221, %222 : vector<8x128xf32>
      %224 = arith.truncf %223 : vector<8x128xf32> to vector<8x128xbf16>
      %225 = arith.index_cast %196 : i32 to index
      %c0_118 = arith.constant 0 : index
      %c0_119 = arith.constant 0 : index
      %226 = vector.load %arg7[%225, %c0_118, %c0_119] : memref<8x8x128xbf16, #tpu.memory_space<vmem>>, vector<1x8x128xbf16>
      %227 = vector.shape_cast %226 : vector<1x8x128xbf16> to vector<8x128xbf16>
      %228 = vector.shape_cast %224 : vector<8x128xbf16> to vector<1x8x128xbf16>
      tpu.vector_store %arg7[%225, %c0_118, %c0_119], %228 {strides = array<i32>} : memref<8x8x128xbf16, #tpu.memory_space<vmem>>, vector<1x8x128xbf16>,
      %c4_i32 = arith.constant 4 : i32
      %c7_i32_120 = arith.constant 7 : i32
      %229 = arith.subi %c7_i32_120, %c4_i32 : i32
      %230 = arith.index_cast %229 : i32 to index
      %c0_121 = arith.constant 0 : index
      %c0_122 = arith.constant 0 : index
      %231 = vector.load %arg9[%230, %c0_121, %c0_122] : memref<8x8x384xf32, #tpu.memory_space<vmem>>, vector<1x8x384xf32>
      %232 = vector.shape_cast %231 : vector<1x8x384xf32> to vector<8x384xf32>
      %233 = arith.truncf %223 : vector<8x128xf32> to vector<8x128xbf16>
      %cst_123 = arith.constant dense<0.000000e+00> : vector<8x384xf32>
      %234 = tpu.matmul %233, %1, %cst_123 {dimension_numbers = #tpu.dot_dimension_numbers<[1], [0], [0], [1], [0, 0, 1, 1], [], []>} : vector<8x128xbf16>, vector<128x384xbf16>, vector<8x384xf32> -> vector<8x384xf32>
      %235 = vector.extract_strided_slice %232 {offsets = [0, 0], sizes = [8, 256], strides = [1, 1]} : vector<8x384xf32> to vector<8x256xf32>
      %236 = vector.extract_strided_slice %234 {offsets = [0, 0], sizes = [8, 256], strides = [1, 1]} : vector<8x384xf32> to vector<8x256xf32>
      %237 = arith.addf %235, %236 : vector<8x256xf32>
      %238 = arith.negf %237 : vector<8x256xf32>
      %239 = math.exp %238 : vector<8x256xf32>
      %cst_124 = arith.constant 1.000000e+00 : f32
      %240 = vector.broadcast %cst_124 : f32 to vector<8x256xf32>
      %241 = arith.addf %240, %239 : vector<8x256xf32>
      %242 = arith.divf %240, %241 : vector<8x256xf32>
      %243 = vector.extract_strided_slice %242 {offsets = [0, 128], sizes = [8, 128], strides = [1, 1]} : vector<8x256xf32> to vector<8x128xf32>
      %244 = vector.extract_strided_slice %232 {offsets = [0, 256], sizes = [8, 128], strides = [1, 1]} : vector<8x384xf32> to vector<8x128xf32>
      %245 = vector.extract_strided_slice %242 {offsets = [0, 0], sizes = [8, 128], strides = [1, 1]} : vector<8x256xf32> to vector<8x128xf32>
      %246 = vector.extract_strided_slice %234 {offsets = [0, 256], sizes = [8, 128], strides = [1, 1]} : vector<8x384xf32> to vector<8x128xf32>
      %247 = vector.broadcast %5 : vector<1x128xf32> to vector<8x128xf32>
      %248 = arith.addf %246, %247 : vector<8x128xf32>
      %249 = arith.mulf %245, %248 : vector<8x128xf32>
      %250 = arith.addf %244, %249 : vector<8x128xf32>
      %251 = math.tanh %250 : vector<8x128xf32>
      %cst_125 = arith.constant 1.000000e+00 : f32
      %252 = vector.broadcast %cst_125 : f32 to vector<8x128xf32>
      %253 = arith.subf %252, %243 : vector<8x128xf32>
      %254 = arith.mulf %253, %251 : vector<8x128xf32>
      %255 = arith.mulf %243, %223 : vector<8x128xf32>
      %256 = arith.addf %254, %255 : vector<8x128xf32>
      %257 = arith.truncf %256 : vector<8x128xf32> to vector<8x128xbf16>
      %258 = arith.index_cast %229 : i32 to index
      %c0_126 = arith.constant 0 : index
      %c0_127 = arith.constant 0 : index
      %259 = vector.load %arg7[%258, %c0_126, %c0_127] : memref<8x8x128xbf16, #tpu.memory_space<vmem>>, vector<1x8x128xbf16>
      %260 = vector.shape_cast %259 : vector<1x8x128xbf16> to vector<8x128xbf16>
      %261 = vector.shape_cast %257 : vector<8x128xbf16> to vector<1x8x128xbf16>
      tpu.vector_store %arg7[%258, %c0_126, %c0_127], %261 {strides = array<i32>} : memref<8x8x128xbf16, #tpu.memory_space<vmem>>, vector<1x8x128xbf16>,
      %c5_i32 = arith.constant 5 : i32
      %c7_i32_128 = arith.constant 7 : i32
      %262 = arith.subi %c7_i32_128, %c5_i32 : i32
      %263 = arith.index_cast %262 : i32 to index
      %c0_129 = arith.constant 0 : index
      %c0_130 = arith.constant 0 : index
      %264 = vector.load %arg9[%263, %c0_129, %c0_130] : memref<8x8x384xf32, #tpu.memory_space<vmem>>, vector<1x8x384xf32>
      %265 = vector.shape_cast %264 : vector<1x8x384xf32> to vector<8x384xf32>
      %266 = arith.truncf %256 : vector<8x128xf32> to vector<8x128xbf16>
      %cst_131 = arith.constant dense<0.000000e+00> : vector<8x384xf32>
      %267 = tpu.matmul %266, %1, %cst_131 {dimension_numbers = #tpu.dot_dimension_numbers<[1], [0], [0], [1], [0, 0, 1, 1], [], []>} : vector<8x128xbf16>, vector<128x384xbf16>, vector<8x384xf32> -> vector<8x384xf32>
      %268 = vector.extract_strided_slice %265 {offsets = [0, 0], sizes = [8, 256], strides = [1, 1]} : vector<8x384xf32> to vector<8x256xf32>
      %269 = vector.extract_strided_slice %267 {offsets = [0, 0], sizes = [8, 256], strides = [1, 1]} : vector<8x384xf32> to vector<8x256xf32>
      %270 = arith.addf %268, %269 : vector<8x256xf32>
      %271 = arith.negf %270 : vector<8x256xf32>
      %272 = math.exp %271 : vector<8x256xf32>
      %cst_132 = arith.constant 1.000000e+00 : f32
      %273 = vector.broadcast %cst_132 : f32 to vector<8x256xf32>
      %274 = arith.addf %273, %272 : vector<8x256xf32>
      %275 = arith.divf %273, %274 : vector<8x256xf32>
      %276 = vector.extract_strided_slice %275 {offsets = [0, 128], sizes = [8, 128], strides = [1, 1]} : vector<8x256xf32> to vector<8x128xf32>
      %277 = vector.extract_strided_slice %265 {offsets = [0, 256], sizes = [8, 128], strides = [1, 1]} : vector<8x384xf32> to vector<8x128xf32>
      %278 = vector.extract_strided_slice %275 {offsets = [0, 0], sizes = [8, 128], strides = [1, 1]} : vector<8x256xf32> to vector<8x128xf32>
      %279 = vector.extract_strided_slice %267 {offsets = [0, 256], sizes = [8, 128], strides = [1, 1]} : vector<8x384xf32> to vector<8x128xf32>
      %280 = vector.broadcast %5 : vector<1x128xf32> to vector<8x128xf32>
      %281 = arith.addf %279, %280 : vector<8x128xf32>
      %282 = arith.mulf %278, %281 : vector<8x128xf32>
      %283 = arith.addf %277, %282 : vector<8x128xf32>
      %284 = math.tanh %283 : vector<8x128xf32>
      %cst_133 = arith.constant 1.000000e+00 : f32
      %285 = vector.broadcast %cst_133 : f32 to vector<8x128xf32>
      %286 = arith.subf %285, %276 : vector<8x128xf32>
      %287 = arith.mulf %286, %284 : vector<8x128xf32>
      %288 = arith.mulf %276, %256 : vector<8x128xf32>
      %289 = arith.addf %287, %288 : vector<8x128xf32>
      %290 = arith.truncf %289 : vector<8x128xf32> to vector<8x128xbf16>
      %291 = arith.index_cast %262 : i32 to index
      %c0_134 = arith.constant 0 : index
      %c0_135 = arith.constant 0 : index
      %292 = vector.load %arg7[%291, %c0_134, %c0_135] : memref<8x8x128xbf16, #tpu.memory_space<vmem>>, vector<1x8x128xbf16>
      %293 = vector.shape_cast %292 : vector<1x8x128xbf16> to vector<8x128xbf16>
      %294 = vector.shape_cast %290 : vector<8x128xbf16> to vector<1x8x128xbf16>
      tpu.vector_store %arg7[%291, %c0_134, %c0_135], %294 {strides = array<i32>} : memref<8x8x128xbf16, #tpu.memory_space<vmem>>, vector<1x8x128xbf16>,
      %c6_i32 = arith.constant 6 : i32
      %c7_i32_136 = arith.constant 7 : i32
      %295 = arith.subi %c7_i32_136, %c6_i32 : i32
      %296 = arith.index_cast %295 : i32 to index
      %c0_137 = arith.constant 0 : index
      %c0_138 = arith.constant 0 : index
      %297 = vector.load %arg9[%296, %c0_137, %c0_138] : memref<8x8x384xf32, #tpu.memory_space<vmem>>, vector<1x8x384xf32>
      %298 = vector.shape_cast %297 : vector<1x8x384xf32> to vector<8x384xf32>
      %299 = arith.truncf %289 : vector<8x128xf32> to vector<8x128xbf16>
      %cst_139 = arith.constant dense<0.000000e+00> : vector<8x384xf32>
      %300 = tpu.matmul %299, %1, %cst_139 {dimension_numbers = #tpu.dot_dimension_numbers<[1], [0], [0], [1], [0, 0, 1, 1], [], []>} : vector<8x128xbf16>, vector<128x384xbf16>, vector<8x384xf32> -> vector<8x384xf32>
      %301 = vector.extract_strided_slice %298 {offsets = [0, 0], sizes = [8, 256], strides = [1, 1]} : vector<8x384xf32> to vector<8x256xf32>
      %302 = vector.extract_strided_slice %300 {offsets = [0, 0], sizes = [8, 256], strides = [1, 1]} : vector<8x384xf32> to vector<8x256xf32>
      %303 = arith.addf %301, %302 : vector<8x256xf32>
      %304 = arith.negf %303 : vector<8x256xf32>
      %305 = math.exp %304 : vector<8x256xf32>
      %cst_140 = arith.constant 1.000000e+00 : f32
      %306 = vector.broadcast %cst_140 : f32 to vector<8x256xf32>
      %307 = arith.addf %306, %305 : vector<8x256xf32>
      %308 = arith.divf %306, %307 : vector<8x256xf32>
      %309 = vector.extract_strided_slice %308 {offsets = [0, 128], sizes = [8, 128], strides = [1, 1]} : vector<8x256xf32> to vector<8x128xf32>
      %310 = vector.extract_strided_slice %298 {offsets = [0, 256], sizes = [8, 128], strides = [1, 1]} : vector<8x384xf32> to vector<8x128xf32>
      %311 = vector.extract_strided_slice %308 {offsets = [0, 0], sizes = [8, 128], strides = [1, 1]} : vector<8x256xf32> to vector<8x128xf32>
      %312 = vector.extract_strided_slice %300 {offsets = [0, 256], sizes = [8, 128], strides = [1, 1]} : vector<8x384xf32> to vector<8x128xf32>
      %313 = vector.broadcast %5 : vector<1x128xf32> to vector<8x128xf32>
      %314 = arith.addf %312, %313 : vector<8x128xf32>
      %315 = arith.mulf %311, %314 : vector<8x128xf32>
      %316 = arith.addf %310, %315 : vector<8x128xf32>
      %317 = math.tanh %316 : vector<8x128xf32>
      %cst_141 = arith.constant 1.000000e+00 : f32
      %318 = vector.broadcast %cst_141 : f32 to vector<8x128xf32>
      %319 = arith.subf %318, %309 : vector<8x128xf32>
      %320 = arith.mulf %319, %317 : vector<8x128xf32>
      %321 = arith.mulf %309, %289 : vector<8x128xf32>
      %322 = arith.addf %320, %321 : vector<8x128xf32>
      %323 = arith.truncf %322 : vector<8x128xf32> to vector<8x128xbf16>
      %324 = arith.index_cast %295 : i32 to index
      %c0_142 = arith.constant 0 : index
      %c0_143 = arith.constant 0 : index
      %325 = vector.load %arg7[%324, %c0_142, %c0_143] : memref<8x8x128xbf16, #tpu.memory_space<vmem>>, vector<1x8x128xbf16>
      %326 = vector.shape_cast %325 : vector<1x8x128xbf16> to vector<8x128xbf16>
      %327 = vector.shape_cast %323 : vector<8x128xbf16> to vector<1x8x128xbf16>
      tpu.vector_store %arg7[%324, %c0_142, %c0_143], %327 {strides = array<i32>} : memref<8x8x128xbf16, #tpu.memory_space<vmem>>, vector<1x8x128xbf16>,
      %c7_i32_144 = arith.constant 7 : i32
      %c7_i32_145 = arith.constant 7 : i32
      %328 = arith.subi %c7_i32_145, %c7_i32_144 : i32
      %329 = arith.index_cast %328 : i32 to index
      %c0_146 = arith.constant 0 : index
      %c0_147 = arith.constant 0 : index
      %330 = vector.load %arg9[%329, %c0_146, %c0_147] : memref<8x8x384xf32, #tpu.memory_space<vmem>>, vector<1x8x384xf32>
      %331 = vector.shape_cast %330 : vector<1x8x384xf32> to vector<8x384xf32>
      %332 = arith.truncf %322 : vector<8x128xf32> to vector<8x128xbf16>
      %cst_148 = arith.constant dense<0.000000e+00> : vector<8x384xf32>
      %333 = tpu.matmul %332, %1, %cst_148 {dimension_numbers = #tpu.dot_dimension_numbers<[1], [0], [0], [1], [0, 0, 1, 1], [], []>} : vector<8x128xbf16>, vector<128x384xbf16>, vector<8x384xf32> -> vector<8x384xf32>
      %334 = vector.extract_strided_slice %331 {offsets = [0, 0], sizes = [8, 256], strides = [1, 1]} : vector<8x384xf32> to vector<8x256xf32>
      %335 = vector.extract_strided_slice %333 {offsets = [0, 0], sizes = [8, 256], strides = [1, 1]} : vector<8x384xf32> to vector<8x256xf32>
      %336 = arith.addf %334, %335 : vector<8x256xf32>
      %337 = arith.negf %336 : vector<8x256xf32>
      %338 = math.exp %337 : vector<8x256xf32>
      %cst_149 = arith.constant 1.000000e+00 : f32
      %339 = vector.broadcast %cst_149 : f32 to vector<8x256xf32>
      %340 = arith.addf %339, %338 : vector<8x256xf32>
      %341 = arith.divf %339, %340 : vector<8x256xf32>
      %342 = vector.extract_strided_slice %341 {offsets = [0, 128], sizes = [8, 128], strides = [1, 1]} : vector<8x256xf32> to vector<8x128xf32>
      %343 = vector.extract_strided_slice %331 {offsets = [0, 256], sizes = [8, 128], strides = [1, 1]} : vector<8x384xf32> to vector<8x128xf32>
      %344 = vector.extract_strided_slice %341 {offsets = [0, 0], sizes = [8, 128], strides = [1, 1]} : vector<8x256xf32> to vector<8x128xf32>
      %345 = vector.extract_strided_slice %333 {offsets = [0, 256], sizes = [8, 128], strides = [1, 1]} : vector<8x384xf32> to vector<8x128xf32>
      %346 = vector.broadcast %5 : vector<1x128xf32> to vector<8x128xf32>
      %347 = arith.addf %345, %346 : vector<8x128xf32>
      %348 = arith.mulf %344, %347 : vector<8x128xf32>
      %349 = arith.addf %343, %348 : vector<8x128xf32>
      %350 = math.tanh %349 : vector<8x128xf32>
      %cst_150 = arith.constant 1.000000e+00 : f32
      %351 = vector.broadcast %cst_150 : f32 to vector<8x128xf32>
      %352 = arith.subf %351, %342 : vector<8x128xf32>
      %353 = arith.mulf %352, %350 : vector<8x128xf32>
      %354 = arith.mulf %342, %322 : vector<8x128xf32>
      %355 = arith.addf %353, %354 : vector<8x128xf32>
      %356 = arith.truncf %355 : vector<8x128xf32> to vector<8x128xbf16>
      %357 = arith.index_cast %328 : i32 to index
      %c0_151 = arith.constant 0 : index
      %c0_152 = arith.constant 0 : index
      %358 = vector.load %arg7[%357, %c0_151, %c0_152] : memref<8x8x128xbf16, #tpu.memory_space<vmem>>, vector<1x8x128xbf16>
      %359 = vector.shape_cast %358 : vector<1x8x128xbf16> to vector<8x128xbf16>
      %360 = vector.shape_cast %356 : vector<8x128xbf16> to vector<1x8x128xbf16>
      tpu.vector_store %arg7[%357, %c0_151, %c0_152], %360 {strides = array<i32>} : memref<8x8x128xbf16, #tpu.memory_space<vmem>>, vector<1x8x128xbf16>,
      %c8_i32 = arith.constant 8 : i32
      %c1_153 = arith.constant 1 : index
      %c0_154 = arith.constant 0 : index
      %c0_155 = arith.constant 0 : index
      %361 = vector.load %arg8[%c1_153, %c0_154, %c0_155] : memref<2x8x128xf32, #tpu.memory_space<vmem>>, vector<1x8x128xf32>
      %362 = vector.shape_cast %361 : vector<1x8x128xf32> to vector<8x128xf32>
      %363 = vector.shape_cast %355 : vector<8x128xf32> to vector<1x8x128xf32>
      tpu.vector_store %arg8[%c1_153, %c0_154, %c0_155], %363 {strides = array<i32>} : memref<2x8x128xf32, #tpu.memory_space<vmem>>, vector<1x8x128xf32>,
    } else {
    }
    return
  }
  func.func @transform_0(%arg0: i32, %arg1: i32) -> (i32, i32, i32) {
    %c2_i32 = arith.constant 2 : i32
    %0 = arith.muli %c2_i32, %arg1 : i32
    %c0_i32 = arith.constant 0 : i32
    %1 = arith.subi %c0_i32, %0 : i32
    %2 = arith.muli %arg0, %1 : i32
    %3 = arith.addi %arg1, %2 : i32
    %c0_i32_0 = arith.constant 0 : i32
    %c0_i32_1 = arith.constant 0 : i32
    %c0_i32_2 = arith.constant 0 : i32
    return %3, %c0_i32_0, %c0_i32_1 : i32, i32, i32
  }
  func.func @transform_1(%arg0: i32, %arg1: i32) -> (i32, i32, i32) {
    %c0_i32 = arith.constant 0 : i32
    %c0_i32_0 = arith.constant 0 : i32
    %c0_i32_1 = arith.constant 0 : i32
    return %arg0, %c0_i32, %c0_i32_0 : i32, i32, i32
  }
  func.func @transform_2(%arg0: i32, %arg1: i32) -> (i32, i32, i32) {
    %c0_i32 = arith.constant 0 : i32
    %c0_i32_0 = arith.constant 0 : i32
    %c0_i32_1 = arith.constant 0 : i32
    return %arg0, %c0_i32, %c0_i32_0 : i32, i32, i32
  }
  func.func @transform_3(%arg0: i32, %arg1: i32) -> (i32, i32, i32) {
    %c0_i32 = arith.constant 0 : i32
    %c0_i32_0 = arith.constant 0 : i32
    %c0_i32_1 = arith.constant 0 : i32
    return %arg0, %c0_i32, %c0_i32_0 : i32, i32, i32
  }
  func.func @transform_4(%arg0: i32, %arg1: i32) -> (i32, i32, i32) {
    %c0_i32 = arith.constant 0 : i32
    %c0_i32_0 = arith.constant 0 : i32
    %c0_i32_1 = arith.constant 0 : i32
    return %arg0, %c0_i32, %c0_i32_0 : i32, i32, i32
  }
  func.func @transform_5(%arg0: i32, %arg1: i32) -> (i32, i32, i32) {
    %c2_i32 = arith.constant 2 : i32
    %0 = arith.muli %c2_i32, %arg1 : i32
    %c0_i32 = arith.constant 0 : i32
    %1 = arith.subi %c0_i32, %0 : i32
    %2 = arith.muli %arg0, %1 : i32
    %3 = arith.addi %arg1, %2 : i32
    %c0_i32_0 = arith.constant 0 : i32
    %c0_i32_1 = arith.constant 0 : i32
    return %3, %c0_i32_0, %arg0 : i32, i32, i32
  }
}

module attributes {stable_mosaic.version = 11 : i64} {
  func.func @bigru_recurrence_kernel(%arg0: i32, %arg1: i32, %arg2: memref<8x8x256xbf16, #tpu.memory_space<vmem>>, %arg3: memref<1x512x384xbf16, #tpu.memory_space<vmem>>, %arg4: memref<1x128x384xbf16, #tpu.memory_space<vmem>>, %arg5: memref<1x1x384xf32, #tpu.memory_space<vmem>>, %arg6: memref<1x1x128xf32, #tpu.memory_space<vmem>>, %arg7: memref<4x8x128xbf16, #tpu.memory_space<vmem>>, %arg8: memref<2x8x128xf32, #tpu.memory_space<vmem>>, %arg9: memref<4x8x384xf32, #tpu.memory_space<vmem>>) attributes {dimension_semantics = [#tpu.dimension_semantics<parallel>, #tpu.dimension_semantics<arbitrary>], iteration_bounds = array<i64: 2, 1>, scalar_prefetch = 0 : i64, scratch_operands = 2 : i64, tpu.core_type = #tpu.core_type<tc>, window_params = [{transform_indices = @transform_0, window_bounds = array<i64: 8, 8, 256>}, {transform_indices = @transform_1, window_bounds = array<i64: 1, 512, 384>}, {transform_indices = @transform_2, window_bounds = array<i64: 1, 128, 384>}, {transform_indices = @transform_3, window_bounds = array<i64: 1, 1, 384>}, {transform_indices = @transform_4, window_bounds = array<i64: 1, 1, 128>}, {transform_indices = @transform_5, window_bounds = array<i64: 4, 8, 128>}]} {
    %c0 = arith.constant 0 : index
    %c0_0 = arith.constant 0 : index
    %c0_1 = arith.constant 0 : index
    %0 = vector.load %arg4[%c0, %c0_0, %c0_1] : memref<1x128x384xbf16, #tpu.memory_space<vmem>>, vector<1x128x384xbf16>
    %1 = vector.shape_cast %0 : vector<1x128x384xbf16> to vector<128x384xbf16>
    %c0_2 = arith.constant 0 : index
    %c0_3 = arith.constant 0 : index
    %c0_4 = arith.constant 0 : index
    %2 = vector.load %arg5[%c0_2, %c0_3, %c0_4] : memref<1x1x384xf32, #tpu.memory_space<vmem>>, vector<1x1x384xf32>
    %3 = vector.shape_cast %2 : vector<1x1x384xf32> to vector<1x384xf32>
    %c0_5 = arith.constant 0 : index
    %c0_6 = arith.constant 0 : index
    %c0_7 = arith.constant 0 : index
    %4 = vector.load %arg6[%c0_5, %c0_6, %c0_7] : memref<1x1x128xf32, #tpu.memory_space<vmem>>, vector<1x1x128xf32>
    %5 = vector.shape_cast %4 : vector<1x1x128xf32> to vector<1x128xf32>
    %c0_8 = arith.constant 0 : index
    %c0_9 = arith.constant 0 : index
    %c0_10 = arith.constant 0 : index
    %6 = vector.load %arg2[%c0_8, %c0_9, %c0_10] : memref<8x8x256xbf16, #tpu.memory_space<vmem>>, vector<1x8x256xbf16>
    %7 = vector.shape_cast %6 : vector<1x8x256xbf16> to vector<8x256xbf16>
    %c0_11 = arith.constant 0 : index
    %c0_12 = arith.constant 0 : index
    %c0_13 = arith.constant 0 : index
    %8 = vector.load %arg3[%c0_11, %c0_12, %c0_13] : memref<1x512x384xbf16, #tpu.memory_space<vmem>>, vector<1x256x384xbf16>
    %9 = vector.shape_cast %8 : vector<1x256x384xbf16> to vector<256x384xbf16>
    %cst = arith.constant dense<0.000000e+00> : vector<8x384xf32>
    %10 = tpu.matmul %7, %9, %cst {dimension_numbers = #tpu.dot_dimension_numbers<[1], [0], [0], [1], [0, 0, 1, 1], [], []>} : vector<8x256xbf16>, vector<256x384xbf16>, vector<8x384xf32> -> vector<8x384xf32>
    %11 = vector.broadcast %3 : vector<1x384xf32> to vector<8x384xf32>
    %12 = arith.addf %11, %10 : vector<8x384xf32>
    %c1 = arith.constant 1 : index
    %c0_14 = arith.constant 0 : index
    %c0_15 = arith.constant 0 : index
    %13 = vector.load %arg2[%c1, %c0_14, %c0_15] : memref<8x8x256xbf16, #tpu.memory_space<vmem>>, vector<1x8x256xbf16>
    %14 = vector.shape_cast %13 : vector<1x8x256xbf16> to vector<8x256xbf16>
    %c0_16 = arith.constant 0 : index
    %c256 = arith.constant 256 : index
    %c0_17 = arith.constant 0 : index
    %15 = vector.load %arg3[%c0_16, %c256, %c0_17] : memref<1x512x384xbf16, #tpu.memory_space<vmem>>, vector<1x256x384xbf16>
    %16 = vector.shape_cast %15 : vector<1x256x384xbf16> to vector<256x384xbf16>
    %cst_18 = arith.constant dense<0.000000e+00> : vector<8x384xf32>
    %17 = tpu.matmul %14, %16, %cst_18 {dimension_numbers = #tpu.dot_dimension_numbers<[1], [0], [0], [1], [0, 0, 1, 1], [], []>} : vector<8x256xbf16>, vector<256x384xbf16>, vector<8x384xf32> -> vector<8x384xf32>
    %18 = arith.addf %12, %17 : vector<8x384xf32>
    %c0_19 = arith.constant 0 : index
    %c0_20 = arith.constant 0 : index
    %c0_21 = arith.constant 0 : index
    %19 = vector.load %arg9[%c0_19, %c0_20, %c0_21] : memref<4x8x384xf32, #tpu.memory_space<vmem>>, vector<1x8x384xf32>
    %20 = vector.shape_cast %19 : vector<1x8x384xf32> to vector<8x384xf32>
    %21 = vector.shape_cast %18 : vector<8x384xf32> to vector<1x8x384xf32>
    tpu.vector_store %arg9[%c0_19, %c0_20, %c0_21], %21 {strides = array<i32>} : memref<4x8x384xf32, #tpu.memory_space<vmem>>, vector<1x8x384xf32>,
    %c2 = arith.constant 2 : index
    %c0_22 = arith.constant 0 : index
    %c0_23 = arith.constant 0 : index
    %22 = vector.load %arg2[%c2, %c0_22, %c0_23] : memref<8x8x256xbf16, #tpu.memory_space<vmem>>, vector<1x8x256xbf16>
    %23 = vector.shape_cast %22 : vector<1x8x256xbf16> to vector<8x256xbf16>
    %c0_24 = arith.constant 0 : index
    %c0_25 = arith.constant 0 : index
    %c0_26 = arith.constant 0 : index
    %24 = vector.load %arg3[%c0_24, %c0_25, %c0_26] : memref<1x512x384xbf16, #tpu.memory_space<vmem>>, vector<1x256x384xbf16>
    %25 = vector.shape_cast %24 : vector<1x256x384xbf16> to vector<256x384xbf16>
    %cst_27 = arith.constant dense<0.000000e+00> : vector<8x384xf32>
    %26 = tpu.matmul %23, %25, %cst_27 {dimension_numbers = #tpu.dot_dimension_numbers<[1], [0], [0], [1], [0, 0, 1, 1], [], []>} : vector<8x256xbf16>, vector<256x384xbf16>, vector<8x384xf32> -> vector<8x384xf32>
    %27 = vector.broadcast %3 : vector<1x384xf32> to vector<8x384xf32>
    %28 = arith.addf %27, %26 : vector<8x384xf32>
    %c3 = arith.constant 3 : index
    %c0_28 = arith.constant 0 : index
    %c0_29 = arith.constant 0 : index
    %29 = vector.load %arg2[%c3, %c0_28, %c0_29] : memref<8x8x256xbf16, #tpu.memory_space<vmem>>, vector<1x8x256xbf16>
    %30 = vector.shape_cast %29 : vector<1x8x256xbf16> to vector<8x256xbf16>
    %c0_30 = arith.constant 0 : index
    %c256_31 = arith.constant 256 : index
    %c0_32 = arith.constant 0 : index
    %31 = vector.load %arg3[%c0_30, %c256_31, %c0_32] : memref<1x512x384xbf16, #tpu.memory_space<vmem>>, vector<1x256x384xbf16>
    %32 = vector.shape_cast %31 : vector<1x256x384xbf16> to vector<256x384xbf16>
    %cst_33 = arith.constant dense<0.000000e+00> : vector<8x384xf32>
    %33 = tpu.matmul %30, %32, %cst_33 {dimension_numbers = #tpu.dot_dimension_numbers<[1], [0], [0], [1], [0, 0, 1, 1], [], []>} : vector<8x256xbf16>, vector<256x384xbf16>, vector<8x384xf32> -> vector<8x384xf32>
    %34 = arith.addf %28, %33 : vector<8x384xf32>
    %c1_34 = arith.constant 1 : index
    %c0_35 = arith.constant 0 : index
    %c0_36 = arith.constant 0 : index
    %35 = vector.load %arg9[%c1_34, %c0_35, %c0_36] : memref<4x8x384xf32, #tpu.memory_space<vmem>>, vector<1x8x384xf32>
    %36 = vector.shape_cast %35 : vector<1x8x384xf32> to vector<8x384xf32>
    %37 = vector.shape_cast %34 : vector<8x384xf32> to vector<1x8x384xf32>
    tpu.vector_store %arg9[%c1_34, %c0_35, %c0_36], %37 {strides = array<i32>} : memref<4x8x384xf32, #tpu.memory_space<vmem>>, vector<1x8x384xf32>,
    %c4 = arith.constant 4 : index
    %c0_37 = arith.constant 0 : index
    %c0_38 = arith.constant 0 : index
    %38 = vector.load %arg2[%c4, %c0_37, %c0_38] : memref<8x8x256xbf16, #tpu.memory_space<vmem>>, vector<1x8x256xbf16>
    %39 = vector.shape_cast %38 : vector<1x8x256xbf16> to vector<8x256xbf16>
    %c0_39 = arith.constant 0 : index
    %c0_40 = arith.constant 0 : index
    %c0_41 = arith.constant 0 : index
    %40 = vector.load %arg3[%c0_39, %c0_40, %c0_41] : memref<1x512x384xbf16, #tpu.memory_space<vmem>>, vector<1x256x384xbf16>
    %41 = vector.shape_cast %40 : vector<1x256x384xbf16> to vector<256x384xbf16>
    %cst_42 = arith.constant dense<0.000000e+00> : vector<8x384xf32>
    %42 = tpu.matmul %39, %41, %cst_42 {dimension_numbers = #tpu.dot_dimension_numbers<[1], [0], [0], [1], [0, 0, 1, 1], [], []>} : vector<8x256xbf16>, vector<256x384xbf16>, vector<8x384xf32> -> vector<8x384xf32>
    %43 = vector.broadcast %3 : vector<1x384xf32> to vector<8x384xf32>
    %44 = arith.addf %43, %42 : vector<8x384xf32>
    %c5 = arith.constant 5 : index
    %c0_43 = arith.constant 0 : index
    %c0_44 = arith.constant 0 : index
    %45 = vector.load %arg2[%c5, %c0_43, %c0_44] : memref<8x8x256xbf16, #tpu.memory_space<vmem>>, vector<1x8x256xbf16>
    %46 = vector.shape_cast %45 : vector<1x8x256xbf16> to vector<8x256xbf16>
    %c0_45 = arith.constant 0 : index
    %c256_46 = arith.constant 256 : index
    %c0_47 = arith.constant 0 : index
    %47 = vector.load %arg3[%c0_45, %c256_46, %c0_47] : memref<1x512x384xbf16, #tpu.memory_space<vmem>>, vector<1x256x384xbf16>
    %48 = vector.shape_cast %47 : vector<1x256x384xbf16> to vector<256x384xbf16>
    %cst_48 = arith.constant dense<0.000000e+00> : vector<8x384xf32>
    %49 = tpu.matmul %46, %48, %cst_48 {dimension_numbers = #tpu.dot_dimension_numbers<[1], [0], [0], [1], [0, 0, 1, 1], [], []>} : vector<8x256xbf16>, vector<256x384xbf16>, vector<8x384xf32> -> vector<8x384xf32>
    %50 = arith.addf %44, %49 : vector<8x384xf32>
    %c2_49 = arith.constant 2 : index
    %c0_50 = arith.constant 0 : index
    %c0_51 = arith.constant 0 : index
    %51 = vector.load %arg9[%c2_49, %c0_50, %c0_51] : memref<4x8x384xf32, #tpu.memory_space<vmem>>, vector<1x8x384xf32>
    %52 = vector.shape_cast %51 : vector<1x8x384xf32> to vector<8x384xf32>
    %53 = vector.shape_cast %50 : vector<8x384xf32> to vector<1x8x384xf32>
    tpu.vector_store %arg9[%c2_49, %c0_50, %c0_51], %53 {strides = array<i32>} : memref<4x8x384xf32, #tpu.memory_space<vmem>>, vector<1x8x384xf32>,
    %c6 = arith.constant 6 : index
    %c0_52 = arith.constant 0 : index
    %c0_53 = arith.constant 0 : index
    %54 = vector.load %arg2[%c6, %c0_52, %c0_53] : memref<8x8x256xbf16, #tpu.memory_space<vmem>>, vector<1x8x256xbf16>
    %55 = vector.shape_cast %54 : vector<1x8x256xbf16> to vector<8x256xbf16>
    %c0_54 = arith.constant 0 : index
    %c0_55 = arith.constant 0 : index
    %c0_56 = arith.constant 0 : index
    %56 = vector.load %arg3[%c0_54, %c0_55, %c0_56] : memref<1x512x384xbf16, #tpu.memory_space<vmem>>, vector<1x256x384xbf16>
    %57 = vector.shape_cast %56 : vector<1x256x384xbf16> to vector<256x384xbf16>
    %cst_57 = arith.constant dense<0.000000e+00> : vector<8x384xf32>
    %58 = tpu.matmul %55, %57, %cst_57 {dimension_numbers = #tpu.dot_dimension_numbers<[1], [0], [0], [1], [0, 0, 1, 1], [], []>} : vector<8x256xbf16>, vector<256x384xbf16>, vector<8x384xf32> -> vector<8x384xf32>
    %59 = vector.broadcast %3 : vector<1x384xf32> to vector<8x384xf32>
    %60 = arith.addf %59, %58 : vector<8x384xf32>
    %c7 = arith.constant 7 : index
    %c0_58 = arith.constant 0 : index
    %c0_59 = arith.constant 0 : index
    %61 = vector.load %arg2[%c7, %c0_58, %c0_59] : memref<8x8x256xbf16, #tpu.memory_space<vmem>>, vector<1x8x256xbf16>
    %62 = vector.shape_cast %61 : vector<1x8x256xbf16> to vector<8x256xbf16>
    %c0_60 = arith.constant 0 : index
    %c256_61 = arith.constant 256 : index
    %c0_62 = arith.constant 0 : index
    %63 = vector.load %arg3[%c0_60, %c256_61, %c0_62] : memref<1x512x384xbf16, #tpu.memory_space<vmem>>, vector<1x256x384xbf16>
    %64 = vector.shape_cast %63 : vector<1x256x384xbf16> to vector<256x384xbf16>
    %cst_63 = arith.constant dense<0.000000e+00> : vector<8x384xf32>
    %65 = tpu.matmul %62, %64, %cst_63 {dimension_numbers = #tpu.dot_dimension_numbers<[1], [0], [0], [1], [0, 0, 1, 1], [], []>} : vector<8x256xbf16>, vector<256x384xbf16>, vector<8x384xf32> -> vector<8x384xf32>
    %66 = arith.addf %60, %65 : vector<8x384xf32>
    %c3_64 = arith.constant 3 : index
    %c0_65 = arith.constant 0 : index
    %c0_66 = arith.constant 0 : index
    %67 = vector.load %arg9[%c3_64, %c0_65, %c0_66] : memref<4x8x384xf32, #tpu.memory_space<vmem>>, vector<1x8x384xf32>
    %68 = vector.shape_cast %67 : vector<1x8x384xf32> to vector<8x384xf32>
    %69 = vector.shape_cast %66 : vector<8x384xf32> to vector<1x8x384xf32>
    tpu.vector_store %arg9[%c3_64, %c0_65, %c0_66], %69 {strides = array<i32>} : memref<4x8x384xf32, #tpu.memory_space<vmem>>, vector<1x8x384xf32>,
    %c0_i32 = arith.constant 0 : i32
    %70 = arith.cmpi eq, %arg0, %c0_i32 : i32
    %71 = arith.extui %70 : i1 to i32
    %c0_i32_67 = arith.constant 0 : i32
    %72 = arith.cmpi ne, %71, %c0_i32_67 : i32
    scf.if %72 {
      %c0_i32_69 = arith.constant 0 : i32
      %76 = arith.cmpi eq, %arg1, %c0_i32_69 : i32
      %77 = arith.extui %76 : i1 to i32
      %c0_i32_70 = arith.constant 0 : i32
      %78 = arith.cmpi ne, %77, %c0_i32_70 : i32
      scf.if %78 {
        %cst_107 = arith.constant 0.000000e+00 : f32
        %212 = vector.broadcast %cst_107 : f32 to vector<8x128xf32>
        %c0_108 = arith.constant 0 : index
        %c0_109 = arith.constant 0 : index
        %c0_110 = arith.constant 0 : index
        %213 = vector.load %arg8[%c0_108, %c0_109, %c0_110] : memref<2x8x128xf32, #tpu.memory_space<vmem>>, vector<1x8x128xf32>
        %214 = vector.shape_cast %213 : vector<1x8x128xf32> to vector<8x128xf32>
        %215 = vector.shape_cast %212 : vector<8x128xf32> to vector<1x8x128xf32>
        tpu.vector_store %arg8[%c0_108, %c0_109, %c0_110], %215 {strides = array<i32>} : memref<2x8x128xf32, #tpu.memory_space<vmem>>, vector<1x8x128xf32>,
      } else {
      }
      %c0_71 = arith.constant 0 : index
      %c0_72 = arith.constant 0 : index
      %c0_73 = arith.constant 0 : index
      %79 = vector.load %arg8[%c0_71, %c0_72, %c0_73] : memref<2x8x128xf32, #tpu.memory_space<vmem>>, vector<1x8x128xf32>
      %80 = vector.shape_cast %79 : vector<1x8x128xf32> to vector<8x128xf32>
      %c0_i32_74 = arith.constant 0 : i32
      %81 = arith.index_cast %c0_i32_74 : i32 to index
      %c0_75 = arith.constant 0 : index
      %c0_76 = arith.constant 0 : index
      %82 = vector.load %arg9[%81, %c0_75, %c0_76] : memref<4x8x384xf32, #tpu.memory_space<vmem>>, vector<1x8x384xf32>
      %83 = vector.shape_cast %82 : vector<1x8x384xf32> to vector<8x384xf32>
      %84 = arith.truncf %80 : vector<8x128xf32> to vector<8x128xbf16>
      %cst_77 = arith.constant dense<0.000000e+00> : vector<8x384xf32>
      %85 = tpu.matmul %84, %1, %cst_77 {dimension_numbers = #tpu.dot_dimension_numbers<[1], [0], [0], [1], [0, 0, 1, 1], [], []>} : vector<8x128xbf16>, vector<128x384xbf16>, vector<8x384xf32> -> vector<8x384xf32>
      %86 = vector.extract_strided_slice %83 {offsets = [0, 0], sizes = [8, 256], strides = [1, 1]} : vector<8x384xf32> to vector<8x256xf32>
      %87 = vector.extract_strided_slice %85 {offsets = [0, 0], sizes = [8, 256], strides = [1, 1]} : vector<8x384xf32> to vector<8x256xf32>
      %88 = arith.addf %86, %87 : vector<8x256xf32>
      %89 = arith.negf %88 : vector<8x256xf32>
      %90 = math.exp %89 : vector<8x256xf32>
      %cst_78 = arith.constant 1.000000e+00 : f32
      %91 = vector.broadcast %cst_78 : f32 to vector<8x256xf32>
      %92 = arith.addf %91, %90 : vector<8x256xf32>
      %93 = arith.divf %91, %92 : vector<8x256xf32>
      %94 = vector.extract_strided_slice %93 {offsets = [0, 128], sizes = [8, 128], strides = [1, 1]} : vector<8x256xf32> to vector<8x128xf32>
      %95 = vector.extract_strided_slice %83 {offsets = [0, 256], sizes = [8, 128], strides = [1, 1]} : vector<8x384xf32> to vector<8x128xf32>
      %96 = vector.extract_strided_slice %93 {offsets = [0, 0], sizes = [8, 128], strides = [1, 1]} : vector<8x256xf32> to vector<8x128xf32>
      %97 = vector.extract_strided_slice %85 {offsets = [0, 256], sizes = [8, 128], strides = [1, 1]} : vector<8x384xf32> to vector<8x128xf32>
      %98 = vector.broadcast %5 : vector<1x128xf32> to vector<8x128xf32>
      %99 = arith.addf %97, %98 : vector<8x128xf32>
      %100 = arith.mulf %96, %99 : vector<8x128xf32>
      %101 = arith.addf %95, %100 : vector<8x128xf32>
      %102 = math.tanh %101 : vector<8x128xf32>
      %cst_79 = arith.constant 1.000000e+00 : f32
      %103 = vector.broadcast %cst_79 : f32 to vector<8x128xf32>
      %104 = arith.subf %103, %94 : vector<8x128xf32>
      %105 = arith.mulf %104, %102 : vector<8x128xf32>
      %106 = arith.mulf %94, %80 : vector<8x128xf32>
      %107 = arith.addf %105, %106 : vector<8x128xf32>
      %108 = arith.truncf %107 : vector<8x128xf32> to vector<8x128xbf16>
      %109 = arith.index_cast %c0_i32_74 : i32 to index
      %c0_80 = arith.constant 0 : index
      %c0_81 = arith.constant 0 : index
      %110 = vector.load %arg7[%109, %c0_80, %c0_81] : memref<4x8x128xbf16, #tpu.memory_space<vmem>>, vector<1x8x128xbf16>
      %111 = vector.shape_cast %110 : vector<1x8x128xbf16> to vector<8x128xbf16>
      %112 = vector.shape_cast %108 : vector<8x128xbf16> to vector<1x8x128xbf16>
      tpu.vector_store %arg7[%109, %c0_80, %c0_81], %112 {strides = array<i32>} : memref<4x8x128xbf16, #tpu.memory_space<vmem>>, vector<1x8x128xbf16>,
      %c1_i32_82 = arith.constant 1 : i32
      %113 = arith.index_cast %c1_i32_82 : i32 to index
      %c0_83 = arith.constant 0 : index
      %c0_84 = arith.constant 0 : index
      %114 = vector.load %arg9[%113, %c0_83, %c0_84] : memref<4x8x384xf32, #tpu.memory_space<vmem>>, vector<1x8x384xf32>
      %115 = vector.shape_cast %114 : vector<1x8x384xf32> to vector<8x384xf32>
      %116 = arith.truncf %107 : vector<8x128xf32> to vector<8x128xbf16>
      %cst_85 = arith.constant dense<0.000000e+00> : vector<8x384xf32>
      %117 = tpu.matmul %116, %1, %cst_85 {dimension_numbers = #tpu.dot_dimension_numbers<[1], [0], [0], [1], [0, 0, 1, 1], [], []>} : vector<8x128xbf16>, vector<128x384xbf16>, vector<8x384xf32> -> vector<8x384xf32>
      %118 = vector.extract_strided_slice %115 {offsets = [0, 0], sizes = [8, 256], strides = [1, 1]} : vector<8x384xf32> to vector<8x256xf32>
      %119 = vector.extract_strided_slice %117 {offsets = [0, 0], sizes = [8, 256], strides = [1, 1]} : vector<8x384xf32> to vector<8x256xf32>
      %120 = arith.addf %118, %119 : vector<8x256xf32>
      %121 = arith.negf %120 : vector<8x256xf32>
      %122 = math.exp %121 : vector<8x256xf32>
      %cst_86 = arith.constant 1.000000e+00 : f32
      %123 = vector.broadcast %cst_86 : f32 to vector<8x256xf32>
      %124 = arith.addf %123, %122 : vector<8x256xf32>
      %125 = arith.divf %123, %124 : vector<8x256xf32>
      %126 = vector.extract_strided_slice %125 {offsets = [0, 128], sizes = [8, 128], strides = [1, 1]} : vector<8x256xf32> to vector<8x128xf32>
      %127 = vector.extract_strided_slice %115 {offsets = [0, 256], sizes = [8, 128], strides = [1, 1]} : vector<8x384xf32> to vector<8x128xf32>
      %128 = vector.extract_strided_slice %125 {offsets = [0, 0], sizes = [8, 128], strides = [1, 1]} : vector<8x256xf32> to vector<8x128xf32>
      %129 = vector.extract_strided_slice %117 {offsets = [0, 256], sizes = [8, 128], strides = [1, 1]} : vector<8x384xf32> to vector<8x128xf32>
      %130 = vector.broadcast %5 : vector<1x128xf32> to vector<8x128xf32>
      %131 = arith.addf %129, %130 : vector<8x128xf32>
      %132 = arith.mulf %128, %131 : vector<8x128xf32>
      %133 = arith.addf %127, %132 : vector<8x128xf32>
      %134 = math.tanh %133 : vector<8x128xf32>
      %cst_87 = arith.constant 1.000000e+00 : f32
      %135 = vector.broadcast %cst_87 : f32 to vector<8x128xf32>
      %136 = arith.subf %135, %126 : vector<8x128xf32>
      %137 = arith.mulf %136, %134 : vector<8x128xf32>
      %138 = arith.mulf %126, %107 : vector<8x128xf32>
      %139 = arith.addf %137, %138 : vector<8x128xf32>
      %140 = arith.truncf %139 : vector<8x128xf32> to vector<8x128xbf16>
      %141 = arith.index_cast %c1_i32_82 : i32 to index
      %c0_88 = arith.constant 0 : index
      %c0_89 = arith.constant 0 : index
      %142 = vector.load %arg7[%141, %c0_88, %c0_89] : memref<4x8x128xbf16, #tpu.memory_space<vmem>>, vector<1x8x128xbf16>
      %143 = vector.shape_cast %142 : vector<1x8x128xbf16> to vector<8x128xbf16>
      %144 = vector.shape_cast %140 : vector<8x128xbf16> to vector<1x8x128xbf16>
      tpu.vector_store %arg7[%141, %c0_88, %c0_89], %144 {strides = array<i32>} : memref<4x8x128xbf16, #tpu.memory_space<vmem>>, vector<1x8x128xbf16>,
      %c2_i32 = arith.constant 2 : i32
      %145 = arith.index_cast %c2_i32 : i32 to index
      %c0_90 = arith.constant 0 : index
      %c0_91 = arith.constant 0 : index
      %146 = vector.load %arg9[%145, %c0_90, %c0_91] : memref<4x8x384xf32, #tpu.memory_space<vmem>>, vector<1x8x384xf32>
      %147 = vector.shape_cast %146 : vector<1x8x384xf32> to vector<8x384xf32>
      %148 = arith.truncf %139 : vector<8x128xf32> to vector<8x128xbf16>
      %cst_92 = arith.constant dense<0.000000e+00> : vector<8x384xf32>
      %149 = tpu.matmul %148, %1, %cst_92 {dimension_numbers = #tpu.dot_dimension_numbers<[1], [0], [0], [1], [0, 0, 1, 1], [], []>} : vector<8x128xbf16>, vector<128x384xbf16>, vector<8x384xf32> -> vector<8x384xf32>
      %150 = vector.extract_strided_slice %147 {offsets = [0, 0], sizes = [8, 256], strides = [1, 1]} : vector<8x384xf32> to vector<8x256xf32>
      %151 = vector.extract_strided_slice %149 {offsets = [0, 0], sizes = [8, 256], strides = [1, 1]} : vector<8x384xf32> to vector<8x256xf32>
      %152 = arith.addf %150, %151 : vector<8x256xf32>
      %153 = arith.negf %152 : vector<8x256xf32>
      %154 = math.exp %153 : vector<8x256xf32>
      %cst_93 = arith.constant 1.000000e+00 : f32
      %155 = vector.broadcast %cst_93 : f32 to vector<8x256xf32>
      %156 = arith.addf %155, %154 : vector<8x256xf32>
      %157 = arith.divf %155, %156 : vector<8x256xf32>
      %158 = vector.extract_strided_slice %157 {offsets = [0, 128], sizes = [8, 128], strides = [1, 1]} : vector<8x256xf32> to vector<8x128xf32>
      %159 = vector.extract_strided_slice %147 {offsets = [0, 256], sizes = [8, 128], strides = [1, 1]} : vector<8x384xf32> to vector<8x128xf32>
      %160 = vector.extract_strided_slice %157 {offsets = [0, 0], sizes = [8, 128], strides = [1, 1]} : vector<8x256xf32> to vector<8x128xf32>
      %161 = vector.extract_strided_slice %149 {offsets = [0, 256], sizes = [8, 128], strides = [1, 1]} : vector<8x384xf32> to vector<8x128xf32>
      %162 = vector.broadcast %5 : vector<1x128xf32> to vector<8x128xf32>
      %163 = arith.addf %161, %162 : vector<8x128xf32>
      %164 = arith.mulf %160, %163 : vector<8x128xf32>
      %165 = arith.addf %159, %164 : vector<8x128xf32>
      %166 = math.tanh %165 : vector<8x128xf32>
      %cst_94 = arith.constant 1.000000e+00 : f32
      %167 = vector.broadcast %cst_94 : f32 to vector<8x128xf32>
      %168 = arith.subf %167, %158 : vector<8x128xf32>
      %169 = arith.mulf %168, %166 : vector<8x128xf32>
      %170 = arith.mulf %158, %139 : vector<8x128xf32>
      %171 = arith.addf %169, %170 : vector<8x128xf32>
      %172 = arith.truncf %171 : vector<8x128xf32> to vector<8x128xbf16>
      %173 = arith.index_cast %c2_i32 : i32 to index
      %c0_95 = arith.constant 0 : index
      %c0_96 = arith.constant 0 : index
      %174 = vector.load %arg7[%173, %c0_95, %c0_96] : memref<4x8x128xbf16, #tpu.memory_space<vmem>>, vector<1x8x128xbf16>
      %175 = vector.shape_cast %174 : vector<1x8x128xbf16> to vector<8x128xbf16>
      %176 = vector.shape_cast %172 : vector<8x128xbf16> to vector<1x8x128xbf16>
      tpu.vector_store %arg7[%173, %c0_95, %c0_96], %176 {strides = array<i32>} : memref<4x8x128xbf16, #tpu.memory_space<vmem>>, vector<1x8x128xbf16>,
      %c3_i32 = arith.constant 3 : i32
      %177 = arith.index_cast %c3_i32 : i32 to index
      %c0_97 = arith.constant 0 : index
      %c0_98 = arith.constant 0 : index
      %178 = vector.load %arg9[%177, %c0_97, %c0_98] : memref<4x8x384xf32, #tpu.memory_space<vmem>>, vector<1x8x384xf32>
      %179 = vector.shape_cast %178 : vector<1x8x384xf32> to vector<8x384xf32>
      %180 = arith.truncf %171 : vector<8x128xf32> to vector<8x128xbf16>
      %cst_99 = arith.constant dense<0.000000e+00> : vector<8x384xf32>
      %181 = tpu.matmul %180, %1, %cst_99 {dimension_numbers = #tpu.dot_dimension_numbers<[1], [0], [0], [1], [0, 0, 1, 1], [], []>} : vector<8x128xbf16>, vector<128x384xbf16>, vector<8x384xf32> -> vector<8x384xf32>
      %182 = vector.extract_strided_slice %179 {offsets = [0, 0], sizes = [8, 256], strides = [1, 1]} : vector<8x384xf32> to vector<8x256xf32>
      %183 = vector.extract_strided_slice %181 {offsets = [0, 0], sizes = [8, 256], strides = [1, 1]} : vector<8x384xf32> to vector<8x256xf32>
      %184 = arith.addf %182, %183 : vector<8x256xf32>
      %185 = arith.negf %184 : vector<8x256xf32>
      %186 = math.exp %185 : vector<8x256xf32>
      %cst_100 = arith.constant 1.000000e+00 : f32
      %187 = vector.broadcast %cst_100 : f32 to vector<8x256xf32>
      %188 = arith.addf %187, %186 : vector<8x256xf32>
      %189 = arith.divf %187, %188 : vector<8x256xf32>
      %190 = vector.extract_strided_slice %189 {offsets = [0, 128], sizes = [8, 128], strides = [1, 1]} : vector<8x256xf32> to vector<8x128xf32>
      %191 = vector.extract_strided_slice %179 {offsets = [0, 256], sizes = [8, 128], strides = [1, 1]} : vector<8x384xf32> to vector<8x128xf32>
      %192 = vector.extract_strided_slice %189 {offsets = [0, 0], sizes = [8, 128], strides = [1, 1]} : vector<8x256xf32> to vector<8x128xf32>
      %193 = vector.extract_strided_slice %181 {offsets = [0, 256], sizes = [8, 128], strides = [1, 1]} : vector<8x384xf32> to vector<8x128xf32>
      %194 = vector.broadcast %5 : vector<1x128xf32> to vector<8x128xf32>
      %195 = arith.addf %193, %194 : vector<8x128xf32>
      %196 = arith.mulf %192, %195 : vector<8x128xf32>
      %197 = arith.addf %191, %196 : vector<8x128xf32>
      %198 = math.tanh %197 : vector<8x128xf32>
      %cst_101 = arith.constant 1.000000e+00 : f32
      %199 = vector.broadcast %cst_101 : f32 to vector<8x128xf32>
      %200 = arith.subf %199, %190 : vector<8x128xf32>
      %201 = arith.mulf %200, %198 : vector<8x128xf32>
      %202 = arith.mulf %190, %171 : vector<8x128xf32>
      %203 = arith.addf %201, %202 : vector<8x128xf32>
      %204 = arith.truncf %203 : vector<8x128xf32> to vector<8x128xbf16>
      %205 = arith.index_cast %c3_i32 : i32 to index
      %c0_102 = arith.constant 0 : index
      %c0_103 = arith.constant 0 : index
      %206 = vector.load %arg7[%205, %c0_102, %c0_103] : memref<4x8x128xbf16, #tpu.memory_space<vmem>>, vector<1x8x128xbf16>
      %207 = vector.shape_cast %206 : vector<1x8x128xbf16> to vector<8x128xbf16>
      %208 = vector.shape_cast %204 : vector<8x128xbf16> to vector<1x8x128xbf16>
      tpu.vector_store %arg7[%205, %c0_102, %c0_103], %208 {strides = array<i32>} : memref<4x8x128xbf16, #tpu.memory_space<vmem>>, vector<1x8x128xbf16>,
      %c4_i32 = arith.constant 4 : i32
      %c0_104 = arith.constant 0 : index
      %c0_105 = arith.constant 0 : index
      %c0_106 = arith.constant 0 : index
      %209 = vector.load %arg8[%c0_104, %c0_105, %c0_106] : memref<2x8x128xf32, #tpu.memory_space<vmem>>, vector<1x8x128xf32>
      %210 = vector.shape_cast %209 : vector<1x8x128xf32> to vector<8x128xf32>
      %211 = vector.shape_cast %203 : vector<8x128xf32> to vector<1x8x128xf32>
      tpu.vector_store %arg8[%c0_104, %c0_105, %c0_106], %211 {strides = array<i32>} : memref<2x8x128xf32, #tpu.memory_space<vmem>>, vector<1x8x128xf32>,
    } else {
    }
    %c1_i32 = arith.constant 1 : i32
    %73 = arith.cmpi eq, %arg0, %c1_i32 : i32
    %74 = arith.extui %73 : i1 to i32
    %c0_i32_68 = arith.constant 0 : i32
    %75 = arith.cmpi ne, %74, %c0_i32_68 : i32
    scf.if %75 {
      %c0_i32_69 = arith.constant 0 : i32
      %76 = arith.cmpi eq, %arg1, %c0_i32_69 : i32
      %77 = arith.extui %76 : i1 to i32
      %c0_i32_70 = arith.constant 0 : i32
      %78 = arith.cmpi ne, %77, %c0_i32_70 : i32
      scf.if %78 {
        %cst_111 = arith.constant 0.000000e+00 : f32
        %216 = vector.broadcast %cst_111 : f32 to vector<8x128xf32>
        %c1_112 = arith.constant 1 : index
        %c0_113 = arith.constant 0 : index
        %c0_114 = arith.constant 0 : index
        %217 = vector.load %arg8[%c1_112, %c0_113, %c0_114] : memref<2x8x128xf32, #tpu.memory_space<vmem>>, vector<1x8x128xf32>
        %218 = vector.shape_cast %217 : vector<1x8x128xf32> to vector<8x128xf32>
        %219 = vector.shape_cast %216 : vector<8x128xf32> to vector<1x8x128xf32>
        tpu.vector_store %arg8[%c1_112, %c0_113, %c0_114], %219 {strides = array<i32>} : memref<2x8x128xf32, #tpu.memory_space<vmem>>, vector<1x8x128xf32>,
      } else {
      }
      %c1_71 = arith.constant 1 : index
      %c0_72 = arith.constant 0 : index
      %c0_73 = arith.constant 0 : index
      %79 = vector.load %arg8[%c1_71, %c0_72, %c0_73] : memref<2x8x128xf32, #tpu.memory_space<vmem>>, vector<1x8x128xf32>
      %80 = vector.shape_cast %79 : vector<1x8x128xf32> to vector<8x128xf32>
      %c0_i32_74 = arith.constant 0 : i32
      %c3_i32 = arith.constant 3 : i32
      %81 = arith.subi %c3_i32, %c0_i32_74 : i32
      %82 = arith.index_cast %81 : i32 to index
      %c0_75 = arith.constant 0 : index
      %c0_76 = arith.constant 0 : index
      %83 = vector.load %arg9[%82, %c0_75, %c0_76] : memref<4x8x384xf32, #tpu.memory_space<vmem>>, vector<1x8x384xf32>
      %84 = vector.shape_cast %83 : vector<1x8x384xf32> to vector<8x384xf32>
      %85 = arith.truncf %80 : vector<8x128xf32> to vector<8x128xbf16>
      %cst_77 = arith.constant dense<0.000000e+00> : vector<8x384xf32>
      %86 = tpu.matmul %85, %1, %cst_77 {dimension_numbers = #tpu.dot_dimension_numbers<[1], [0], [0], [1], [0, 0, 1, 1], [], []>} : vector<8x128xbf16>, vector<128x384xbf16>, vector<8x384xf32> -> vector<8x384xf32>
      %87 = vector.extract_strided_slice %84 {offsets = [0, 0], sizes = [8, 256], strides = [1, 1]} : vector<8x384xf32> to vector<8x256xf32>
      %88 = vector.extract_strided_slice %86 {offsets = [0, 0], sizes = [8, 256], strides = [1, 1]} : vector<8x384xf32> to vector<8x256xf32>
      %89 = arith.addf %87, %88 : vector<8x256xf32>
      %90 = arith.negf %89 : vector<8x256xf32>
      %91 = math.exp %90 : vector<8x256xf32>
      %cst_78 = arith.constant 1.000000e+00 : f32
      %92 = vector.broadcast %cst_78 : f32 to vector<8x256xf32>
      %93 = arith.addf %92, %91 : vector<8x256xf32>
      %94 = arith.divf %92, %93 : vector<8x256xf32>
      %95 = vector.extract_strided_slice %94 {offsets = [0, 128], sizes = [8, 128], strides = [1, 1]} : vector<8x256xf32> to vector<8x128xf32>
      %96 = vector.extract_strided_slice %84 {offsets = [0, 256], sizes = [8, 128], strides = [1, 1]} : vector<8x384xf32> to vector<8x128xf32>
      %97 = vector.extract_strided_slice %94 {offsets = [0, 0], sizes = [8, 128], strides = [1, 1]} : vector<8x256xf32> to vector<8x128xf32>
      %98 = vector.extract_strided_slice %86 {offsets = [0, 256], sizes = [8, 128], strides = [1, 1]} : vector<8x384xf32> to vector<8x128xf32>
      %99 = vector.broadcast %5 : vector<1x128xf32> to vector<8x128xf32>
      %100 = arith.addf %98, %99 : vector<8x128xf32>
      %101 = arith.mulf %97, %100 : vector<8x128xf32>
      %102 = arith.addf %96, %101 : vector<8x128xf32>
      %103 = math.tanh %102 : vector<8x128xf32>
      %cst_79 = arith.constant 1.000000e+00 : f32
      %104 = vector.broadcast %cst_79 : f32 to vector<8x128xf32>
      %105 = arith.subf %104, %95 : vector<8x128xf32>
      %106 = arith.mulf %105, %103 : vector<8x128xf32>
      %107 = arith.mulf %95, %80 : vector<8x128xf32>
      %108 = arith.addf %106, %107 : vector<8x128xf32>
      %109 = arith.truncf %108 : vector<8x128xf32> to vector<8x128xbf16>
      %110 = arith.index_cast %81 : i32 to index
      %c0_80 = arith.constant 0 : index
      %c0_81 = arith.constant 0 : index
      %111 = vector.load %arg7[%110, %c0_80, %c0_81] : memref<4x8x128xbf16, #tpu.memory_space<vmem>>, vector<1x8x128xbf16>
      %112 = vector.shape_cast %111 : vector<1x8x128xbf16> to vector<8x128xbf16>
      %113 = vector.shape_cast %109 : vector<8x128xbf16> to vector<1x8x128xbf16>
      tpu.vector_store %arg7[%110, %c0_80, %c0_81], %113 {strides = array<i32>} : memref<4x8x128xbf16, #tpu.memory_space<vmem>>, vector<1x8x128xbf16>,
      %c1_i32_82 = arith.constant 1 : i32
      %c3_i32_83 = arith.constant 3 : i32
      %114 = arith.subi %c3_i32_83, %c1_i32_82 : i32
      %115 = arith.index_cast %114 : i32 to index
      %c0_84 = arith.constant 0 : index
      %c0_85 = arith.constant 0 : index
      %116 = vector.load %arg9[%115, %c0_84, %c0_85] : memref<4x8x384xf32, #tpu.memory_space<vmem>>, vector<1x8x384xf32>
      %117 = vector.shape_cast %116 : vector<1x8x384xf32> to vector<8x384xf32>
      %118 = arith.truncf %108 : vector<8x128xf32> to vector<8x128xbf16>
      %cst_86 = arith.constant dense<0.000000e+00> : vector<8x384xf32>
      %119 = tpu.matmul %118, %1, %cst_86 {dimension_numbers = #tpu.dot_dimension_numbers<[1], [0], [0], [1], [0, 0, 1, 1], [], []>} : vector<8x128xbf16>, vector<128x384xbf16>, vector<8x384xf32> -> vector<8x384xf32>
      %120 = vector.extract_strided_slice %117 {offsets = [0, 0], sizes = [8, 256], strides = [1, 1]} : vector<8x384xf32> to vector<8x256xf32>
      %121 = vector.extract_strided_slice %119 {offsets = [0, 0], sizes = [8, 256], strides = [1, 1]} : vector<8x384xf32> to vector<8x256xf32>
      %122 = arith.addf %120, %121 : vector<8x256xf32>
      %123 = arith.negf %122 : vector<8x256xf32>
      %124 = math.exp %123 : vector<8x256xf32>
      %cst_87 = arith.constant 1.000000e+00 : f32
      %125 = vector.broadcast %cst_87 : f32 to vector<8x256xf32>
      %126 = arith.addf %125, %124 : vector<8x256xf32>
      %127 = arith.divf %125, %126 : vector<8x256xf32>
      %128 = vector.extract_strided_slice %127 {offsets = [0, 128], sizes = [8, 128], strides = [1, 1]} : vector<8x256xf32> to vector<8x128xf32>
      %129 = vector.extract_strided_slice %117 {offsets = [0, 256], sizes = [8, 128], strides = [1, 1]} : vector<8x384xf32> to vector<8x128xf32>
      %130 = vector.extract_strided_slice %127 {offsets = [0, 0], sizes = [8, 128], strides = [1, 1]} : vector<8x256xf32> to vector<8x128xf32>
      %131 = vector.extract_strided_slice %119 {offsets = [0, 256], sizes = [8, 128], strides = [1, 1]} : vector<8x384xf32> to vector<8x128xf32>
      %132 = vector.broadcast %5 : vector<1x128xf32> to vector<8x128xf32>
      %133 = arith.addf %131, %132 : vector<8x128xf32>
      %134 = arith.mulf %130, %133 : vector<8x128xf32>
      %135 = arith.addf %129, %134 : vector<8x128xf32>
      %136 = math.tanh %135 : vector<8x128xf32>
      %cst_88 = arith.constant 1.000000e+00 : f32
      %137 = vector.broadcast %cst_88 : f32 to vector<8x128xf32>
      %138 = arith.subf %137, %128 : vector<8x128xf32>
      %139 = arith.mulf %138, %136 : vector<8x128xf32>
      %140 = arith.mulf %128, %108 : vector<8x128xf32>
      %141 = arith.addf %139, %140 : vector<8x128xf32>
      %142 = arith.truncf %141 : vector<8x128xf32> to vector<8x128xbf16>
      %143 = arith.index_cast %114 : i32 to index
      %c0_89 = arith.constant 0 : index
      %c0_90 = arith.constant 0 : index
      %144 = vector.load %arg7[%143, %c0_89, %c0_90] : memref<4x8x128xbf16, #tpu.memory_space<vmem>>, vector<1x8x128xbf16>
      %145 = vector.shape_cast %144 : vector<1x8x128xbf16> to vector<8x128xbf16>
      %146 = vector.shape_cast %142 : vector<8x128xbf16> to vector<1x8x128xbf16>
      tpu.vector_store %arg7[%143, %c0_89, %c0_90], %146 {strides = array<i32>} : memref<4x8x128xbf16, #tpu.memory_space<vmem>>, vector<1x8x128xbf16>,
      %c2_i32 = arith.constant 2 : i32
      %c3_i32_91 = arith.constant 3 : i32
      %147 = arith.subi %c3_i32_91, %c2_i32 : i32
      %148 = arith.index_cast %147 : i32 to index
      %c0_92 = arith.constant 0 : index
      %c0_93 = arith.constant 0 : index
      %149 = vector.load %arg9[%148, %c0_92, %c0_93] : memref<4x8x384xf32, #tpu.memory_space<vmem>>, vector<1x8x384xf32>
      %150 = vector.shape_cast %149 : vector<1x8x384xf32> to vector<8x384xf32>
      %151 = arith.truncf %141 : vector<8x128xf32> to vector<8x128xbf16>
      %cst_94 = arith.constant dense<0.000000e+00> : vector<8x384xf32>
      %152 = tpu.matmul %151, %1, %cst_94 {dimension_numbers = #tpu.dot_dimension_numbers<[1], [0], [0], [1], [0, 0, 1, 1], [], []>} : vector<8x128xbf16>, vector<128x384xbf16>, vector<8x384xf32> -> vector<8x384xf32>
      %153 = vector.extract_strided_slice %150 {offsets = [0, 0], sizes = [8, 256], strides = [1, 1]} : vector<8x384xf32> to vector<8x256xf32>
      %154 = vector.extract_strided_slice %152 {offsets = [0, 0], sizes = [8, 256], strides = [1, 1]} : vector<8x384xf32> to vector<8x256xf32>
      %155 = arith.addf %153, %154 : vector<8x256xf32>
      %156 = arith.negf %155 : vector<8x256xf32>
      %157 = math.exp %156 : vector<8x256xf32>
      %cst_95 = arith.constant 1.000000e+00 : f32
      %158 = vector.broadcast %cst_95 : f32 to vector<8x256xf32>
      %159 = arith.addf %158, %157 : vector<8x256xf32>
      %160 = arith.divf %158, %159 : vector<8x256xf32>
      %161 = vector.extract_strided_slice %160 {offsets = [0, 128], sizes = [8, 128], strides = [1, 1]} : vector<8x256xf32> to vector<8x128xf32>
      %162 = vector.extract_strided_slice %150 {offsets = [0, 256], sizes = [8, 128], strides = [1, 1]} : vector<8x384xf32> to vector<8x128xf32>
      %163 = vector.extract_strided_slice %160 {offsets = [0, 0], sizes = [8, 128], strides = [1, 1]} : vector<8x256xf32> to vector<8x128xf32>
      %164 = vector.extract_strided_slice %152 {offsets = [0, 256], sizes = [8, 128], strides = [1, 1]} : vector<8x384xf32> to vector<8x128xf32>
      %165 = vector.broadcast %5 : vector<1x128xf32> to vector<8x128xf32>
      %166 = arith.addf %164, %165 : vector<8x128xf32>
      %167 = arith.mulf %163, %166 : vector<8x128xf32>
      %168 = arith.addf %162, %167 : vector<8x128xf32>
      %169 = math.tanh %168 : vector<8x128xf32>
      %cst_96 = arith.constant 1.000000e+00 : f32
      %170 = vector.broadcast %cst_96 : f32 to vector<8x128xf32>
      %171 = arith.subf %170, %161 : vector<8x128xf32>
      %172 = arith.mulf %171, %169 : vector<8x128xf32>
      %173 = arith.mulf %161, %141 : vector<8x128xf32>
      %174 = arith.addf %172, %173 : vector<8x128xf32>
      %175 = arith.truncf %174 : vector<8x128xf32> to vector<8x128xbf16>
      %176 = arith.index_cast %147 : i32 to index
      %c0_97 = arith.constant 0 : index
      %c0_98 = arith.constant 0 : index
      %177 = vector.load %arg7[%176, %c0_97, %c0_98] : memref<4x8x128xbf16, #tpu.memory_space<vmem>>, vector<1x8x128xbf16>
      %178 = vector.shape_cast %177 : vector<1x8x128xbf16> to vector<8x128xbf16>
      %179 = vector.shape_cast %175 : vector<8x128xbf16> to vector<1x8x128xbf16>
      tpu.vector_store %arg7[%176, %c0_97, %c0_98], %179 {strides = array<i32>} : memref<4x8x128xbf16, #tpu.memory_space<vmem>>, vector<1x8x128xbf16>,
      %c3_i32_99 = arith.constant 3 : i32
      %c3_i32_100 = arith.constant 3 : i32
      %180 = arith.subi %c3_i32_100, %c3_i32_99 : i32
      %181 = arith.index_cast %180 : i32 to index
      %c0_101 = arith.constant 0 : index
      %c0_102 = arith.constant 0 : index
      %182 = vector.load %arg9[%181, %c0_101, %c0_102] : memref<4x8x384xf32, #tpu.memory_space<vmem>>, vector<1x8x384xf32>
      %183 = vector.shape_cast %182 : vector<1x8x384xf32> to vector<8x384xf32>
      %184 = arith.truncf %174 : vector<8x128xf32> to vector<8x128xbf16>
      %cst_103 = arith.constant dense<0.000000e+00> : vector<8x384xf32>
      %185 = tpu.matmul %184, %1, %cst_103 {dimension_numbers = #tpu.dot_dimension_numbers<[1], [0], [0], [1], [0, 0, 1, 1], [], []>} : vector<8x128xbf16>, vector<128x384xbf16>, vector<8x384xf32> -> vector<8x384xf32>
      %186 = vector.extract_strided_slice %183 {offsets = [0, 0], sizes = [8, 256], strides = [1, 1]} : vector<8x384xf32> to vector<8x256xf32>
      %187 = vector.extract_strided_slice %185 {offsets = [0, 0], sizes = [8, 256], strides = [1, 1]} : vector<8x384xf32> to vector<8x256xf32>
      %188 = arith.addf %186, %187 : vector<8x256xf32>
      %189 = arith.negf %188 : vector<8x256xf32>
      %190 = math.exp %189 : vector<8x256xf32>
      %cst_104 = arith.constant 1.000000e+00 : f32
      %191 = vector.broadcast %cst_104 : f32 to vector<8x256xf32>
      %192 = arith.addf %191, %190 : vector<8x256xf32>
      %193 = arith.divf %191, %192 : vector<8x256xf32>
      %194 = vector.extract_strided_slice %193 {offsets = [0, 128], sizes = [8, 128], strides = [1, 1]} : vector<8x256xf32> to vector<8x128xf32>
      %195 = vector.extract_strided_slice %183 {offsets = [0, 256], sizes = [8, 128], strides = [1, 1]} : vector<8x384xf32> to vector<8x128xf32>
      %196 = vector.extract_strided_slice %193 {offsets = [0, 0], sizes = [8, 128], strides = [1, 1]} : vector<8x256xf32> to vector<8x128xf32>
      %197 = vector.extract_strided_slice %185 {offsets = [0, 256], sizes = [8, 128], strides = [1, 1]} : vector<8x384xf32> to vector<8x128xf32>
      %198 = vector.broadcast %5 : vector<1x128xf32> to vector<8x128xf32>
      %199 = arith.addf %197, %198 : vector<8x128xf32>
      %200 = arith.mulf %196, %199 : vector<8x128xf32>
      %201 = arith.addf %195, %200 : vector<8x128xf32>
      %202 = math.tanh %201 : vector<8x128xf32>
      %cst_105 = arith.constant 1.000000e+00 : f32
      %203 = vector.broadcast %cst_105 : f32 to vector<8x128xf32>
      %204 = arith.subf %203, %194 : vector<8x128xf32>
      %205 = arith.mulf %204, %202 : vector<8x128xf32>
      %206 = arith.mulf %194, %174 : vector<8x128xf32>
      %207 = arith.addf %205, %206 : vector<8x128xf32>
      %208 = arith.truncf %207 : vector<8x128xf32> to vector<8x128xbf16>
      %209 = arith.index_cast %180 : i32 to index
      %c0_106 = arith.constant 0 : index
      %c0_107 = arith.constant 0 : index
      %210 = vector.load %arg7[%209, %c0_106, %c0_107] : memref<4x8x128xbf16, #tpu.memory_space<vmem>>, vector<1x8x128xbf16>
      %211 = vector.shape_cast %210 : vector<1x8x128xbf16> to vector<8x128xbf16>
      %212 = vector.shape_cast %208 : vector<8x128xbf16> to vector<1x8x128xbf16>
      tpu.vector_store %arg7[%209, %c0_106, %c0_107], %212 {strides = array<i32>} : memref<4x8x128xbf16, #tpu.memory_space<vmem>>, vector<1x8x128xbf16>,
      %c4_i32 = arith.constant 4 : i32
      %c1_108 = arith.constant 1 : index
      %c0_109 = arith.constant 0 : index
      %c0_110 = arith.constant 0 : index
      %213 = vector.load %arg8[%c1_108, %c0_109, %c0_110] : memref<2x8x128xf32, #tpu.memory_space<vmem>>, vector<1x8x128xf32>
      %214 = vector.shape_cast %213 : vector<1x8x128xf32> to vector<8x128xf32>
      %215 = vector.shape_cast %207 : vector<8x128xf32> to vector<1x8x128xf32>
      tpu.vector_store %arg8[%c1_108, %c0_109, %c0_110], %215 {strides = array<i32>} : memref<2x8x128xf32, #tpu.memory_space<vmem>>, vector<1x8x128xf32>,
    } else {
    }
    return
  }
  func.func @transform_0(%arg0: i32, %arg1: i32) -> (i32, i32, i32) {
    %c2_i32 = arith.constant 2 : i32
    %0 = arith.muli %c2_i32, %arg1 : i32
    %c0_i32 = arith.constant 0 : i32
    %1 = arith.subi %c0_i32, %0 : i32
    %2 = arith.muli %arg0, %1 : i32
    %3 = arith.addi %arg1, %2 : i32
    %c0_i32_0 = arith.constant 0 : i32
    %c0_i32_1 = arith.constant 0 : i32
    %c0_i32_2 = arith.constant 0 : i32
    return %3, %c0_i32_0, %c0_i32_1 : i32, i32, i32
  }
  func.func @transform_1(%arg0: i32, %arg1: i32) -> (i32, i32, i32) {
    %c0_i32 = arith.constant 0 : i32
    %c0_i32_0 = arith.constant 0 : i32
    %c0_i32_1 = arith.constant 0 : i32
    return %arg0, %c0_i32, %c0_i32_0 : i32, i32, i32
  }
  func.func @transform_2(%arg0: i32, %arg1: i32) -> (i32, i32, i32) {
    %c0_i32 = arith.constant 0 : i32
    %c0_i32_0 = arith.constant 0 : i32
    %c0_i32_1 = arith.constant 0 : i32
    return %arg0, %c0_i32, %c0_i32_0 : i32, i32, i32
  }
  func.func @transform_3(%arg0: i32, %arg1: i32) -> (i32, i32, i32) {
    %c0_i32 = arith.constant 0 : i32
    %c0_i32_0 = arith.constant 0 : i32
    %c0_i32_1 = arith.constant 0 : i32
    return %arg0, %c0_i32, %c0_i32_0 : i32, i32, i32
  }
  func.func @transform_4(%arg0: i32, %arg1: i32) -> (i32, i32, i32) {
    %c0_i32 = arith.constant 0 : i32
    %c0_i32_0 = arith.constant 0 : i32
    %c0_i32_1 = arith.constant 0 : i32
    return %arg0, %c0_i32, %c0_i32_0 : i32, i32, i32
  }
  func.func @transform_5(%arg0: i32, %arg1: i32) -> (i32, i32, i32) {
    %c2_i32 = arith.constant 2 : i32
    %0 = arith.muli %c2_i32, %arg1 : i32
    %c0_i32 = arith.constant 0 : i32
    %1 = arith.subi %c0_i32, %0 : i32
    %2 = arith.muli %arg0, %1 : i32
    %3 = arith.addi %arg1, %2 : i32
    %c0_i32_0 = arith.constant 0 : i32
    %c0_i32_1 = arith.constant 0 : i32
    return %3, %c0_i32_0, %arg0 : i32, i32, i32
  }
}

module attributes {stable_mosaic.version = 11 : i64} {
  func.func @bigru_recurrence_kernel(%arg0: i32, %arg1: i32, %arg2: memref<4x8x256xbf16, #tpu.memory_space<vmem>>, %arg3: memref<1x512x384xbf16, #tpu.memory_space<vmem>>, %arg4: memref<1x128x384xbf16, #tpu.memory_space<vmem>>, %arg5: memref<1x1x384xf32, #tpu.memory_space<vmem>>, %arg6: memref<1x1x128xf32, #tpu.memory_space<vmem>>, %arg7: memref<2x8x128xbf16, #tpu.memory_space<vmem>>, %arg8: memref<2x8x128xf32, #tpu.memory_space<vmem>>, %arg9: memref<2x8x384xf32, #tpu.memory_space<vmem>>) attributes {dimension_semantics = [#tpu.dimension_semantics<parallel>, #tpu.dimension_semantics<arbitrary>], iteration_bounds = array<i64: 2, 1>, scalar_prefetch = 0 : i64, scratch_operands = 2 : i64, tpu.core_type = #tpu.core_type<tc>, window_params = [{transform_indices = @transform_0, window_bounds = array<i64: 4, 8, 256>}, {transform_indices = @transform_1, window_bounds = array<i64: 1, 512, 384>}, {transform_indices = @transform_2, window_bounds = array<i64: 1, 128, 384>}, {transform_indices = @transform_3, window_bounds = array<i64: 1, 1, 384>}, {transform_indices = @transform_4, window_bounds = array<i64: 1, 1, 128>}, {transform_indices = @transform_5, window_bounds = array<i64: 2, 8, 128>}]} {
    %c0 = arith.constant 0 : index
    %c0_0 = arith.constant 0 : index
    %c0_1 = arith.constant 0 : index
    %0 = vector.load %arg4[%c0, %c0_0, %c0_1] : memref<1x128x384xbf16, #tpu.memory_space<vmem>>, vector<1x128x384xbf16>
    %1 = vector.shape_cast %0 : vector<1x128x384xbf16> to vector<128x384xbf16>
    %c0_2 = arith.constant 0 : index
    %c0_3 = arith.constant 0 : index
    %c0_4 = arith.constant 0 : index
    %2 = vector.load %arg5[%c0_2, %c0_3, %c0_4] : memref<1x1x384xf32, #tpu.memory_space<vmem>>, vector<1x1x384xf32>
    %3 = vector.shape_cast %2 : vector<1x1x384xf32> to vector<1x384xf32>
    %c0_5 = arith.constant 0 : index
    %c0_6 = arith.constant 0 : index
    %c0_7 = arith.constant 0 : index
    %4 = vector.load %arg6[%c0_5, %c0_6, %c0_7] : memref<1x1x128xf32, #tpu.memory_space<vmem>>, vector<1x1x128xf32>
    %5 = vector.shape_cast %4 : vector<1x1x128xf32> to vector<1x128xf32>
    %c0_8 = arith.constant 0 : index
    %c0_9 = arith.constant 0 : index
    %c0_10 = arith.constant 0 : index
    %6 = vector.load %arg2[%c0_8, %c0_9, %c0_10] : memref<4x8x256xbf16, #tpu.memory_space<vmem>>, vector<1x8x256xbf16>
    %7 = vector.shape_cast %6 : vector<1x8x256xbf16> to vector<8x256xbf16>
    %c0_11 = arith.constant 0 : index
    %c0_12 = arith.constant 0 : index
    %c0_13 = arith.constant 0 : index
    %8 = vector.load %arg3[%c0_11, %c0_12, %c0_13] : memref<1x512x384xbf16, #tpu.memory_space<vmem>>, vector<1x256x384xbf16>
    %9 = vector.shape_cast %8 : vector<1x256x384xbf16> to vector<256x384xbf16>
    %cst = arith.constant dense<0.000000e+00> : vector<8x384xf32>
    %10 = tpu.matmul %7, %9, %cst {dimension_numbers = #tpu.dot_dimension_numbers<[1], [0], [0], [1], [0, 0, 1, 1], [], []>} : vector<8x256xbf16>, vector<256x384xbf16>, vector<8x384xf32> -> vector<8x384xf32>
    %11 = vector.broadcast %3 : vector<1x384xf32> to vector<8x384xf32>
    %12 = arith.addf %11, %10 : vector<8x384xf32>
    %c1 = arith.constant 1 : index
    %c0_14 = arith.constant 0 : index
    %c0_15 = arith.constant 0 : index
    %13 = vector.load %arg2[%c1, %c0_14, %c0_15] : memref<4x8x256xbf16, #tpu.memory_space<vmem>>, vector<1x8x256xbf16>
    %14 = vector.shape_cast %13 : vector<1x8x256xbf16> to vector<8x256xbf16>
    %c0_16 = arith.constant 0 : index
    %c256 = arith.constant 256 : index
    %c0_17 = arith.constant 0 : index
    %15 = vector.load %arg3[%c0_16, %c256, %c0_17] : memref<1x512x384xbf16, #tpu.memory_space<vmem>>, vector<1x256x384xbf16>
    %16 = vector.shape_cast %15 : vector<1x256x384xbf16> to vector<256x384xbf16>
    %cst_18 = arith.constant dense<0.000000e+00> : vector<8x384xf32>
    %17 = tpu.matmul %14, %16, %cst_18 {dimension_numbers = #tpu.dot_dimension_numbers<[1], [0], [0], [1], [0, 0, 1, 1], [], []>} : vector<8x256xbf16>, vector<256x384xbf16>, vector<8x384xf32> -> vector<8x384xf32>
    %18 = arith.addf %12, %17 : vector<8x384xf32>
    %c0_19 = arith.constant 0 : index
    %c0_20 = arith.constant 0 : index
    %c0_21 = arith.constant 0 : index
    %19 = vector.load %arg9[%c0_19, %c0_20, %c0_21] : memref<2x8x384xf32, #tpu.memory_space<vmem>>, vector<1x8x384xf32>
    %20 = vector.shape_cast %19 : vector<1x8x384xf32> to vector<8x384xf32>
    %21 = vector.shape_cast %18 : vector<8x384xf32> to vector<1x8x384xf32>
    tpu.vector_store %arg9[%c0_19, %c0_20, %c0_21], %21 {strides = array<i32>} : memref<2x8x384xf32, #tpu.memory_space<vmem>>, vector<1x8x384xf32>,
    %c2 = arith.constant 2 : index
    %c0_22 = arith.constant 0 : index
    %c0_23 = arith.constant 0 : index
    %22 = vector.load %arg2[%c2, %c0_22, %c0_23] : memref<4x8x256xbf16, #tpu.memory_space<vmem>>, vector<1x8x256xbf16>
    %23 = vector.shape_cast %22 : vector<1x8x256xbf16> to vector<8x256xbf16>
    %c0_24 = arith.constant 0 : index
    %c0_25 = arith.constant 0 : index
    %c0_26 = arith.constant 0 : index
    %24 = vector.load %arg3[%c0_24, %c0_25, %c0_26] : memref<1x512x384xbf16, #tpu.memory_space<vmem>>, vector<1x256x384xbf16>
    %25 = vector.shape_cast %24 : vector<1x256x384xbf16> to vector<256x384xbf16>
    %cst_27 = arith.constant dense<0.000000e+00> : vector<8x384xf32>
    %26 = tpu.matmul %23, %25, %cst_27 {dimension_numbers = #tpu.dot_dimension_numbers<[1], [0], [0], [1], [0, 0, 1, 1], [], []>} : vector<8x256xbf16>, vector<256x384xbf16>, vector<8x384xf32> -> vector<8x384xf32>
    %27 = vector.broadcast %3 : vector<1x384xf32> to vector<8x384xf32>
    %28 = arith.addf %27, %26 : vector<8x384xf32>
    %c3 = arith.constant 3 : index
    %c0_28 = arith.constant 0 : index
    %c0_29 = arith.constant 0 : index
    %29 = vector.load %arg2[%c3, %c0_28, %c0_29] : memref<4x8x256xbf16, #tpu.memory_space<vmem>>, vector<1x8x256xbf16>
    %30 = vector.shape_cast %29 : vector<1x8x256xbf16> to vector<8x256xbf16>
    %c0_30 = arith.constant 0 : index
    %c256_31 = arith.constant 256 : index
    %c0_32 = arith.constant 0 : index
    %31 = vector.load %arg3[%c0_30, %c256_31, %c0_32] : memref<1x512x384xbf16, #tpu.memory_space<vmem>>, vector<1x256x384xbf16>
    %32 = vector.shape_cast %31 : vector<1x256x384xbf16> to vector<256x384xbf16>
    %cst_33 = arith.constant dense<0.000000e+00> : vector<8x384xf32>
    %33 = tpu.matmul %30, %32, %cst_33 {dimension_numbers = #tpu.dot_dimension_numbers<[1], [0], [0], [1], [0, 0, 1, 1], [], []>} : vector<8x256xbf16>, vector<256x384xbf16>, vector<8x384xf32> -> vector<8x384xf32>
    %34 = arith.addf %28, %33 : vector<8x384xf32>
    %c1_34 = arith.constant 1 : index
    %c0_35 = arith.constant 0 : index
    %c0_36 = arith.constant 0 : index
    %35 = vector.load %arg9[%c1_34, %c0_35, %c0_36] : memref<2x8x384xf32, #tpu.memory_space<vmem>>, vector<1x8x384xf32>
    %36 = vector.shape_cast %35 : vector<1x8x384xf32> to vector<8x384xf32>
    %37 = vector.shape_cast %34 : vector<8x384xf32> to vector<1x8x384xf32>
    tpu.vector_store %arg9[%c1_34, %c0_35, %c0_36], %37 {strides = array<i32>} : memref<2x8x384xf32, #tpu.memory_space<vmem>>, vector<1x8x384xf32>,
    %c0_i32 = arith.constant 0 : i32
    %38 = arith.cmpi eq, %arg0, %c0_i32 : i32
    %39 = arith.extui %38 : i1 to i32
    %c0_i32_37 = arith.constant 0 : i32
    %40 = arith.cmpi ne, %39, %c0_i32_37 : i32
    scf.if %40 {
      %c0_i32_39 = arith.constant 0 : i32
      %44 = arith.cmpi eq, %arg1, %c0_i32_39 : i32
      %45 = arith.extui %44 : i1 to i32
      %c0_i32_40 = arith.constant 0 : i32
      %46 = arith.cmpi ne, %45, %c0_i32_40 : i32
      scf.if %46 {
        %cst_63 = arith.constant 0.000000e+00 : f32
        %116 = vector.broadcast %cst_63 : f32 to vector<8x128xf32>
        %c0_64 = arith.constant 0 : index
        %c0_65 = arith.constant 0 : index
        %c0_66 = arith.constant 0 : index
        %117 = vector.load %arg8[%c0_64, %c0_65, %c0_66] : memref<2x8x128xf32, #tpu.memory_space<vmem>>, vector<1x8x128xf32>
        %118 = vector.shape_cast %117 : vector<1x8x128xf32> to vector<8x128xf32>
        %119 = vector.shape_cast %116 : vector<8x128xf32> to vector<1x8x128xf32>
        tpu.vector_store %arg8[%c0_64, %c0_65, %c0_66], %119 {strides = array<i32>} : memref<2x8x128xf32, #tpu.memory_space<vmem>>, vector<1x8x128xf32>,
      } else {
      }
      %c0_41 = arith.constant 0 : index
      %c0_42 = arith.constant 0 : index
      %c0_43 = arith.constant 0 : index
      %47 = vector.load %arg8[%c0_41, %c0_42, %c0_43] : memref<2x8x128xf32, #tpu.memory_space<vmem>>, vector<1x8x128xf32>
      %48 = vector.shape_cast %47 : vector<1x8x128xf32> to vector<8x128xf32>
      %c0_i32_44 = arith.constant 0 : i32
      %49 = arith.index_cast %c0_i32_44 : i32 to index
      %c0_45 = arith.constant 0 : index
      %c0_46 = arith.constant 0 : index
      %50 = vector.load %arg9[%49, %c0_45, %c0_46] : memref<2x8x384xf32, #tpu.memory_space<vmem>>, vector<1x8x384xf32>
      %51 = vector.shape_cast %50 : vector<1x8x384xf32> to vector<8x384xf32>
      %52 = arith.truncf %48 : vector<8x128xf32> to vector<8x128xbf16>
      %cst_47 = arith.constant dense<0.000000e+00> : vector<8x384xf32>
      %53 = tpu.matmul %52, %1, %cst_47 {dimension_numbers = #tpu.dot_dimension_numbers<[1], [0], [0], [1], [0, 0, 1, 1], [], []>} : vector<8x128xbf16>, vector<128x384xbf16>, vector<8x384xf32> -> vector<8x384xf32>
      %54 = vector.extract_strided_slice %51 {offsets = [0, 0], sizes = [8, 256], strides = [1, 1]} : vector<8x384xf32> to vector<8x256xf32>
      %55 = vector.extract_strided_slice %53 {offsets = [0, 0], sizes = [8, 256], strides = [1, 1]} : vector<8x384xf32> to vector<8x256xf32>
      %56 = arith.addf %54, %55 : vector<8x256xf32>
      %57 = arith.negf %56 : vector<8x256xf32>
      %58 = math.exp %57 : vector<8x256xf32>
      %cst_48 = arith.constant 1.000000e+00 : f32
      %59 = vector.broadcast %cst_48 : f32 to vector<8x256xf32>
      %60 = arith.addf %59, %58 : vector<8x256xf32>
      %61 = arith.divf %59, %60 : vector<8x256xf32>
      %62 = vector.extract_strided_slice %61 {offsets = [0, 128], sizes = [8, 128], strides = [1, 1]} : vector<8x256xf32> to vector<8x128xf32>
      %63 = vector.extract_strided_slice %51 {offsets = [0, 256], sizes = [8, 128], strides = [1, 1]} : vector<8x384xf32> to vector<8x128xf32>
      %64 = vector.extract_strided_slice %61 {offsets = [0, 0], sizes = [8, 128], strides = [1, 1]} : vector<8x256xf32> to vector<8x128xf32>
      %65 = vector.extract_strided_slice %53 {offsets = [0, 256], sizes = [8, 128], strides = [1, 1]} : vector<8x384xf32> to vector<8x128xf32>
      %66 = vector.broadcast %5 : vector<1x128xf32> to vector<8x128xf32>
      %67 = arith.addf %65, %66 : vector<8x128xf32>
      %68 = arith.mulf %64, %67 : vector<8x128xf32>
      %69 = arith.addf %63, %68 : vector<8x128xf32>
      %70 = math.tanh %69 : vector<8x128xf32>
      %cst_49 = arith.constant 1.000000e+00 : f32
      %71 = vector.broadcast %cst_49 : f32 to vector<8x128xf32>
      %72 = arith.subf %71, %62 : vector<8x128xf32>
      %73 = arith.mulf %72, %70 : vector<8x128xf32>
      %74 = arith.mulf %62, %48 : vector<8x128xf32>
      %75 = arith.addf %73, %74 : vector<8x128xf32>
      %76 = arith.truncf %75 : vector<8x128xf32> to vector<8x128xbf16>
      %77 = arith.index_cast %c0_i32_44 : i32 to index
      %c0_50 = arith.constant 0 : index
      %c0_51 = arith.constant 0 : index
      %78 = vector.load %arg7[%77, %c0_50, %c0_51] : memref<2x8x128xbf16, #tpu.memory_space<vmem>>, vector<1x8x128xbf16>
      %79 = vector.shape_cast %78 : vector<1x8x128xbf16> to vector<8x128xbf16>
      %80 = vector.shape_cast %76 : vector<8x128xbf16> to vector<1x8x128xbf16>
      tpu.vector_store %arg7[%77, %c0_50, %c0_51], %80 {strides = array<i32>} : memref<2x8x128xbf16, #tpu.memory_space<vmem>>, vector<1x8x128xbf16>,
      %c1_i32_52 = arith.constant 1 : i32
      %81 = arith.index_cast %c1_i32_52 : i32 to index
      %c0_53 = arith.constant 0 : index
      %c0_54 = arith.constant 0 : index
      %82 = vector.load %arg9[%81, %c0_53, %c0_54] : memref<2x8x384xf32, #tpu.memory_space<vmem>>, vector<1x8x384xf32>
      %83 = vector.shape_cast %82 : vector<1x8x384xf32> to vector<8x384xf32>
      %84 = arith.truncf %75 : vector<8x128xf32> to vector<8x128xbf16>
      %cst_55 = arith.constant dense<0.000000e+00> : vector<8x384xf32>
      %85 = tpu.matmul %84, %1, %cst_55 {dimension_numbers = #tpu.dot_dimension_numbers<[1], [0], [0], [1], [0, 0, 1, 1], [], []>} : vector<8x128xbf16>, vector<128x384xbf16>, vector<8x384xf32> -> vector<8x384xf32>
      %86 = vector.extract_strided_slice %83 {offsets = [0, 0], sizes = [8, 256], strides = [1, 1]} : vector<8x384xf32> to vector<8x256xf32>
      %87 = vector.extract_strided_slice %85 {offsets = [0, 0], sizes = [8, 256], strides = [1, 1]} : vector<8x384xf32> to vector<8x256xf32>
      %88 = arith.addf %86, %87 : vector<8x256xf32>
      %89 = arith.negf %88 : vector<8x256xf32>
      %90 = math.exp %89 : vector<8x256xf32>
      %cst_56 = arith.constant 1.000000e+00 : f32
      %91 = vector.broadcast %cst_56 : f32 to vector<8x256xf32>
      %92 = arith.addf %91, %90 : vector<8x256xf32>
      %93 = arith.divf %91, %92 : vector<8x256xf32>
      %94 = vector.extract_strided_slice %93 {offsets = [0, 128], sizes = [8, 128], strides = [1, 1]} : vector<8x256xf32> to vector<8x128xf32>
      %95 = vector.extract_strided_slice %83 {offsets = [0, 256], sizes = [8, 128], strides = [1, 1]} : vector<8x384xf32> to vector<8x128xf32>
      %96 = vector.extract_strided_slice %93 {offsets = [0, 0], sizes = [8, 128], strides = [1, 1]} : vector<8x256xf32> to vector<8x128xf32>
      %97 = vector.extract_strided_slice %85 {offsets = [0, 256], sizes = [8, 128], strides = [1, 1]} : vector<8x384xf32> to vector<8x128xf32>
      %98 = vector.broadcast %5 : vector<1x128xf32> to vector<8x128xf32>
      %99 = arith.addf %97, %98 : vector<8x128xf32>
      %100 = arith.mulf %96, %99 : vector<8x128xf32>
      %101 = arith.addf %95, %100 : vector<8x128xf32>
      %102 = math.tanh %101 : vector<8x128xf32>
      %cst_57 = arith.constant 1.000000e+00 : f32
      %103 = vector.broadcast %cst_57 : f32 to vector<8x128xf32>
      %104 = arith.subf %103, %94 : vector<8x128xf32>
      %105 = arith.mulf %104, %102 : vector<8x128xf32>
      %106 = arith.mulf %94, %75 : vector<8x128xf32>
      %107 = arith.addf %105, %106 : vector<8x128xf32>
      %108 = arith.truncf %107 : vector<8x128xf32> to vector<8x128xbf16>
      %109 = arith.index_cast %c1_i32_52 : i32 to index
      %c0_58 = arith.constant 0 : index
      %c0_59 = arith.constant 0 : index
      %110 = vector.load %arg7[%109, %c0_58, %c0_59] : memref<2x8x128xbf16, #tpu.memory_space<vmem>>, vector<1x8x128xbf16>
      %111 = vector.shape_cast %110 : vector<1x8x128xbf16> to vector<8x128xbf16>
      %112 = vector.shape_cast %108 : vector<8x128xbf16> to vector<1x8x128xbf16>
      tpu.vector_store %arg7[%109, %c0_58, %c0_59], %112 {strides = array<i32>} : memref<2x8x128xbf16, #tpu.memory_space<vmem>>, vector<1x8x128xbf16>,
      %c2_i32 = arith.constant 2 : i32
      %c0_60 = arith.constant 0 : index
      %c0_61 = arith.constant 0 : index
      %c0_62 = arith.constant 0 : index
      %113 = vector.load %arg8[%c0_60, %c0_61, %c0_62] : memref<2x8x128xf32, #tpu.memory_space<vmem>>, vector<1x8x128xf32>
      %114 = vector.shape_cast %113 : vector<1x8x128xf32> to vector<8x128xf32>
      %115 = vector.shape_cast %107 : vector<8x128xf32> to vector<1x8x128xf32>
      tpu.vector_store %arg8[%c0_60, %c0_61, %c0_62], %115 {strides = array<i32>} : memref<2x8x128xf32, #tpu.memory_space<vmem>>, vector<1x8x128xf32>,
    } else {
    }
    %c1_i32 = arith.constant 1 : i32
    %41 = arith.cmpi eq, %arg0, %c1_i32 : i32
    %42 = arith.extui %41 : i1 to i32
    %c0_i32_38 = arith.constant 0 : i32
    %43 = arith.cmpi ne, %42, %c0_i32_38 : i32
    scf.if %43 {
      %c0_i32_39 = arith.constant 0 : i32
      %44 = arith.cmpi eq, %arg1, %c0_i32_39 : i32
      %45 = arith.extui %44 : i1 to i32
      %c0_i32_40 = arith.constant 0 : i32
      %46 = arith.cmpi ne, %45, %c0_i32_40 : i32
      scf.if %46 {
        %cst_65 = arith.constant 0.000000e+00 : f32
        %118 = vector.broadcast %cst_65 : f32 to vector<8x128xf32>
        %c1_66 = arith.constant 1 : index
        %c0_67 = arith.constant 0 : index
        %c0_68 = arith.constant 0 : index
        %119 = vector.load %arg8[%c1_66, %c0_67, %c0_68] : memref<2x8x128xf32, #tpu.memory_space<vmem>>, vector<1x8x128xf32>
        %120 = vector.shape_cast %119 : vector<1x8x128xf32> to vector<8x128xf32>
        %121 = vector.shape_cast %118 : vector<8x128xf32> to vector<1x8x128xf32>
        tpu.vector_store %arg8[%c1_66, %c0_67, %c0_68], %121 {strides = array<i32>} : memref<2x8x128xf32, #tpu.memory_space<vmem>>, vector<1x8x128xf32>,
      } else {
      }
      %c1_41 = arith.constant 1 : index
      %c0_42 = arith.constant 0 : index
      %c0_43 = arith.constant 0 : index
      %47 = vector.load %arg8[%c1_41, %c0_42, %c0_43] : memref<2x8x128xf32, #tpu.memory_space<vmem>>, vector<1x8x128xf32>
      %48 = vector.shape_cast %47 : vector<1x8x128xf32> to vector<8x128xf32>
      %c0_i32_44 = arith.constant 0 : i32
      %c1_i32_45 = arith.constant 1 : i32
      %49 = arith.subi %c1_i32_45, %c0_i32_44 : i32
      %50 = arith.index_cast %49 : i32 to index
      %c0_46 = arith.constant 0 : index
      %c0_47 = arith.constant 0 : index
      %51 = vector.load %arg9[%50, %c0_46, %c0_47] : memref<2x8x384xf32, #tpu.memory_space<vmem>>, vector<1x8x384xf32>
      %52 = vector.shape_cast %51 : vector<1x8x384xf32> to vector<8x384xf32>
      %53 = arith.truncf %48 : vector<8x128xf32> to vector<8x128xbf16>
      %cst_48 = arith.constant dense<0.000000e+00> : vector<8x384xf32>
      %54 = tpu.matmul %53, %1, %cst_48 {dimension_numbers = #tpu.dot_dimension_numbers<[1], [0], [0], [1], [0, 0, 1, 1], [], []>} : vector<8x128xbf16>, vector<128x384xbf16>, vector<8x384xf32> -> vector<8x384xf32>
      %55 = vector.extract_strided_slice %52 {offsets = [0, 0], sizes = [8, 256], strides = [1, 1]} : vector<8x384xf32> to vector<8x256xf32>
      %56 = vector.extract_strided_slice %54 {offsets = [0, 0], sizes = [8, 256], strides = [1, 1]} : vector<8x384xf32> to vector<8x256xf32>
      %57 = arith.addf %55, %56 : vector<8x256xf32>
      %58 = arith.negf %57 : vector<8x256xf32>
      %59 = math.exp %58 : vector<8x256xf32>
      %cst_49 = arith.constant 1.000000e+00 : f32
      %60 = vector.broadcast %cst_49 : f32 to vector<8x256xf32>
      %61 = arith.addf %60, %59 : vector<8x256xf32>
      %62 = arith.divf %60, %61 : vector<8x256xf32>
      %63 = vector.extract_strided_slice %62 {offsets = [0, 128], sizes = [8, 128], strides = [1, 1]} : vector<8x256xf32> to vector<8x128xf32>
      %64 = vector.extract_strided_slice %52 {offsets = [0, 256], sizes = [8, 128], strides = [1, 1]} : vector<8x384xf32> to vector<8x128xf32>
      %65 = vector.extract_strided_slice %62 {offsets = [0, 0], sizes = [8, 128], strides = [1, 1]} : vector<8x256xf32> to vector<8x128xf32>
      %66 = vector.extract_strided_slice %54 {offsets = [0, 256], sizes = [8, 128], strides = [1, 1]} : vector<8x384xf32> to vector<8x128xf32>
      %67 = vector.broadcast %5 : vector<1x128xf32> to vector<8x128xf32>
      %68 = arith.addf %66, %67 : vector<8x128xf32>
      %69 = arith.mulf %65, %68 : vector<8x128xf32>
      %70 = arith.addf %64, %69 : vector<8x128xf32>
      %71 = math.tanh %70 : vector<8x128xf32>
      %cst_50 = arith.constant 1.000000e+00 : f32
      %72 = vector.broadcast %cst_50 : f32 to vector<8x128xf32>
      %73 = arith.subf %72, %63 : vector<8x128xf32>
      %74 = arith.mulf %73, %71 : vector<8x128xf32>
      %75 = arith.mulf %63, %48 : vector<8x128xf32>
      %76 = arith.addf %74, %75 : vector<8x128xf32>
      %77 = arith.truncf %76 : vector<8x128xf32> to vector<8x128xbf16>
      %78 = arith.index_cast %49 : i32 to index
      %c0_51 = arith.constant 0 : index
      %c0_52 = arith.constant 0 : index
      %79 = vector.load %arg7[%78, %c0_51, %c0_52] : memref<2x8x128xbf16, #tpu.memory_space<vmem>>, vector<1x8x128xbf16>
      %80 = vector.shape_cast %79 : vector<1x8x128xbf16> to vector<8x128xbf16>
      %81 = vector.shape_cast %77 : vector<8x128xbf16> to vector<1x8x128xbf16>
      tpu.vector_store %arg7[%78, %c0_51, %c0_52], %81 {strides = array<i32>} : memref<2x8x128xbf16, #tpu.memory_space<vmem>>, vector<1x8x128xbf16>,
      %c1_i32_53 = arith.constant 1 : i32
      %c1_i32_54 = arith.constant 1 : i32
      %82 = arith.subi %c1_i32_54, %c1_i32_53 : i32
      %83 = arith.index_cast %82 : i32 to index
      %c0_55 = arith.constant 0 : index
      %c0_56 = arith.constant 0 : index
      %84 = vector.load %arg9[%83, %c0_55, %c0_56] : memref<2x8x384xf32, #tpu.memory_space<vmem>>, vector<1x8x384xf32>
      %85 = vector.shape_cast %84 : vector<1x8x384xf32> to vector<8x384xf32>
      %86 = arith.truncf %76 : vector<8x128xf32> to vector<8x128xbf16>
      %cst_57 = arith.constant dense<0.000000e+00> : vector<8x384xf32>
      %87 = tpu.matmul %86, %1, %cst_57 {dimension_numbers = #tpu.dot_dimension_numbers<[1], [0], [0], [1], [0, 0, 1, 1], [], []>} : vector<8x128xbf16>, vector<128x384xbf16>, vector<8x384xf32> -> vector<8x384xf32>
      %88 = vector.extract_strided_slice %85 {offsets = [0, 0], sizes = [8, 256], strides = [1, 1]} : vector<8x384xf32> to vector<8x256xf32>
      %89 = vector.extract_strided_slice %87 {offsets = [0, 0], sizes = [8, 256], strides = [1, 1]} : vector<8x384xf32> to vector<8x256xf32>
      %90 = arith.addf %88, %89 : vector<8x256xf32>
      %91 = arith.negf %90 : vector<8x256xf32>
      %92 = math.exp %91 : vector<8x256xf32>
      %cst_58 = arith.constant 1.000000e+00 : f32
      %93 = vector.broadcast %cst_58 : f32 to vector<8x256xf32>
      %94 = arith.addf %93, %92 : vector<8x256xf32>
      %95 = arith.divf %93, %94 : vector<8x256xf32>
      %96 = vector.extract_strided_slice %95 {offsets = [0, 128], sizes = [8, 128], strides = [1, 1]} : vector<8x256xf32> to vector<8x128xf32>
      %97 = vector.extract_strided_slice %85 {offsets = [0, 256], sizes = [8, 128], strides = [1, 1]} : vector<8x384xf32> to vector<8x128xf32>
      %98 = vector.extract_strided_slice %95 {offsets = [0, 0], sizes = [8, 128], strides = [1, 1]} : vector<8x256xf32> to vector<8x128xf32>
      %99 = vector.extract_strided_slice %87 {offsets = [0, 256], sizes = [8, 128], strides = [1, 1]} : vector<8x384xf32> to vector<8x128xf32>
      %100 = vector.broadcast %5 : vector<1x128xf32> to vector<8x128xf32>
      %101 = arith.addf %99, %100 : vector<8x128xf32>
      %102 = arith.mulf %98, %101 : vector<8x128xf32>
      %103 = arith.addf %97, %102 : vector<8x128xf32>
      %104 = math.tanh %103 : vector<8x128xf32>
      %cst_59 = arith.constant 1.000000e+00 : f32
      %105 = vector.broadcast %cst_59 : f32 to vector<8x128xf32>
      %106 = arith.subf %105, %96 : vector<8x128xf32>
      %107 = arith.mulf %106, %104 : vector<8x128xf32>
      %108 = arith.mulf %96, %76 : vector<8x128xf32>
      %109 = arith.addf %107, %108 : vector<8x128xf32>
      %110 = arith.truncf %109 : vector<8x128xf32> to vector<8x128xbf16>
      %111 = arith.index_cast %82 : i32 to index
      %c0_60 = arith.constant 0 : index
      %c0_61 = arith.constant 0 : index
      %112 = vector.load %arg7[%111, %c0_60, %c0_61] : memref<2x8x128xbf16, #tpu.memory_space<vmem>>, vector<1x8x128xbf16>
      %113 = vector.shape_cast %112 : vector<1x8x128xbf16> to vector<8x128xbf16>
      %114 = vector.shape_cast %110 : vector<8x128xbf16> to vector<1x8x128xbf16>
      tpu.vector_store %arg7[%111, %c0_60, %c0_61], %114 {strides = array<i32>} : memref<2x8x128xbf16, #tpu.memory_space<vmem>>, vector<1x8x128xbf16>,
      %c2_i32 = arith.constant 2 : i32
      %c1_62 = arith.constant 1 : index
      %c0_63 = arith.constant 0 : index
      %c0_64 = arith.constant 0 : index
      %115 = vector.load %arg8[%c1_62, %c0_63, %c0_64] : memref<2x8x128xf32, #tpu.memory_space<vmem>>, vector<1x8x128xf32>
      %116 = vector.shape_cast %115 : vector<1x8x128xf32> to vector<8x128xf32>
      %117 = vector.shape_cast %109 : vector<8x128xf32> to vector<1x8x128xf32>
      tpu.vector_store %arg8[%c1_62, %c0_63, %c0_64], %117 {strides = array<i32>} : memref<2x8x128xf32, #tpu.memory_space<vmem>>, vector<1x8x128xf32>,
    } else {
    }
    return
  }
  func.func @transform_0(%arg0: i32, %arg1: i32) -> (i32, i32, i32) {
    %c2_i32 = arith.constant 2 : i32
    %0 = arith.muli %c2_i32, %arg1 : i32
    %c0_i32 = arith.constant 0 : i32
    %1 = arith.subi %c0_i32, %0 : i32
    %2 = arith.muli %arg0, %1 : i32
    %3 = arith.addi %arg1, %2 : i32
    %c0_i32_0 = arith.constant 0 : i32
    %c0_i32_1 = arith.constant 0 : i32
    %c0_i32_2 = arith.constant 0 : i32
    return %3, %c0_i32_0, %c0_i32_1 : i32, i32, i32
  }
  func.func @transform_1(%arg0: i32, %arg1: i32) -> (i32, i32, i32) {
    %c0_i32 = arith.constant 0 : i32
    %c0_i32_0 = arith.constant 0 : i32
    %c0_i32_1 = arith.constant 0 : i32
    return %arg0, %c0_i32, %c0_i32_0 : i32, i32, i32
  }
  func.func @transform_2(%arg0: i32, %arg1: i32) -> (i32, i32, i32) {
    %c0_i32 = arith.constant 0 : i32
    %c0_i32_0 = arith.constant 0 : i32
    %c0_i32_1 = arith.constant 0 : i32
    return %arg0, %c0_i32, %c0_i32_0 : i32, i32, i32
  }
  func.func @transform_3(%arg0: i32, %arg1: i32) -> (i32, i32, i32) {
    %c0_i32 = arith.constant 0 : i32
    %c0_i32_0 = arith.constant 0 : i32
    %c0_i32_1 = arith.constant 0 : i32
    return %arg0, %c0_i32, %c0_i32_0 : i32, i32, i32
  }
  func.func @transform_4(%arg0: i32, %arg1: i32) -> (i32, i32, i32) {
    %c0_i32 = arith.constant 0 : i32
    %c0_i32_0 = arith.constant 0 : i32
    %c0_i32_1 = arith.constant 0 : i32
    return %arg0, %c0_i32, %c0_i32_0 : i32, i32, i32
  }
  func.func @transform_5(%arg0: i32, %arg1: i32) -> (i32, i32, i32) {
    %c2_i32 = arith.constant 2 : i32
    %0 = arith.muli %c2_i32, %arg1 : i32
    %c0_i32 = arith.constant 0 : i32
    %1 = arith.subi %c0_i32, %0 : i32
    %2 = arith.muli %arg0, %1 : i32
    %3 = arith.addi %arg1, %2 : i32
    %c0_i32_0 = arith.constant 0 : i32
    %c0_i32_1 = arith.constant 0 : i32
    return %3, %c0_i32_0, %arg0 : i32, i32, i32
  }
}

</mosaic_0001>

<bundles_post_ra>
// kernel: pyramidal_encoder_pallas.3
= control target key start
LH: loop header
LB: loop body
LE: loop exit
PB: predicated region body
PF: predicated region fallthrough
CT: control target
= control target key end

     0   :  { %s6284_s0 = inlined_call_operand.hbm [shape: bf16[8,8,8], index: 0, kind: input, shape index: {}]   ;;  %s6285_s1 = inlined_call_operand.hbm [shape: bf16[2,8,384], index: 1, kind: input, shape index: {}]   ;;  %s6286_s2 = inlined_call_operand.hbm [shape: bf16[2,128,384], index: 2, kind: input, shape index: {}]   ;;  %s6287_s3 = inlined_call_operand.hbm [shape: f32[2,1,384], index: 3, kind: input, shape index: {}]   ;;  %s6288_s4 = inlined_call_operand.hbm [shape: f32[2,1,128], index: 4, kind: input, shape index: {}]   ;;  %s6289_s5 = inlined_call_operand.hbm [shape: bf16[8,8,256], index: 5, kind: output, shape index: {}]  }
   0x1   :  { %6331 = sst [smem:[#allocation39_spill]] %s6285_s1 }
   0x2   :  { %6332 = sst [smem:[#allocation40_spill]] %s6287_s3 }
   0x3   :  { %10 = vsyncpa [#allocation5], 0 }
   0x4   :  { %12 = vsyncpa [#allocation5 + $0x1], 0 }
   0x5   :  { %13 = vsyncpa [#allocation8], 0 }
   0x6   :  { %15 = vsyncpa [#allocation8 + $0x1], 0 }
   0x7   :  { %16 = vsyncpa [#allocation11], 0 }
   0x8   :  { %18 = vsyncpa [#allocation11 + $0x1], 0 }
   0x9   :  { %19 = vsyncpa [#allocation6], 0 }
   0xa   :  { %21 = vsyncpa [#allocation6 + $0x1], 0  ;;  %s4873_s18 = smov 0   ;;  %s4875_s19 = smov 0  }
   0xb   :  { %s4877_s20 = smov 0   ;;  %s4879_s21 = smov 0  }
   0xc   :  { %s4881_s22 = smov 0   ;;  %s4883_s23 = smov 0  }
   0xd LB: > { %6333 = sst [smem:[#allocation18_spill]] %s4805_s20  ;;  %s4904_s24 = sadd.s32 4294967295, %s4817_s23   ;;  %s4817_s23 = sphi %s4883_s23, %s27_s23   ;;  %s4813_s22 = sphi %s4881_s22, %s6405_s22   ;;  %s4809_s21 = sphi %s4879_s21, %s6404_s21   ;;  %s4805_s20 = sphi %s4877_s20, %s6400_s20   ;;  %s4801_s19 = sphi %s4875_s19, %s6403_s19   ;;  %s4797_s18 = sphi %s4873_s18, %s6402_s18  }
   0xe   : > { %6334 = sst [smem:[#allocation19_spill]] %s4817_s23  ;;  %s3603_s25 = sadd.s32 4294967294, %s4817_s23  }
   0xf   : > { %s39_s26 = sadd.s32 1, %s4813_s22  ;;  %s80_s27 = sadd.s32 1, %s4805_s20 }
  0x10   : > { %p41_p0 = scmp.ge.s32.totalorder %s39_s26, 2  ;;  %p87_p1 = scmp.ne.s32.totalorder %s4805_s20, %s4801_s19 }
  0x11   : > { %p6292_p2 = scmp.eq.s32.totalorder %s4817_s23, 0  ;;  %p93_p3 = scmp.ne.s32.totalorder %s4801_s19, %s4797_s18 }
  0x12   : > { %s6407_s26 = smov (%p41_p0, %s39_s26), 0  ;;  %p6290_p5 = scmp.eq.s32.totalorder %s4904_s24, 0 }
  0x13   : > { %6335 = sst [smem:[#allocation20_spill]] %s6407_s26  ;;  %p4918_p4 = por %p6292_p2, %p87_p1 }
  0x14   : > { %s77_s29 = ssub.s32 %s4813_s22, %s6407_s26  ;;  %p205_p6 = scmp.eq.s32.totalorder %s4904_s24, 1 }
  0x15   : > { %p78_p7 = scmp.eq.s32.totalorder %s77_s29, 0  ;;  %p4928_p8 = por %p6290_p5, %p93_p3 }
  0x16   : > { %p4932_p9 = por %p205_p6, %p87_p1  ;;  %p211_p10 = scmp.eq.s32.totalorder %s3603_s25, 1 }
  0x17   : > { %s6337_s30 = scalar_select %p4928_p8, 1, 0 }
  0x18   : > { %s6338_s6 = scalar_select %p4932_p9, 1, 0 }
  0x19   : > { %s4937_s7 = scalar_select %p78_p7, %s4805_s20, %s80_s27  }
  0x1a   : > { %p4939_p11 = por %p211_p10, %p93_p3  ;;  %p6291_p13 = scmp.lt.s32.totalorder %s4817_s23, 2 }
  0x1b   : > { %6339 = sst [smem:[#allocation21_spill]] %s4937_s7  ;;  %s6293_s9 = sand.u32 1, %s4817_s23  }
  0x1c   : > { %s6340_s8 = scalar_select %p4939_p11, 1, 0 }
  0x1d   : > { %s4947_s10 = sand.u32 1, %s4805_s20   ;;  %s4298_s12 = smul.u32 192, %s4813_s22 }
  0x1e   : > { %s4297_s11 = smul.u32 12, %s4947_s10  ;;  %p4955_p0 = pnand %p6291_p13, %p4918_p4 }
  0x1f   : > { %s6342_s1 = sld [smem:[#allocation39_spill]]  ;;  %s4969_s28 = scalar_lea.sflag [#allocation8], %s6293_s9 }
  0x20   : > { %s6341_s13 = scalar_select %p4955_p0, 1, 0 }
  0x21   : > { %s260_s25 = scalar_lea.vmem [#allocation7], %s4297_s11  ;;  %p4975_p3 = pneg %p4955_p0 }
  0x22   : > { %s268_s27 = sshll.u32 %s260_s25, 4  ;;  %s4965_s27 = int_to_ptr.vmem [resolvable:$true] %s268_s27 }
  0x23   : > { %s6343_s14 = scalar_select %p4975_p3, 1, 0 }
  0x25   : > { %s4963_s17 = scalar_lea.hbm %s6342_s1, %s4298_s12  ;;  %s4584_s11 = scalar_lea.hbm %s6342_s1, 384 }
  0x26   : > { %s4579_s29 = scalar_lea.hbm %s4963_s17, 192  ;;  %p4585_p7 = scmp.lt.u32.totalorder %s4963_s17, %s6342_s1 }
  0x27   : > { %p4580_p1 = scmp.ne.s32.totalorder %s4963_s17, %s4579_s29  ;;  %p4586_p10 = scmp.lt.u32.totalorder %s4584_s11, %s4579_s29 }
  0x28   : > { %p4588_p5 = scmp.lt.u32.totalorder %s4579_s29, %s4963_s17 }
  0x29   : > { %p4582_p4 = pnand %p4975_p3, %p4580_p1  ;;  %p4587_p12 = por %p4586_p10, %p4585_p7 }
  0x2b   : > { %p4583_p6 = pneg %p4582_p4  ;;  %p4589_p13 = por %p4588_p5, %p4587_p12 }
  0x2d   : > { %p4590_p2 = pnand %p4589_p13, %p4583_p6 }
  0x2f   : > { %4593 = shalt.err (!%p4590_p2)
}
  0x30   : > { %s4594_s9 = scalar_lea.vmem %s4965_s27, 192  ;;  %s4819_s12 = smov [#allocation7]  }
  0x31   : > { %p4595_p1 = scmp.ne.s32.totalorder %s4965_s27, %s4594_s9  ;;  %s4599_s15 = sshll.u32 %s4819_s12, 4  ;;  %s4600_s15 = int_to_ptr.vmem [resolvable:$false] %s4599_s15 }
  0x32   : > { %s4601_s16 = scalar_lea.vmem %s4600_s15, 384  ;;  %p4602_p9 = scmp.lt.s32.totalorder %s4965_s27, %s4600_s15 }
  0x33   : > { %p4597_p4 = pnand %p4595_p1, %p4975_p3  ;;  %p4603_p8 = scmp.lt.s32.totalorder %s4601_s16, %s4594_s9 }
  0x35   : > { %p4598_p11 = pneg %p4597_p4  ;;  %p4604_p7 = por %p4603_p8, %p4602_p9 }
  0x37   : > { %p4605_p10 = pnand %p4604_p7, %p4598_p11 }
  0x39   : > { %4608 = shalt.err (!%p4605_p10)
}
  0x3a   : > { %4326 = dma.hbm_to_vmem [thread:$0]  (!%p4955_p0), %s4963_s17, 192, %s4965_s27, %s4969_s28  }
  0x3b   : > { %p3611_p2 = scmp.ge.s32.totalorder %s4817_s23, 1  ;;  %p330_p5 = scmp.lt.s32.totalorder %s4817_s23, 3 }
  0x3c   : > { %s4301_s29 = smul.u32 3, %s4947_s10  ;;  %s6345_s3 = sld [smem:[#allocation40_spill]] }
  0x3d   : > { %p5002_p12 = pnand %p3611_p2, %p330_p5  ;;  %s4302_s11 = smul.u32 48, %s4813_s22 }
  0x3e   : > { %s300_s16 = scalar_lea.vmem [#allocation10], %s4301_s29  ;;  %s6346_s17 = sand.u32 1, %s4817_s23  }
  0x3f   : > { %s6344_s9 = scalar_select %p5002_p12, 1, 0 }
  0x40   : > { %s308_s1 = sshll.u32 %s300_s16, 4  ;;  %s5014_s27 = scalar_lea.sflag [#allocation11], %s6346_s17  ;;  %s309_s1 = int_to_ptr.vmem [resolvable:$true] %s308_s1 }
  0x42   : > { %s5010_s15 = scalar_lea.hbm %s6345_s3, %s4302_s11  ;;  %s4614_s11 = scalar_lea.hbm %s6345_s3, 96 }
  0x43   : > { %s4609_s26 = scalar_lea.hbm %s5010_s15, 48  ;;  %p4615_p13 = scmp.lt.u32.totalorder %s5010_s15, %s6345_s3 }
  0x44   : > { %p4610_p8 = scmp.ne.s32.totalorder %s5010_s15, %s4609_s26  ;;  %p4616_p6 = scmp.lt.u32.totalorder %s4614_s11, %s4609_s26 }
  0x45   : > { %p4618_p4 = scmp.lt.u32.totalorder %s4609_s26, %s5010_s15 }
  0x46   : > { %p4612_p9 = pnand %p4610_p8, %p4975_p3  ;;  %p4617_p1 = por %p4616_p6, %p4615_p13 }
  0x48   : > { %p4613_p11 = pneg %p4612_p9  ;;  %p4619_p7 = por %p4618_p4, %p4617_p1 }
  0x4a   : > { %p4620_p10 = pnand %p4619_p7, %p4613_p11 }
  0x4c   : > { %4623 = shalt.err (!%p4620_p10)
}
  0x4d   : > { %s4624_s29 = scalar_lea.vmem %s309_s1, 48  ;;  %s4820_s16 = smov [#allocation10]  }
  0x4e   : > { %p4625_p2 = scmp.ne.s32.totalorder %s309_s1, %s4624_s29  ;;  %s4629_s17 = sshll.u32 %s4820_s16, 4  ;;  %s4630_s17 = int_to_ptr.vmem [resolvable:$false] %s4629_s17 }
  0x4f   : > { %s4631_s20 = scalar_lea.vmem %s4630_s17, 96  ;;  %p4632_p9 = scmp.lt.s32.totalorder %s309_s1, %s4630_s17 }
  0x50   : > { %p4627_p5 = pnand %p4625_p2, %p4975_p3  ;;  %p4633_p12 = scmp.lt.s32.totalorder %s4631_s20, %s4624_s29 }
  0x52   : > { %p4628_p8 = pneg %p4627_p5  ;;  %p4634_p0 = por %p4633_p12, %p4632_p9 }
  0x54   : > { %p4635_p6 = pnand %p4634_p0, %p4628_p8 }
  0x56   : > { %4638 = shalt.err (!%p4635_p6)
}
  0x57   : > { %p6347_p13 = scmp.ne.s32.totalorder %s6341_s13, 0  ;;  %p6348_p11 = scmp.eq.s32.totalorder %s4817_s23, 0 }
  0x58   : > { %p6349_p1 = scmp.lt.s32.totalorder %s4817_s23, 2  ;;  %s4821_s7 = smov [#allocation4]  }
  0x59   : > { %4332 = dma.hbm_to_vmem [thread:$0]  (!%p6347_p13), %s5010_s15, 48, %s309_s1, %s5014_s27  }
  0x5a   : > { %p5038_p4 = pnand %p6349_p1, %p6348_p11  ;;  %s246_s11 = sshll.u32 %s4821_s7, 4  ;;  %s247_s11 = int_to_ptr.vmem [resolvable:$true] %s246_s11 }
  0x5b   : > { %s4639_s29 = scalar_lea.hbm %s6284_s0, 512 }
  0x5c   : > { %p4640_p0 = scmp.ne.s32.totalorder %s6284_s0, %s4639_s29  ;;  %p4641_p12 = pneg %p5038_p4 }
  0x5d   : > { %p4646_p2 = scmp.lt.u32.totalorder %s4639_s29, %s6284_s0 }
  0x5e   : > { %p4642_p7 = pnand %p4641_p12, %p4640_p0 }
  0x60   : > { %p4643_p10 = pneg %p4642_p7 }
  0x62   : > { %p4648_p5 = pnand %p4646_p2, %p4643_p10 }
  0x64   : > { %4651 = shalt.err (!%p4648_p5)
}
  0x65   : > { %s4652_s20 = scalar_lea.vmem %s247_s11, 512  ;;  %s4659_s7 = scalar_lea.vmem %s247_s11, 1024 }
  0x66   : > { %p4653_p8 = scmp.ne.s32.totalorder %s247_s11, %s4652_s20  ;;  %p4660_p11 = scmp.lt.s32.totalorder %s247_s11, %s247_s11 }
  0x67   : > { %p4661_p1 = scmp.lt.s32.totalorder %s4659_s7, %s4652_s20 }
  0x68   : > { %p4655_p9 = pnand %p4653_p8, %p4641_p12 }
  0x69   : > { %p4662_p13 = por %p4661_p1, %p4660_p11 }
  0x6a   : > { %p4656_p6 = pneg %p4655_p9 }
  0x6c   : > { %p4663_p3 = pnand %p4662_p13, %p4656_p6 }
  0x6e   : > { %4666 = shalt.err (!%p4663_p3)
}
  0x6f   : > { %s4822_s25 = smov 64   ;;  %s4823_s12 = smov 4  }
  0x70   : > { %4323 = dma.hbm_to_vmem [thread:$0]  (!%p5038_p4), %s6284_s0, 512, %s247_s11, [#allocation5], %s4822_s25, %s4822_s25, %s4823_s12  }
  0x71   : > { %s4300_s17 = smul.u32 3072, %s4813_s22  ;;  %p6352_p13 = scmp.ne.s32.totalorder %s6343_s14, 0 }
  0x72   : > { %s6351_s1 = smul.u32 192, %s4947_s10  ;;  %s4672_s12 = scalar_lea.hbm %s6286_s2, 6144 }
  0x73   : > { %s5066_s23 = scalar_lea.hbm %s6286_s2, %s4300_s17 }
  0x74   : > { %s279_s15 = scalar_lea.vmem [#allocation9], %s6351_s1  ;;  %s4667_s26 = scalar_lea.hbm %s5066_s23, 3072 }
  0x75   : > { %s286_s3 = sshll.u32 %s279_s15, 4  ;;  %p4668_p3 = scmp.ne.s32.totalorder %s5066_s23, %s4667_s26  ;;  %s5061_s3 = int_to_ptr.vmem [resolvable:$true] %s286_s3 }
  0x76   : > { %p4673_p12 = scmp.lt.u32.totalorder %s5066_s23, %s6286_s2  ;;  %p4674_p7 = scmp.lt.u32.totalorder %s4672_s12, %s4667_s26 }
  0x77   : > { %p4670_p0 = pnand %p4668_p3, %p6352_p13  ;;  %p4676_p2 = scmp.lt.u32.totalorder %s4667_s26, %s5066_s23 }
  0x78   : > { %p4675_p10 = por %p4674_p7, %p4673_p12 }
  0x79   : > { %p4671_p4 = pneg %p4670_p0 }
  0x7a   : > { %p4677_p5 = por %p4676_p2, %p4675_p10 }
  0x7c   : > { %p4678_p8 = pnand %p4677_p5, %p4671_p4 }
  0x7e   : > { %4681 = shalt.err (!%p4678_p8)
}
  0x7f   : > { %s4682_s17 = scalar_lea.vmem %s5061_s3, 3072  ;;  %s4824_s1 = smov [#allocation9]  }
  0x80   : > { %p4683_p9 = scmp.ne.s32.totalorder %s5061_s3, %s4682_s17  ;;  %s4687_s15 = sshll.u32 %s4824_s1, 4  ;;  %s4688_s15 = int_to_ptr.vmem [resolvable:$false] %s4687_s15 }
  0x81   : > { %s4689_s20 = scalar_lea.vmem %s4688_s15, 6144  ;;  %p4690_p1 = scmp.lt.s32.totalorder %s5061_s3, %s4688_s15 }
  0x82   : > { %p4685_p6 = pnand %p4683_p9, %p6352_p13  ;;  %p4691_p3 = scmp.lt.s32.totalorder %s4689_s20, %s4682_s17 }
  0x84   : > { %p4686_p11 = pneg %p4685_p6  ;;  %p4692_p0 = por %p4691_p3, %p4690_p1 }
  0x86   : > { %p4693_p12 = pnand %p4692_p0, %p4686_p11 }
  0x88   : > { %4696 = shalt.err (!%p4693_p12)
}
  0x89   : > { %s4825_s7 = smov 192   ;;  %s4826_s26 = smov 12  }
  0x8a   : > { %p6353_p4 = scmp.ne.s32.totalorder %s6341_s13, 0  ;;  %s3610_s11 = sshll.u32 %s4813_s22, 4 }
  0x8b   : > { %s5094_s29 = scalar_lea.hbm %s6288_s4, %s3610_s11  ;;  %s318_s16 = scalar_lea.vmem [#allocation12], %s4947_s10 }
  0x8c   : > { %4329 = dma.hbm_to_vmem [thread:$0]  (!%p6353_p4), %s5066_s23, 3072, %s5061_s3, %s4969_s28, %s4825_s7, %s4825_s7, %s4826_s26  }
  0x8d   : > { %s325_s17 = sshll.u32 %s318_s16, 4  ;;  %s4697_s1 = scalar_lea.hbm %s5094_s29, 16  ;;  %s326_s17 = int_to_ptr.vmem [resolvable:$true] %s325_s17 }
  0x8e   : > { %p4698_p7 = scmp.ne.s32.totalorder %s5094_s29, %s4697_s1  ;;  %s4702_s23 = scalar_lea.hbm %s6288_s4, 32 }
  0x8f   : > { %p4703_p5 = scmp.lt.u32.totalorder %s5094_s29, %s6288_s4  ;;  %p4704_p8 = scmp.lt.u32.totalorder %s4702_s23, %s4697_s1 }
  0x90   : > { %p4700_p10 = pnand %p4698_p7, %p6352_p13  ;;  %p4706_p6 = scmp.lt.u32.totalorder %s4697_s1, %s5094_s29 }
  0x91   : > { %p4705_p9 = por %p4704_p8, %p4703_p5 }
  0x92   : > { %p4701_p2 = pneg %p4700_p10 }
  0x93   : > { %p4707_p11 = por %p4706_p6, %p4705_p9 }
  0x95   : > { %p4708_p1 = pnand %p4707_p11, %p4701_p2 }
  0x97   : > { %4711 = shalt.err (!%p4708_p1)
}
  0x98   : > { %s4712_s10 = scalar_lea.vmem %s326_s17, 16  ;;  %s4827_s7 = smov [#allocation12]  }
  0x99   : > { %p4713_p3 = scmp.ne.s32.totalorder %s326_s17, %s4712_s10  ;;  %s4717_s26 = sshll.u32 %s4827_s7, 4  ;;  %s4718_s26 = int_to_ptr.vmem [resolvable:$false] %s4717_s26 }
  0x9a   : > { %s4719_s11 = scalar_lea.vmem %s4718_s26, 32  ;;  %p4720_p7 = scmp.lt.s32.totalorder %s326_s17, %s4718_s26 }
  0x9b   : > { %p4715_p0 = pnand %p4713_p3, %p6352_p13  ;;  %p4721_p10 = scmp.lt.s32.totalorder %s4719_s11, %s4712_s10 }
  0x9d   : > { %p4716_p12 = pneg %p4715_p0  ;;  %p4722_p4 = por %p4721_p10, %p4720_p7 }
  0x9f   : > { %p4723_p5 = pnand %p4722_p4, %p4716_p12 }
  0xa1   : > { %4726 = shalt.err (!%p4723_p5)
}
  0xa2   : > { %p6354_p8 = scmp.ne.s32.totalorder %s6341_s13, 0  ;;  %p6355_p2 = scmp.ne.s32.totalorder %s6344_s9, 0 }
  0xa4   : > { %4335 = dma.hbm_to_vmem [thread:$0]  (!%p6354_p8), %s5094_s29, 16, %s326_s17, %s5014_s27  }
  0xa5   : > { %334 = sbr.rel (%p6355_p2) target bundleno = 4747 (0x128b), region = 40 }
  0xac   : > { %p6356_p13 = scmp.eq.s32.totalorder %s4904_s24, 0 }
  0xae   : > { %4780 = dma.done.wait (%p6356_p13), [#allocation5], 512   ;;  %p6357_p9 = pmov %p6356_p13 }
  0xaf   : > { %s345_s14 = sand.u32 1, %s4904_s24   ;;  %s5123_s25 = sand.u32 1, %s4801_s19  }
  0xb0   : > { %4782 = vsyncadd (%p6357_p9), [#allocation5], 4294966784  ;;  %s4303_s13 = smul.u32 12, %s5123_s25  ;;  %s346_s12 = scalar_lea.sflag [#allocation8], %s345_s14 }
  0xb1   : > { %p6358_p4 = scmp.ne.s32.totalorder %s6337_s30, 0 }
  0xb2   : > { %s5126_s16 = scalar_lea.vmem [#allocation7], %s4303_s13 }
  0xb3   : > { %4784 = dma.done.wait (%p6358_p4), %s346_s12, 3264  }
  0xb4   : > { %4786 = vsyncadd (%p6358_p4), %s346_s12, 4294964032  ;;  %s4304_s9 = smul.u32 192, %s5123_s25  ;;  %s364_s24 = scalar_lea.sflag [#allocation11], %s345_s14 }
  0xb5   : > { %s4305_s27 = smul.u32 3, %s5123_s25 }
  0xb6   : > { %s5134_s29 = scalar_lea.vmem [#allocation9], %s4304_s9 }
  0xb7   : > { %s5136_s17 = scalar_lea.vmem [#allocation10], %s4305_s27 }
  0xb8   : > { %4788 = dma.done.wait (%p6358_p4), %s364_s24, 64  }
  0xb9   : > { %4790 = vsyncadd (%p6358_p4), %s364_s24, 4294967232  ;;  %s3613_s1 = sshll.u32 %s5123_s25, 5  ;;  %v4828_v0 = vmov 0.0   ;;  %v4829_v1 = vmov 0   ;;  %vm4830_vm0 = vmmov 0   ;;  %v5148_v2 = vld [vmem:[%s5134_s29] sm:$0xff]  ;;  %v573_v63 = vlaneseq }
  0xba   : > { %3929 = vmatprep.subr.bf16.mxu1 %v4828_v0  ;;  %523 = vmatprep.mubr.bf16.mxu0 %v4829_v1  ;;  %v5151_v3 = vld [vmem:[%s5134_s29 + $0x8] sm:$0xf]  ;;  %v5154_v4 = vld [vmem:[%s5134_s29 + $0xc] sm:$0xff]  ;;  %v5157_v5 = vld [vmem:[%s5134_s29 + $0x14] sm:$0xf]  ;;  %s375_s30 = scalar_lea.vmem [#allocation12], %s5123_s25 }
  0xbb   : > { %3931 = vmatprep.mubr.msk.bf16.mxu1 %vm4830_vm0, %v4828_v0  ;;  %v5160_v6 = vld [vmem:[%s5134_s29 + $0x18] sm:$0xff]  ;;  %v5163_v7 = vld [vmem:[%s5134_s29 + $0x20] sm:$0xf]  ;;  %v5166_v8 = vld [vmem:[%s5134_s29 + $0x24] sm:$0xff]  ;;  %vm481_vm1 = vcmask 1043456   ;;  %vm477_vm2 = vcmask 64512  }
  0xbc   : > { %v5169_v9 = vld [vmem:[%s5134_s29 + $0x2c] sm:$0xf]  ;;  %v5172_v10 = vld [vmem:[%s5134_s29 + $0x30] sm:$0xff]  ;;  %v5175_v11 = vld [vmem:[%s5134_s29 + $0x38] sm:$0xf]  ;;  %s5372_s15 = scalar_lea.vmem [#allocation13], %s3613_s1 }
  0xbd   : > { %v5178_v12 = vld [vmem:[%s5134_s29 + $0x3c] sm:$0xff]  ;;  %v5181_v13 = vld [vmem:[%s5134_s29 + $0x44] sm:$0xf]  ;;  %v5184_v14 = vld [vmem:[%s5134_s29 + $0x48] sm:$0xff]  ;;  %p3669_p6 = scmp.ne.s32.totalorder %s4809_s21, 0 }
  0xbe   : > { %v5187_v15 = vld [vmem:[%s5134_s29 + $0x50] sm:$0xf]  ;;  %v5190_v16 = vld [vmem:[%s5134_s29 + $0x54] sm:$0xff]  ;;  %v5193_v17 = vld [vmem:[%s5134_s29 + $0x5c] sm:$0xf]  ;;  %vm4833_vm3 = vmmov (!%p3669_p6), 0  }
  0xbf   : > { %6359 = vst [vmem:[#allocation22_spill] sm:$0xff] %v5187_v15  ;;  %v5196_v18 = vld [vmem:[%s5134_s29 + $0x60] sm:$0xff]  ;;  %v5199_v19 = vld [vmem:[%s5134_s29 + $0x68] sm:$0xf]  ;;  %v5202_v20 = vld [vmem:[%s5134_s29 + $0x6c] sm:$0xff] }
  0xc0   : > { %6360 = vst [vmem:[#allocation23_spill] sm:$0xff] %v5199_v19  ;;  %v5205_v21 = vld [vmem:[%s5134_s29 + $0x74] sm:$0xf]  ;;  %v5208_v22 = vld [vmem:[%s5134_s29 + $0x78] sm:$0xff]  ;;  %v5211_v23 = vld [vmem:[%s5134_s29 + $0x80] sm:$0xf] }
  0xc1   : > { %6361 = vst [vmem:[#allocation24_spill] sm:$0xff] %v5205_v21  ;;  %6362 = vst [vmem:[#allocation25_spill] sm:$0xff] %v5208_v22  ;;  %v5214_v24 = vld [vmem:[%s5134_s29 + $0x84] sm:$0xff]  ;;  %v5217_v25 = vld [vmem:[%s5134_s29 + $0x8c] sm:$0xf] }
  0xc2   : > { %6363 = vst [vmem:[#allocation26_spill] sm:$0xff] %v5211_v23  ;;  %6364 = vst [vmem:[#allocation27_spill] sm:$0xff] %v5214_v24  ;;  %v5220_v26 = vld [vmem:[%s5134_s29 + $0x90] sm:$0xff]  ;;  %v5223_v27 = vld [vmem:[%s5134_s29 + $0x98] sm:$0xf] }
  0xc3   : > { %6365 = vst [vmem:[#allocation28_spill] sm:$0xff] %v5217_v25  ;;  %6366 = vst [vmem:[#allocation29_spill] sm:$0xff] %v5220_v26  ;;  %v5226_v28 = vld [vmem:[%s5134_s29 + $0x9c] sm:$0xff]  ;;  %v5229_v29 = vld [vmem:[%s5134_s29 + $0xa4] sm:$0xf] }
  0xc4   : > { %6367 = vst [vmem:[#allocation30_spill] sm:$0xff] %v5223_v27  ;;  %6368 = vst [vmem:[#allocation31_spill] sm:$0xff] %v5226_v28  ;;  %v5232_v30 = vld [vmem:[%s5134_s29 + $0xa8] sm:$0xff]  ;;  %v5235_v31 = vld [vmem:[%s5134_s29 + $0xb0] sm:$0xf] }
  0xc5   : > { %6369 = vst [vmem:[#allocation32_spill] sm:$0xff] %v5229_v29  ;;  %6370 = vst [vmem:[#allocation33_spill] sm:$0xff] %v5232_v30  ;;  %v5238_v32 = vld [vmem:[%s5134_s29 + $0xb4] sm:$0xff]  ;;  %v5241_v33 = vld [vmem:[%s5134_s29 + $0xbc] sm:$0xf] }
  0xc6   : > { %6371 = vst [vmem:[#allocation34_spill] sm:$0xff] %v5235_v31  ;;  %6372 = vst [vmem:[#allocation35_spill] sm:$0xff] %v5238_v32  ;;  %v5244_v34 = vld [vmem:[%s375_s30] sm:$0x1]  ;;  %v4411_v36 = vld [vmem:[%s5126_s16 + $0x8] ss:$0 sps:$4 sm:$0xff]  }
  0xc7   : > { %6373 = vst [vmem:[#allocation36_spill] sm:$0xff] %v5241_v33  ;;  %6374 = vst [vmem:[#allocation37_spill] sm:$0xff] %v5244_v34  ;;  %v467_v35 = vld [vmem:[%s5126_s16] sm:$0xff]  ;;  %v4412_v39 = vld [vmem:[%s5126_s16 + $0x8] ss:$0 sps:$4 sm:$0xff]   ;;  %v489_v40 = vsel %vm481_vm1, %v4411_v36, 0 }
  0xc8   : > { %v5248_v37 = vcombine.high %v467_v35, %v467_v35  ;;  %v3614_v38 = vcombine.low %v467_v35, %v467_v35  ;;  %3930 = vmatpush3.bf16.msra.mxu1 %v489_v40  ;;  %v466_v42 = vld [vmem:[#allocation4] sm:$0xf]  ;;  %v616_v43 = vsel %vm481_vm1, %v4412_v39, 0  ;;  %v4413_v44 = vld [vmem:[%s5126_s16 + $0x8] ss:$0 sps:$4 sm:$0xff]   ;;  %v574_v35 = vshrl.u32 %v573_v63, 7 }
  0xc9   : > { %3935 = vmatprep.subr.bf16.mxu1 %v4828_v0  ;;  %v3620_v45 = vld [vmem:[#allocation4 + $0x4] sm:$0xf]  ;;  %v728_v46 = vsel %vm481_vm1, %v4413_v44, 0  ;;  %v4414_v47 = vld [vmem:[%s5126_s16 + $0x8] ss:$0 sps:$4 sm:$0xff]  }
  0xca   : > { %3617 = vmatprep.subr.msk.bf16.mxu0 %vm481_vm1, %v5248_v37  ;;  %v5255_v41 = vsel %vm481_vm1, %v3614_v38, 0  ;;  %v3627_v48 = vld [vmem:[#allocation4 + $0x8] sm:$0xf]  ;;  %v840_v49 = vsel %vm481_vm1, %v4414_v47, 0  ;;  %v3634_v51 = vld [vmem:[#allocation4 + $0xc] sm:$0xf] }
  0xcb   : > { %492 = vmatpush1.bf16.msra.mxu0 %v5255_v41  ;;  %3932 = vmatmul.mubr.msk.bf16.vlgmr.msra.gmra.mrb[0].mxu1 %vm477_vm2, %v466_v42  ;;  %v4415_v50 = vld [vmem:[%s5126_s16 + $0x8] ss:$0 sps:$4 sm:$0xff]   ;;  %v3641_v54 = vld [vmem:[#allocation4 + $0x10] sm:$0xf]  ;;  %v3655_v60 = vld [vmem:[#allocation4 + $0x18] sm:$0xf] }
  0xcc   : > { %3624 = vmatprep.subr.msk.bf16.mxu0 %vm481_vm1, %v5248_v37  ;;  %3936 = vmatpush3.bf16.msra.mxu1 %v616_v43  ;;  %v952_v52 = vsel %vm481_vm1, %v4415_v50, 0  ;;  %v4416_v53 = vld [vmem:[%s5126_s16 + $0x8] ss:$0 sps:$4 sm:$0xff]   ;;  %v3662_v62 = vld [vmem:[#allocation4 + $0x1c] sm:$0xf]  ;;  %v583_v36 = vsub.s32 2, %v574_v35 }
  0xcd   : > { %3937 = vmatprep.mubr.msk.bf16.mxu1 %vm4830_vm0, %v4828_v0  ;;  %3941 = vmatprep.subr.bf16.mxu1 %v4828_v0  ;;  %v1064_v55 = vsel %vm481_vm1, %v4416_v53, 0  ;;  %v4417_v56 = vld [vmem:[%s5126_s16 + $0x8] ss:$0 sps:$4 sm:$0xff]   ;;  %v5337_v38 = vsub.s32 0, %v574_v35  ;;  %v579_v39 = vsub.s32 1, %v574_v35 }
  0xce   : > { %3618 = vmatmul.mubr.msk.bf16.vlgmr.msra.gmra.mrb[0].mxu0 %vm477_vm2, %v466_v42  ;;  %v3648_v57 = vld [vmem:[#allocation4 + $0x14] sm:$0xf]  ;;  %v1176_v58 = vsel %vm481_vm1, %v4417_v56, 0 }
  0xcf   : > { %619 = vmatpush1.bf16.msra.mxu0 %v5255_v41  ;;  %650 = vmatprep.mubr.bf16.mxu0 %v4829_v1  ;;  %v4418_v59 = vld [vmem:[%s5126_s16 + $0x8] ss:$0 sps:$4 sm:$0xff]   ;;  %6375 = vst [vmem:[#allocation38_spill] sm:$0xff] %v5337_v38 }
  0xd0   : > { %3631 = vmatprep.subr.msk.bf16.mxu0 %vm481_vm1, %v5248_v37  ;;  %v1288_v61 = vsel %vm481_vm1, %v4418_v59, 0 }
  0xd3   : > { %3938 = vmatmul.mubr.msk.bf16.vlgmr.msra.gmra.mrb[4].mxu1 %vm477_vm2, %v3620_v45 }
  0xd4   : > { %3942 = vmatpush3.bf16.msra.mxu1 %v728_v46  ;;  %3943 = vmatprep.mubr.msk.bf16.mxu1 %vm4830_vm0, %v4828_v0 }
  0xd5   : > { %3947 = vmatprep.subr.bf16.mxu1 %v4828_v0 }
  0xd6   : > { %3625 = vmatmul.mubr.msk.bf16.vlgmr.msra.gmra.mrb[4].mxu0 %vm477_vm2, %v3620_v45 }
  0xd7   : > { %731 = vmatpush1.bf16.msra.mxu0 %v5255_v41  ;;  %762 = vmatprep.mubr.bf16.mxu0 %v4829_v1 }
  0xd8   : > { %3638 = vmatprep.subr.msk.bf16.mxu0 %vm481_vm1, %v5248_v37 }
  0xdb   : > { %3944 = vmatmul.mubr.msk.bf16.vlgmr.msra.gmra.mrb[8].mxu1 %vm477_vm2, %v3627_v48 }
  0xdc   : > { %3948 = vmatpush3.bf16.msra.mxu1 %v840_v49  ;;  %3949 = vmatprep.mubr.msk.bf16.mxu1 %vm4830_vm0, %v4828_v0 }
  0xdd   : > { %3953 = vmatprep.subr.bf16.mxu1 %v4828_v0 }
  0xde   : > { %3632 = vmatmul.mubr.msk.bf16.vlgmr.msra.gmra.mrb[8].mxu0 %vm477_vm2, %v3627_v48 }
  0xdf   : > { %843 = vmatpush1.bf16.msra.mxu0 %v5255_v41  ;;  %874 = vmatprep.mubr.bf16.mxu0 %v4829_v1 }
  0xe0   : > { %3645 = vmatprep.subr.msk.bf16.mxu0 %vm481_vm1, %v5248_v37 }
  0xe3   : > { %3950 = vmatmul.mubr.msk.bf16.vlgmr.msra.gmra.mrb[12].mxu1 %vm477_vm2, %v3634_v51 }
  0xe4   : > { %3954 = vmatpush3.bf16.msra.mxu1 %v952_v52  ;;  %3955 = vmatprep.mubr.msk.bf16.mxu1 %vm4830_vm0, %v4828_v0 }
  0xe5   : > { %3959 = vmatprep.subr.bf16.mxu1 %v4828_v0 }
  0xe6   : > { %3639 = vmatmul.mubr.msk.bf16.vlgmr.msra.gmra.mrb[12].mxu0 %vm477_vm2, %v3634_v51 }
  0xe7   : > { %955 = vmatpush1.bf16.msra.mxu0 %v5255_v41  ;;  %986 = vmatprep.mubr.bf16.mxu0 %v4829_v1 }
  0xe8   : > { %3652 = vmatprep.subr.msk.bf16.mxu0 %vm481_vm1, %v5248_v37 }
  0xeb   : > { %3956 = vmatmul.mubr.msk.bf16.vlgmr.msra.gmra.mrb[16].mxu1 %vm477_vm2, %v3641_v54 }
  0xec   : > { %3960 = vmatpush3.bf16.msra.mxu1 %v1064_v55  ;;  %3961 = vmatprep.mubr.msk.bf16.mxu1 %vm4830_vm0, %v4828_v0 }
  0xed   : > { %3965 = vmatprep.subr.bf16.mxu1 %v4828_v0 }
  0xee   : > { %3646 = vmatmul.mubr.msk.bf16.vlgmr.msra.gmra.mrb[16].mxu0 %vm477_vm2, %v3641_v54 }
  0xef   : > { %1067 = vmatpush1.bf16.msra.mxu0 %v5255_v41  ;;  %1098 = vmatprep.mubr.bf16.mxu0 %v4829_v1 }
  0xf0   : > { %3659 = vmatprep.subr.msk.bf16.mxu0 %vm481_vm1, %v5248_v37 }
  0xf3   : > { %3962 = vmatmul.mubr.msk.bf16.vlgmr.msra.gmra.mrb[20].mxu1 %vm477_vm2, %v3648_v57 }
  0xf4   : > { %3966 = vmatpush3.bf16.msra.mxu1 %v1176_v58  ;;  %3967 = vmatprep.mubr.msk.bf16.mxu1 %vm4830_vm0, %v4828_v0 }
  0xf5   : > { %3971 = vmatprep.subr.bf16.mxu1 %v4828_v0 }
  0xf6   : > { %3653 = vmatmul.mubr.msk.bf16.vlgmr.msra.gmra.mrb[20].mxu0 %vm477_vm2, %v3648_v57 }
  0xf7   : > { %1179 = vmatpush1.bf16.msra.mxu0 %v5255_v41  ;;  %1210 = vmatprep.mubr.bf16.mxu0 %v4829_v1 }
  0xf8   : > { %3666 = vmatprep.subr.msk.bf16.mxu0 %vm481_vm1, %v5248_v37  ;;  %v464_v37 = vld [vmem:[%s5136_s17] sm:$0x7] }
  0xf9   : > { %v5339_v40 = vrot.slane %v464_v37, %v583_v36 }
  0xfb   : > { %3968 = vmatmul.mubr.msk.bf16.vlgmr.msra.gmra.mrb[24].mxu1 %vm477_vm2, %v3655_v60 }
  0xfc   : > { %3972 = vmatpush3.bf16.msra.mxu1 %v1288_v61  ;;  %3973 = vmatprep.mubr.msk.bf16.mxu1 %vm4830_vm0, %v4828_v0 }
  0xfe   : > { %3660 = vmatmul.mubr.msk.bf16.vlgmr.msra.gmra.mrb[24].mxu0 %vm477_vm2, %v3655_v60 }
  0xff   : > { %1291 = vmatpush1.bf16.msra.mxu0 %v5255_v41  ;;  %1322 = vmatprep.mubr.bf16.mxu0 %v4829_v1  ;;  %v5342_v41 = vrot.slane %v464_v37, %v5337_v38  ;;  %v5344_v1 = vrot.slane %v464_v37, %v579_v39 }
 0x103   : > { %3974 = vmatmul.mubr.msk.bf16.vlgmr.msra.gmra.mrb[28].mxu1 %vm477_vm2, %v3662_v62 }
 0x106   : > { %3667 = vmatmul.mubr.msk.bf16.vlgmr.msra.gmra.mrb[28].mxu0 %vm477_vm2, %v3662_v62 }
 0x19e   : > { %v566_v0 = vpop.f32.mrb[0].mxu1 }
 0x19f   : > { %v590_v43 = vadd.f32 %v5339_v40, %v566_v0  ;;  %v3933_v44 = vpop.f32.mrb[1].mxu1 }
 0x1a0   : > { %v569_v47 = vpop.f32.mrb[2].mxu1 }
 0x1a1   : > { %v525_v42 = vpop.f32.mrb[0].mxu0  ;;  %593 = vst [vmem:[#allocation3 + $0x10] sm:$0xff] %v590_v43  ;;  %v3934_v50 = vpop.f32.mrb[3].mxu1 }
 0x1a2   : > { %v588_v45 = vadd.f32 %v5342_v41, %v525_v42  ;;  %v527_v46 = vpop.f32.mrb[1].mxu0 }
 0x1a3   : > { %v589_v48 = vadd.f32 %v5344_v1, %v527_v46  ;;  %v529_v49 = vpop.f32.mrb[2].mxu0 }
 0x1a4   : > { %591 = vst [vmem:[#allocation3] sm:$0xff] %v588_v45  ;;  %v530_v51 = vpop.f32.mrb[3].mxu0 }
 0x1a5   : > { %592 = vst [vmem:[#allocation3 + $0x8] sm:$0xff] %v589_v48 }
 0x1a6   : > { %v693_v52 = vpop.f32.mrb[4].mxu1 }
 0x1a7   : > { %v701_v54 = vadd.f32 %v693_v52, %v5339_v40  ;;  %v3939_v55 = vpop.f32.mrb[5].mxu1 }
 0x1a8   : > { %v696_v58 = vpop.f32.mrb[6].mxu1 }
 0x1a9   : > { %v652_v53 = vpop.f32.mrb[4].mxu0  ;;  %705 = vst [vmem:[#allocation3 + $0x28] sm:$0xff] %v701_v54  ;;  %v3940_v61 = vpop.f32.mrb[7].mxu1 }
 0x1aa   : > { %v699_v56 = vadd.f32 %v652_v53, %v5342_v41  ;;  %v654_v57 = vpop.f32.mrb[5].mxu0 }
 0x1ab   : > { %v700_v59 = vadd.f32 %v654_v57, %v5344_v1  ;;  %v656_v60 = vpop.f32.mrb[6].mxu0 }
 0x1ac   : > { %703 = vst [vmem:[#allocation3 + $0x18] sm:$0xff] %v699_v56  ;;  %v657_v62 = vpop.f32.mrb[7].mxu0 }
 0x1ad   : > { %704 = vst [vmem:[#allocation3 + $0x20] sm:$0xff] %v700_v59 }
 0x1ae   : > { %v805_v63 = vpop.f32.mrb[8].mxu1 }
 0x1af   : > { %v813_v36 = vadd.f32 %v805_v63, %v5339_v40  ;;  %v3945_v37 = vpop.f32.mrb[9].mxu1 }
 0x1b0   : > { %v808_v42 = vpop.f32.mrb[10].mxu1 }
 0x1b1   : > { %v764_v35 = vpop.f32.mrb[8].mxu0  ;;  %817 = vst [vmem:[#allocation3 + $0x40] sm:$0xff] %v813_v36  ;;  %v3946_v45 = vpop.f32.mrb[11].mxu1 }
 0x1b2   : > { %v811_v39 = vadd.f32 %v764_v35, %v5342_v41  ;;  %v766_v0 = vpop.f32.mrb[9].mxu0 }
 0x1b3   : > { %v812_v43 = vadd.f32 %v766_v0, %v5344_v1  ;;  %v768_v44 = vpop.f32.mrb[10].mxu0 }
 0x1b4   : > { %815 = vst [vmem:[#allocation3 + $0x30] sm:$0xff] %v811_v39  ;;  %v769_v46 = vpop.f32.mrb[11].mxu0 }
 0x1b5   : > { %816 = vst [vmem:[#allocation3 + $0x38] sm:$0xff] %v812_v43 }
 0x1b6   : > { %v917_v47 = vpop.f32.mrb[12].mxu1 }
 0x1b7   : > { %v925_v49 = vadd.f32 %v917_v47, %v5339_v40  ;;  %v3951_v50 = vpop.f32.mrb[13].mxu1 }
 0x1b8   : > { %v920_v53 = vpop.f32.mrb[14].mxu1 }
 0x1b9   : > { %v876_v48 = vpop.f32.mrb[12].mxu0  ;;  %929 = vst [vmem:[#allocation3 + $0x58] sm:$0xff] %v925_v49  ;;  %v3952_v56 = vpop.f32.mrb[15].mxu1 }
 0x1ba   : > { %v923_v51 = vadd.f32 %v876_v48, %v5342_v41  ;;  %v878_v52 = vpop.f32.mrb[13].mxu0 }
 0x1bb   : > { %v924_v54 = vadd.f32 %v878_v52, %v5344_v1  ;;  %v880_v55 = vpop.f32.mrb[14].mxu0 }
 0x1bc   : > { %927 = vst [vmem:[#allocation3 + $0x48] sm:$0xff] %v923_v51  ;;  %v881_v57 = vpop.f32.mrb[15].mxu0 }
 0x1bd   : > { %928 = vst [vmem:[#allocation3 + $0x50] sm:$0xff] %v924_v54 }
 0x1be   : > { %v1029_v58 = vpop.f32.mrb[16].mxu1 }
 0x1bf   : > { %v1037_v60 = vadd.f32 %v1029_v58, %v5339_v40  ;;  %v3957_v61 = vpop.f32.mrb[17].mxu1 }
 0x1c0   : > { %v1032_v35 = vpop.f32.mrb[18].mxu1 }
 0x1c1   : > { %v988_v59 = vpop.f32.mrb[16].mxu0  ;;  %1041 = vst [vmem:[#allocation3 + $0x70] sm:$0xff] %v1037_v60  ;;  %v3958_v39 = vpop.f32.mrb[19].mxu1 }
 0x1c2   : > { %v1035_v62 = vadd.f32 %v988_v59, %v5342_v41  ;;  %v990_v63 = vpop.f32.mrb[17].mxu0 }
 0x1c3   : > { %v1036_v36 = vadd.f32 %v990_v63, %v5344_v1  ;;  %v992_v37 = vpop.f32.mrb[18].mxu0 }
 0x1c4   : > { %1039 = vst [vmem:[#allocation3 + $0x60] sm:$0xff] %v1035_v62  ;;  %v993_v0 = vpop.f32.mrb[19].mxu0 }
 0x1c5   : > { %1040 = vst [vmem:[#allocation3 + $0x68] sm:$0xff] %v1036_v36 }
 0x1c6   : > { %v1141_v42 = vpop.f32.mrb[20].mxu1 }
 0x1c7   : > { %v1149_v44 = vadd.f32 %v1141_v42, %v5339_v40  ;;  %v3963_v45 = vpop.f32.mrb[21].mxu1 }
 0x1c8   : > { %v1144_v48 = vpop.f32.mrb[22].mxu1 }
 0x1c9   : > { %v1100_v43 = vpop.f32.mrb[20].mxu0  ;;  %1153 = vst [vmem:[#allocation3 + $0x88] sm:$0xff] %v1149_v44  ;;  %v3964_v51 = vpop.f32.mrb[23].mxu1  ;;  %v5391_v48 = vcombine.low (!%p3669_p6), %v5160_v6, %v5166_v8 }
 0x1ca   : > { %v1147_v46 = vadd.f32 %v1100_v43, %v5342_v41  ;;  %v1102_v47 = vpop.f32.mrb[21].mxu0  ;;  %v6321_v51 = vmov (!%p3669_p6), 0.0  }
 0x1cb   : > { %v1148_v49 = vadd.f32 %v1102_v47, %v5344_v1  ;;  %v1104_v50 = vpop.f32.mrb[22].mxu0  ;;  %3977 = vmatprep.subr.bf16.mxu1 (!%p3669_p6), %v6321_v51  ;;  %3993 = vmatprep.mubr.msk.bf16.mxu1 (!%p3669_p6), %vm4833_vm3, %v6321_v51 }
 0x1cc   : > { %1151 = vst [vmem:[#allocation3 + $0x78] sm:$0xff] %v1147_v46  ;;  %v1105_v52 = vpop.f32.mrb[23].mxu0  ;;  %v5400_v50 = vcombine.high (!%p3669_p6), %v5172_v10, %v5178_v12 }
 0x1cd   : > { %1152 = vst [vmem:[#allocation3 + $0x80] sm:$0xff] %v1148_v49  ;;  %v5395_v49 = vcombine.low (!%p3669_p6), %v5151_v3, %v5157_v5  ;;  %v5406_v52 = vcombine.low (!%p3669_p6), %v5163_v7, %v5169_v9 }
 0x1ce   : > { %v1253_v53 = vpop.f32.mrb[24].mxu1 }
 0x1cf   : > { %v1261_v55 = vadd.f32 %v1253_v53, %v5339_v40  ;;  %v3969_v56 = vpop.f32.mrb[25].mxu1  ;;  %3978 = vmatpush3.bf16.msra.mxu1 (!%p3669_p6), %v5395_v49  ;;  %v6304_v53 = vmov (!%p3669_p6), 0  }
 0x1d0   : > { %v1256_v59 = vpop.f32.mrb[26].mxu1  ;;  %1552 = vmatprep.mubr.bf16.mxu0 (!%p3669_p6), %v6304_v53  ;;  %3979 = vmatprep.subr.bf16.mxu1 (!%p3669_p6), %v6321_v51  ;;  %v5425_v56 = vcombine.low (!%p3669_p6), %v5175_v11, %v5181_v13 }
 0x1d1   : > { %v1212_v54 = vpop.f32.mrb[24].mxu0  ;;  %1265 = vst [vmem:[#allocation3 + $0xa0] sm:$0xff] %v1261_v55  ;;  %v3970_v62 = vpop.f32.mrb[27].mxu1  ;;  %v5420_v55 = vcombine.high (!%p3669_p6), %v5184_v14, %v5190_v16  ;;  %v5441_v59 = vcombine.low (!%p3669_p6), %v5187_v15, %v5193_v17  ;;  %v1633_v15 = vld [vmem:[#allocation3 + $0x28] sm:$0xff] (!%p3669_p6) }
 0x1d2   : > { %v1259_v57 = vadd.f32 %v1212_v54, %v5342_v41  ;;  %v1214_v58 = vpop.f32.mrb[25].mxu0  ;;  %v5413_v54 = vcombine.low (!%p3669_p6), %v5172_v10, %v5178_v12  ;;  %v5457_v62 = vcombine.low (!%p3669_p6), %v5199_v19, %v5205_v21 }
 0x1d3   : > { %v1260_v60 = vadd.f32 %v1214_v58, %v5344_v1  ;;  %v1216_v61 = vpop.f32.mrb[26].mxu0  ;;  %3980 = vmatpush3.bf16.msra.mxu1 (!%p3669_p6), %v5406_v52  ;;  %v5436_v58 = vcombine.high (!%p3669_p6), %v5196_v18, %v5202_v20 }
 0x1d4   : > { %1263 = vst [vmem:[#allocation3 + $0x90] sm:$0xff] %v1259_v57  ;;  %v1217_v63 = vpop.f32.mrb[27].mxu0  ;;  %3981 = vmatprep.subr.bf16.mxu1 (!%p3669_p6), %v6321_v51  ;;  %v5431_v57 = vcombine.low (!%p3669_p6), %v5184_v14, %v5190_v16  ;;  %v5452_v61 = vcombine.high (!%p3669_p6), %v5208_v22, %v5214_v24 }
 0x1d5   : > { %1264 = vst [vmem:[#allocation3 + $0x98] sm:$0xff] %v1260_v60  ;;  %v5447_v60 = vcombine.low (!%p3669_p6), %v5196_v18, %v5202_v20  ;;  %v5463_v63 = vcombine.low (!%p3669_p6), %v5208_v22, %v5214_v24 }
 0x1d6   : > { %v1365_v35 = vpop.f32.mrb[28].mxu1 }
 0x1d7   : > { %v1373_v37 = vadd.f32 %v1365_v35, %v5339_v40  ;;  %v3975_v39 = vpop.f32.mrb[29].mxu1  ;;  %1381 = sbr.rel (%p3669_p6) target bundleno = 2596 (0xa24), region = 64  ;;  %v5377_v40 = vcombine.high (!%p3669_p6), %v5148_v2, %v5154_v4  ;;  %3982 = vmatpush3.bf16.msra.mxu1 (!%p3669_p6), %v5425_v56  ;;  %v5468_v35 = vcombine.high (!%p3669_p6), %v5220_v26, %v5226_v28 }
 0x1d8   : > { %v1368_v43 = vpop.f32.mrb[30].mxu1  ;;  %3983 = vmatprep.subr.bf16.mxu1 (!%p3669_p6), %v6321_v51  ;;  %v5484_v39 = vcombine.high (!%p3669_p6), %v5232_v30, %v5238_v32 }
 0x1d9   : > { %v1324_v36 = vpop.f32.mrb[28].mxu0  ;;  %1377 = vst [vmem:[#allocation3 + $0xb8] sm:$0xff] %v1373_v37  ;;  %v3976_v46 = vpop.f32.mrb[31].mxu1  ;;  %1520 = vmatprep.subr.bf16.mxu0 (!%p3669_p6), %v5377_v40  ;;  %v5479_v37 = vcombine.low (!%p3669_p6), %v5220_v26, %v5226_v28  ;;  %v5501_v43 = vcombine.low (!%p3669_p6), %v5235_v31, %v5241_v33 }
 0x1da   : > { %v1371_v0 = vadd.f32 %v1324_v36, %v5342_v41  ;;  %v1326_v42 = vpop.f32.mrb[29].mxu0  ;;  %v5381_v41 = vcombine.low (!%p3669_p6), %v5148_v2, %v5154_v4  ;;  %v5473_v36 = vcombine.low (!%p3669_p6), %v5211_v23, %v5217_v25 }
 0x1db   : > { %v1372_v44 = vadd.f32 %v1326_v42, %v5344_v1  ;;  %v1328_v45 = vpop.f32.mrb[30].mxu0  ;;  %v5385_v1 = vcombine.high (!%p3669_p6), %v5160_v6, %v5166_v8  ;;  %3984 = vmatpush3.bf16.msra.mxu1 (!%p3669_p6), %v5441_v59  ;;  %v5495_v42 = vcombine.low (!%p3669_p6), %v5232_v30, %v5238_v32 }
 0x1dc   : > { %1375 = vst [vmem:[#allocation3 + $0xa8] sm:$0xff] %v1371_v0  ;;  %v1329_v47 = vpop.f32.mrb[31].mxu0  ;;  %1521 = vmatpush1.bf16.msra.mxu0 (!%p3669_p6), %v5381_v41  ;;  %3985 = vmatprep.subr.bf16.mxu1 (!%p3669_p6), %v6321_v51  ;;  %v5489_v0 = vcombine.low (!%p3669_p6), %v5223_v27, %v5229_v29  ;;  %v1388_v45 = vld [vmem:[#allocation3] sm:$0xff] (!%p3669_p6) }
 0x1dd   : > { %1376 = vst [vmem:[#allocation3 + $0xb0] sm:$0xff] %v1372_v44  ;;  %1522 = vmatprep.subr.bf16.mxu0 (!%p3669_p6), %v5385_v1  ;;  %v4834_v44 = vmov (!%p3669_p6), 0.0|0.0  }
 0x1df   : > { %3986 = vmatpush3.bf16.msra.mxu1 %v5457_v62 }
 0x1e0   : > { %1523 = vmatpush1.bf16.msra.mxu0 %v5391_v48  ;;  %3987 = vmatprep.subr.bf16.mxu1 %v6321_v51 }
 0x1e1   : > { %1524 = vmatprep.subr.bf16.mxu0 %v5400_v50 }
 0x1e3   : > { %3988 = vmatpush3.bf16.msra.mxu1 %v5473_v36 }
 0x1e4   : > { %1525 = vmatpush1.bf16.msra.mxu0 %v5413_v54  ;;  %3989 = vmatprep.subr.bf16.mxu1 %v6321_v51 }
 0x1e5   : > { %1526 = vmatprep.subr.bf16.mxu0 %v5420_v55 }
 0x1e7   : > { %3990 = vmatpush3.bf16.msra.mxu1 %v5489_v0 }
 0x1e8   : > { %1527 = vmatpush1.bf16.msra.mxu0 %v5431_v57  ;;  %3991 = vmatprep.subr.bf16.mxu1 %v6321_v51 }
 0x1e9   : > { %1528 = vmatprep.subr.bf16.mxu0 %v5436_v58 }
 0x1eb   : > { %3992 = vmatpush3.bf16.msra.mxu1 %v5501_v43 }
 0x1ec   : > { %1529 = vmatpush1.bf16.msra.mxu0 %v5447_v60  ;;  %3997 = vmatprep.subr.bf16.mxu1 %v6321_v51 }
 0x1ed   : > { %1530 = vmatprep.subr.bf16.mxu0 %v5452_v61 }
 0x1ee   : > { %3994 = vmatmul.mubr.bf16.vlgmr.msra.gmra.mrb[0].mxu1 %v4834_v44 }
 0x1ef   : > { %3998 = vmatpush3.bf16.msra.mxu1 %v5395_v49  ;;  %4013 = vmatprep.mubr.msk.bf16.mxu1 %vm4833_vm3, %v6321_v51 }
 0x1f0   : > { %1531 = vmatpush1.bf16.msra.mxu0 %v5463_v63  ;;  %3999 = vmatprep.subr.bf16.mxu1 %v6321_v51 }
 0x1f1   : > { %1532 = vmatprep.subr.bf16.mxu0 %v5468_v35 }
 0x1f3   : > { %4000 = vmatpush3.bf16.msra.mxu1 %v5406_v52 }
 0x1f4   : > { %1533 = vmatpush1.bf16.msra.mxu0 %v5479_v37  ;;  %4001 = vmatprep.subr.bf16.mxu1 %v6321_v51 }
 0x1f5   : > { %1534 = vmatprep.subr.bf16.mxu0 %v5484_v39 }
 0x1f7   : > { %4002 = vmatpush3.bf16.msra.mxu1 %v5425_v56 }
 0x1f8   : > { %1535 = vmatpush1.bf16.msra.mxu0 %v5495_v42  ;;  %4003 = vmatprep.subr.bf16.mxu1 %v6321_v51 }
 0x1f9   : > { %1634 = vmatprep.subr.bf16.mxu0 %v5377_v40 }
 0x1fb   : > { %1553 = vmatmul.mubr.bf16.vlgmr.msra.gmra.mrb[0].mxu0 %v4834_v44  ;;  %4004 = vmatpush3.bf16.msra.mxu1 %v5441_v59  ;;  %v1389_v44 = vld [vmem:[#allocation3 + $0x8] sm:$0xff] }
 0x1fc   : > { %1635 = vmatpush1.bf16.msra.mxu0 %v5381_v41  ;;  %1666 = vmatprep.mubr.bf16.mxu0 %v6304_v53 }
 0x1fd   : > { %1636 = vmatprep.subr.bf16.mxu0 %v5385_v1  ;;  %4005 = vmatprep.subr.bf16.mxu1 %v6321_v51 }
 0x1ff   : > { %4006 = vmatpush3.bf16.msra.mxu1 %v5457_v62 }
 0x200   : > { %1637 = vmatpush1.bf16.msra.mxu0 %v5391_v48  ;;  %4007 = vmatprep.subr.bf16.mxu1 %v6321_v51 }
 0x201   : > { %1638 = vmatprep.subr.bf16.mxu0 %v5400_v50 }
 0x203   : > { %4008 = vmatpush3.bf16.msra.mxu1 %v5473_v36 }
 0x204   : > { %1639 = vmatpush1.bf16.msra.mxu0 %v5413_v54  ;;  %4009 = vmatprep.subr.bf16.mxu1 %v6321_v51 }
 0x205   : > { %1640 = vmatprep.subr.bf16.mxu0 %v5420_v55 }
 0x207   : > { %4010 = vmatpush3.bf16.msra.mxu1 %v5489_v0 }
 0x208   : > { %1641 = vmatpush1.bf16.msra.mxu0 %v5431_v57  ;;  %4011 = vmatprep.subr.bf16.mxu1 %v6321_v51 }
 0x209   : > { %1642 = vmatprep.subr.bf16.mxu0 %v5436_v58 }
 0x20b   : > { %4012 = vmatpush3.bf16.msra.mxu1 %v5501_v43 }
 0x20c   : > { %1643 = vmatpush1.bf16.msra.mxu0 %v5447_v60  ;;  %4017 = vmatprep.subr.bf16.mxu1 %v6321_v51  ;;  %v5545_v51 = vrot.slane %v5244_v34, %v5337_v38 }
 0x20d   : > { %1644 = vmatprep.subr.bf16.mxu0 %v5452_v61 }
 0x210   : > { %1645 = vmatpush1.bf16.msra.mxu0 %v5463_v63 }
 0x211   : > { %1646 = vmatprep.subr.bf16.mxu0 %v5468_v35 }
 0x214   : > { %1647 = vmatpush1.bf16.msra.mxu0 %v5479_v37 }
 0x215   : > { %1648 = vmatprep.subr.bf16.mxu0 %v5484_v39 }
 0x218   : > { %1649 = vmatpush1.bf16.msra.mxu0 %v5495_v42 }
 0x219   : > { %1743 = vmatprep.subr.bf16.mxu0 %v5377_v40 }
 0x2c1   : > { %v1595_v33 = vpop.f32.mrb[0].mxu1 }
 0x2c2   : > { %v3995_v30 = vpop.f32.mrb[1].mxu1 }
 0x2c3   : > { %v1598_v23 = vpop.f32.mrb[2].mxu1  ;;  %v1390_v30 = vld [vmem:[#allocation3 + $0x10] sm:$0xff] }
 0x2c4   : > { %v3996_v25 = vpop.f32.mrb[3].mxu1 }
 0x2ce   : > { %v1554_v46 = vpop.f32.mrb[0].mxu0 }
 0x2cf   : > { %v1601_v47 = vadd.f32 %v1554_v46, %v1388_v45  ;;  %v1556_v53 = vpop.f32.mrb[1].mxu0  ;;  %v1621_v46 = vadd.f32 %v5545_v51, %v1595_v33  ;;  %v6376_v33 = vmov 0.0  }
 0x2d0   : > { %v1558_v31 = vpop.f32.mrb[2].mxu0  ;;  %v1602_v32 = vadd.f32 %v1556_v53, %v1389_v44  ;;  %v6377_v44 = vmov 0  }
 0x2d1   : > { %v3694_v27 = vmul.f32 -1.442695, %v1601_v47  ;;  %v1559_v29 = vpop.f32.mrb[3].mxu0 }
 0x2d2   : > { %v3695_v26 = vmul.f32 -1.442695, %v1602_v32 }
 0x2d3   : > { %4419 = vpow2.f32 %v3694_v27 }
 0x2d4   : > { %4421 = vpow2.f32 %v3695_v26 }
 0x2dd   : > { %v4420_v28 = vpop.eup %4419 }
 0x2de   : > { %v1609_v19 = vadd.f32 1.0, %v4420_v28  ;;  %v4422_v45 = vpop.eup %4421 }
 0x2df   : > { %v1610_v31 = vadd.f32 1.0, %v4422_v45  ;;  %v1631_v45 = vld [vmem:[#allocation3 + $0x18] sm:$0xff] }
 0x2e0   : > { %4423 = vrcp.f32 %v1609_v19 }
 0x2e1   : > { %4425 = vrcp.f32 %v1610_v31 }
 0x2ea   : > { %v4424_v29 = vpop.eup %4423 }
 0x2eb   : > { %v1622_v23 = vmul.f32 %v4424_v29, %v1621_v46  ;;  %v4426_v25 = vpop.eup %4425 }
 0x2ec   : > { %v1625_v26 = vsub.f32 1.0, %v4426_v25  ;;  %v1627_v19 = vmul.f32 0.0, %v4426_v25 }
 0x2ed   : > { %v1623_v27 = vadd.f32 %v1622_v23, %v1390_v30  ;;  %v1632_v30 = vld [vmem:[#allocation3 + $0x20] sm:$0xff] }
 0x2ef   : > { %4427 = vtanh.f32 %v1623_v27 }
 0x2f9   : > { %v4428_v32 = vpop.eup %4427 }
 0x2fa   : > { %v1626_v28 = vmul.f32 %v4428_v32, %v1625_v26 }
 0x2fc   : > { %v5548_v53 = vadd.f32 %v1627_v19, %v1626_v28 }
 0x2fe   : > { %v1629_v47 = vpack.c.bf16 %v5548_v53, %v5548_v53 }
 0x300   : > { %1630 = vst [vmem:[%s5372_s15] sm:$0xf] %v1629_v47  ;;  %1667 = vmatmul.mubr.bf16.vlgmr.msra.gmra.mrb[4].mxu0 %v1629_v47  ;;  %4014 = vmatmul.mubr.bf16.vlgmr.msra.gmra.mrb[4].mxu1 %v1629_v47 }
 0x301   : > { %1744 = vmatpush1.bf16.msra.mxu0 %v5381_v41  ;;  %4018 = vmatpush3.bf16.msra.mxu1 %v5395_v49 }
 0x302   : > { %1745 = vmatprep.subr.bf16.mxu0 %v5385_v1  ;;  %4019 = vmatprep.subr.bf16.mxu1 %v6376_v33 }
 0x303   : > { %1775 = vmatprep.mubr.bf16.mxu0 %v6377_v44  ;;  %4033 = vmatprep.mubr.msk.bf16.mxu1 %vm4833_vm3, %v6376_v33 }
 0x305   : > { %1746 = vmatpush1.bf16.msra.mxu0 %v5391_v48  ;;  %4020 = vmatpush3.bf16.msra.mxu1 %v5406_v52 }
 0x306   : > { %1747 = vmatprep.subr.bf16.mxu0 %v5400_v50  ;;  %4021 = vmatprep.subr.bf16.mxu1 %v6376_v33 }
 0x309   : > { %1748 = vmatpush1.bf16.msra.mxu0 %v5413_v54  ;;  %4022 = vmatpush3.bf16.msra.mxu1 %v5425_v56 }
 0x30a   : > { %1749 = vmatprep.subr.bf16.mxu0 %v5420_v55  ;;  %4023 = vmatprep.subr.bf16.mxu1 %v6376_v33 }
 0x30d   : > { %1750 = vmatpush1.bf16.msra.mxu0 %v5431_v57  ;;  %4024 = vmatpush3.bf16.msra.mxu1 %v5441_v59 }
 0x30e   : > { %1751 = vmatprep.subr.bf16.mxu0 %v5436_v58  ;;  %4025 = vmatprep.subr.bf16.mxu1 %v6376_v33 }
 0x311   : > { %1752 = vmatpush1.bf16.msra.mxu0 %v5447_v60  ;;  %4026 = vmatpush3.bf16.msra.mxu1 %v5457_v62 }
 0x312   : > { %1753 = vmatprep.subr.bf16.mxu0 %v5452_v61  ;;  %4027 = vmatprep.subr.bf16.mxu1 %v6376_v33 }
 0x315   : > { %1754 = vmatpush1.bf16.msra.mxu0 %v5463_v63  ;;  %4028 = vmatpush3.bf16.msra.mxu1 %v5473_v36 }
 0x316   : > { %1755 = vmatprep.subr.bf16.mxu0 %v5468_v35  ;;  %4029 = vmatprep.subr.bf16.mxu1 %v6376_v33 }
 0x319   : > { %1756 = vmatpush1.bf16.msra.mxu0 %v5479_v37  ;;  %4030 = vmatpush3.bf16.msra.mxu1 %v5489_v0 }
 0x31a   : > { %1757 = vmatprep.subr.bf16.mxu0 %v5484_v39  ;;  %4031 = vmatprep.subr.bf16.mxu1 %v6376_v33 }
 0x31d   : > { %1758 = vmatpush1.bf16.msra.mxu0 %v5495_v42  ;;  %4032 = vmatpush3.bf16.msra.mxu1 %v5501_v43 }
 0x31e   : > { %1852 = vmatprep.subr.bf16.mxu0 %v5377_v40  ;;  %4037 = vmatprep.subr.bf16.mxu1 %v6376_v33 }
 0x3d3   : > { %v1668_v31 = vpop.f32.mrb[4].mxu0  ;;  %v1709_v46 = vpop.f32.mrb[4].mxu1 }
 0x3d4   : > { %v1715_v29 = vadd.f32 %v1668_v31, %v1631_v45  ;;  %v1670_v23 = vpop.f32.mrb[5].mxu0  ;;  %v4015_v27 = vpop.f32.mrb[5].mxu1  ;;  %v1729_v45 = vadd.f32 %v1709_v46, %v5545_v51 }
 0x3d5   : > { %v1672_v25 = vpop.f32.mrb[6].mxu0  ;;  %v1712_v26 = vpop.f32.mrb[6].mxu1  ;;  %v1716_v47 = vadd.f32 %v1670_v23, %v1632_v30 }
 0x3d6   : > { %v3696_v32 = vmul.f32 -1.442695, %v1715_v29  ;;  %v1673_v28 = vpop.f32.mrb[7].mxu0  ;;  %v4016_v19 = vpop.f32.mrb[7].mxu1 }
 0x3d7   : > { %v3697_v34 = vmul.f32 -1.442695, %v1716_v47 }
 0x3d8   : > { %4429 = vpow2.f32 %v3696_v32 }
 0x3d9   : > { %4431 = vpow2.f32 %v3697_v34 }
 0x3e2   : > { %v4430_v38 = vpop.eup %4429 }
 0x3e3   : > { %v1723_v21 = vadd.f32 1.0, %v4430_v38  ;;  %v4432_v22 = vpop.eup %4431 }
 0x3e4   : > { %v1724_v24 = vadd.f32 1.0, %v4432_v22 }
 0x3e5   : > { %4433 = vrcp.f32 %v1723_v21 }
 0x3e6   : > { %4435 = vrcp.f32 %v1724_v24 }
 0x3ef   : > { %v4434_v31 = vpop.eup %4433 }
 0x3f0   : > { %v1730_v27 = vmul.f32 %v4434_v31, %v1729_v45  ;;  %v4436_v29 = vpop.eup %4435 }
 0x3f1   : > { %v1733_v26 = vsub.f32 1.0, %v4436_v29  ;;  %v1735_v34 = vmul.f32 %v4436_v29, %v5548_v53  ;;  %v1741_v53 = vld [vmem:[#allocation3 + $0x38] sm:$0xff] }
 0x3f2   : > { %v1731_v25 = vadd.f32 %v1730_v27, %v1633_v15  ;;  %v1740_v15 = vld [vmem:[#allocation3 + $0x30] sm:$0xff] }
 0x3f4   : > { %4437 = vtanh.f32 %v1731_v25 }
 0x3fe   : > { %v4438_v30 = vpop.eup %4437 }
 0x3ff   : > { %v1734_v23 = vmul.f32 %v4438_v30, %v1733_v26 }
 0x401   : > { %v5590_v32 = vadd.f32 %v1735_v34, %v1734_v23 }
 0x403   : > { %v1737_v21 = vpack.c.bf16 %v5590_v32, %v5590_v32 }
 0x405   : > { %3698 = vst [vmem:[%s5372_s15 + $0x4] sm:$0xf] %v1737_v21  ;;  %1776 = vmatmul.mubr.bf16.vlgmr.msra.gmra.mrb[8].mxu0 %v1737_v21  ;;  %4034 = vmatmul.mubr.bf16.vlgmr.msra.gmra.mrb[8].mxu1 %v1737_v21 }
 0x406   : > { %1853 = vmatpush1.bf16.msra.mxu0 %v5381_v41  ;;  %4038 = vmatpush3.bf16.msra.mxu1 %v5395_v49 }
 0x407   : > { %1854 = vmatprep.subr.bf16.mxu0 %v5385_v1  ;;  %4039 = vmatprep.subr.bf16.mxu1 %v6376_v33 }
 0x408   : > { %1884 = vmatprep.mubr.bf16.mxu0 %v6377_v44  ;;  %4053 = vmatprep.mubr.msk.bf16.mxu1 %vm4833_vm3, %v6376_v33 }
 0x40a   : > { %1855 = vmatpush1.bf16.msra.mxu0 %v5391_v48  ;;  %4040 = vmatpush3.bf16.msra.mxu1 %v5406_v52 }
 0x40b   : > { %1856 = vmatprep.subr.bf16.mxu0 %v5400_v50  ;;  %4041 = vmatprep.subr.bf16.mxu1 %v6376_v33 }
 0x40e   : > { %1857 = vmatpush1.bf16.msra.mxu0 %v5413_v54  ;;  %4042 = vmatpush3.bf16.msra.mxu1 %v5425_v56 }
 0x40f   : > { %1858 = vmatprep.subr.bf16.mxu0 %v5420_v55  ;;  %4043 = vmatprep.subr.bf16.mxu1 %v6376_v33 }
 0x412   : > { %1859 = vmatpush1.bf16.msra.mxu0 %v5431_v57  ;;  %4044 = vmatpush3.bf16.msra.mxu1 %v5441_v59 }
 0x413   : > { %1860 = vmatprep.subr.bf16.mxu0 %v5436_v58  ;;  %4045 = vmatprep.subr.bf16.mxu1 %v6376_v33 }
 0x416   : > { %1861 = vmatpush1.bf16.msra.mxu0 %v5447_v60  ;;  %4046 = vmatpush3.bf16.msra.mxu1 %v5457_v62 }
 0x417   : > { %1862 = vmatprep.subr.bf16.mxu0 %v5452_v61  ;;  %4047 = vmatprep.subr.bf16.mxu1 %v6376_v33 }
 0x41a   : > { %1863 = vmatpush1.bf16.msra.mxu0 %v5463_v63  ;;  %4048 = vmatpush3.bf16.msra.mxu1 %v5473_v36 }
 0x41b   : > { %1864 = vmatprep.subr.bf16.mxu0 %v5468_v35  ;;  %4049 = vmatprep.subr.bf16.mxu1 %v6376_v33 }
 0x41e   : > { %1865 = vmatpush1.bf16.msra.mxu0 %v5479_v37  ;;  %4050 = vmatpush3.bf16.msra.mxu1 %v5489_v0 }
 0x41f   : > { %1866 = vmatprep.subr.bf16.mxu0 %v5484_v39  ;;  %4051 = vmatprep.subr.bf16.mxu1 %v6376_v33 }
 0x422   : > { %1867 = vmatpush1.bf16.msra.mxu0 %v5495_v42  ;;  %4052 = vmatpush3.bf16.msra.mxu1 %v5501_v43 }
 0x423   : > { %1961 = vmatprep.subr.bf16.mxu0 %v5377_v40  ;;  %4057 = vmatprep.subr.bf16.mxu1 %v6376_v33 }
 0x4d8   : > { %v1777_v22 = vpop.f32.mrb[8].mxu0  ;;  %v1818_v24 = vpop.f32.mrb[8].mxu1 }
 0x4d9   : > { %v1824_v38 = vadd.f32 %v1777_v22, %v1740_v15  ;;  %v1779_v46 = vpop.f32.mrb[9].mxu0  ;;  %v4035_v28 = vpop.f32.mrb[9].mxu1  ;;  %v1838_v21 = vadd.f32 %v1818_v24, %v5545_v51  ;;  %v1742_v22 = vld [vmem:[#allocation3 + $0x40] sm:$0xff] }
 0x4da   : > { %v1781_v19 = vpop.f32.mrb[10].mxu0  ;;  %v1821_v47 = vpop.f32.mrb[10].mxu1  ;;  %v1825_v25 = vadd.f32 %v1779_v46, %v1741_v53 }
 0x4db   : > { %v3699_v45 = vmul.f32 -1.442695, %v1824_v38  ;;  %v1782_v31 = vpop.f32.mrb[11].mxu0  ;;  %v4036_v27 = vpop.f32.mrb[11].mxu1 }
 0x4dc   : > { %v3700_v29 = vmul.f32 -1.442695, %v1825_v25 }
 0x4dd   : > { %4439 = vpow2.f32 %v3699_v45 }
 0x4de   : > { %4441 = vpow2.f32 %v3700_v29 }
 0x4e7   : > { %v4440_v26 = vpop.eup %4439 }
 0x4e8   : > { %v1832_v30 = vadd.f32 1.0, %v4440_v26  ;;  %v4442_v23 = vpop.eup %4441  ;;  %v1850_v26 = vld [vmem:[#allocation3 + $0x50] sm:$0xff] }
 0x4e9   : > { %v1833_v34 = vadd.f32 1.0, %v4442_v23 }
 0x4ea   : > { %4443 = vrcp.f32 %v1832_v30 }
 0x4eb   : > { %4445 = vrcp.f32 %v1833_v34 }
 0x4f4   : > { %v4444_v15 = vpop.eup %4443 }
 0x4f5   : > { %v1839_v28 = vmul.f32 %v4444_v15, %v1838_v21  ;;  %v4446_v38 = vpop.eup %4445 }
 0x4f6   : > { %v1842_v47 = vsub.f32 1.0, %v4446_v38  ;;  %v1844_v45 = vmul.f32 %v4446_v38, %v5590_v32  ;;  %v1849_v32 = vld [vmem:[#allocation3 + $0x48] sm:$0xff] }
 0x4f7   : > { %v1840_v19 = vadd.f32 %v1839_v28, %v1742_v22 }
 0x4f9   : > { %4447 = vtanh.f32 %v1840_v19 }
 0x503   : > { %v4448_v53 = vpop.eup %4447 }
 0x504   : > { %v1843_v46 = vmul.f32 %v4448_v53, %v1842_v47 }
 0x506   : > { %v5632_v31 = vadd.f32 %v1844_v45, %v1843_v46 }
 0x508   : > { %v1846_v27 = vpack.c.bf16 %v5632_v31, %v5632_v31 }
 0x50a   : > { %3701 = vst [vmem:[%s5372_s15 + $0x8] sm:$0xf] %v1846_v27  ;;  %1885 = vmatmul.mubr.bf16.vlgmr.msra.gmra.mrb[12].mxu0 %v1846_v27  ;;  %4054 = vmatmul.mubr.bf16.vlgmr.msra.gmra.mrb[12].mxu1 %v1846_v27 }
 0x50b   : > { %1962 = vmatpush1.bf16.msra.mxu0 %v5381_v41  ;;  %4058 = vmatpush3.bf16.msra.mxu1 %v5395_v49 }
 0x50c   : > { %1963 = vmatprep.subr.bf16.mxu0 %v5385_v1  ;;  %4059 = vmatprep.subr.bf16.mxu1 %v6376_v33 }
 0x50d   : > { %1993 = vmatprep.mubr.bf16.mxu0 %v6377_v44  ;;  %4073 = vmatprep.mubr.msk.bf16.mxu1 %vm4833_vm3, %v6376_v33 }
 0x50f   : > { %1964 = vmatpush1.bf16.msra.mxu0 %v5391_v48  ;;  %4060 = vmatpush3.bf16.msra.mxu1 %v5406_v52 }
 0x510   : > { %1965 = vmatprep.subr.bf16.mxu0 %v5400_v50  ;;  %4061 = vmatprep.subr.bf16.mxu1 %v6376_v33 }
 0x513   : > { %1966 = vmatpush1.bf16.msra.mxu0 %v5413_v54  ;;  %4062 = vmatpush3.bf16.msra.mxu1 %v5425_v56 }
 0x514   : > { %1967 = vmatprep.subr.bf16.mxu0 %v5420_v55  ;;  %4063 = vmatprep.subr.bf16.mxu1 %v6376_v33 }
 0x517   : > { %1968 = vmatpush1.bf16.msra.mxu0 %v5431_v57  ;;  %4064 = vmatpush3.bf16.msra.mxu1 %v5441_v59 }
 0x518   : > { %1969 = vmatprep.subr.bf16.mxu0 %v5436_v58  ;;  %4065 = vmatprep.subr.bf16.mxu1 %v6376_v33 }
 0x51b   : > { %1970 = vmatpush1.bf16.msra.mxu0 %v5447_v60  ;;  %4066 = vmatpush3.bf16.msra.mxu1 %v5457_v62 }
 0x51c   : > { %1971 = vmatprep.subr.bf16.mxu0 %v5452_v61  ;;  %4067 = vmatprep.subr.bf16.mxu1 %v6376_v33 }
 0x51f   : > { %1972 = vmatpush1.bf16.msra.mxu0 %v5463_v63  ;;  %4068 = vmatpush3.bf16.msra.mxu1 %v5473_v36 }
 0x520   : > { %1973 = vmatprep.subr.bf16.mxu0 %v5468_v35  ;;  %4069 = vmatprep.subr.bf16.mxu1 %v6376_v33 }
 0x523   : > { %1974 = vmatpush1.bf16.msra.mxu0 %v5479_v37  ;;  %4070 = vmatpush3.bf16.msra.mxu1 %v5489_v0 }
 0x524   : > { %1975 = vmatprep.subr.bf16.mxu0 %v5484_v39  ;;  %4071 = vmatprep.subr.bf16.mxu1 %v6376_v33 }
 0x527   : > { %1976 = vmatpush1.bf16.msra.mxu0 %v5495_v42  ;;  %4072 = vmatpush3.bf16.msra.mxu1 %v5501_v43 }
 0x528   : > { %2070 = vmatprep.subr.bf16.mxu0 %v5377_v40  ;;  %4077 = vmatprep.subr.bf16.mxu1 %v6376_v33 }
 0x5dd   : > { %v1886_v24 = vpop.f32.mrb[12].mxu0  ;;  %v1927_v25 = vpop.f32.mrb[12].mxu1 }
 0x5de   : > { %v1933_v29 = vadd.f32 %v1886_v24, %v1849_v32  ;;  %v1888_v30 = vpop.f32.mrb[13].mxu0  ;;  %v4055_v23 = vpop.f32.mrb[13].mxu1  ;;  %v1947_v27 = vadd.f32 %v1927_v25, %v5545_v51  ;;  %v1851_v24 = vld [vmem:[#allocation3 + $0x58] sm:$0xff] }
 0x5df   : > { %v1890_v34 = vpop.f32.mrb[14].mxu0  ;;  %v1930_v21 = vpop.f32.mrb[14].mxu1  ;;  %v1934_v19 = vadd.f32 %v1888_v30, %v1850_v26 }
 0x5e0   : > { %v3702_v15 = vmul.f32 -1.442695, %v1933_v29  ;;  %v1891_v22 = vpop.f32.mrb[15].mxu0  ;;  %v4056_v28 = vpop.f32.mrb[15].mxu1 }
 0x5e1   : > { %v3703_v38 = vmul.f32 -1.442695, %v1934_v19 }
 0x5e2   : > { %4449 = vpow2.f32 %v3702_v15 }
 0x5e3   : > { %4451 = vpow2.f32 %v3703_v38 }
 0x5ec   : > { %v4450_v47 = vpop.eup %4449 }
 0x5ed   : > { %v1941_v53 = vadd.f32 1.0, %v4450_v47  ;;  %v4452_v46 = vpop.eup %4451  ;;  %v1959_v47 = vld [vmem:[#allocation3 + $0x68] sm:$0xff] }
 0x5ee   : > { %v1942_v45 = vadd.f32 1.0, %v4452_v46 }
 0x5ef   : > { %4453 = vrcp.f32 %v1941_v53 }
 0x5f0   : > { %4455 = vrcp.f32 %v1942_v45 }
 0x5f9   : > { %v4454_v32 = vpop.eup %4453 }
 0x5fa   : > { %v1948_v23 = vmul.f32 %v4454_v32, %v1947_v27  ;;  %v4456_v29 = vpop.eup %4455 }
 0x5fb   : > { %v1951_v21 = vsub.f32 1.0, %v4456_v29  ;;  %v1953_v15 = vmul.f32 %v4456_v29, %v5632_v31  ;;  %v1958_v31 = vld [vmem:[#allocation3 + $0x60] sm:$0xff] }
 0x5fc   : > { %v1949_v34 = vadd.f32 %v1948_v23, %v1851_v24 }
 0x5fe   : > { %4457 = vtanh.f32 %v1949_v34 }
 0x608   : > { %v4458_v26 = vpop.eup %4457 }
 0x609   : > { %v1952_v30 = vmul.f32 %v4458_v26, %v1951_v21 }
 0x60b   : > { %v5674_v22 = vadd.f32 %v1953_v15, %v1952_v30 }
 0x60d   : > { %v1955_v28 = vpack.c.bf16 %v5674_v22, %v5674_v22 }
 0x60f   : > { %3704 = vst [vmem:[%s5372_s15 + $0xc] sm:$0xf] %v1955_v28  ;;  %1994 = vmatmul.mubr.bf16.vlgmr.msra.gmra.mrb[16].mxu0 %v1955_v28  ;;  %4074 = vmatmul.mubr.bf16.vlgmr.msra.gmra.mrb[16].mxu1 %v1955_v28 }
 0x610   : > { %2071 = vmatpush1.bf16.msra.mxu0 %v5381_v41  ;;  %4078 = vmatpush3.bf16.msra.mxu1 %v5395_v49 }
 0x611   : > { %2072 = vmatprep.subr.bf16.mxu0 %v5385_v1  ;;  %4079 = vmatprep.subr.bf16.mxu1 %v6376_v33 }
 0x612   : > { %2102 = vmatprep.mubr.bf16.mxu0 %v6377_v44  ;;  %4093 = vmatprep.mubr.msk.bf16.mxu1 %vm4833_vm3, %v6376_v33 }
 0x614   : > { %2073 = vmatpush1.bf16.msra.mxu0 %v5391_v48  ;;  %4080 = vmatpush3.bf16.msra.mxu1 %v5406_v52 }
 0x615   : > { %2074 = vmatprep.subr.bf16.mxu0 %v5400_v50  ;;  %4081 = vmatprep.subr.bf16.mxu1 %v6376_v33 }
 0x618   : > { %2075 = vmatpush1.bf16.msra.mxu0 %v5413_v54  ;;  %4082 = vmatpush3.bf16.msra.mxu1 %v5425_v56 }
 0x619   : > { %2076 = vmatprep.subr.bf16.mxu0 %v5420_v55  ;;  %4083 = vmatprep.subr.bf16.mxu1 %v6376_v33 }
 0x61c   : > { %2077 = vmatpush1.bf16.msra.mxu0 %v5431_v57  ;;  %4084 = vmatpush3.bf16.msra.mxu1 %v5441_v59 }
 0x61d   : > { %2078 = vmatprep.subr.bf16.mxu0 %v5436_v58  ;;  %4085 = vmatprep.subr.bf16.mxu1 %v6376_v33 }
 0x620   : > { %2079 = vmatpush1.bf16.msra.mxu0 %v5447_v60  ;;  %4086 = vmatpush3.bf16.msra.mxu1 %v5457_v62 }
 0x621   : > { %2080 = vmatprep.subr.bf16.mxu0 %v5452_v61  ;;  %4087 = vmatprep.subr.bf16.mxu1 %v6376_v33 }
 0x624   : > { %2081 = vmatpush1.bf16.msra.mxu0 %v5463_v63  ;;  %4088 = vmatpush3.bf16.msra.mxu1 %v5473_v36 }
 0x625   : > { %2082 = vmatprep.subr.bf16.mxu0 %v5468_v35  ;;  %4089 = vmatprep.subr.bf16.mxu1 %v6376_v33 }
 0x628   : > { %2083 = vmatpush1.bf16.msra.mxu0 %v5479_v37  ;;  %4090 = vmatpush3.bf16.msra.mxu1 %v5489_v0 }
 0x629   : > { %2084 = vmatprep.subr.bf16.mxu0 %v5484_v39  ;;  %4091 = vmatprep.subr.bf16.mxu1 %v6376_v33 }
 0x62c   : > { %2085 = vmatpush1.bf16.msra.mxu0 %v5495_v42  ;;  %4092 = vmatpush3.bf16.msra.mxu1 %v5501_v43 }
 0x62d   : > { %2179 = vmatprep.subr.bf16.mxu0 %v5377_v40  ;;  %4097 = vmatprep.subr.bf16.mxu1 %v6376_v33 }
 0x6e2   : > { %v1995_v25 = vpop.f32.mrb[16].mxu0  ;;  %v2036_v19 = vpop.f32.mrb[16].mxu1 }
 0x6e3   : > { %v2042_v38 = vadd.f32 %v1995_v25, %v1958_v31  ;;  %v1997_v53 = vpop.f32.mrb[17].mxu0  ;;  %v4075_v46 = vpop.f32.mrb[17].mxu1  ;;  %v2056_v28 = vadd.f32 %v2036_v19, %v5545_v51  ;;  %v1960_v25 = vld [vmem:[#allocation3 + $0x70] sm:$0xff] }
 0x6e4   : > { %v1999_v45 = vpop.f32.mrb[18].mxu0  ;;  %v2039_v27 = vpop.f32.mrb[18].mxu1  ;;  %v2043_v34 = vadd.f32 %v1997_v53, %v1959_v47 }
 0x6e5   : > { %v3705_v32 = vmul.f32 -1.442695, %v2042_v38  ;;  %v2000_v24 = vpop.f32.mrb[19].mxu0  ;;  %v4076_v23 = vpop.f32.mrb[19].mxu1 }
 0x6e6   : > { %v3706_v29 = vmul.f32 -1.442695, %v2043_v34 }
 0x6e7   : > { %4459 = vpow2.f32 %v3705_v32 }
 0x6e8   : > { %4461 = vpow2.f32 %v3706_v29 }
 0x6f1   : > { %v4460_v21 = vpop.eup %4459 }
 0x6f2   : > { %v2050_v26 = vadd.f32 1.0, %v4460_v21  ;;  %v4462_v30 = vpop.eup %4461  ;;  %v2068_v21 = vld [vmem:[#allocation3 + $0x80] sm:$0xff] }
 0x6f3   : > { %v2051_v15 = vadd.f32 1.0, %v4462_v30 }
 0x6f4   : > { %4463 = vrcp.f32 %v2050_v26 }
 0x6f5   : > { %4465 = vrcp.f32 %v2051_v15 }
 0x6fe   : > { %v4464_v31 = vpop.eup %4463 }
 0x6ff   : > { %v2057_v46 = vmul.f32 %v4464_v31, %v2056_v28  ;;  %v4466_v38 = vpop.eup %4465 }
 0x700   : > { %v2060_v27 = vsub.f32 1.0, %v4466_v38  ;;  %v2062_v32 = vmul.f32 %v4466_v38, %v5674_v22  ;;  %v2067_v22 = vld [vmem:[#allocation3 + $0x78] sm:$0xff] }
 0x701   : > { %v2058_v45 = vadd.f32 %v2057_v46, %v1960_v25 }
 0x703   : > { %4467 = vtanh.f32 %v2058_v45 }
 0x70d   : > { %v4468_v47 = vpop.eup %4467 }
 0x70e   : > { %v2061_v53 = vmul.f32 %v4468_v47, %v2060_v27 }
 0x710   : > { %v5716_v24 = vadd.f32 %v2062_v32, %v2061_v53 }
 0x712   : > { %v2064_v23 = vpack.c.bf16 %v5716_v24, %v5716_v24 }
 0x714   : > { %3707 = vst [vmem:[%s5372_s15 + $0x10] sm:$0xf] %v2064_v23  ;;  %2103 = vmatmul.mubr.bf16.vlgmr.msra.gmra.mrb[20].mxu0 %v2064_v23  ;;  %4094 = vmatmul.mubr.bf16.vlgmr.msra.gmra.mrb[20].mxu1 %v2064_v23 }
 0x715   : > { %2180 = vmatpush1.bf16.msra.mxu0 %v5381_v41  ;;  %4098 = vmatpush3.bf16.msra.mxu1 %v5395_v49 }
 0x716   : > { %2181 = vmatprep.subr.bf16.mxu0 %v5385_v1  ;;  %4099 = vmatprep.subr.bf16.mxu1 %v6376_v33 }
 0x717   : > { %2211 = vmatprep.mubr.bf16.mxu0 %v6377_v44  ;;  %4113 = vmatprep.mubr.msk.bf16.mxu1 %vm4833_vm3, %v6376_v33 }
 0x719   : > { %2182 = vmatpush1.bf16.msra.mxu0 %v5391_v48  ;;  %4100 = vmatpush3.bf16.msra.mxu1 %v5406_v52 }
 0x71a   : > { %2183 = vmatprep.subr.bf16.mxu0 %v5400_v50  ;;  %4101 = vmatprep.subr.bf16.mxu1 %v6376_v33 }
 0x71d   : > { %2184 = vmatpush1.bf16.msra.mxu0 %v5413_v54  ;;  %4102 = vmatpush3.bf16.msra.mxu1 %v5425_v56 }
 0x71e   : > { %2185 = vmatprep.subr.bf16.mxu0 %v5420_v55  ;;  %4103 = vmatprep.subr.bf16.mxu1 %v6376_v33 }
 0x721   : > { %2186 = vmatpush1.bf16.msra.mxu0 %v5431_v57  ;;  %4104 = vmatpush3.bf16.msra.mxu1 %v5441_v59 }
 0x722   : > { %2187 = vmatprep.subr.bf16.mxu0 %v5436_v58  ;;  %4105 = vmatprep.subr.bf16.mxu1 %v6376_v33 }
 0x725   : > { %2188 = vmatpush1.bf16.msra.mxu0 %v5447_v60  ;;  %4106 = vmatpush3.bf16.msra.mxu1 %v5457_v62 }
 0x726   : > { %2189 = vmatprep.subr.bf16.mxu0 %v5452_v61  ;;  %4107 = vmatprep.subr.bf16.mxu1 %v6376_v33 }
 0x729   : > { %2190 = vmatpush1.bf16.msra.mxu0 %v5463_v63  ;;  %4108 = vmatpush3.bf16.msra.mxu1 %v5473_v36 }
 0x72a   : > { %2191 = vmatprep.subr.bf16.mxu0 %v5468_v35  ;;  %4109 = vmatprep.subr.bf16.mxu1 %v6376_v33 }
 0x72d   : > { %2192 = vmatpush1.bf16.msra.mxu0 %v5479_v37  ;;  %4110 = vmatpush3.bf16.msra.mxu1 %v5489_v0 }
 0x72e   : > { %2193 = vmatprep.subr.bf16.mxu0 %v5484_v39  ;;  %4111 = vmatprep.subr.bf16.mxu1 %v6376_v33 }
 0x731   : > { %2194 = vmatpush1.bf16.msra.mxu0 %v5495_v42  ;;  %4112 = vmatpush3.bf16.msra.mxu1 %v5501_v43 }
 0x732   : > { %2288 = vmatprep.subr.bf16.mxu0 %v5377_v40  ;;  %4117 = vmatprep.subr.bf16.mxu1 %v6376_v33 }
 0x7e7   : > { %v2104_v19 = vpop.f32.mrb[20].mxu0  ;;  %v2145_v34 = vpop.f32.mrb[20].mxu1 }
 0x7e8   : > { %v2151_v29 = vadd.f32 %v2104_v19, %v2067_v22  ;;  %v2106_v26 = vpop.f32.mrb[21].mxu0  ;;  %v4095_v30 = vpop.f32.mrb[21].mxu1  ;;  %v2165_v32 = vadd.f32 %v2145_v34, %v5545_v51  ;;  %v2069_v22 = vld [vmem:[#allocation3 + $0x88] sm:$0xff] }
 0x7e9   : > { %v2108_v15 = vpop.f32.mrb[22].mxu0  ;;  %v2148_v28 = vpop.f32.mrb[22].mxu1  ;;  %v2152_v45 = vadd.f32 %v2106_v26, %v2068_v21 }
 0x7ea   : > { %v3708_v31 = vmul.f32 -1.442695, %v2151_v29  ;;  %v2109_v25 = vpop.f32.mrb[23].mxu0  ;;  %v4096_v46 = vpop.f32.mrb[23].mxu1 }
 0x7eb   : > { %v3709_v38 = vmul.f32 -1.442695, %v2152_v45 }
 0x7ec   : > { %4469 = vpow2.f32 %v3708_v31 }
 0x7ed   : > { %4471 = vpow2.f32 %v3709_v38 }
 0x7f6   : > { %v4470_v27 = vpop.eup %4469 }
 0x7f7   : > { %v2159_v40 = vadd.f32 1.0, %v4470_v27  ;;  %v4472_v47 = vpop.eup %4471  ;;  %v2285_v27 = vld [vmem:[#allocation3 + $0xa8] sm:$0xff] }
 0x7f8   : > { %v2160_v53 = vadd.f32 1.0, %v4472_v47 }
 0x7f9   : > { %4473 = vrcp.f32 %v2159_v40 }
 0x7fa   : > { %4475 = vrcp.f32 %v2160_v53 }
 0x803   : > { %v4474_v23 = vpop.eup %4473 }
 0x804   : > { %v2166_v19 = vmul.f32 %v4474_v23, %v2165_v32  ;;  %v4476_v29 = vpop.eup %4475  ;;  %v2286_v32 = vld [vmem:[#allocation3 + $0xb0] sm:$0xff] }
 0x805   : > { %v2169_v15 = vsub.f32 1.0, %v4476_v29  ;;  %v2171_v28 = vmul.f32 %v4476_v29, %v5716_v24 }
 0x806   : > { %v2167_v30 = vadd.f32 %v2166_v19, %v2069_v22 }
 0x808   : > { %4477 = vtanh.f32 %v2167_v30 }
 0x812   : > { %v4478_v21 = vpop.eup %4477 }
 0x813   : > { %v2170_v26 = vmul.f32 %v4478_v21, %v2169_v15 }
 0x815   : > { %v5758_v31 = vadd.f32 %v2171_v28, %v2170_v26 }
 0x817   : > { %v2173_v25 = vpack.c.bf16 %v5758_v31, %v5758_v31 }
 0x819   : > { %3710 = vst [vmem:[%s5372_s15 + $0x14] sm:$0xf] %v2173_v25  ;;  %2212 = vmatmul.mubr.bf16.vlgmr.msra.gmra.mrb[24].mxu0 %v2173_v25  ;;  %4114 = vmatmul.mubr.bf16.vlgmr.msra.gmra.mrb[24].mxu1 %v2173_v25 }
 0x81a   : > { %2289 = vmatpush1.bf16.msra.mxu0 %v5381_v41  ;;  %4118 = vmatpush3.bf16.msra.mxu1 %v5395_v49  ;;  %v2176_v41 = vld [vmem:[#allocation3 + $0x90] sm:$0xff] }
 0x81b   : > { %2290 = vmatprep.subr.bf16.mxu0 %v5385_v1  ;;  %4119 = vmatprep.subr.bf16.mxu1 %v6376_v33 }
 0x81c   : > { %2320 = vmatprep.mubr.bf16.mxu0 %v6377_v44  ;;  %4133 = vmatprep.mubr.msk.bf16.mxu1 %vm4833_vm3, %v6376_v33 }
 0x81e   : > { %2291 = vmatpush1.bf16.msra.mxu0 %v5391_v48  ;;  %4120 = vmatpush3.bf16.msra.mxu1 %v5406_v52 }
 0x81f   : > { %2292 = vmatprep.subr.bf16.mxu0 %v5400_v50  ;;  %4121 = vmatprep.subr.bf16.mxu1 %v6376_v33  ;;  %v2177_v50 = vld [vmem:[#allocation3 + $0x98] sm:$0xff] }
 0x822   : > { %2293 = vmatpush1.bf16.msra.mxu0 %v5413_v54  ;;  %4122 = vmatpush3.bf16.msra.mxu1 %v5425_v56 }
 0x823   : > { %2294 = vmatprep.subr.bf16.mxu0 %v5420_v55  ;;  %4123 = vmatprep.subr.bf16.mxu1 %v6376_v33 }
 0x826   : > { %2295 = vmatpush1.bf16.msra.mxu0 %v5431_v57  ;;  %4124 = vmatpush3.bf16.msra.mxu1 %v5441_v59 }
 0x827   : > { %2296 = vmatprep.subr.bf16.mxu0 %v5436_v58  ;;  %4125 = vmatprep.subr.bf16.mxu1 %v6376_v33 }
 0x82a   : > { %2297 = vmatpush1.bf16.msra.mxu0 %v5447_v60  ;;  %4126 = vmatpush3.bf16.msra.mxu1 %v5457_v62 }
 0x82b   : > { %2298 = vmatprep.subr.bf16.mxu0 %v5452_v61  ;;  %4127 = vmatprep.subr.bf16.mxu1 %v6376_v33 }
 0x82e   : > { %2299 = vmatpush1.bf16.msra.mxu0 %v5463_v63  ;;  %4128 = vmatpush3.bf16.msra.mxu1 %v5473_v36 }
 0x82f   : > { %2300 = vmatprep.subr.bf16.mxu0 %v5468_v35  ;;  %4129 = vmatprep.subr.bf16.mxu1 %v6376_v33 }
 0x832   : > { %2301 = vmatpush1.bf16.msra.mxu0 %v5479_v37  ;;  %4130 = vmatpush3.bf16.msra.mxu1 %v5489_v0  ;;  %v2178_v0 = vld [vmem:[#allocation3 + $0xa0] sm:$0xff] }
 0x833   : > { %2302 = vmatprep.subr.bf16.mxu0 %v5484_v39  ;;  %4131 = vmatprep.subr.bf16.mxu1 %v6376_v33 }
 0x836   : > { %2303 = vmatpush1.bf16.msra.mxu0 %v5495_v42  ;;  %4132 = vmatpush3.bf16.msra.mxu1 %v5501_v43 }
 0x8ec   : > { %v2213_v1 = vpop.f32.mrb[24].mxu0  ;;  %v2254_v48 = vpop.f32.mrb[24].mxu1 }
 0x8ed   : > { %v2260_v49 = vadd.f32 %v2213_v1, %v2176_v41  ;;  %v2215_v52 = vpop.f32.mrb[25].mxu0  ;;  %v4115_v54 = vpop.f32.mrb[25].mxu1  ;;  %v2274_v37 = vadd.f32 %v2254_v48, %v5545_v51 }
 0x8ee   : > { %v2217_v55 = vpop.f32.mrb[26].mxu0  ;;  %v2257_v56 = vpop.f32.mrb[26].mxu1  ;;  %v2261_v60 = vadd.f32 %v2215_v52, %v2177_v50  ;;  %v2287_v50 = vld [vmem:[#allocation3 + $0xb8] sm:$0xff] }
 0x8ef   : > { %v3711_v57 = vmul.f32 -1.442695, %v2260_v49  ;;  %v2218_v58 = vpop.f32.mrb[27].mxu0  ;;  %v4116_v59 = vpop.f32.mrb[27].mxu1 }
 0x8f0   : > { %v3712_v61 = vmul.f32 -1.442695, %v2261_v60 }
 0x8f1   : > { %4479 = vpow2.f32 %v3711_v57 }
 0x8f2   : > { %4481 = vpow2.f32 %v3712_v61 }
 0x8fb   : > { %v4480_v62 = vpop.eup %4479 }
 0x8fc   : > { %v2268_v63 = vadd.f32 1.0, %v4480_v62  ;;  %v4482_v35 = vpop.eup %4481 }
 0x8fd   : > { %v2269_v36 = vadd.f32 1.0, %v4482_v35 }
 0x8fe   : > { %4483 = vrcp.f32 %v2268_v63 }
 0x8ff   : > { %4485 = vrcp.f32 %v2269_v36 }
 0x908   : > { %v4484_v39 = vpop.eup %4483 }
 0x909   : > { %v2275_v42 = vmul.f32 %v4484_v39, %v2274_v37  ;;  %v4486_v33 = vpop.eup %4485 }
 0x90a   : > { %v2278_v44 = vsub.f32 1.0, %v4486_v33  ;;  %v2280_v46 = vmul.f32 %v4486_v33, %v5758_v31 }
 0x90b   : > { %v2276_v43 = vadd.f32 %v2275_v42, %v2178_v0 }
 0x90d   : > { %4487 = vtanh.f32 %v2276_v43 }
 0x917   : > { %v4488_v24 = vpop.eup %4487 }
 0x918   : > { %v2279_v34 = vmul.f32 %v4488_v24, %v2278_v44 }
 0x91a   : > { %v2281_v45 = vadd.f32 %v2280_v46, %v2279_v34 }
 0x91c   : > { %v2282_v38 = vpack.c.bf16 %v2281_v45, %v2281_v45 }
 0x91e   : > { %3713 = vst [vmem:[%s5372_s15 + $0x18] sm:$0xf] %v2282_v38  ;;  %2321 = vmatmul.mubr.bf16.vlgmr.msra.gmra.mrb[28].mxu0 %v2282_v38  ;;  %4134 = vmatmul.mubr.bf16.vlgmr.msra.gmra.mrb[28].mxu1 %v2282_v38 }
 0x9f1   : > { %v2322_v40 = vpop.f32.mrb[28].mxu0  ;;  %v2363_v47 = vpop.f32.mrb[28].mxu1 }
 0x9f2   : > { %v2369_v53 = vadd.f32 %v2322_v40, %v2285_v27  ;;  %v2324_v23 = vpop.f32.mrb[29].mxu0  ;;  %v4135_v22 = vpop.f32.mrb[29].mxu1  ;;  %v2383_v48 = vadd.f32 %v2363_v47, %v5545_v51 }
 0x9f3   : > { %v2326_v19 = vpop.f32.mrb[30].mxu0  ;;  %v2366_v30 = vpop.f32.mrb[30].mxu1  ;;  %v2370_v26 = vadd.f32 %v2324_v23, %v2286_v32 }
 0x9f4   : > { %v3714_v29 = vmul.f32 -1.442695, %v2369_v53  ;;  %v2327_v15 = vpop.f32.mrb[31].mxu0  ;;  %v4136_v21 = vpop.f32.mrb[31].mxu1 }
 0x9f5   : > { %v3715_v28 = vmul.f32 -1.442695, %v2370_v26 }
 0x9f6   : > { %4489 = vpow2.f32 %v3714_v29 }
 0x9f7   : > { %4491 = vpow2.f32 %v3715_v28 }
 0xa00   : > { %v4490_v31 = vpop.eup %4489 }
 0xa01   : > { %v2377_v25 = vadd.f32 1.0, %v4490_v31  ;;  %v4492_v41 = vpop.eup %4491 }
 0xa02   : > { %v2378_v1 = vadd.f32 1.0, %v4492_v41 }
 0xa03   : > { %4493 = vrcp.f32 %v2377_v25 }
 0xa04   : > { %4495 = vrcp.f32 %v2378_v1 }
 0xa0d   : > { %v4494_v49 = vpop.eup %4493 }
 0xa0e   : > { %v2384_v52 = vmul.f32 %v4494_v49, %v2383_v48  ;;  %v4496_v55 = vpop.eup %4495 }
 0xa0f   : > { %v2387_v56 = vsub.f32 1.0, %v4496_v55  ;;  %v2389_v59 = vmul.f32 %v4496_v55, %v2281_v45 }
 0xa10   : > { %v2385_v54 = vadd.f32 %v2384_v52, %v2287_v50 }
 0xa12   : > { %4497 = vtanh.f32 %v2385_v54 }
 0xa1c   : > { %v4498_v57 = vpop.eup %4497 }
 0xa1d   : > { %v2388_v58 = vmul.f32 %v4498_v57, %v2387_v56 }
 0xa1f   : > { %v2390_v60 = vadd.f32 %v2389_v59, %v2388_v58 }
 0xa21   : > { %v2391_v61 = vpack.c.bf16 %v2390_v60, %v2390_v60 }
 0xa23   : > { %3716 = vst [vmem:[%s5372_s15 + $0x1c] sm:$0xf] %v2391_v61 }
 0xa24 PF: > { %p3717_p11 = scmp.ne.s32.totalorder %s4809_s21, 1 }
 0xa25   : > { %v5804_v51 = vcombine.high (!%p3717_p11), %v5148_v2, %v5154_v4  ;;  %v5808_v62 = vcombine.low (!%p3717_p11), %v5148_v2, %v5154_v4  ;;  %v5812_v63 = vcombine.high (!%p3717_p11), %v5160_v6, %v5166_v8  ;;  %v5818_v35 = vcombine.low (!%p3717_p11), %v5160_v6, %v5166_v8  ;;  %v6381_v39 = vld [vmem:[#allocation24_spill] sm:$0xff] (!%p3717_p11)  ;;  %v6382_v0 = vld [vmem:[#allocation23_spill] sm:$0xff] (!%p3717_p11)  ;;  %v6384_v42 = vld [vmem:[#allocation29_spill] sm:$0xff] (!%p3717_p11) }
 0xa26   : > { %2398 = sbr.rel (%p3717_p11) target bundleno = 4720 (0x1270), region = 72  ;;  %v5822_v36 = vcombine.low (!%p3717_p11), %v5151_v3, %v5157_v5  ;;  %v5827_v2 = vcombine.high (!%p3717_p11), %v5172_v10, %v5178_v12  ;;  %v4835_v4 = vmov (!%p3717_p11), 0.0   ;;  %v5833_v37 = vcombine.low (!%p3717_p11), %v5163_v7, %v5169_v9  ;;  %v6385_v33 = vld [vmem:[#allocation28_spill] sm:$0xff] (!%p3717_p11)  ;;  %v6386_v44 = vld [vmem:[#allocation26_spill] sm:$0xff] (!%p3717_p11)  ;;  %v6387_v46 = vld [vmem:[#allocation35_spill] sm:$0xff] (!%p3717_p11) }
 0xa27   : > { %2539 = vmatprep.subr.bf16.mxu0 (!%p3717_p11), %v5804_v51  ;;  %4137 = vmatprep.subr.bf16.mxu1 (!%p3717_p11), %v4835_v4  ;;  %v4836_v6 = vmov (!%p3717_p11), 0   ;;  %v5840_v3 = vcombine.low (!%p3717_p11), %v5172_v10, %v5178_v12  ;;  %vm4837_vm4 = vmmov (!%p3717_p11), 0   ;;  %v5847_v5 = vcombine.high (!%p3717_p11), %v5184_v14, %v5190_v16  ;;  %v6378_v10 = vld [vmem:[#allocation22_spill] sm:$0xff] (!%p3717_p11)  ;;  %v6388_v45 = vld [vmem:[#allocation33_spill] sm:$0xff] (!%p3717_p11)  ;;  %v6389_v27 = vld [vmem:[#allocation32_spill] sm:$0xff] (!%p3717_p11) }
 0xa28   : > { %2540 = vmatpush1.bf16.msra.mxu0 (!%p3717_p11), %v5808_v62  ;;  %4138 = vmatpush3.bf16.msra.mxu1 (!%p3717_p11), %v5822_v36  ;;  %v5852_v7 = vcombine.low (!%p3717_p11), %v5175_v11, %v5181_v13  ;;  %v5858_v8 = vcombine.low (!%p3717_p11), %v5184_v14, %v5190_v16  ;;  %v5863_v9 = vcombine.high (!%p3717_p11), %v5196_v18, %v5202_v20  ;;  %v6379_v13 = vld [vmem:[#allocation27_spill] sm:$0xff] (!%p3717_p11)  ;;  %v6380_v14 = vld [vmem:[#allocation25_spill] sm:$0xff] (!%p3717_p11)  ;;  %v6390_v40 = vld [vmem:[#allocation30_spill] sm:$0xff] (!%p3717_p11)  ;;  %v4838_v19 = vmov (!%p3717_p11), 0.0|0.0  }
 0xa29   : > { %2541 = vmatprep.subr.bf16.mxu0 (!%p3717_p11), %v5812_v63  ;;  %2571 = vmatprep.mubr.bf16.mxu0 (!%p3717_p11), %v4836_v6  ;;  %v5868_v11 = vcombine.low (!%p3717_p11), %v6378_v10, %v5193_v17  ;;  %v5874_v12 = vcombine.low (!%p3717_p11), %v5196_v18, %v5202_v20  ;;  %v5879_v16 = vcombine.high (!%p3717_p11), %v6380_v14, %v6379_v13  ;;  %v6383_v20 = vld [vmem:[#allocation31_spill] sm:$0xff] (!%p3717_p11)  ;;  %v6391_v32 = vld [vmem:[#allocation36_spill] sm:$0xff] (!%p3717_p11)  ;;  %v6392_v23 = vld [vmem:[#allocation34_spill] sm:$0xff] (!%p3717_p11) }
 0xa2a   : > { %4139 = vmatprep.subr.bf16.mxu1 (!%p3717_p11), %v4835_v4  ;;  %4153 = vmatprep.mubr.msk.bf16.mxu1 (!%p3717_p11), %vm4837_vm4, %v4835_v4  ;;  %v5884_v17 = vcombine.low (!%p3717_p11), %v6382_v0, %v6381_v39  ;;  %v5890_v18 = vcombine.low (!%p3717_p11), %v6380_v14, %v6379_v13  ;;  %v5895_v43 = vcombine.high (!%p3717_p11), %v6384_v42, %v6383_v20  ;;  %v2407_v30 = vld [vmem:[#allocation3 + $0xa8] sm:$0xff] (!%p3717_p11)  ;;  %v2408_v21 = vld [vmem:[#allocation3 + $0xb0] sm:$0xff] (!%p3717_p11)  ;;  %v6393_v56 = vld [vmem:[#allocation38_spill] sm:$0xff] (!%p3717_p11) }
 0xa2b   : > { %v5900_v24 = vcombine.low (!%p3717_p11), %v6386_v44, %v6385_v33  ;;  %v5906_v34 = vcombine.low (!%p3717_p11), %v6384_v42, %v6383_v20  ;;  %v5911_v38 = vcombine.high (!%p3717_p11), %v6388_v45, %v6387_v46  ;;  %v5916_v47 = vcombine.low (!%p3717_p11), %v6390_v40, %v6389_v27  ;;  %v6394_v57 = vld [vmem:[#allocation37_spill] sm:$0xff] (!%p3717_p11)  ;;  %v2651_v27 = vld [vmem:[#allocation3 + $0x90] sm:$0xff] (!%p3717_p11) }
 0xa2c   : > { %2542 = vmatpush1.bf16.msra.mxu0 (!%p3717_p11), %v5818_v35  ;;  %4140 = vmatpush3.bf16.msra.mxu1 (!%p3717_p11), %v5833_v37  ;;  %v5922_v53 = vcombine.low (!%p3717_p11), %v6388_v45, %v6387_v46  ;;  %v5928_v22 = vcombine.low (!%p3717_p11), %v6392_v23, %v6391_v32  ;;  %v5972_v58 = vrot.slane (!%p3717_p11), %v6394_v57, %v6393_v56  ;;  %v2409_v13 = vld [vmem:[#allocation3 + $0xb8] sm:$0xff] (!%p3717_p11) }
 0xa2d   : > { %2543 = vmatprep.subr.bf16.mxu0 %v5827_v2  ;;  %4141 = vmatprep.subr.bf16.mxu1 %v4835_v4 }
 0xa30   : > { %2544 = vmatpush1.bf16.msra.mxu0 %v5840_v3  ;;  %4142 = vmatpush3.bf16.msra.mxu1 %v5852_v7 }
 0xa31   : > { %2545 = vmatprep.subr.bf16.mxu0 %v5847_v5  ;;  %4143 = vmatprep.subr.bf16.mxu1 %v4835_v4 }
 0xa34   : > { %2546 = vmatpush1.bf16.msra.mxu0 %v5858_v8  ;;  %4144 = vmatpush3.bf16.msra.mxu1 %v5868_v11 }
 0xa35   : > { %2547 = vmatprep.subr.bf16.mxu0 %v5863_v9  ;;  %4145 = vmatprep.subr.bf16.mxu1 %v4835_v4 }
 0xa38   : > { %2548 = vmatpush1.bf16.msra.mxu0 %v5874_v12  ;;  %4146 = vmatpush3.bf16.msra.mxu1 %v5884_v17 }
 0xa39   : > { %2549 = vmatprep.subr.bf16.mxu0 %v5879_v16  ;;  %4147 = vmatprep.subr.bf16.mxu1 %v4835_v4 }
 0xa3c   : > { %2550 = vmatpush1.bf16.msra.mxu0 %v5890_v18  ;;  %4148 = vmatpush3.bf16.msra.mxu1 %v5900_v24 }
 0xa3d   : > { %2551 = vmatprep.subr.bf16.mxu0 %v5895_v43  ;;  %4149 = vmatprep.subr.bf16.mxu1 %v4835_v4 }
 0xa40   : > { %2552 = vmatpush1.bf16.msra.mxu0 %v5906_v34  ;;  %4150 = vmatpush3.bf16.msra.mxu1 %v5916_v47 }
 0xa41   : > { %2553 = vmatprep.subr.bf16.mxu0 %v5911_v38  ;;  %4151 = vmatprep.subr.bf16.mxu1 %v4835_v4 }
 0xa44   : > { %2554 = vmatpush1.bf16.msra.mxu0 %v5922_v53  ;;  %4152 = vmatpush3.bf16.msra.mxu1 %v5928_v22 }
 0xa45   : > { %2654 = vmatprep.subr.bf16.mxu0 %v5804_v51  ;;  %4157 = vmatprep.subr.bf16.mxu1 %v4835_v4 }
 0xa47   : > { %2572 = vmatmul.mubr.bf16.vlgmr.msra.gmra.mrb[0].mxu0 %v4838_v19  ;;  %4154 = vmatmul.mubr.bf16.vlgmr.msra.gmra.mrb[0].mxu1 %v4838_v19  ;;  %v2652_v19 = vld [vmem:[#allocation3 + $0x98] sm:$0xff] }
 0xa48   : > { %2655 = vmatpush1.bf16.msra.mxu0 %v5808_v62  ;;  %2686 = vmatprep.mubr.bf16.mxu0 %v4836_v6 }
 0xa49   : > { %2656 = vmatprep.subr.bf16.mxu0 %v5812_v63  ;;  %4158 = vmatpush3.bf16.msra.mxu1 %v5822_v36 }
 0xa4a   : > { %4173 = vmatprep.mubr.msk.bf16.mxu1 %vm4837_vm4, %v4835_v4  ;;  %4159 = vmatprep.subr.bf16.mxu1 %v4835_v4 }
 0xa4c   : > { %2657 = vmatpush1.bf16.msra.mxu0 %v5818_v35 }
 0xa4d   : > { %2658 = vmatprep.subr.bf16.mxu0 %v5827_v2  ;;  %4160 = vmatpush3.bf16.msra.mxu1 %v5833_v37 }
 0xa4e   : > { %4161 = vmatprep.subr.bf16.mxu1 %v4835_v4 }
 0xa50   : > { %2659 = vmatpush1.bf16.msra.mxu0 %v5840_v3 }
 0xa51   : > { %2660 = vmatprep.subr.bf16.mxu0 %v5847_v5  ;;  %4162 = vmatpush3.bf16.msra.mxu1 %v5852_v7 }
 0xa52   : > { %4163 = vmatprep.subr.bf16.mxu1 %v4835_v4 }
 0xa54   : > { %2661 = vmatpush1.bf16.msra.mxu0 %v5858_v8 }
 0xa55   : > { %2662 = vmatprep.subr.bf16.mxu0 %v5863_v9  ;;  %4164 = vmatpush3.bf16.msra.mxu1 %v5868_v11 }
 0xa56   : > { %4165 = vmatprep.subr.bf16.mxu1 %v4835_v4 }
 0xa58   : > { %2663 = vmatpush1.bf16.msra.mxu0 %v5874_v12 }
 0xa59   : > { %2664 = vmatprep.subr.bf16.mxu0 %v5879_v16  ;;  %4166 = vmatpush3.bf16.msra.mxu1 %v5884_v17 }
 0xa5a   : > { %4167 = vmatprep.subr.bf16.mxu1 %v4835_v4 }
 0xa5c   : > { %2665 = vmatpush1.bf16.msra.mxu0 %v5890_v18 }
 0xa5d   : > { %2666 = vmatprep.subr.bf16.mxu0 %v5895_v43  ;;  %4168 = vmatpush3.bf16.msra.mxu1 %v5900_v24 }
 0xa5e   : > { %4169 = vmatprep.subr.bf16.mxu1 %v4835_v4 }
 0xa60   : > { %2667 = vmatpush1.bf16.msra.mxu0 %v5906_v34 }
 0xa61   : > { %2668 = vmatprep.subr.bf16.mxu0 %v5911_v38  ;;  %4170 = vmatpush3.bf16.msra.mxu1 %v5916_v47 }
 0xa62   : > { %4171 = vmatprep.subr.bf16.mxu1 %v4835_v4 }
 0xa64   : > { %2669 = vmatpush1.bf16.msra.mxu0 %v5922_v53 }
 0xa65   : > { %2763 = vmatprep.subr.bf16.mxu0 %v5804_v51  ;;  %4172 = vmatpush3.bf16.msra.mxu1 %v5928_v22 }
 0xa66   : > { %4177 = vmatprep.subr.bf16.mxu1 %v4835_v4 }
 0xb1a   : > { %v2573_v29 = vpop.f32.mrb[0].mxu0  ;;  %v2614_v31 = vpop.f32.mrb[0].mxu1 }
 0xb1b   : > { %v2620_v15 = vadd.f32 %v2573_v29, %v2407_v30  ;;  %v2575_v26 = vpop.f32.mrb[1].mxu0  ;;  %v4155_v1 = vpop.f32.mrb[1].mxu1  ;;  %v2640_v61 = vadd.f32 %v5972_v58, %v2614_v31 }
 0xb1c   : > { %v2577_v28 = vpop.f32.mrb[2].mxu0  ;;  %v2621_v48 = vadd.f32 %v2575_v26, %v2408_v21  ;;  %v2617_v49 = vpop.f32.mrb[2].mxu1 }
 0xb1d   : > { %v3742_v25 = vmul.f32 -1.442695, %v2620_v15  ;;  %v2578_v41 = vpop.f32.mrb[3].mxu0  ;;  %v4156_v50 = vpop.f32.mrb[3].mxu1 }
 0xb1e   : > { %v3743_v52 = vmul.f32 -1.442695, %v2621_v48 }
 0xb1f   : > { %4499 = vpow2.f32 %v3742_v25 }
 0xb20   : > { %4501 = vpow2.f32 %v3743_v52 }
 0xb29   : > { %v4500_v54 = vpop.eup %4499 }
 0xb2a   : > { %v2628_v55 = vadd.f32 1.0, %v4500_v54  ;;  %v4502_v59 = vpop.eup %4501 }
 0xb2b   : > { %v2629_v60 = vadd.f32 1.0, %v4502_v59 }
 0xb2c   : > { %4503 = vrcp.f32 %v2628_v55  ;;  %v2653_v55 = vld [vmem:[#allocation3 + $0xa0] sm:$0xff] }
 0xb2d   : > { %4505 = vrcp.f32 %v2629_v60 }
 0xb36   : > { %v4504_v10 = vpop.eup %4503 }
 0xb37   : > { %v2641_v14 = vmul.f32 %v4504_v10, %v2640_v61  ;;  %v4506_v0 = vpop.eup %4505 }
 0xb38   : > { %v2644_v20 = vsub.f32 1.0, %v4506_v0  ;;  %v2646_v44 = vmul.f32 0.0, %v4506_v0  ;;  %v2760_v0 = vld [vmem:[#allocation3 + $0x78] sm:$0xff] }
 0xb39   : > { %v2642_v39 = vadd.f32 %v2641_v14, %v2409_v13 }
 0xb3b   : > { %4507 = vtanh.f32 %v2642_v39 }
 0xb45   : > { %v4508_v42 = vpop.eup %4507 }
 0xb46   : > { %v2645_v33 = vmul.f32 %v4508_v42, %v2644_v20 }
 0xb48   : > { %v5975_v46 = vadd.f32 %v2646_v44, %v2645_v33  ;;  %v2761_v44 = vld [vmem:[#allocation3 + $0x80] sm:$0xff] }
 0xb4a   : > { %v2648_v45 = vpack.c.bf16 %v5975_v46, %v5975_v46 }
 0xb4c   : > { %3744 = vst [vmem:[%s5372_s15 + $0x1c] sm:$0xf] %v2648_v45  ;;  %2687 = vmatmul.mubr.bf16.vlgmr.msra.gmra.mrb[4].mxu0 %v2648_v45  ;;  %4174 = vmatmul.mubr.bf16.vlgmr.msra.gmra.mrb[4].mxu1 %v2648_v45 }
 0xb4d   : > { %2764 = vmatpush1.bf16.msra.mxu0 %v5808_v62  ;;  %4178 = vmatpush3.bf16.msra.mxu1 %v5822_v36 }
 0xb4e   : > { %2765 = vmatprep.subr.bf16.mxu0 %v5812_v63  ;;  %4179 = vmatprep.subr.bf16.mxu1 %v4835_v4 }
 0xb4f   : > { %2795 = vmatprep.mubr.bf16.mxu0 %v4836_v6  ;;  %4193 = vmatprep.mubr.msk.bf16.mxu1 %vm4837_vm4, %v4835_v4 }
 0xb51   : > { %2766 = vmatpush1.bf16.msra.mxu0 %v5818_v35  ;;  %4180 = vmatpush3.bf16.msra.mxu1 %v5833_v37 }
 0xb52   : > { %2767 = vmatprep.subr.bf16.mxu0 %v5827_v2  ;;  %4181 = vmatprep.subr.bf16.mxu1 %v4835_v4 }
 0xb55   : > { %2768 = vmatpush1.bf16.msra.mxu0 %v5840_v3  ;;  %4182 = vmatpush3.bf16.msra.mxu1 %v5852_v7 }
 0xb56   : > { %2769 = vmatprep.subr.bf16.mxu0 %v5847_v5  ;;  %4183 = vmatprep.subr.bf16.mxu1 %v4835_v4 }
 0xb59   : > { %2770 = vmatpush1.bf16.msra.mxu0 %v5858_v8  ;;  %4184 = vmatpush3.bf16.msra.mxu1 %v5868_v11 }
 0xb5a   : > { %2771 = vmatprep.subr.bf16.mxu0 %v5863_v9  ;;  %4185 = vmatprep.subr.bf16.mxu1 %v4835_v4 }
 0xb5d   : > { %2772 = vmatpush1.bf16.msra.mxu0 %v5874_v12  ;;  %4186 = vmatpush3.bf16.msra.mxu1 %v5884_v17 }
 0xb5e   : > { %2773 = vmatprep.subr.bf16.mxu0 %v5879_v16  ;;  %4187 = vmatprep.subr.bf16.mxu1 %v4835_v4 }
 0xb61   : > { %2774 = vmatpush1.bf16.msra.mxu0 %v5890_v18  ;;  %4188 = vmatpush3.bf16.msra.mxu1 %v5900_v24 }
 0xb62   : > { %2775 = vmatprep.subr.bf16.mxu0 %v5895_v43  ;;  %4189 = vmatprep.subr.bf16.mxu1 %v4835_v4 }
 0xb65   : > { %2776 = vmatpush1.bf16.msra.mxu0 %v5906_v34  ;;  %4190 = vmatpush3.bf16.msra.mxu1 %v5916_v47 }
 0xb66   : > { %2777 = vmatprep.subr.bf16.mxu0 %v5911_v38  ;;  %4191 = vmatprep.subr.bf16.mxu1 %v4835_v4 }
 0xb69   : > { %2778 = vmatpush1.bf16.msra.mxu0 %v5922_v53  ;;  %4192 = vmatpush3.bf16.msra.mxu1 %v5928_v22 }
 0xb6a   : > { %2872 = vmatprep.subr.bf16.mxu0 %v5804_v51  ;;  %4197 = vmatprep.subr.bf16.mxu1 %v4835_v4 }
 0xc1f   : > { %v2688_v40 = vpop.f32.mrb[4].mxu0  ;;  %v2729_v32 = vpop.f32.mrb[4].mxu1 }
 0xc20   : > { %v2735_v23 = vadd.f32 %v2688_v40, %v2651_v27  ;;  %v2690_v30 = vpop.f32.mrb[5].mxu0  ;;  %v4175_v29 = vpop.f32.mrb[5].mxu1  ;;  %v2749_v52 = vadd.f32 %v2729_v32, %v5972_v58 }
 0xc21   : > { %v2692_v15 = vpop.f32.mrb[6].mxu0  ;;  %v2732_v21 = vpop.f32.mrb[6].mxu1  ;;  %v2736_v25 = vadd.f32 %v2690_v30, %v2652_v19 }
 0xc22   : > { %v3745_v26 = vmul.f32 -1.442695, %v2735_v23  ;;  %v2693_v28 = vpop.f32.mrb[7].mxu0  ;;  %v4176_v31 = vpop.f32.mrb[7].mxu1 }
 0xc23   : > { %v3746_v41 = vmul.f32 -1.442695, %v2736_v25 }
 0xc24   : > { %4509 = vpow2.f32 %v3745_v26 }
 0xc25   : > { %4511 = vpow2.f32 %v3746_v41  ;;  %v2762_v41 = vld [vmem:[#allocation3 + $0x88] sm:$0xff] }
 0xc2e   : > { %v4510_v1 = vpop.eup %4509 }
 0xc2f   : > { %v2743_v48 = vadd.f32 1.0, %v4510_v1  ;;  %v4512_v49 = vpop.eup %4511 }
 0xc30   : > { %v2744_v50 = vadd.f32 1.0, %v4512_v49 }
 0xc31   : > { %4513 = vrcp.f32 %v2743_v48 }
 0xc32   : > { %4515 = vrcp.f32 %v2744_v50 }
 0xc3b   : > { %v4514_v54 = vpop.eup %4513 }
 0xc3c   : > { %v2750_v56 = vmul.f32 %v4514_v54, %v2749_v52  ;;  %v4516_v59 = vpop.eup %4515 }
 0xc3d   : > { %v2753_v60 = vsub.f32 1.0, %v4516_v59  ;;  %v2755_v13 = vmul.f32 %v4516_v59, %v5975_v46  ;;  %v2869_v59 = vld [vmem:[#allocation3 + $0x60] sm:$0xff] }
 0xc3e   : > { %v2751_v57 = vadd.f32 %v2750_v56, %v2653_v55 }
 0xc40   : > { %4517 = vtanh.f32 %v2751_v57 }
 0xc4a   : > { %v4518_v61 = vpop.eup %4517 }
 0xc4b   : > { %v2754_v10 = vmul.f32 %v4518_v61, %v2753_v60 }
 0xc4d   : > { %v6017_v14 = vadd.f32 %v2755_v13, %v2754_v10  ;;  %v2870_v13 = vld [vmem:[#allocation3 + $0x68] sm:$0xff] }
 0xc4f   : > { %v2757_v39 = vpack.c.bf16 %v6017_v14, %v6017_v14 }
 0xc51   : > { %3747 = vst [vmem:[%s5372_s15 + $0x18] sm:$0xf] %v2757_v39  ;;  %2796 = vmatmul.mubr.bf16.vlgmr.msra.gmra.mrb[8].mxu0 %v2757_v39  ;;  %4194 = vmatmul.mubr.bf16.vlgmr.msra.gmra.mrb[8].mxu1 %v2757_v39 }
 0xc52   : > { %2873 = vmatpush1.bf16.msra.mxu0 %v5808_v62  ;;  %4198 = vmatpush3.bf16.msra.mxu1 %v5822_v36 }
 0xc53   : > { %2874 = vmatprep.subr.bf16.mxu0 %v5812_v63  ;;  %4199 = vmatprep.subr.bf16.mxu1 %v4835_v4 }
 0xc54   : > { %2904 = vmatprep.mubr.bf16.mxu0 %v4836_v6  ;;  %4213 = vmatprep.mubr.msk.bf16.mxu1 %vm4837_vm4, %v4835_v4 }
 0xc56   : > { %2875 = vmatpush1.bf16.msra.mxu0 %v5818_v35  ;;  %4200 = vmatpush3.bf16.msra.mxu1 %v5833_v37 }
 0xc57   : > { %2876 = vmatprep.subr.bf16.mxu0 %v5827_v2  ;;  %4201 = vmatprep.subr.bf16.mxu1 %v4835_v4 }
 0xc5a   : > { %2877 = vmatpush1.bf16.msra.mxu0 %v5840_v3  ;;  %4202 = vmatpush3.bf16.msra.mxu1 %v5852_v7 }
 0xc5b   : > { %2878 = vmatprep.subr.bf16.mxu0 %v5847_v5  ;;  %4203 = vmatprep.subr.bf16.mxu1 %v4835_v4 }
 0xc5e   : > { %2879 = vmatpush1.bf16.msra.mxu0 %v5858_v8  ;;  %4204 = vmatpush3.bf16.msra.mxu1 %v5868_v11 }
 0xc5f   : > { %2880 = vmatprep.subr.bf16.mxu0 %v5863_v9  ;;  %4205 = vmatprep.subr.bf16.mxu1 %v4835_v4 }
 0xc62   : > { %2881 = vmatpush1.bf16.msra.mxu0 %v5874_v12  ;;  %4206 = vmatpush3.bf16.msra.mxu1 %v5884_v17 }
 0xc63   : > { %2882 = vmatprep.subr.bf16.mxu0 %v5879_v16  ;;  %4207 = vmatprep.subr.bf16.mxu1 %v4835_v4 }
 0xc66   : > { %2883 = vmatpush1.bf16.msra.mxu0 %v5890_v18  ;;  %4208 = vmatpush3.bf16.msra.mxu1 %v5900_v24 }
 0xc67   : > { %2884 = vmatprep.subr.bf16.mxu0 %v5895_v43  ;;  %4209 = vmatprep.subr.bf16.mxu1 %v4835_v4 }
 0xc6a   : > { %2885 = vmatpush1.bf16.msra.mxu0 %v5906_v34  ;;  %4210 = vmatpush3.bf16.msra.mxu1 %v5916_v47 }
 0xc6b   : > { %2886 = vmatprep.subr.bf16.mxu0 %v5911_v38  ;;  %4211 = vmatprep.subr.bf16.mxu1 %v4835_v4 }
 0xc6e   : > { %2887 = vmatpush1.bf16.msra.mxu0 %v5922_v53  ;;  %4212 = vmatpush3.bf16.msra.mxu1 %v5928_v22 }
 0xc6f   : > { %2981 = vmatprep.subr.bf16.mxu0 %v5804_v51  ;;  %4217 = vmatprep.subr.bf16.mxu1 %v4835_v4 }
 0xd24   : > { %v2797_v20 = vpop.f32.mrb[8].mxu0  ;;  %v2838_v42 = vpop.f32.mrb[8].mxu1 }
 0xd25   : > { %v2844_v33 = vadd.f32 %v2797_v20, %v2760_v0  ;;  %v2799_v46 = vpop.f32.mrb[9].mxu0  ;;  %v4195_v45 = vpop.f32.mrb[9].mxu1  ;;  %v2858_v31 = vadd.f32 %v2838_v42, %v5972_v58 }
 0xd26   : > { %v2801_v27 = vpop.f32.mrb[10].mxu0  ;;  %v2841_v40 = vpop.f32.mrb[10].mxu1  ;;  %v2845_v30 = vadd.f32 %v2799_v46, %v2761_v44 }
 0xd27   : > { %v3748_v32 = vmul.f32 -1.442695, %v2844_v33  ;;  %v2802_v23 = vpop.f32.mrb[11].mxu0  ;;  %v4196_v19 = vpop.f32.mrb[11].mxu1 }
 0xd28   : > { %v3749_v29 = vmul.f32 -1.442695, %v2845_v30 }
 0xd29   : > { %4519 = vpow2.f32 %v3748_v32 }
 0xd2a   : > { %4521 = vpow2.f32 %v3749_v29  ;;  %v2871_v29 = vld [vmem:[#allocation3 + $0x70] sm:$0xff] }
 0xd33   : > { %v4520_v15 = vpop.eup %4519 }
 0xd34   : > { %v2852_v21 = vadd.f32 1.0, %v4520_v15  ;;  %v4522_v26 = vpop.eup %4521 }
 0xd35   : > { %v2853_v28 = vadd.f32 1.0, %v4522_v26 }
 0xd36   : > { %4523 = vrcp.f32 %v2852_v21 }
 0xd37   : > { %4525 = vrcp.f32 %v2853_v28 }
 0xd40   : > { %v4524_v25 = vpop.eup %4523 }
 0xd41   : > { %v2859_v1 = vmul.f32 %v4524_v25, %v2858_v31  ;;  %v4526_v49 = vpop.eup %4525 }
 0xd42   : > { %v2862_v50 = vsub.f32 1.0, %v4526_v49  ;;  %v2864_v55 = vmul.f32 %v4526_v49, %v6017_v14  ;;  %v2978_v49 = vld [vmem:[#allocation3 + $0x48] sm:$0xff] }
 0xd43   : > { %v2860_v48 = vadd.f32 %v2859_v1, %v2762_v41 }
 0xd45   : > { %4527 = vtanh.f32 %v2860_v48 }
 0xd4f   : > { %v4528_v52 = vpop.eup %4527 }
 0xd50   : > { %v2863_v54 = vmul.f32 %v4528_v52, %v2862_v50 }
 0xd52   : > { %v6059_v56 = vadd.f32 %v2864_v55, %v2863_v54  ;;  %v2979_v55 = vld [vmem:[#allocation3 + $0x50] sm:$0xff] }
 0xd54   : > { %v2866_v57 = vpack.c.bf16 %v6059_v56, %v6059_v56 }
 0xd56   : > { %3750 = vst [vmem:[%s5372_s15 + $0x14] sm:$0xf] %v2866_v57  ;;  %2905 = vmatmul.mubr.bf16.vlgmr.msra.gmra.mrb[12].mxu0 %v2866_v57  ;;  %4214 = vmatmul.mubr.bf16.vlgmr.msra.gmra.mrb[12].mxu1 %v2866_v57 }
 0xd57   : > { %2982 = vmatpush1.bf16.msra.mxu0 %v5808_v62  ;;  %4218 = vmatpush3.bf16.msra.mxu1 %v5822_v36 }
 0xd58   : > { %2983 = vmatprep.subr.bf16.mxu0 %v5812_v63  ;;  %4219 = vmatprep.subr.bf16.mxu1 %v4835_v4 }
 0xd59   : > { %3013 = vmatprep.mubr.bf16.mxu0 %v4836_v6  ;;  %4233 = vmatprep.mubr.msk.bf16.mxu1 %vm4837_vm4, %v4835_v4 }
 0xd5b   : > { %2984 = vmatpush1.bf16.msra.mxu0 %v5818_v35  ;;  %4220 = vmatpush3.bf16.msra.mxu1 %v5833_v37 }
 0xd5c   : > { %2985 = vmatprep.subr.bf16.mxu0 %v5827_v2  ;;  %4221 = vmatprep.subr.bf16.mxu1 %v4835_v4 }
 0xd5f   : > { %2986 = vmatpush1.bf16.msra.mxu0 %v5840_v3  ;;  %4222 = vmatpush3.bf16.msra.mxu1 %v5852_v7 }
 0xd60   : > { %2987 = vmatprep.subr.bf16.mxu0 %v5847_v5  ;;  %4223 = vmatprep.subr.bf16.mxu1 %v4835_v4 }
 0xd63   : > { %2988 = vmatpush1.bf16.msra.mxu0 %v5858_v8  ;;  %4224 = vmatpush3.bf16.msra.mxu1 %v5868_v11 }
 0xd64   : > { %2989 = vmatprep.subr.bf16.mxu0 %v5863_v9  ;;  %4225 = vmatprep.subr.bf16.mxu1 %v4835_v4 }
 0xd67   : > { %2990 = vmatpush1.bf16.msra.mxu0 %v5874_v12  ;;  %4226 = vmatpush3.bf16.msra.mxu1 %v5884_v17 }
 0xd68   : > { %2991 = vmatprep.subr.bf16.mxu0 %v5879_v16  ;;  %4227 = vmatprep.subr.bf16.mxu1 %v4835_v4 }
 0xd6b   : > { %2992 = vmatpush1.bf16.msra.mxu0 %v5890_v18  ;;  %4228 = vmatpush3.bf16.msra.mxu1 %v5900_v24 }
 0xd6c   : > { %2993 = vmatprep.subr.bf16.mxu0 %v5895_v43  ;;  %4229 = vmatprep.subr.bf16.mxu1 %v4835_v4 }
 0xd6f   : > { %2994 = vmatpush1.bf16.msra.mxu0 %v5906_v34  ;;  %4230 = vmatpush3.bf16.msra.mxu1 %v5916_v47 }
 0xd70   : > { %2995 = vmatprep.subr.bf16.mxu0 %v5911_v38  ;;  %4231 = vmatprep.subr.bf16.mxu1 %v4835_v4 }
 0xd73   : > { %2996 = vmatpush1.bf16.msra.mxu0 %v5922_v53  ;;  %4232 = vmatpush3.bf16.msra.mxu1 %v5928_v22 }
 0xd74   : > { %3090 = vmatprep.subr.bf16.mxu0 %v5804_v51  ;;  %4237 = vmatprep.subr.bf16.mxu1 %v4835_v4 }
 0xe29   : > { %v2906_v60 = vpop.f32.mrb[12].mxu0  ;;  %v2947_v61 = vpop.f32.mrb[12].mxu1 }
 0xe2a   : > { %v2953_v10 = vadd.f32 %v2906_v60, %v2869_v59  ;;  %v2908_v14 = vpop.f32.mrb[13].mxu0  ;;  %v4215_v39 = vpop.f32.mrb[13].mxu1  ;;  %v2967_v19 = vadd.f32 %v2947_v61, %v5972_v58 }
 0xe2b   : > { %v2910_v0 = vpop.f32.mrb[14].mxu0  ;;  %v2950_v20 = vpop.f32.mrb[14].mxu1  ;;  %v2954_v46 = vadd.f32 %v2908_v14, %v2870_v13 }
 0xe2c   : > { %v3751_v42 = vmul.f32 -1.442695, %v2953_v10  ;;  %v2911_v33 = vpop.f32.mrb[15].mxu0  ;;  %v4216_v44 = vpop.f32.mrb[15].mxu1 }
 0xe2d   : > { %v3752_v45 = vmul.f32 -1.442695, %v2954_v46 }
 0xe2e   : > { %4529 = vpow2.f32 %v3751_v42 }
 0xe2f   : > { %4531 = vpow2.f32 %v3752_v45  ;;  %v2980_v45 = vld [vmem:[#allocation3 + $0x58] sm:$0xff] }
 0xe38   : > { %v4530_v27 = vpop.eup %4529 }
 0xe39   : > { %v2961_v40 = vadd.f32 1.0, %v4530_v27  ;;  %v4532_v32 = vpop.eup %4531 }
 0xe3a   : > { %v2962_v23 = vadd.f32 1.0, %v4532_v32 }
 0xe3b   : > { %4533 = vrcp.f32 %v2961_v40 }
 0xe3c   : > { %4535 = vrcp.f32 %v2962_v23 }
 0xe45   : > { %v4534_v30 = vpop.eup %4533 }
 0xe46   : > { %v2968_v15 = vmul.f32 %v4534_v30, %v2967_v19  ;;  %v4536_v26 = vpop.eup %4535 }
 0xe47   : > { %v2971_v28 = vsub.f32 1.0, %v4536_v26  ;;  %v2973_v41 = vmul.f32 %v4536_v26, %v6059_v56  ;;  %v3087_v26 = vld [vmem:[#allocation3 + $0x30] sm:$0xff] }
 0xe48   : > { %v2969_v21 = vadd.f32 %v2968_v15, %v2871_v29 }
 0xe4a   : > { %4537 = vtanh.f32 %v2969_v21 }
 0xe54   : > { %v4538_v31 = vpop.eup %4537 }
 0xe55   : > { %v2972_v25 = vmul.f32 %v4538_v31, %v2971_v28 }
 0xe57   : > { %v6101_v1 = vadd.f32 %v2973_v41, %v2972_v25  ;;  %v3088_v41 = vld [vmem:[#allocation3 + $0x38] sm:$0xff] }
 0xe59   : > { %v2975_v48 = vpack.c.bf16 %v6101_v1, %v6101_v1 }
 0xe5b   : > { %3753 = vst [vmem:[%s5372_s15 + $0x10] sm:$0xf] %v2975_v48  ;;  %3014 = vmatmul.mubr.bf16.vlgmr.msra.gmra.mrb[16].mxu0 %v2975_v48  ;;  %4234 = vmatmul.mubr.bf16.vlgmr.msra.gmra.mrb[16].mxu1 %v2975_v48 }
 0xe5c   : > { %3091 = vmatpush1.bf16.msra.mxu0 %v5808_v62  ;;  %4238 = vmatpush3.bf16.msra.mxu1 %v5822_v36 }
 0xe5d   : > { %3092 = vmatprep.subr.bf16.mxu0 %v5812_v63  ;;  %4239 = vmatprep.subr.bf16.mxu1 %v4835_v4 }
 0xe5e   : > { %3122 = vmatprep.mubr.bf16.mxu0 %v4836_v6  ;;  %4253 = vmatprep.mubr.msk.bf16.mxu1 %vm4837_vm4, %v4835_v4 }
 0xe60   : > { %3093 = vmatpush1.bf16.msra.mxu0 %v5818_v35  ;;  %4240 = vmatpush3.bf16.msra.mxu1 %v5833_v37 }
 0xe61   : > { %3094 = vmatprep.subr.bf16.mxu0 %v5827_v2  ;;  %4241 = vmatprep.subr.bf16.mxu1 %v4835_v4 }
 0xe64   : > { %3095 = vmatpush1.bf16.msra.mxu0 %v5840_v3  ;;  %4242 = vmatpush3.bf16.msra.mxu1 %v5852_v7 }
 0xe65   : > { %3096 = vmatprep.subr.bf16.mxu0 %v5847_v5  ;;  %4243 = vmatprep.subr.bf16.mxu1 %v4835_v4 }
 0xe68   : > { %3097 = vmatpush1.bf16.msra.mxu0 %v5858_v8  ;;  %4244 = vmatpush3.bf16.msra.mxu1 %v5868_v11 }
 0xe69   : > { %3098 = vmatprep.subr.bf16.mxu0 %v5863_v9  ;;  %4245 = vmatprep.subr.bf16.mxu1 %v4835_v4 }
 0xe6c   : > { %3099 = vmatpush1.bf16.msra.mxu0 %v5874_v12  ;;  %4246 = vmatpush3.bf16.msra.mxu1 %v5884_v17 }
 0xe6d   : > { %3100 = vmatprep.subr.bf16.mxu0 %v5879_v16  ;;  %4247 = vmatprep.subr.bf16.mxu1 %v4835_v4 }
 0xe70   : > { %3101 = vmatpush1.bf16.msra.mxu0 %v5890_v18  ;;  %4248 = vmatpush3.bf16.msra.mxu1 %v5900_v24 }
 0xe71   : > { %3102 = vmatprep.subr.bf16.mxu0 %v5895_v43  ;;  %4249 = vmatprep.subr.bf16.mxu1 %v4835_v4 }
 0xe74   : > { %3103 = vmatpush1.bf16.msra.mxu0 %v5906_v34  ;;  %4250 = vmatpush3.bf16.msra.mxu1 %v5916_v47 }
 0xe75   : > { %3104 = vmatprep.subr.bf16.mxu0 %v5911_v38  ;;  %4251 = vmatprep.subr.bf16.mxu1 %v4835_v4 }
 0xe78   : > { %3105 = vmatpush1.bf16.msra.mxu0 %v5922_v53  ;;  %4252 = vmatpush3.bf16.msra.mxu1 %v5928_v22 }
 0xe79   : > { %3199 = vmatprep.subr.bf16.mxu0 %v5804_v51  ;;  %4257 = vmatprep.subr.bf16.mxu1 %v4835_v4 }
 0xf2e   : > { %v3015_v50 = vpop.f32.mrb[16].mxu0  ;;  %v3056_v52 = vpop.f32.mrb[16].mxu1 }
 0xf2f   : > { %v3062_v54 = vadd.f32 %v3015_v50, %v2978_v49  ;;  %v3017_v56 = vpop.f32.mrb[17].mxu0  ;;  %v4235_v57 = vpop.f32.mrb[17].mxu1  ;;  %v3076_v44 = vadd.f32 %v3056_v52, %v5972_v58 }
 0xf30   : > { %v3019_v59 = vpop.f32.mrb[18].mxu0  ;;  %v3059_v60 = vpop.f32.mrb[18].mxu1  ;;  %v3063_v14 = vadd.f32 %v3017_v56, %v2979_v55 }
 0xf31   : > { %v3754_v61 = vmul.f32 -1.442695, %v3062_v54  ;;  %v3020_v10 = vpop.f32.mrb[19].mxu0  ;;  %v4236_v13 = vpop.f32.mrb[19].mxu1 }
 0xf32   : > { %v3755_v39 = vmul.f32 -1.442695, %v3063_v14  ;;  %v3089_v14 = vld [vmem:[#allocation3 + $0x40] sm:$0xff] }
 0xf33   : > { %4539 = vpow2.f32 %v3754_v61 }
 0xf34   : > { %4541 = vpow2.f32 %v3755_v39 }
 0xf3d   : > { %v4540_v0 = vpop.eup %4539 }
 0xf3e   : > { %v3070_v20 = vadd.f32 1.0, %v4540_v0  ;;  %v4542_v42 = vpop.eup %4541 }
 0xf3f   : > { %v3071_v33 = vadd.f32 1.0, %v4542_v42 }
 0xf40   : > { %4543 = vrcp.f32 %v3070_v20 }
 0xf41   : > { %4545 = vrcp.f32 %v3071_v33 }
 0xf4a   : > { %v4544_v46 = vpop.eup %4543 }
 0xf4b   : > { %v3077_v27 = vmul.f32 %v4544_v46, %v3076_v44  ;;  %v4546_v32 = vpop.eup %4545 }
 0xf4c   : > { %v3080_v23 = vsub.f32 1.0, %v4546_v32  ;;  %v3082_v29 = vmul.f32 %v4546_v32, %v6101_v1 }
 0xf4d   : > { %v3078_v40 = vadd.f32 %v3077_v27, %v2980_v45 }
 0xf4f   : > { %4547 = vtanh.f32 %v3078_v40 }
 0xf59   : > { %v4548_v19 = vpop.eup %4547 }
 0xf5a   : > { %v3081_v30 = vmul.f32 %v4548_v19, %v3080_v23 }
 0xf5c   : > { %v6143_v15 = vadd.f32 %v3082_v29, %v3081_v30  ;;  %v3305_v29 = vld [vmem:[#allocation3] sm:$0xff] }
 0xf5e   : > { %v3084_v21 = vpack.c.bf16 %v6143_v15, %v6143_v15 }
 0xf60   : > { %3756 = vst [vmem:[%s5372_s15 + $0xc] sm:$0xf] %v3084_v21  ;;  %3123 = vmatmul.mubr.bf16.vlgmr.msra.gmra.mrb[20].mxu0 %v3084_v21  ;;  %4254 = vmatmul.mubr.bf16.vlgmr.msra.gmra.mrb[20].mxu1 %v3084_v21 }
 0xf61   : > { %3200 = vmatpush1.bf16.msra.mxu0 %v5808_v62  ;;  %4258 = vmatpush3.bf16.msra.mxu1 %v5822_v36 }
 0xf62   : > { %3201 = vmatprep.subr.bf16.mxu0 %v5812_v63  ;;  %4259 = vmatprep.subr.bf16.mxu1 %v4835_v4 }
 0xf63   : > { %3231 = vmatprep.mubr.bf16.mxu0 %v4836_v6  ;;  %4273 = vmatprep.mubr.msk.bf16.mxu1 %vm4837_vm4, %v4835_v4 }
 0xf65   : > { %3202 = vmatpush1.bf16.msra.mxu0 %v5818_v35  ;;  %4260 = vmatpush3.bf16.msra.mxu1 %v5833_v37 }
 0xf66   : > { %3203 = vmatprep.subr.bf16.mxu0 %v5827_v2  ;;  %4261 = vmatprep.subr.bf16.mxu1 %v4835_v4 }
 0xf69   : > { %3204 = vmatpush1.bf16.msra.mxu0 %v5840_v3  ;;  %4262 = vmatpush3.bf16.msra.mxu1 %v5852_v7 }
 0xf6a   : > { %3205 = vmatprep.subr.bf16.mxu0 %v5847_v5  ;;  %4263 = vmatprep.subr.bf16.mxu1 %v4835_v4 }
 0xf6d   : > { %3206 = vmatpush1.bf16.msra.mxu0 %v5858_v8  ;;  %4264 = vmatpush3.bf16.msra.mxu1 %v5868_v11 }
 0xf6e   : > { %3207 = vmatprep.subr.bf16.mxu0 %v5863_v9  ;;  %4265 = vmatprep.subr.bf16.mxu1 %v4835_v4 }
 0xf71   : > { %3208 = vmatpush1.bf16.msra.mxu0 %v5874_v12  ;;  %4266 = vmatpush3.bf16.msra.mxu1 %v5884_v17 }
 0xf72   : > { %3209 = vmatprep.subr.bf16.mxu0 %v5879_v16  ;;  %4267 = vmatprep.subr.bf16.mxu1 %v4835_v4 }
 0xf75   : > { %3210 = vmatpush1.bf16.msra.mxu0 %v5890_v18  ;;  %4268 = vmatpush3.bf16.msra.mxu1 %v5900_v24 }
 0xf76   : > { %3211 = vmatprep.subr.bf16.mxu0 %v5895_v43  ;;  %4269 = vmatprep.subr.bf16.mxu1 %v4835_v4 }
 0xf79   : > { %3212 = vmatpush1.bf16.msra.mxu0 %v5906_v34  ;;  %4270 = vmatpush3.bf16.msra.mxu1 %v5916_v47 }
 0xf7a   : > { %3213 = vmatprep.subr.bf16.mxu0 %v5911_v38  ;;  %4271 = vmatprep.subr.bf16.mxu1 %v4835_v4 }
 0xf7d   : > { %3214 = vmatpush1.bf16.msra.mxu0 %v5922_v53  ;;  %4272 = vmatpush3.bf16.msra.mxu1 %v5928_v22 }
 0xf7e   : > { %3308 = vmatprep.subr.bf16.mxu0 %v5804_v51  ;;  %4277 = vmatprep.subr.bf16.mxu1 %v4835_v4 }
0x1033   : > { %v3124_v28 = vpop.f32.mrb[20].mxu0  ;;  %v3165_v31 = vpop.f32.mrb[20].mxu1 }
0x1034   : > { %v3171_v25 = vadd.f32 %v3124_v28, %v3087_v26  ;;  %v3126_v1 = vpop.f32.mrb[21].mxu0  ;;  %v4255_v48 = vpop.f32.mrb[21].mxu1  ;;  %v3185_v10 = vadd.f32 %v3165_v31, %v5972_v58  ;;  %v3306_v28 = vld [vmem:[#allocation3 + $0x8] sm:$0xff] }
0x1035   : > { %v3128_v49 = vpop.f32.mrb[22].mxu0  ;;  %v3168_v50 = vpop.f32.mrb[22].mxu1  ;;  %v3172_v56 = vadd.f32 %v3126_v1, %v3088_v41 }
0x1036   : > { %v3757_v52 = vmul.f32 -1.442695, %v3171_v25  ;;  %v3129_v54 = vpop.f32.mrb[23].mxu0  ;;  %v4256_v55 = vpop.f32.mrb[23].mxu1 }
0x1037   : > { %v3758_v57 = vmul.f32 -1.442695, %v3172_v56 }
0x1038   : > { %4549 = vpow2.f32 %v3757_v52 }
0x1039   : > { %4551 = vpow2.f32 %v3758_v57 }
0x1042   : > { %v4550_v59 = vpop.eup %4549 }
0x1043   : > { %v3179_v51 = vadd.f32 1.0, %v4550_v59  ;;  %v4552_v60 = vpop.eup %4551 }
0x1044   : > { %v3180_v61 = vadd.f32 1.0, %v4552_v60 }
0x1045   : > { %4553 = vrcp.f32 %v3179_v51 }
0x1046   : > { %4555 = vrcp.f32 %v3180_v61  ;;  %v3307_v61 = vld [vmem:[#allocation3 + $0x10] sm:$0xff] }
0x104f   : > { %v4554_v13 = vpop.eup %4553 }
0x1050   : > { %v3186_v39 = vmul.f32 %v4554_v13, %v3185_v10  ;;  %v4556_v20 = vpop.eup %4555 }
0x1051   : > { %v3189_v42 = vsub.f32 1.0, %v4556_v20  ;;  %v3191_v46 = vmul.f32 %v4556_v20, %v6143_v15 }
0x1052   : > { %v3187_v0 = vadd.f32 %v3186_v39, %v3089_v14 }
0x1054   : > { %4557 = vtanh.f32 %v3187_v0 }
0x105e   : > { %v4558_v33 = vpop.eup %4557 }
0x105f   : > { %v3190_v44 = vmul.f32 %v4558_v33, %v3189_v42 }
0x1061   : > { %v6185_v45 = vadd.f32 %v3191_v46, %v3190_v44 }
0x1063   : > { %v3193_v27 = vpack.c.bf16 %v6185_v45, %v6185_v45 }
0x1065   : > { %3759 = vst [vmem:[%s5372_s15 + $0x8] sm:$0xf] %v3193_v27  ;;  %3232 = vmatmul.mubr.bf16.vlgmr.msra.gmra.mrb[24].mxu0 %v3193_v27  ;;  %4274 = vmatmul.mubr.bf16.vlgmr.msra.gmra.mrb[24].mxu1 %v3193_v27 }
0x1066   : > { %3309 = vmatpush1.bf16.msra.mxu0 %v5808_v62  ;;  %4278 = vmatpush3.bf16.msra.mxu1 %v5822_v36  ;;  %v3196_v62 = vld [vmem:[#allocation3 + $0x18] sm:$0xff] }
0x1067   : > { %3310 = vmatprep.subr.bf16.mxu0 %v5812_v63  ;;  %4279 = vmatprep.subr.bf16.mxu1 %v4835_v4 }
0x1068   : > { %3340 = vmatprep.mubr.bf16.mxu0 %v4836_v6  ;;  %4293 = vmatprep.mubr.msk.bf16.mxu1 %vm4837_vm4, %v4835_v4 }
0x106a   : > { %3311 = vmatpush1.bf16.msra.mxu0 %v5818_v35  ;;  %4280 = vmatpush3.bf16.msra.mxu1 %v5833_v37 }
0x106b   : > { %3312 = vmatprep.subr.bf16.mxu0 %v5827_v2  ;;  %4281 = vmatprep.subr.bf16.mxu1 %v4835_v4  ;;  %v3197_v2 = vld [vmem:[#allocation3 + $0x20] sm:$0xff] }
0x106e   : > { %3313 = vmatpush1.bf16.msra.mxu0 %v5840_v3  ;;  %4282 = vmatpush3.bf16.msra.mxu1 %v5852_v7 }
0x106f   : > { %3314 = vmatprep.subr.bf16.mxu0 %v5847_v5  ;;  %4283 = vmatprep.subr.bf16.mxu1 %v4835_v4 }
0x1072   : > { %3315 = vmatpush1.bf16.msra.mxu0 %v5858_v8  ;;  %4284 = vmatpush3.bf16.msra.mxu1 %v5868_v11 }
0x1073   : > { %3316 = vmatprep.subr.bf16.mxu0 %v5863_v9  ;;  %4285 = vmatprep.subr.bf16.mxu1 %v4835_v4 }
0x1076   : > { %3317 = vmatpush1.bf16.msra.mxu0 %v5874_v12  ;;  %4286 = vmatpush3.bf16.msra.mxu1 %v5884_v17 }
0x1077   : > { %3318 = vmatprep.subr.bf16.mxu0 %v5879_v16  ;;  %4287 = vmatprep.subr.bf16.mxu1 %v4835_v4 }
0x107a   : > { %3319 = vmatpush1.bf16.msra.mxu0 %v5890_v18  ;;  %4288 = vmatpush3.bf16.msra.mxu1 %v5900_v24 }
0x107b   : > { %3320 = vmatprep.subr.bf16.mxu0 %v5895_v43  ;;  %4289 = vmatprep.subr.bf16.mxu1 %v4835_v4 }
0x107e   : > { %3321 = vmatpush1.bf16.msra.mxu0 %v5906_v34  ;;  %4290 = vmatpush3.bf16.msra.mxu1 %v5916_v47  ;;  %v3198_v34 = vld [vmem:[#allocation3 + $0x28] sm:$0xff] }
0x107f   : > { %3322 = vmatprep.subr.bf16.mxu0 %v5911_v38  ;;  %4291 = vmatprep.subr.bf16.mxu1 %v4835_v4 }
0x1082   : > { %3323 = vmatpush1.bf16.msra.mxu0 %v5922_v53  ;;  %4292 = vmatpush3.bf16.msra.mxu1 %v5928_v22 }
0x1138   : > { %v3233_v63 = vpop.f32.mrb[24].mxu0  ;;  %v3274_v35 = vpop.f32.mrb[24].mxu1 }
0x1139   : > { %v3280_v36 = vadd.f32 %v3233_v63, %v3196_v62  ;;  %v3235_v37 = vpop.f32.mrb[25].mxu0  ;;  %v4275_v6 = vpop.f32.mrb[25].mxu1  ;;  %v3294_v43 = vadd.f32 %v3274_v35, %v5972_v58 }
0x113a   : > { %v3237_v3 = vpop.f32.mrb[26].mxu0  ;;  %v3277_v5 = vpop.f32.mrb[26].mxu1  ;;  %v3281_v11 = vadd.f32 %v3235_v37, %v3197_v2 }
0x113b   : > { %v3760_v7 = vmul.f32 -1.442695, %v3280_v36  ;;  %v3238_v8 = vpop.f32.mrb[27].mxu0  ;;  %v4276_v9 = vpop.f32.mrb[27].mxu1 }
0x113c   : > { %v3761_v12 = vmul.f32 -1.442695, %v3281_v11 }
0x113d   : > { %4559 = vpow2.f32 %v3760_v7 }
0x113e   : > { %4561 = vpow2.f32 %v3761_v12 }
0x1147   : > { %v4560_v4 = vpop.eup %4559 }
0x1148   : > { %v3288_v16 = vadd.f32 1.0, %v4560_v4  ;;  %v4562_v17 = vpop.eup %4561 }
0x1149   : > { %v3289_v18 = vadd.f32 1.0, %v4562_v17 }
0x114a   : > { %4563 = vrcp.f32 %v3288_v16 }
0x114b   : > { %4565 = vrcp.f32 %v3289_v18 }
0x1154   : > { %v4564_v24 = vpop.eup %4563 }
0x1155   : > { %v3295_v38 = vmul.f32 %v4564_v24, %v3294_v43  ;;  %v4566_v53 = vpop.eup %4565 }
0x1156   : > { %v3298_v22 = vsub.f32 1.0, %v4566_v53  ;;  %v3300_v23 = vmul.f32 %v4566_v53, %v6185_v45 }
0x1157   : > { %v3296_v47 = vadd.f32 %v3295_v38, %v3198_v34 }
0x1159   : > { %4567 = vtanh.f32 %v3296_v47 }
0x1163   : > { %v4568_v40 = vpop.eup %4567 }
0x1164   : > { %v3299_v32 = vmul.f32 %v4568_v40, %v3298_v22 }
0x1166   : > { %v3301_v19 = vadd.f32 %v3300_v23, %v3299_v32 }
0x1168   : > { %v3302_v30 = vpack.c.bf16 %v3301_v19, %v3301_v19 }
0x116a   : > { %3762 = vst [vmem:[%s5372_s15 + $0x4] sm:$0xf] %v3302_v30  ;;  %3341 = vmatmul.mubr.bf16.vlgmr.msra.gmra.mrb[28].mxu0 %v3302_v30  ;;  %4294 = vmatmul.mubr.bf16.vlgmr.msra.gmra.mrb[28].mxu1 %v3302_v30 }
0x123d   : > { %v3342_v15 = vpop.f32.mrb[28].mxu0  ;;  %v3383_v21 = vpop.f32.mrb[28].mxu1 }
0x123e   : > { %v3389_v26 = vadd.f32 %v3342_v15, %v3305_v29  ;;  %v3344_v31 = vpop.f32.mrb[29].mxu0  ;;  %v4295_v25 = vpop.f32.mrb[29].mxu1  ;;  %v3403_v51 = vadd.f32 %v3383_v21, %v5972_v58 }
0x123f   : > { %v3346_v41 = vpop.f32.mrb[30].mxu0  ;;  %v3386_v1 = vpop.f32.mrb[30].mxu1  ;;  %v3390_v52 = vadd.f32 %v3344_v31, %v3306_v28 }
0x1240   : > { %v3763_v48 = vmul.f32 -1.442695, %v3389_v26  ;;  %v3347_v49 = vpop.f32.mrb[31].mxu0  ;;  %v4296_v50 = vpop.f32.mrb[31].mxu1 }
0x1241   : > { %v3764_v54 = vmul.f32 -1.442695, %v3390_v52 }
0x1242   : > { %4569 = vpow2.f32 %v3763_v48 }
0x1243   : > { %4571 = vpow2.f32 %v3764_v54 }
0x124c   : > { %v4570_v55 = vpop.eup %4569 }
0x124d   : > { %v3397_v56 = vadd.f32 1.0, %v4570_v55  ;;  %v4572_v57 = vpop.eup %4571 }
0x124e   : > { %v3398_v59 = vadd.f32 1.0, %v4572_v57 }
0x124f   : > { %4573 = vrcp.f32 %v3397_v56 }
0x1250   : > { %4575 = vrcp.f32 %v3398_v59 }
0x1259   : > { %v4574_v60 = vpop.eup %4573 }
0x125a   : > { %v3404_v10 = vmul.f32 %v4574_v60, %v3403_v51  ;;  %v4576_v14 = vpop.eup %4575 }
0x125b   : > { %v3407_v39 = vsub.f32 1.0, %v4576_v14  ;;  %v3409_v42 = vmul.f32 %v4576_v14, %v3301_v19 }
0x125c   : > { %v3405_v13 = vadd.f32 %v3404_v10, %v3307_v61 }
0x125e   : > { %4577 = vtanh.f32 %v3405_v13 }
0x1268   : > { %v4578_v0 = vpop.eup %4577 }
0x1269   : > { %v3408_v20 = vmul.f32 %v4578_v0, %v3407_v39 }
0x126b   : > { %v3410_v33 = vadd.f32 %v3409_v42, %v3408_v20 }
0x126d   : > { %v3411_v44 = vpack.c.bf16 %v3410_v33, %v3410_v33 }
0x126f   : > { %3412 = vst [vmem:[%s5372_s15] sm:$0xf] %v3411_v44 }
0x1270 PF: > { %s3766_s3 = sshll.u32 %s4809_s21, 6  ;;  %s3434_s10 = sshll.u32 %s5372_s15, 4  ;;  %s6235_s10 = int_to_ptr.vmem [resolvable:$true] %s3434_s10 }
0x1271   : > { %s6232_s20 = scalar_lea.hbm %s6289_s5, %s3766_s3  ;;  %s3415_s7 = scalar_lea.sflag [#allocation6], %s5123_s25 }
0x1272   : > { %s4727_s26 = scalar_lea.vmem %s6235_s10, 512  ;;  %p6395_p3 = scmp.ne.s32.totalorder %s6338_s6, 0 }
0x1273   : > { %p4728_p1 = scmp.ne.s32.totalorder %s6235_s10, %s4727_s26  ;;  %s4839_s11 = smov [#allocation13]  }
0x1274   : > { %s4731_s14 = sshll.u32 %s4839_s11, 4  ;;  %s4732_s14 = int_to_ptr.vmem [resolvable:$false] %s4731_s14 }
0x1275   : > { %p4729_p0 = pnand %p4728_p1, %p6395_p3  ;;  %s4733_s21 = scalar_lea.vmem %s4732_s14, 1024 }
0x1276   : > { %p4734_p7 = scmp.lt.s32.totalorder %s6235_s10, %s4732_s14  ;;  %p4735_p10 = scmp.lt.s32.totalorder %s4733_s21, %s4727_s26 }
0x1277   : > { %p4730_p12 = pneg %p4729_p0 }
0x1278   : > { %p4736_p5 = por %p4735_p10, %p4734_p7 }
0x127a   : > { %p4737_p8 = pnand %p4736_p5, %p4730_p12 }
0x127c   : > { %4740 = shalt.err (!%p4737_p8)
}
0x127d   : > { %s4741_s13 = scalar_lea.hbm %s6232_s20, 512  ;;  %s4745_s9 = scalar_lea.hbm %s6289_s5, 1024 }
0x127e   : > { %p4742_p2 = scmp.ne.s32.totalorder %s6232_s20, %s4741_s13  ;;  %p4746_p4 = scmp.lt.u32.totalorder %s6232_s20, %s6289_s5 }
0x127f   : > { %p4747_p6 = scmp.lt.u32.totalorder %s4745_s9, %s4741_s13  ;;  %p4749_p1 = scmp.lt.u32.totalorder %s4741_s13, %s6232_s20 }
0x1280   : > { %p4743_p13 = pnand %p4742_p2, %p6395_p3 }
0x1281   : > { %p4748_p11 = por %p4747_p6, %p4746_p4 }
0x1282   : > { %p4744_p9 = pneg %p4743_p13 }
0x1283   : > { %p4750_p0 = por %p4749_p1, %p4748_p11 }
0x1285   : > { %p4751_p12 = pnand %p4750_p0, %p4744_p9 }
0x1287   : > { %4754 = shalt.err (!%p4751_p12)
}
0x1288   : > { %s4840_s24 = smov 64   ;;  %s4841_s17 = smov 128  }
0x1289   : > { %s4842_s1 = smov 4  }
0x128a   : > { %4318 = dma.vmem_to_hbm [thread:$0]  (%p6395_p3), %s6235_s10, 512, %s6232_s20, %s3415_s7, %s4840_s24, %s4841_s17, %s4842_s1  }
0x128b PF: > { %s6396_s30 = sld [smem:[#allocation19_spill]]  ;;  %s3449_s15 = sand.u32 1, %s4797_s18  }
0x128c   : > { %p6397_p7 = scmp.ne.s32.totalorder %s6340_s8, 0  ;;  %s3450_s3 = scalar_lea.sflag [#allocation6], %s3449_s15 }
0x1291   : > { %p6398_p10 = scmp.ge.s32.totalorder %s6396_s30, 2 }
0x1293   : > { %p4337_p5 = pnand %p6398_p10, %p6397_p7 }
0x1295   : > { %4792 = dma.done.wait (!%p4337_p5), %s3450_s3, 512  }
0x1296   : > { %4794 = vsyncadd (!%p4337_p5), %s3450_s3, 4294966784  ;;  %s27_s23 = sadd.s32 1, %s6396_s30   ;;  %s6399_s28 = sld [smem:[#allocation18_spill]] }
0x1297   : > { %p24_p8 = scmp.ge.s32.totalorder %s27_s23, 4   ;;  %s6400_s20 = sld [smem:[#allocation21_spill]] }
0x1298   : > { %s6401_s6 = sld [smem:[#allocation20_spill]]  ;;  %s6402_s18 = smov %s4801_s19 }
0x1299   : > { %s6404_s21 = smov %s4813_s22  ;;  %26 = sbr.rel (!%p24_p8) target bundleno = 13 (0xd), region = 179 }
0x129c   : > { %s6403_s19 = smov %s6399_s28 }
0x129e   : > { %s6405_s22 = smov %s6401_s6 }
0x12a0   :  { %3455 = vsyncpa [#allocation5], 1 }
0x12a1   :  { %3457 = vsyncpa [#allocation5 + $0x1], 1 }
0x12a2   :  { %3458 = vsyncpa [#allocation8], 1 }
0x12a3   :  { %3460 = vsyncpa [#allocation8 + $0x1], 1 }
0x12a4   :  { %3461 = vsyncpa [#allocation11], 1 }
0x12a5   :  { %3463 = vsyncpa [#allocation11 + $0x1], 1 }
0x12a6   :  { %3464 = vsyncpa [#allocation6], 1 }
0x12a7   :  { %3466 = vsyncpa [#allocation6 + $0x1], 1 }

// kernel: pyramidal_encoder_pallas.5
= control target key start
LH: loop header
LB: loop body
LE: loop exit
PB: predicated region body
PF: predicated region fallthrough
CT: control target
= control target key end

     0   :  { %s5190_s0 = inlined_call_operand.hbm [shape: bf16[4,8,256], index: 0, kind: input, shape index: {}]   ;;  %s5191_s1 = inlined_call_operand.hbm [shape: bf16[2,512,384], index: 1, kind: input, shape index: {}]   ;;  %s5192_s2 = inlined_call_operand.hbm [shape: bf16[2,128,384], index: 2, kind: input, shape index: {}]   ;;  %s5193_s3 = inlined_call_operand.hbm [shape: f32[2,1,384], index: 3, kind: input, shape index: {}]   ;;  %s5194_s4 = inlined_call_operand.hbm [shape: f32[2,1,128], index: 4, kind: input, shape index: {}]   ;;  %s5195_s5 = inlined_call_operand.hbm [shape: bf16[2,8,256], index: 5, kind: output, shape index: {}]  }
   0x1   :  { %5222 = sst [smem:[#allocation35_spill]] %s5191_s1 }
   0x2   :  { %5223 = sst [smem:[#allocation36_spill]] %s5193_s3 }
   0x3   :  { %10 = vsyncpa [#allocation5], 0 }
   0x4   :  { %12 = vsyncpa [#allocation5 + $0x1], 0 }
   0x5   :  { %13 = vsyncpa [#allocation8], 0 }
   0x6   :  { %15 = vsyncpa [#allocation8 + $0x1], 0 }
   0x7   :  { %16 = vsyncpa [#allocation11], 0 }
   0x8   :  { %18 = vsyncpa [#allocation11 + $0x1], 0 }
   0x9   :  { %19 = vsyncpa [#allocation6], 0 }
   0xa   :  { %21 = vsyncpa [#allocation6 + $0x1], 0  ;;  %s4162_s18 = smov 0   ;;  %s4164_s19 = smov 0  }
   0xb   :  { %s4166_s20 = smov 0   ;;  %s4168_s21 = smov 0  }
   0xc   :  { %s4170_s22 = smov 0   ;;  %s4172_s23 = smov 0  }
   0xd LB: > { %5224 = sst [smem:[#allocation18_spill]] %s4089_s18  ;;  %s4193_s24 = sadd.s32 4294967295, %s4109_s23   ;;  %s4109_s23 = sphi %s4172_s23, %s27_s23   ;;  %s4105_s22 = sphi %s4170_s22, %s5299_s22   ;;  %s4101_s21 = sphi %s4168_s21, %s5298_s21   ;;  %s4097_s20 = sphi %s4166_s20, %s5294_s20   ;;  %s4093_s19 = sphi %s4164_s19, %s5297_s19   ;;  %s4089_s18 = sphi %s4162_s18, %s5296_s18  }
   0xe   : > { %5225 = sst [smem:[#allocation19_spill]] %s4097_s20  ;;  %s3060_s25 = sadd.s32 4294967294, %s4109_s23  }
   0xf   : > { %5226 = sst [smem:[#allocation20_spill]] %s4109_s23  ;;  %s39_s26 = sadd.s32 1, %s4105_s22 }
  0x10   : > { %s80_s27 = sadd.s32 1, %s4097_s20  ;;  %p41_p0 = scmp.ge.s32.totalorder %s39_s26, 2 }
  0x11   : > { %p87_p1 = scmp.ne.s32.totalorder %s4097_s20, %s4093_s19  ;;  %p5198_p2 = scmp.eq.s32.totalorder %s4109_s23, 0 }
  0x12   : > { %p93_p3 = scmp.ne.s32.totalorder %s4093_s19, %s4089_s18  ;;  %s5301_s26 = smov (%p41_p0, %s39_s26), 0 }
  0x13   : > { %5227 = sst [smem:[#allocation21_spill]] %s5301_s26  ;;  %p4207_p4 = por %p5198_p2, %p87_p1 }
  0x14   : > { %p5196_p5 = scmp.eq.s32.totalorder %s4193_s24, 0  ;;  %s77_s29 = ssub.s32 %s4105_s22, %s5301_s26 }
  0x15   : > { %p205_p6 = scmp.eq.s32.totalorder %s4193_s24, 1  ;;  %p78_p7 = scmp.eq.s32.totalorder %s77_s29, 0 }
  0x16   : > { %p4217_p8 = por %p5196_p5, %p93_p3  ;;  %p211_p10 = scmp.eq.s32.totalorder %s3060_s25, 1 }
  0x17   : > { %p4221_p9 = por %p205_p6, %p87_p1  ;;  %p5197_p13 = scmp.lt.s32.totalorder %s4109_s23, 2 }
  0x18   : > { %s5229_s30 = scalar_select %p4217_p8, 1, 0 }
  0x19   : > { %s5230_s6 = scalar_select %p4221_p9, 1, 0 }
  0x1a   : > { %s4226_s7 = scalar_select %p78_p7, %s4097_s20, %s80_s27  }
  0x1b   : > { %p4228_p11 = por %p211_p10, %p93_p3  ;;  %s5199_s9 = sand.u32 1, %s4109_s23  }
  0x1c   : > { %5231 = sst [smem:[#allocation22_spill]] %s4226_s7  ;;  %s4236_s10 = sand.u32 1, %s4097_s20  }
  0x1d   : > { %s5232_s8 = scalar_select %p4228_p11, 1, 0 }
  0x1e   : > { %s3554_s11 = smul.u32 768, %s4236_s10  ;;  %p4244_p0 = pnand %p5197_p13, %p4207_p4 }
  0x1f   : > { %5233 = sst [smem:[#allocation23_spill]] %s5232_s8  ;;  %s3555_s12 = smul.u32 12288, %s4105_s22 }
  0x20   : > { %s5234_s13 = scalar_select %p4244_p0, 1, 0 }
  0x21   : > { %s5235_s1 = sld [smem:[#allocation35_spill]]  ;;  %s261_s17 = scalar_lea.vmem [#allocation7], %s3554_s11 }
  0x22   : > { %s268_s25 = sshll.u32 %s261_s17, 4  ;;  %s4258_s27 = scalar_lea.sflag [#allocation8], %s5199_s9  ;;  %s4253_s25 = int_to_ptr.vmem [resolvable:$true] %s268_s25 }
  0x23   : > { %p4264_p4 = pneg %p4244_p0 }
  0x25   : > { %s5236_s29 = scalar_select %p4264_p4, 1, 0 }
  0x27   : > { %s4251_s16 = scalar_lea.hbm %s5235_s1, %s3555_s12  ;;  %s3876_s14 = scalar_lea.hbm %s5235_s1, 24576 }
  0x28   : > { %s3871_s28 = scalar_lea.hbm %s4251_s16, 12288  ;;  %p3877_p10 = scmp.lt.u32.totalorder %s4251_s16, %s5235_s1 }
  0x29   : > { %p3872_p3 = scmp.ne.s32.totalorder %s4251_s16, %s3871_s28  ;;  %p3878_p12 = scmp.lt.u32.totalorder %s3876_s14, %s3871_s28 }
  0x2a   : > { %p3880_p13 = scmp.lt.u32.totalorder %s3871_s28, %s4251_s16 }
  0x2b   : > { %p3874_p6 = pnand %p4264_p4, %p3872_p3  ;;  %p3879_p5 = por %p3878_p12, %p3877_p10 }
  0x2d   : > { %p3875_p7 = pneg %p3874_p6  ;;  %p3881_p2 = por %p3880_p13, %p3879_p5 }
  0x2f   : > { %p3882_p1 = pnand %p3881_p2, %p3875_p7 }
  0x31   : > { %3885 = shalt.err (!%p3882_p1)
}
  0x32   : > { %s3886_s9 = scalar_lea.vmem %s4253_s25, 12288  ;;  %s4111_s12 = smov [#allocation7]  }
  0x33   : > { %p3887_p3 = scmp.ne.s32.totalorder %s4253_s25, %s3886_s9  ;;  %s3891_s11 = sshll.u32 %s4111_s12, 4  ;;  %s3892_s11 = int_to_ptr.vmem [resolvable:$false] %s3891_s11 }
  0x34   : > { %s3893_s15 = scalar_lea.vmem %s3892_s11, 24576  ;;  %p3894_p9 = scmp.lt.s32.totalorder %s4253_s25, %s3892_s11 }
  0x35   : > { %p3889_p6 = pnand %p3887_p3, %p4264_p4  ;;  %p3895_p8 = scmp.lt.s32.totalorder %s3893_s15, %s3886_s9 }
  0x37   : > { %p3890_p11 = pneg %p3889_p6  ;;  %p3896_p12 = por %p3895_p8, %p3894_p9 }
  0x39   : > { %p3897_p10 = pnand %p3896_p12, %p3890_p11 }
  0x3b   : > { %3900 = shalt.err (!%p3897_p10)
}
  0x3c   : > { %s5203_s28 = smov 192   ;;  %s5204_s14 = smov 12  }
  0x3d   : > { %3583 = dma.hbm_to_vmem [thread:$0]  (!%p4244_p0), %s4251_s16, 12288, %s4253_s25, %s4258_s27, %s5203_s28, %s5203_s28, %s5204_s14  }
  0x3e   : > { %p333_p2 = scmp.lt.s32.totalorder %s4109_s23, 3  ;;  %s3558_s9 = smul.u32 3, %s4236_s10 }
  0x3f   : > { %p5237_p5 = scmp.ge.s32.totalorder %s4109_s23, 1  ;;  %s3559_s12 = smul.u32 48, %s4105_s22 }
  0x40   : > { %s5239_s3 = sld [smem:[#allocation36_spill]]  ;;  %s303_s26 = scalar_lea.vmem [#allocation10], %s3558_s9 }
  0x41   : > { %p4295_p8 = pnand %p5237_p5, %p333_p2  ;;  %s311_s7 = sshll.u32 %s303_s26, 4  ;;  %s312_s7 = int_to_ptr.vmem [resolvable:$true] %s311_s7 }
  0x42   : > { %s5240_s16 = sand.u32 1, %s4109_s23  }
  0x43   : > { %s5238_s17 = scalar_select %p4295_p8, 1, 0 }
  0x44   : > { %s4307_s25 = scalar_lea.sflag [#allocation11], %s5240_s16 }
  0x46   : > { %s4303_s1 = scalar_lea.hbm %s5239_s3, %s3559_s12  ;;  %s3906_s12 = scalar_lea.hbm %s5239_s3, 96 }
  0x47   : > { %s3901_s28 = scalar_lea.hbm %s4303_s1, 48  ;;  %p3907_p1 = scmp.lt.u32.totalorder %s4303_s1, %s5239_s3 }
  0x48   : > { %p3902_p9 = scmp.ne.s32.totalorder %s4303_s1, %s3901_s28  ;;  %p3908_p7 = scmp.lt.u32.totalorder %s3906_s12, %s3901_s28 }
  0x49   : > { %p3910_p6 = scmp.lt.u32.totalorder %s3901_s28, %s4303_s1 }
  0x4a   : > { %p3904_p11 = pnand %p3902_p9, %p4264_p4  ;;  %p3909_p3 = por %p3908_p7, %p3907_p1 }
  0x4c   : > { %p3905_p13 = pneg %p3904_p11  ;;  %p3911_p12 = por %p3910_p6, %p3909_p3 }
  0x4e   : > { %p3912_p10 = pnand %p3911_p12, %p3905_p13 }
  0x50   : > { %3915 = shalt.err (!%p3912_p10)
}
  0x51   : > { %s3916_s26 = scalar_lea.vmem %s312_s7, 48  ;;  %s4114_s9 = smov [#allocation10]  }
  0x52   : > { %p3917_p2 = scmp.ne.s32.totalorder %s312_s7, %s3916_s26  ;;  %s3921_s16 = sshll.u32 %s4114_s9, 4  ;;  %s3922_s16 = int_to_ptr.vmem [resolvable:$false] %s3921_s16 }
  0x53   : > { %s3923_s20 = scalar_lea.vmem %s3922_s16, 96  ;;  %p3924_p11 = scmp.lt.s32.totalorder %s312_s7, %s3922_s16 }
  0x54   : > { %p3919_p5 = pnand %p3917_p2, %p4264_p4  ;;  %p3925_p8 = scmp.lt.s32.totalorder %s3923_s20, %s3916_s26 }
  0x56   : > { %p3920_p9 = pneg %p3919_p5  ;;  %p3926_p0 = por %p3925_p8, %p3924_p11 }
  0x58   : > { %p3927_p1 = pnand %p3926_p0, %p3920_p9 }
  0x5a   : > { %3930 = shalt.err (!%p3927_p1)
}
  0x5b   : > { %p5241_p7 = scmp.ne.s32.totalorder %s5234_s13, 0  ;;  %s4115_s28 = smov [#allocation4]  }
  0x5c   : > { %s247_s14 = sshll.u32 %s4115_s28, 4  ;;  %p5242_p13 = scmp.eq.s32.totalorder %s4109_s23, 0  ;;  %s248_s14 = int_to_ptr.vmem [resolvable:$true] %s247_s14 }
  0x5d   : > { %3589 = dma.hbm_to_vmem [thread:$0]  (!%p5241_p7), %s4303_s1, 48, %s312_s7, %s4307_s25  }
  0x5e   : > { %p5243_p3 = scmp.lt.s32.totalorder %s4109_s23, 2  ;;  %s3931_s26 = scalar_lea.hbm %s5190_s0, 512 }
  0x5f   : > { %p3932_p0 = scmp.ne.s32.totalorder %s5190_s0, %s3931_s26  ;;  %p3938_p2 = scmp.lt.u32.totalorder %s3931_s26, %s5190_s0 }
  0x60   : > { %p4331_p6 = pnand %p5243_p3, %p5242_p13 }
  0x62   : > { %p3933_p8 = pneg %p4331_p6 }
  0x64   : > { %p3934_p12 = pnand %p3933_p8, %p3932_p0 }
  0x66   : > { %p3935_p10 = pneg %p3934_p12 }
  0x68   : > { %p3940_p5 = pnand %p3938_p2, %p3935_p10 }
  0x6a   : > { %3943 = shalt.err (!%p3940_p5)
}
  0x6b   : > { %s3944_s20 = scalar_lea.vmem %s248_s14, 512  ;;  %s3951_s28 = scalar_lea.vmem %s248_s14, 1024 }
  0x6c   : > { %p3945_p9 = scmp.ne.s32.totalorder %s248_s14, %s3944_s20  ;;  %p3952_p13 = scmp.lt.s32.totalorder %s248_s14, %s248_s14 }
  0x6d   : > { %p3953_p3 = scmp.lt.s32.totalorder %s3951_s28, %s3944_s20 }
  0x6e   : > { %p3947_p11 = pnand %p3945_p9, %p3933_p8 }
  0x6f   : > { %p3954_p7 = por %p3953_p3, %p3952_p13 }
  0x70   : > { %p3948_p1 = pneg %p3947_p11 }
  0x72   : > { %p3955_p4 = pnand %p3954_p7, %p3948_p1 }
  0x74   : > { %3958 = shalt.err (!%p3955_p4)
}
  0x75   : > { %s4116_s11 = smov 128   ;;  %s4117_s15 = smov 8  }
  0x76   : > { %3580 = dma.hbm_to_vmem [thread:$0]  (!%p4331_p6), %s5190_s0, 512, %s248_s14, [#allocation5], %s4116_s11, %s4116_s11, %s4117_s15  }
  0x77   : > { %s3556_s16 = smul.u32 192, %s4236_s10  ;;  %s3067_s7 = sshll.u32 %s4105_s22, 4 }
  0x78   : > { %s3557_s1 = smul.u32 3072, %s4105_s22  ;;  %s4357_s3 = scalar_lea.hbm %s5194_s4, %s3067_s7 }
  0x79   : > { %s282_s12 = scalar_lea.vmem [#allocation9], %s3556_s16  ;;  %s321_s14 = scalar_lea.vmem [#allocation12], %s4236_s10 }
  0x7a   : > { %s4362_s18 = scalar_lea.hbm %s5192_s2, %s3557_s1  ;;  %s289_s26 = sshll.u32 %s282_s12, 4  ;;  %s4364_s26 = int_to_ptr.vmem [resolvable:$true] %s289_s26 }
  0x7b   : > { %s4367_s11 = sshll.u32 %s321_s14, 4  ;;  %s3959_s15 = scalar_lea.hbm %s4362_s18, 3072  ;;  %s329_s11 = int_to_ptr.vmem [resolvable:$true] %s4367_s11 }
  0x7c   : > { %p3960_p4 = scmp.ne.s32.totalorder %s4362_s18, %s3959_s15  ;;  %p5245_p7 = scmp.ne.s32.totalorder %s5236_s29, 0 }
  0x7d   : > { %s3964_s8 = scalar_lea.hbm %s5192_s2, 6144  ;;  %p3965_p8 = scmp.lt.u32.totalorder %s4362_s18, %s5192_s2 }
  0x7e   : > { %p3962_p6 = pnand %p3960_p4, %p5245_p7  ;;  %p3966_p12 = scmp.lt.u32.totalorder %s3964_s8, %s3959_s15 }
  0x7f   : > { %p3968_p2 = scmp.lt.u32.totalorder %s3959_s15, %s4362_s18 }
  0x80   : > { %p3963_p0 = pneg %p3962_p6  ;;  %p3967_p10 = por %p3966_p12, %p3965_p8 }
  0x82   : > { %p3969_p5 = por %p3968_p2, %p3967_p10 }
  0x84   : > { %p3970_p9 = pnand %p3969_p5, %p3963_p0 }
  0x86   : > { %3973 = shalt.err (!%p3970_p9)
}
  0x87   : > { %s3974_s10 = scalar_lea.vmem %s4364_s26, 3072  ;;  %s4118_s16 = smov [#allocation9]  }
  0x88   : > { %p3975_p11 = scmp.ne.s32.totalorder %s4364_s26, %s3974_s10  ;;  %s3979_s20 = sshll.u32 %s4118_s16, 4  ;;  %s3980_s20 = int_to_ptr.vmem [resolvable:$false] %s3979_s20 }
  0x89   : > { %s3981_s28 = scalar_lea.vmem %s3980_s20, 6144  ;;  %p3982_p3 = scmp.lt.s32.totalorder %s4364_s26, %s3980_s20 }
  0x8a   : > { %p3977_p1 = pnand %p3975_p11, %p5245_p7  ;;  %p3983_p4 = scmp.lt.s32.totalorder %s3981_s28, %s3974_s10 }
  0x8c   : > { %p3978_p13 = pneg %p3977_p1  ;;  %p3984_p6 = por %p3983_p4, %p3982_p3 }
  0x8e   : > { %p3985_p8 = pnand %p3984_p6, %p3978_p13 }
  0x90   : > { %3988 = shalt.err (!%p3985_p8)
}
  0x91   : > { %p5246_p0 = scmp.ne.s32.totalorder %s5234_s13, 0  ;;  %s5247_s12 = smov 12  }
  0x92   : > { %s5248_s14 = smov 192   ;;  %s3989_s15 = scalar_lea.hbm %s4357_s3, 16 }
  0x93   : > { %3586 = dma.hbm_to_vmem [thread:$0]  (!%p5246_p0), %s4362_s18, 3072, %s4364_s26, %s4258_s27, %s5248_s14, %s5248_s14, %s5247_s12  }
  0x94   : > { %p3990_p12 = scmp.ne.s32.totalorder %s4357_s3, %s3989_s15  ;;  %s3994_s8 = scalar_lea.hbm %s5194_s4, 32 }
  0x95   : > { %p3995_p5 = scmp.lt.u32.totalorder %s4357_s3, %s5194_s4  ;;  %p3996_p9 = scmp.lt.u32.totalorder %s3994_s8, %s3989_s15 }
  0x96   : > { %p3992_p10 = pnand %p3990_p12, %p5245_p7  ;;  %p3998_p1 = scmp.lt.u32.totalorder %s3989_s15, %s4357_s3 }
  0x97   : > { %p3997_p11 = por %p3996_p9, %p3995_p5 }
  0x98   : > { %p3993_p2 = pneg %p3992_p10 }
  0x99   : > { %p3999_p13 = por %p3998_p1, %p3997_p11 }
  0x9b   : > { %p4000_p3 = pnand %p3999_p13, %p3993_p2 }
  0x9d   : > { %4003 = shalt.err (!%p4000_p3)
}
  0x9e   : > { %s4004_s18 = scalar_lea.vmem %s329_s11, 16  ;;  %s4119_s27 = smov [#allocation12]  }
  0x9f   : > { %p4005_p4 = scmp.ne.s32.totalorder %s329_s11, %s4004_s18  ;;  %s4009_s26 = sshll.u32 %s4119_s27, 4  ;;  %s4010_s26 = int_to_ptr.vmem [resolvable:$false] %s4009_s26 }
  0xa0   : > { %s4011_s10 = scalar_lea.vmem %s4010_s26, 32  ;;  %p4012_p12 = scmp.lt.s32.totalorder %s329_s11, %s4010_s26 }
  0xa1   : > { %p4007_p6 = pnand %p4005_p4, %p5245_p7  ;;  %p4013_p10 = scmp.lt.s32.totalorder %s4011_s10, %s4004_s18 }
  0xa3   : > { %p4008_p8 = pneg %p4007_p6  ;;  %p4014_p0 = por %p4013_p10, %p4012_p12 }
  0xa5   : > { %p4015_p5 = pnand %p4014_p0, %p4008_p8 }
  0xa7   : > { %4018 = shalt.err (!%p4015_p5)
}
  0xa8   : > { %p5249_p9 = scmp.ne.s32.totalorder %s5234_s13, 0  ;;  %p5250_p2 = scmp.ne.s32.totalorder %s5238_s17, 0 }
  0xaa   : > { %3592 = dma.hbm_to_vmem [thread:$0]  (!%p5249_p9), %s4357_s3, 16, %s329_s11, %s4307_s25  }
  0xab   : > { %337 = sbr.rel (%p5250_p2) target bundleno = 1735 (0x6c7), region = 40 }
  0xb2   : > { %p5251_p7 = scmp.eq.s32.totalorder %s4193_s24, 0 }
  0xb4   : > { %4072 = dma.done.wait (%p5251_p7), [#allocation5], 512   ;;  %p5252_p11 = pmov %p5251_p7 }
  0xb5   : > { %s348_s29 = sand.u32 1, %s4193_s24   ;;  %s4421_s16 = sand.u32 1, %s4093_s19  }
  0xb6   : > { %4074 = vsyncadd (%p5252_p11), [#allocation5], 4294966784  ;;  %s3560_s13 = smul.u32 768, %s4421_s16  ;;  %s349_s20 = scalar_lea.sflag [#allocation8], %s348_s29 }
  0xb7   : > { %p5253_p0 = scmp.ne.s32.totalorder %s5229_s30, 0 }
  0xb8   : > { %s4424_s28 = scalar_lea.vmem [#allocation7], %s3560_s13 }
  0xb9   : > { %4076 = dma.done.wait (%p5253_p0), %s349_s20, 15360  }
  0xba   : > { %4078 = vsyncadd (%p5253_p0), %s349_s20, 4294951936  ;;  %s3561_s3 = smul.u32 192, %s4421_s16  ;;  %s367_s24 = scalar_lea.sflag [#allocation11], %s348_s29 }
  0xbb   : > { %s3562_s17 = smul.u32 3, %s4421_s16 }
  0xbc   : > { %s4432_s25 = scalar_lea.vmem [#allocation9], %s3561_s3 }
  0xbd   : > { %s4434_s11 = scalar_lea.vmem [#allocation10], %s3562_s17 }
  0xbe   : > { %4080 = dma.done.wait (%p5253_p0), %s367_s24, 64  }
  0xbf   : > { %4082 = vsyncadd (%p5253_p0), %s367_s24, 4294967232  ;;  %s3070_s12 = sshll.u32 %s4421_s16, 3  ;;  %v4442_v0 = vld [vmem:[%s4432_s25] sm:$0xff]  ;;  %v4445_v1 = vld [vmem:[%s4432_s25 + $0x8] sm:$0xf]  ;;  %s378_s30 = scalar_lea.vmem [#allocation12], %s4421_s16 }
  0xc0   : > { %v4448_v2 = vld [vmem:[%s4432_s25 + $0xc] sm:$0xff]  ;;  %v4451_v3 = vld [vmem:[%s4432_s25 + $0x14] sm:$0xf]  ;;  %v4454_v4 = vld [vmem:[%s4432_s25 + $0x18] sm:$0xff]  ;;  %s4954_s14 = scalar_lea.vmem [#allocation13], %s3070_s12  ;;  %p3274_p1 = scmp.ne.s32.totalorder %s4101_s21, 0 }
  0xc1   : > { %v4457_v5 = vld [vmem:[%s4432_s25 + $0x20] sm:$0xf]  ;;  %v4460_v6 = vld [vmem:[%s4432_s25 + $0x24] sm:$0xff]  ;;  %v4463_v7 = vld [vmem:[%s4432_s25 + $0x2c] sm:$0xf]  ;;  %vm4122_vm0 = vmmov (!%p3274_p1), 0  }
  0xc2   : > { %v4466_v8 = vld [vmem:[%s4432_s25 + $0x30] sm:$0xff]  ;;  %v4469_v9 = vld [vmem:[%s4432_s25 + $0x38] sm:$0xf]  ;;  %v4472_v10 = vld [vmem:[%s4432_s25 + $0x3c] sm:$0xff] }
  0xc3   : > { %v4475_v11 = vld [vmem:[%s4432_s25 + $0x44] sm:$0xf]  ;;  %v4478_v12 = vld [vmem:[%s4432_s25 + $0x48] sm:$0xff]  ;;  %v4481_v13 = vld [vmem:[%s4432_s25 + $0x50] sm:$0xf] }
  0xc4   : > { %v4484_v14 = vld [vmem:[%s4432_s25 + $0x54] sm:$0xff]  ;;  %v4487_v15 = vld [vmem:[%s4432_s25 + $0x5c] sm:$0xf]  ;;  %v4490_v16 = vld [vmem:[%s4432_s25 + $0x60] sm:$0xff] }
  0xc5   : > { %v4493_v17 = vld [vmem:[%s4432_s25 + $0x68] sm:$0xf]  ;;  %v4496_v18 = vld [vmem:[%s4432_s25 + $0x6c] sm:$0xff]  ;;  %v4499_v19 = vld [vmem:[%s4432_s25 + $0x74] sm:$0xf] }
  0xc6   : > { %v4502_v20 = vld [vmem:[%s4432_s25 + $0x78] sm:$0xff]  ;;  %v4505_v21 = vld [vmem:[%s4432_s25 + $0x80] sm:$0xf]  ;;  %v4508_v22 = vld [vmem:[%s4432_s25 + $0x84] sm:$0xff] }
  0xc7   : > { %5254 = vst [vmem:[#allocation24_spill] sm:$0xff] %v4505_v21  ;;  %v4511_v23 = vld [vmem:[%s4432_s25 + $0x8c] sm:$0xf]  ;;  %v4514_v24 = vld [vmem:[%s4432_s25 + $0x90] sm:$0xff]  ;;  %v4517_v25 = vld [vmem:[%s4432_s25 + $0x98] sm:$0xf] }
  0xc8   : > { %5255 = vst [vmem:[#allocation25_spill] sm:$0xff] %v4511_v23  ;;  %5256 = vst [vmem:[#allocation26_spill] sm:$0xff] %v4514_v24  ;;  %v4520_v26 = vld [vmem:[%s4432_s25 + $0x9c] sm:$0xff]  ;;  %v4523_v27 = vld [vmem:[%s4432_s25 + $0xa4] sm:$0xf] }
  0xc9   : > { %5257 = vst [vmem:[#allocation27_spill] sm:$0xff] %v4517_v25  ;;  %5258 = vst [vmem:[#allocation28_spill] sm:$0xff] %v4520_v26  ;;  %v4526_v28 = vld [vmem:[%s4432_s25 + $0xa8] sm:$0xff]  ;;  %v4529_v29 = vld [vmem:[%s4432_s25 + $0xb0] sm:$0xf] }
  0xca   : > { %5259 = vst [vmem:[#allocation29_spill] sm:$0xff] %v4523_v27  ;;  %5260 = vst [vmem:[#allocation30_spill] sm:$0xff] %v4526_v28  ;;  %v4532_v30 = vld [vmem:[%s4432_s25 + $0xb4] sm:$0xff]  ;;  %v4535_v31 = vld [vmem:[%s4432_s25 + $0xbc] sm:$0xf] }
  0xcb   : > { %5261 = vst [vmem:[#allocation31_spill] sm:$0xff] %v4529_v29  ;;  %5262 = vst [vmem:[#allocation32_spill] sm:$0xff] %v4532_v30  ;;  %v4538_v32 = vld [vmem:[%s378_s30] sm:$0x1]  ;;  %v3665_v34 = vld [vmem:[%s4424_s28 + $0xc8] ss:$12 sps:$4 sm:$0xff]  }
  0xcc   : > { %5263 = vst [vmem:[#allocation33_spill] sm:$0xff] %v4535_v31  ;;  %5264 = vst [vmem:[#allocation34_spill] sm:$0xff] %v4538_v32  ;;  %v4541_v33 = vld [vmem:[%s4424_s28 + $0x4] ss:$12 sps:$4 sm:$0xff]   ;;  %v4546_v35 = vld [vmem:[%s4424_s28] ss:$12 sps:$4 sm:$0xff]   ;;  %3338 = vmatprep.subr.bf16.mxu1 %v3665_v34 }
  0xcd   : > { %797 = vmatprep.subr.bf16.mxu0 %v4541_v33  ;;  %v3667_v36 = vld [vmem:[%s4424_s28 + $0x8] ss:$12 sps:$4 sm:$0xff]   ;;  %v3670_v38 = vld [vmem:[%s4424_s28 + $0xe0] ss:$12 sps:$4 sm:$0xff]   ;;  %v4555_v39 = vld [vmem:[%s4424_s28 + $0x18] ss:$12 sps:$4 sm:$0xff]  }
  0xce   : > { %798 = vmatpush1.bf16.msra.mxu0 %v4546_v35  ;;  %v4551_v37 = vld [vmem:[%s4424_s28 + $0x1c] ss:$12 sps:$4 sm:$0xff]   ;;  %3339 = vmatpush3.bf16.msra.mxu1 %v3667_v36  ;;  %v3672_v40 = vld [vmem:[%s4424_s28 + $0x20] ss:$12 sps:$4 sm:$0xff]   ;;  %v3675_v42 = vld [vmem:[%s4424_s28 + $0xf8] ss:$12 sps:$4 sm:$0xff]  }
  0xcf   : > { %799 = vmatprep.subr.bf16.mxu0 %v4551_v37  ;;  %3340 = vmatprep.subr.bf16.mxu1 %v3670_v38  ;;  %v4560_v41 = vld [vmem:[%s4424_s28 + $0x34] ss:$12 sps:$4 sm:$0xff]   ;;  %v4565_v43 = vld [vmem:[%s4424_s28 + $0x30] ss:$12 sps:$4 sm:$0xff]   ;;  %v3677_v44 = vld [vmem:[%s4424_s28 + $0x38] ss:$12 sps:$4 sm:$0xff]  }
  0xd0   : > { %v4570_v45 = vld [vmem:[%s4424_s28 + $0x4c] ss:$12 sps:$4 sm:$0xff]   ;;  %v3680_v46 = vld [vmem:[%s4424_s28 + $0x110] ss:$12 sps:$4 sm:$0xff]   ;;  %v4575_v47 = vld [vmem:[%s4424_s28 + $0x48] ss:$12 sps:$4 sm:$0xff]  }
  0xd1   : > { %v3682_v48 = vld [vmem:[%s4424_s28 + $0x50] ss:$12 sps:$4 sm:$0xff]   ;;  %v3685_v50 = vld [vmem:[%s4424_s28 + $0x128] ss:$12 sps:$4 sm:$0xff]   ;;  %v4584_v51 = vld [vmem:[%s4424_s28 + $0x60] ss:$12 sps:$4 sm:$0xff]  }
  0xd2   : > { %800 = vmatpush1.bf16.msra.mxu0 %v4555_v39  ;;  %3341 = vmatpush3.bf16.msra.mxu1 %v3672_v40  ;;  %v4580_v49 = vld [vmem:[%s4424_s28 + $0x64] ss:$12 sps:$4 sm:$0xff]   ;;  %v3687_v52 = vld [vmem:[%s4424_s28 + $0x68] ss:$12 sps:$4 sm:$0xff]   ;;  %v3690_v54 = vld [vmem:[%s4424_s28 + $0x140] ss:$12 sps:$4 sm:$0xff]  }
  0xd3   : > { %801 = vmatprep.subr.bf16.mxu0 %v4560_v41  ;;  %3342 = vmatprep.subr.bf16.mxu1 %v3675_v42  ;;  %v4590_v53 = vld [vmem:[%s4424_s28 + $0x7c] ss:$12 sps:$4 sm:$0xff]   ;;  %v4594_v55 = vld [vmem:[%s4424_s28 + $0x78] ss:$12 sps:$4 sm:$0xff]   ;;  %v3692_v56 = vld [vmem:[%s4424_s28 + $0x80] ss:$12 sps:$4 sm:$0xff]  }
  0xd4   : > { %v4600_v57 = vld [vmem:[%s4424_s28 + $0x94] ss:$12 sps:$4 sm:$0xff]   ;;  %v3695_v58 = vld [vmem:[%s4424_s28 + $0x158] ss:$12 sps:$4 sm:$0xff]   ;;  %v4605_v59 = vld [vmem:[%s4424_s28 + $0x90] ss:$12 sps:$4 sm:$0xff]  }
  0xd5   : > { %v3697_v60 = vld [vmem:[%s4424_s28 + $0x98] ss:$12 sps:$4 sm:$0xff]   ;;  %v3700_v62 = vld [vmem:[%s4424_s28 + $0x170] ss:$12 sps:$4 sm:$0xff]   ;;  %v4614_v34 = vld [vmem:[%s4424_s28 + $0xa8] ss:$12 sps:$4 sm:$0xff]  }
  0xd6   : > { %802 = vmatpush1.bf16.msra.mxu0 %v4565_v43  ;;  %3343 = vmatpush3.bf16.msra.mxu1 %v3677_v44  ;;  %v4610_v61 = vld [vmem:[%s4424_s28 + $0xac] ss:$12 sps:$4 sm:$0xff]   ;;  %v469_v63 = vld [vmem:[#allocation4] sm:$0xff]  ;;  %v3702_v38 = vld [vmem:[%s4424_s28 + $0xb0] ss:$12 sps:$4 sm:$0xff]  }
  0xd7   : > { %803 = vmatprep.subr.bf16.mxu0 %v4570_v45  ;;  %3344 = vmatprep.subr.bf16.mxu1 %v3680_v46  ;;  %v3072_v36 = vcombine.high %v469_v63, %v469_v63  ;;  %v4620_v40 = vld [vmem:[%s4424_s28 + $0xc4] ss:$12 sps:$4 sm:$0xff]   ;;  %v3707_v42 = vld [vmem:[%s4424_s28 + $0x248] ss:$12 sps:$4 sm:$0xff]   ;;  %v4624_v44 = vcombine.low %v469_v63, %v469_v63  ;;  %v4627_v46 = vld [vmem:[%s4424_s28 + $0xc0] ss:$12 sps:$4 sm:$0xff]  }
  0xd8   : > { %v3719_v63 = vld [vmem:[%s4424_s28 + $0x1b8] ss:$12 sps:$4 sm:$0xff]   ;;  %v4667_v32 = vld [vmem:[%s4424_s28 + $0x120] ss:$12 sps:$4 sm:$0xff]   ;;  %v4688_v28 = vld [vmem:[%s4424_s28 + $0x150] ss:$12 sps:$4 sm:$0xff]  }
  0xd9   : > { %870 = vmatprep.mubr.bf16.mxu1 %v3072_v36  ;;  %829 = vmatprep.mubr.bf16.mxu0 %v3072_v36  ;;  %v4653_v36 = vld [vmem:[%s4424_s28 + $0x10c] ss:$12 sps:$4 sm:$0xff]   ;;  %v3742_v21 = vld [vmem:[%s4424_s28 + $0x2f0] ss:$12 sps:$4 sm:$0xff]  }
  0xda   : > { %804 = vmatpush1.bf16.msra.mxu0 %v4575_v47  ;;  %3345 = vmatpush3.bf16.msra.mxu1 %v3682_v48  ;;  %v3709_v48 = vld [vmem:[%s4424_s28 + $0x188] ss:$12 sps:$4 sm:$0xff]   ;;  %v3732_v29 = vld [vmem:[%s4424_s28 + $0x2c0] ss:$12 sps:$4 sm:$0xff]   ;;  %v3737_v27 = vld [vmem:[%s4424_s28 + $0x2d8] ss:$12 sps:$4 sm:$0xff]  }
  0xdb   : > { %805 = vmatprep.subr.bf16.mxu0 %v4580_v49  ;;  %3346 = vmatprep.subr.bf16.mxu1 %v3685_v50  ;;  %v4632_v50 = vld [vmem:[%s4424_s28 + $0xdc] ss:$12 sps:$4 sm:$0xff]   ;;  %v3734_v31 = vld [vmem:[%s4424_s28 + $0x200] ss:$12 sps:$4 sm:$0xff]   ;;  %v4703_v24 = vld [vmem:[%s4424_s28 + $0x184] ss:$12 sps:$4 sm:$0xff]  }
  0xdc   : > { %v3121_v25 = vld [vmem:[#allocation4 + $0x8] sm:$0xff]  ;;  %v3744_v23 = vld [vmem:[%s4424_s28 + $0x230] ss:$12 sps:$4 sm:$0xff]  }
  0xdd   : > { %v4693_v30 = vld [vmem:[%s4424_s28 + $0x16c] ss:$12 sps:$4 sm:$0xff]   ;;  %v4713_v26 = vld [vmem:[%s4424_s28 + $0x19c] ss:$12 sps:$4 sm:$0xff]  }
  0xde   : > { %806 = vmatpush1.bf16.msra.mxu0 %v4584_v51  ;;  %3347 = vmatpush3.bf16.msra.mxu1 %v3687_v52  ;;  %v3712_v52 = vld [vmem:[%s4424_s28 + $0x260] ss:$12 sps:$4 sm:$0xff]  }
  0xdf   : > { %807 = vmatprep.subr.bf16.mxu0 %v4590_v53  ;;  %3348 = vmatprep.subr.bf16.mxu1 %v3690_v54  ;;  %v4636_v54 = vld [vmem:[%s4424_s28 + $0xd8] ss:$12 sps:$4 sm:$0xff]  }
  0xe2   : > { %808 = vmatpush1.bf16.msra.mxu0 %v4594_v55  ;;  %3349 = vmatpush3.bf16.msra.mxu1 %v3692_v56  ;;  %v3714_v56 = vld [vmem:[%s4424_s28 + $0x1a0] ss:$12 sps:$4 sm:$0xff]  }
  0xe3   : > { %809 = vmatprep.subr.bf16.mxu0 %v4600_v57  ;;  %3350 = vmatprep.subr.bf16.mxu1 %v3695_v58  ;;  %v4643_v58 = vld [vmem:[%s4424_s28 + $0xf4] ss:$12 sps:$4 sm:$0xff]  }
  0xe6   : > { %810 = vmatpush1.bf16.msra.mxu0 %v4605_v59  ;;  %3351 = vmatpush3.bf16.msra.mxu1 %v3697_v60  ;;  %v3717_v60 = vld [vmem:[%s4424_s28 + $0x278] ss:$12 sps:$4 sm:$0xff]  }
  0xe7   : > { %811 = vmatprep.subr.bf16.mxu0 %v4610_v61  ;;  %3352 = vmatprep.subr.bf16.mxu1 %v3700_v62  ;;  %v4647_v62 = vld [vmem:[%s4424_s28 + $0xf0] ss:$12 sps:$4 sm:$0xff]  }
  0xea   : > { %812 = vmatpush1.bf16.msra.mxu0 %v4614_v34  ;;  %3353 = vmatpush3.bf16.msra.mxu1 %v3702_v38  ;;  %v3722_v38 = vld [vmem:[%s4424_s28 + $0x290] ss:$12 sps:$4 sm:$0xff]  }
  0xeb   : > { %813 = vmatprep.subr.bf16.mxu0 %v4620_v40  ;;  %3360 = vmatprep.subr.bf16.mxu1 %v3707_v42  ;;  %v4658_v42 = vld [vmem:[%s4424_s28 + $0x108] ss:$12 sps:$4 sm:$0xff]  }
  0xed   : > { %871 = vmatmul.mubr.bf16.vlgmr.msra.gmra.mrb[0].mxu1 %v4624_v44 }
  0xee   : > { %814 = vmatpush1.bf16.msra.mxu0 %v4627_v46  ;;  %3361 = vmatpush3.bf16.msra.mxu1 %v3709_v48  ;;  %v3724_v48 = vld [vmem:[%s4424_s28 + $0x1d0] ss:$12 sps:$4 sm:$0xff]  }
  0xef   : > { %815 = vmatprep.subr.bf16.mxu0 %v4632_v50  ;;  %3362 = vmatprep.subr.bf16.mxu1 %v3712_v52  ;;  %v4663_v52 = vld [vmem:[%s4424_s28 + $0x124] ss:$12 sps:$4 sm:$0xff]  }
  0xf2   : > { %816 = vmatpush1.bf16.msra.mxu0 %v4636_v54  ;;  %3363 = vmatpush3.bf16.msra.mxu1 %v3714_v56  ;;  %v3727_v56 = vld [vmem:[%s4424_s28 + $0x2a8] ss:$12 sps:$4 sm:$0xff]  }
  0xf3   : > { %817 = vmatprep.subr.bf16.mxu0 %v4643_v58  ;;  %3364 = vmatprep.subr.bf16.mxu1 %v3717_v60  ;;  %v3729_v60 = vld [vmem:[%s4424_s28 + $0x1e8] ss:$12 sps:$4 sm:$0xff]  }
  0xf6   : > { %818 = vmatpush1.bf16.msra.mxu0 %v4647_v62  ;;  %3365 = vmatpush3.bf16.msra.mxu1 %v3719_v63  ;;  %v4673_v63 = vld [vmem:[%s4424_s28 + $0x13c] ss:$12 sps:$4 sm:$0xff]  }
  0xf7   : > { %819 = vmatprep.subr.bf16.mxu0 %v4653_v36  ;;  %3366 = vmatprep.subr.bf16.mxu1 %v3722_v38  ;;  %v4678_v38 = vld [vmem:[%s4424_s28 + $0x138] ss:$12 sps:$4 sm:$0xff]  }
  0xfa   : > { %820 = vmatpush1.bf16.msra.mxu0 %v4658_v42  ;;  %3367 = vmatpush3.bf16.msra.mxu1 %v3724_v48  ;;  %v4683_v48 = vld [vmem:[%s4424_s28 + $0x154] ss:$12 sps:$4 sm:$0xff]  }
  0xfb   : > { %821 = vmatprep.subr.bf16.mxu0 %v4663_v52  ;;  %3368 = vmatprep.subr.bf16.mxu1 %v3727_v56  ;;  %v3123_v56 = vcombine.high %v3121_v25, %v3121_v25 }
  0xfd   : > { %1299 = vmatprep.mubr.bf16.mxu1 %v3123_v56 }
  0xfe   : > { %822 = vmatpush1.bf16.msra.mxu0 %v4667_v32  ;;  %3369 = vmatpush3.bf16.msra.mxu1 %v3729_v60  ;;  %v3739_v60 = vld [vmem:[%s4424_s28 + $0x218] ss:$12 sps:$4 sm:$0xff]  }
  0xff   : > { %823 = vmatprep.subr.bf16.mxu0 %v4673_v63  ;;  %3370 = vmatprep.subr.bf16.mxu1 %v3732_v29  ;;  %v4698_v29 = vld [vmem:[%s4424_s28 + $0x168] ss:$12 sps:$4 sm:$0xff]  }
 0x102   : > { %824 = vmatpush1.bf16.msra.mxu0 %v4678_v38  ;;  %3371 = vmatpush3.bf16.msra.mxu1 %v3734_v31  ;;  %v4706_v31 = vcombine.low %v3121_v25, %v3121_v25  ;;  %v4730_v25 = vld [vmem:[%s4424_s28 + $0x1b0] ss:$12 sps:$4 sm:$0xff]  }
 0x103   : > { %825 = vmatprep.subr.bf16.mxu0 %v4683_v48  ;;  %3372 = vmatprep.subr.bf16.mxu1 %v3737_v27  ;;  %v4709_v27 = vld [vmem:[%s4424_s28 + $0x180] ss:$12 sps:$4 sm:$0xff]  }
 0x106   : > { %826 = vmatpush1.bf16.msra.mxu0 %v4688_v28  ;;  %3373 = vmatpush3.bf16.msra.mxu1 %v3739_v60  ;;  %v3798_v60 = vld [vmem:[%s4424_s28 + $0x8] ss:$12 sps:$4 sm:$0xff]  }
 0x107   : > { %827 = vmatprep.subr.bf16.mxu0 %v4693_v30  ;;  %3374 = vmatprep.subr.bf16.mxu1 %v3742_v21  ;;  %v4720_v21 = vld [vmem:[%s4424_s28 + $0x198] ss:$12 sps:$4 sm:$0xff]  }
 0x10a   : > { %828 = vmatpush1.bf16.msra.mxu0 %v4698_v29  ;;  %3375 = vmatpush3.bf16.msra.mxu1 %v3744_v23  ;;  %v4725_v23 = vld [vmem:[%s4424_s28 + $0x1b4] ss:$12 sps:$4 sm:$0xff]  }
 0x10b   : > { %1226 = vmatprep.subr.bf16.mxu0 %v4703_v24  ;;  %1642 = vmatprep.subr.bf16.mxu1 %v4541_v33  ;;  %v4735_v33 = vld [vmem:[%s4424_s28 + $0x1cc] ss:$12 sps:$4 sm:$0xff]  }
 0x10d   : > { %830 = vmatmul.mubr.bf16.vlgmr.msra.gmra.mrb[0].mxu0 %v4624_v44  ;;  %1300 = vmatmul.mubr.bf16.vlgmr.msra.gmra.mrb[4].mxu1 %v4706_v31 }
 0x10e   : > { %1227 = vmatpush1.bf16.msra.mxu0 %v4709_v27  ;;  %1643 = vmatpush1.bf16.msra.mxu1 %v4546_v35  ;;  %v4738_v35 = vld [vmem:[#allocation4 + $0x10] sm:$0xff] }
 0x10f   : > { %1228 = vmatprep.subr.bf16.mxu0 %v4713_v26  ;;  %1644 = vmatprep.subr.bf16.mxu1 %v4551_v37  ;;  %v4742_v37 = vld [vmem:[%s4424_s28 + $0x1c8] ss:$12 sps:$4 sm:$0xff]   ;;  %v4746_v44 = vcombine.high %v4738_v35, %v4738_v35 }
 0x110   : > { %1258 = vmatprep.mubr.bf16.mxu0 %v3123_v56  ;;  %v4772_v56 = vld [vmem:[%s4424_s28 + $0x214] ss:$12 sps:$4 sm:$0xff]  }
 0x111   : > { %1674 = vmatprep.mubr.bf16.mxu1 %v4746_v44 }
 0x112   : > { %1229 = vmatpush1.bf16.msra.mxu0 %v4720_v21  ;;  %1645 = vmatpush1.bf16.msra.mxu1 %v4555_v39  ;;  %v4751_v39 = vld [vmem:[%s4424_s28 + $0x1e4] ss:$12 sps:$4 sm:$0xff]  }
 0x113   : > { %1230 = vmatprep.subr.bf16.mxu0 %v4725_v23  ;;  %1646 = vmatprep.subr.bf16.mxu1 %v4560_v41  ;;  %v4757_v41 = vld [vmem:[%s4424_s28 + $0x1e0] ss:$12 sps:$4 sm:$0xff]  }
 0x116   : > { %1231 = vmatpush1.bf16.msra.mxu0 %v4730_v25  ;;  %1647 = vmatpush1.bf16.msra.mxu1 %v4565_v43  ;;  %v4762_v43 = vld [vmem:[%s4424_s28 + $0x1fc] ss:$12 sps:$4 sm:$0xff]  }
 0x117   : > { %1232 = vmatprep.subr.bf16.mxu0 %v4735_v33  ;;  %1648 = vmatprep.subr.bf16.mxu1 %v4570_v45  ;;  %v4767_v45 = vld [vmem:[%s4424_s28 + $0x1f8] ss:$12 sps:$4 sm:$0xff]  }
 0x11a   : > { %1233 = vmatpush1.bf16.msra.mxu0 %v4742_v37  ;;  %1649 = vmatpush1.bf16.msra.mxu1 %v4575_v47  ;;  %v4777_v47 = vld [vmem:[%s4424_s28 + $0x210] ss:$12 sps:$4 sm:$0xff]  }
 0x11b   : > { %1234 = vmatprep.subr.bf16.mxu0 %v4751_v39  ;;  %1650 = vmatprep.subr.bf16.mxu1 %v4580_v49  ;;  %v4782_v49 = vld [vmem:[%s4424_s28 + $0x22c] ss:$12 sps:$4 sm:$0xff]  }
 0x11e   : > { %1235 = vmatpush1.bf16.msra.mxu0 %v4757_v41  ;;  %1651 = vmatpush1.bf16.msra.mxu1 %v4584_v51  ;;  %v4787_v51 = vld [vmem:[%s4424_s28 + $0x228] ss:$12 sps:$4 sm:$0xff]  }
 0x11f   : > { %1236 = vmatprep.subr.bf16.mxu0 %v4762_v43  ;;  %1652 = vmatprep.subr.bf16.mxu1 %v4590_v53  ;;  %v4792_v53 = vld [vmem:[%s4424_s28 + $0x244] ss:$12 sps:$4 sm:$0xff]  }
 0x122   : > { %1237 = vmatpush1.bf16.msra.mxu0 %v4767_v45  ;;  %1653 = vmatpush1.bf16.msra.mxu1 %v4594_v55  ;;  %v4797_v55 = vld [vmem:[%s4424_s28 + $0x240] ss:$12 sps:$4 sm:$0xff]  }
 0x123   : > { %1238 = vmatprep.subr.bf16.mxu0 %v4772_v56  ;;  %1654 = vmatprep.subr.bf16.mxu1 %v4600_v57  ;;  %v4802_v57 = vld [vmem:[%s4424_s28 + $0x25c] ss:$12 sps:$4 sm:$0xff]  }
 0x126   : > { %1239 = vmatpush1.bf16.msra.mxu0 %v4777_v47  ;;  %1655 = vmatpush1.bf16.msra.mxu1 %v4605_v59  ;;  %v4807_v59 = vld [vmem:[%s4424_s28 + $0x258] ss:$12 sps:$4 sm:$0xff]  }
 0x127   : > { %1240 = vmatprep.subr.bf16.mxu0 %v4782_v49  ;;  %1656 = vmatprep.subr.bf16.mxu1 %v4610_v61  ;;  %v4812_v61 = vld [vmem:[%s4424_s28 + $0x274] ss:$12 sps:$4 sm:$0xff]  }
 0x12a   : > { %1241 = vmatpush1.bf16.msra.mxu0 %v4787_v51  ;;  %1657 = vmatpush1.bf16.msra.mxu1 %v4614_v34  ;;  %v4817_v34 = vld [vmem:[%s4424_s28 + $0x270] ss:$12 sps:$4 sm:$0xff]  }
 0x12b   : > { %1242 = vmatprep.subr.bf16.mxu0 %v4792_v53  ;;  %1658 = vmatprep.subr.bf16.mxu1 %v4620_v40  ;;  %v4822_v40 = vld [vmem:[%s4424_s28 + $0x28c] ss:$12 sps:$4 sm:$0xff]  }
 0x12e   : > { %1243 = vmatpush1.bf16.msra.mxu0 %v4797_v55  ;;  %1659 = vmatpush1.bf16.msra.mxu1 %v4627_v46  ;;  %v4827_v46 = vld [vmem:[%s4424_s28 + $0x288] ss:$12 sps:$4 sm:$0xff]  }
 0x12f   : > { %1244 = vmatprep.subr.bf16.mxu0 %v4802_v57  ;;  %1660 = vmatprep.subr.bf16.mxu1 %v4632_v50  ;;  %v4832_v50 = vld [vmem:[%s4424_s28 + $0x2a4] ss:$12 sps:$4 sm:$0xff]  }
 0x132   : > { %1245 = vmatpush1.bf16.msra.mxu0 %v4807_v59  ;;  %1661 = vmatpush1.bf16.msra.mxu1 %v4636_v54  ;;  %v4837_v54 = vld [vmem:[%s4424_s28 + $0x2a0] ss:$12 sps:$4 sm:$0xff]  }
 0x133   : > { %1246 = vmatprep.subr.bf16.mxu0 %v4812_v61  ;;  %1662 = vmatprep.subr.bf16.mxu1 %v4643_v58  ;;  %v4842_v58 = vld [vmem:[%s4424_s28 + $0x2bc] ss:$12 sps:$4 sm:$0xff]  }
 0x136   : > { %1247 = vmatpush1.bf16.msra.mxu0 %v4817_v34  ;;  %1663 = vmatpush1.bf16.msra.mxu1 %v4647_v62  ;;  %v4847_v62 = vld [vmem:[%s4424_s28 + $0x2b8] ss:$12 sps:$4 sm:$0xff]  }
 0x137   : > { %1248 = vmatprep.subr.bf16.mxu0 %v4822_v40  ;;  %1664 = vmatprep.subr.bf16.mxu1 %v4653_v36  ;;  %v4852_v36 = vld [vmem:[%s4424_s28 + $0x2d4] ss:$12 sps:$4 sm:$0xff]  }
 0x13a   : > { %1249 = vmatpush1.bf16.msra.mxu0 %v4827_v46  ;;  %1665 = vmatpush1.bf16.msra.mxu1 %v4658_v42  ;;  %v4857_v42 = vld [vmem:[%s4424_s28 + $0x2d0] ss:$12 sps:$4 sm:$0xff]  }
 0x13b   : > { %1250 = vmatprep.subr.bf16.mxu0 %v4832_v50  ;;  %1666 = vmatprep.subr.bf16.mxu1 %v4663_v52  ;;  %v4862_v52 = vld [vmem:[%s4424_s28 + $0x2ec] ss:$12 sps:$4 sm:$0xff]  }
 0x13e   : > { %1251 = vmatpush1.bf16.msra.mxu0 %v4837_v54  ;;  %1667 = vmatpush1.bf16.msra.mxu1 %v4667_v32  ;;  %v4867_v32 = vld [vmem:[%s4424_s28 + $0x2e8] ss:$12 sps:$4 sm:$0xff]  }
 0x13f   : > { %1252 = vmatprep.subr.bf16.mxu0 %v4842_v58  ;;  %1668 = vmatprep.subr.bf16.mxu1 %v4673_v63  ;;  %v3797_v63 = vld [vmem:[%s4424_s28 + $0xc8] ss:$12 sps:$4 sm:$0xff]  }
 0x142   : > { %1253 = vmatpush1.bf16.msra.mxu0 %v4847_v62  ;;  %1669 = vmatpush1.bf16.msra.mxu1 %v4678_v38  ;;  %v3173_v38 = vcombine.low %v4738_v35, %v4738_v35  ;;  %v3800_v35 = vld [vmem:[%s4424_s28 + $0x20] ss:$12 sps:$4 sm:$0xff]  }
 0x143   : > { %1254 = vmatprep.subr.bf16.mxu0 %v4852_v36  ;;  %1670 = vmatprep.subr.bf16.mxu1 %v4683_v48  ;;  %v4877_v48 = vld [vmem:[#allocation4 + $0x18] sm:$0xff] }
 0x146   : > { %1255 = vmatpush1.bf16.msra.mxu0 %v4857_v42  ;;  %1671 = vmatpush1.bf16.msra.mxu1 %v4688_v28  ;;  %v3799_v28 = vld [vmem:[%s4424_s28 + $0xe0] ss:$12 sps:$4 sm:$0xff]  }
 0x147   : > { %1256 = vmatprep.subr.bf16.mxu0 %v4862_v52  ;;  %1672 = vmatprep.subr.bf16.mxu1 %v4693_v30  ;;  %v3225_v30 = vcombine.high %v4877_v48, %v4877_v48 }
 0x14a   : > { %1257 = vmatpush1.bf16.msra.mxu0 %v4867_v32  ;;  %1673 = vmatpush1.bf16.msra.mxu1 %v4698_v29  ;;  %v3801_v29 = vld [vmem:[%s4424_s28 + $0xf8] ss:$12 sps:$4 sm:$0xff]  }
 0x14b   : > { %3382 = vmatprep.subr.bf16.mxu0 %v3797_v63  ;;  %2055 = vmatprep.subr.bf16.mxu1 %v4703_v24  ;;  %v3802_v24 = vld [vmem:[%s4424_s28 + $0x38] ss:$12 sps:$4 sm:$0xff]   ;;  %v3827_v63 = vld [vmem:[%s4424_s28 + $0x2f0] ss:$12 sps:$4 sm:$0xff]  }
 0x14d   : > { %1259 = vmatmul.mubr.bf16.vlgmr.msra.gmra.mrb[0].mxu0 %v4706_v31  ;;  %1675 = vmatmul.mubr.bf16.vlgmr.msra.gmra.mrb[8].mxu1 %v3173_v38  ;;  %v3803_v31 = vld [vmem:[%s4424_s28 + $0x110] ss:$12 sps:$4 sm:$0xff]  }
 0x14e   : > { %3383 = vmatpush3.bf16.msra.mxu0 %v3798_v60  ;;  %2056 = vmatpush1.bf16.msra.mxu1 %v4709_v27  ;;  %v3804_v27 = vld [vmem:[%s4424_s28 + $0x50] ss:$12 sps:$4 sm:$0xff]   ;;  %v879_v60 = vlaneseq }
 0x14f   : > { %3384 = vmatprep.subr.bf16.mxu0 %v3799_v28  ;;  %2057 = vmatprep.subr.bf16.mxu1 %v4713_v26  ;;  %v3805_v26 = vld [vmem:[%s4424_s28 + $0x128] ss:$12 sps:$4 sm:$0xff]  }
 0x150   : > { %1715 = vmatprep.mubr.bf16.mxu0 %v4746_v44  ;;  %2087 = vmatprep.mubr.bf16.mxu1 %v3225_v30  ;;  %v3806_v44 = vld [vmem:[%s4424_s28 + $0x68] ss:$12 sps:$4 sm:$0xff]   ;;  %v880_v28 = vshrl.u32 %v879_v60, 7  ;;  %v4965_v60 = vcombine.high (!%p3274_p1), %v4454_v4, %v4460_v6 }
 0x152   : > { %3385 = vmatpush3.bf16.msra.mxu0 %v3800_v35  ;;  %2058 = vmatpush1.bf16.msra.mxu1 %v4720_v21  ;;  %v3807_v21 = vld [vmem:[%s4424_s28 + $0x140] ss:$12 sps:$4 sm:$0xff]  }
 0x153   : > { %3386 = vmatprep.subr.bf16.mxu0 %v3801_v29  ;;  %2059 = vmatprep.subr.bf16.mxu1 %v4725_v23  ;;  %v3808_v23 = vld [vmem:[%s4424_s28 + $0x80] ss:$12 sps:$4 sm:$0xff]  }
 0x156   : > { %3387 = vmatpush3.bf16.msra.mxu0 %v3802_v24  ;;  %2060 = vmatpush1.bf16.msra.mxu1 %v4730_v25  ;;  %v3809_v25 = vld [vmem:[%s4424_s28 + $0x158] ss:$12 sps:$4 sm:$0xff]  }
 0x157   : > { %3388 = vmatprep.subr.bf16.mxu0 %v3803_v31  ;;  %2061 = vmatprep.subr.bf16.mxu1 %v4735_v33  ;;  %v3810_v33 = vld [vmem:[%s4424_s28 + $0x98] ss:$12 sps:$4 sm:$0xff]  }
 0x15a   : > { %3389 = vmatpush3.bf16.msra.mxu0 %v3804_v27  ;;  %2062 = vmatpush1.bf16.msra.mxu1 %v4742_v37  ;;  %v3811_v37 = vld [vmem:[%s4424_s28 + $0x170] ss:$12 sps:$4 sm:$0xff]  }
 0x15b   : > { %3390 = vmatprep.subr.bf16.mxu0 %v3805_v26  ;;  %2063 = vmatprep.subr.bf16.mxu1 %v4751_v39  ;;  %v3812_v39 = vld [vmem:[%s4424_s28 + $0xb0] ss:$12 sps:$4 sm:$0xff]  }
 0x15e   : > { %3391 = vmatpush3.bf16.msra.mxu0 %v3806_v44  ;;  %2064 = vmatpush1.bf16.msra.mxu1 %v4757_v41  ;;  %v3813_v41 = vld [vmem:[%s4424_s28 + $0x248] ss:$12 sps:$4 sm:$0xff]   ;;  %v885_v44 = vsub.s32 1, %v880_v28 }
 0x15f   : > { %3392 = vmatprep.subr.bf16.mxu0 %v3807_v21  ;;  %2065 = vmatprep.subr.bf16.mxu1 %v4762_v43  ;;  %v3814_v43 = vld [vmem:[%s4424_s28 + $0x188] ss:$12 sps:$4 sm:$0xff]  }
 0x162   : > { %3393 = vmatpush3.bf16.msra.mxu0 %v3808_v23  ;;  %2066 = vmatpush1.bf16.msra.mxu1 %v4767_v45  ;;  %v3815_v45 = vld [vmem:[%s4424_s28 + $0x260] ss:$12 sps:$4 sm:$0xff]  }
 0x163   : > { %3394 = vmatprep.subr.bf16.mxu0 %v3809_v25  ;;  %2067 = vmatprep.subr.bf16.mxu1 %v4772_v56  ;;  %v3816_v56 = vld [vmem:[%s4424_s28 + $0x1a0] ss:$12 sps:$4 sm:$0xff]  }
 0x166   : > { %3395 = vmatpush3.bf16.msra.mxu0 %v3810_v33  ;;  %2068 = vmatpush1.bf16.msra.mxu1 %v4777_v47  ;;  %v3817_v47 = vld [vmem:[%s4424_s28 + $0x278] ss:$12 sps:$4 sm:$0xff]  }
 0x167   : > { %3396 = vmatprep.subr.bf16.mxu0 %v3811_v37  ;;  %2069 = vmatprep.subr.bf16.mxu1 %v4782_v49  ;;  %v3818_v49 = vld [vmem:[%s4424_s28 + $0x1b8] ss:$12 sps:$4 sm:$0xff]  }
 0x16a   : > { %3397 = vmatpush3.bf16.msra.mxu0 %v3812_v39  ;;  %2070 = vmatpush1.bf16.msra.mxu1 %v4787_v51  ;;  %v3819_v51 = vld [vmem:[%s4424_s28 + $0x290] ss:$12 sps:$4 sm:$0xff]  }
 0x16b   : > { %3404 = vmatprep.subr.bf16.mxu0 %v3813_v41  ;;  %2071 = vmatprep.subr.bf16.mxu1 %v4792_v53  ;;  %v3820_v53 = vld [vmem:[%s4424_s28 + $0x1d0] ss:$12 sps:$4 sm:$0xff]  }
 0x16d   : > { %1716 = vmatmul.mubr.bf16.vlgmr.msra.gmra.mrb[4].mxu0 %v3173_v38 }
 0x16e   : > { %3405 = vmatpush3.bf16.msra.mxu0 %v3814_v43  ;;  %2128 = vmatprep.mubr.bf16.mxu0 %v3225_v30  ;;  %v467_v30 = vld [vmem:[%s4434_s11] sm:$0x7] }
 0x16f   : > { %2072 = vmatpush1.bf16.msra.mxu1 %v4797_v55  ;;  %3406 = vmatprep.subr.bf16.mxu0 %v3815_v45  ;;  %v3821_v55 = vld [vmem:[%s4424_s28 + $0x2a8] ss:$12 sps:$4 sm:$0xff]   ;;  %v886_v23 = vrot.slane %v467_v30, %v885_v44  ;;  %v3286_v44 = vcombine.low (!%p3274_p1), %v4481_v13, %v4487_v15 }
 0x170   : > { %2073 = vmatprep.subr.bf16.mxu1 %v4802_v57  ;;  %v3822_v57 = vld [vmem:[%s4424_s28 + $0x1e8] ss:$12 sps:$4 sm:$0xff]  }
 0x172   : > { %3407 = vmatpush3.bf16.msra.mxu0 %v3816_v56 }
 0x173   : > { %2074 = vmatpush1.bf16.msra.mxu1 %v4807_v59  ;;  %3408 = vmatprep.subr.bf16.mxu0 %v3817_v47  ;;  %v3823_v59 = vld [vmem:[%s4424_s28 + $0x2c0] ss:$12 sps:$4 sm:$0xff]  }
 0x174   : > { %2075 = vmatprep.subr.bf16.mxu1 %v4812_v61  ;;  %v3824_v61 = vld [vmem:[%s4424_s28 + $0x200] ss:$12 sps:$4 sm:$0xff]  }
 0x176   : > { %3409 = vmatpush3.bf16.msra.mxu0 %v3818_v49 }
 0x177   : > { %2076 = vmatpush1.bf16.msra.mxu1 %v4817_v34  ;;  %3410 = vmatprep.subr.bf16.mxu0 %v3819_v51  ;;  %v3825_v34 = vld [vmem:[%s4424_s28 + $0x2d8] ss:$12 sps:$4 sm:$0xff]  }
 0x178   : > { %2077 = vmatprep.subr.bf16.mxu1 %v4822_v40  ;;  %v3826_v40 = vld [vmem:[%s4424_s28 + $0x218] ss:$12 sps:$4 sm:$0xff]  }
 0x17a   : > { %3411 = vmatpush3.bf16.msra.mxu0 %v3820_v53 }
 0x17b   : > { %2078 = vmatpush1.bf16.msra.mxu1 %v4827_v46  ;;  %3412 = vmatprep.subr.bf16.mxu0 %v3821_v55  ;;  %v3828_v46 = vld [vmem:[%s4424_s28 + $0x230] ss:$12 sps:$4 sm:$0xff]  }
 0x17c   : > { %2079 = vmatprep.subr.bf16.mxu1 %v4832_v50  ;;  %v3224_v50 = vcombine.low %v4877_v48, %v4877_v48 }
 0x17e   : > { %3413 = vmatpush3.bf16.msra.mxu0 %v3822_v57 }
 0x17f   : > { %2080 = vmatpush1.bf16.msra.mxu1 %v4837_v54  ;;  %3414 = vmatprep.subr.bf16.mxu0 %v3823_v59 }
 0x180   : > { %2081 = vmatprep.subr.bf16.mxu1 %v4842_v58 }
 0x182   : > { %3415 = vmatpush3.bf16.msra.mxu0 %v3824_v61 }
 0x183   : > { %2082 = vmatpush1.bf16.msra.mxu1 %v4847_v62  ;;  %3416 = vmatprep.subr.bf16.mxu0 %v3825_v34 }
 0x184   : > { %2083 = vmatprep.subr.bf16.mxu1 %v4852_v36 }
 0x186   : > { %3417 = vmatpush3.bf16.msra.mxu0 %v3826_v40 }
 0x187   : > { %2084 = vmatpush1.bf16.msra.mxu1 %v4857_v42  ;;  %3418 = vmatprep.subr.bf16.mxu0 %v3827_v63  ;;  %v889_v42 = vsub.s32 2, %v880_v28 }
 0x188   : > { %2085 = vmatprep.subr.bf16.mxu1 %v4862_v52 }
 0x189   : > { %v890_v35 = vrot.slane %v467_v30, %v889_v42  ;;  %v3277_v42 = vcombine.low (!%p3274_p1), %v4445_v1, %v4451_v3 }
 0x18a   : > { %3419 = vmatpush3.bf16.msra.mxu0 %v3828_v46 }
 0x18b   : > { %2086 = vmatpush1.bf16.msra.mxu1 %v4867_v32  ;;  %v4949_v32 = vsub.s32 0, %v880_v28  ;;  %v4970_v28 = vcombine.low (!%p3274_p1), %v4454_v4, %v4460_v6 }
 0x18d   : > { %2129 = vmatmul.mubr.bf16.vlgmr.msra.gmra.mrb[8].mxu0 %v3224_v50  ;;  %v882_v21 = vrot.slane %v467_v30, %v4949_v32  ;;  %v4977_v30 = vcombine.high (!%p3274_p1), %v4466_v8, %v4472_v10 }
 0x18e   : > { %2088 = vmatmul.mubr.bf16.vlgmr.msra.gmra.mrb[8].mxu1 %v3224_v50 }
 0x1c0   : > { %v3354_v54 = vpop.f32.mrb[0].mxu1 }
 0x1c1   : > { %v3355_v58 = vpop.f32.mrb[1].mxu1 }
 0x1c2   : > { %v3356_v62 = vadd.f32 %v3355_v58, %v3354_v54  ;;  %v3357_v36 = vpop.f32.mrb[2].mxu1 }
 0x1c3   : > { %v3358_v38 = vpop.f32.mrb[3].mxu1  ;;  %v3276_v36 = vcombine.high (!%p3274_p1), %v4442_v0, %v4448_v2 }
 0x1c4   : > { %v896_v24 = vadd.f32 %v3356_v62, %v890_v35  ;;  %v4961_v38 = vcombine.low (!%p3274_p1), %v4442_v0, %v4448_v2 }
 0x1c5   : > { %2285 = vmatprep.subr.bf16.mxu0 (!%p3274_p1), %v3276_v36 }
 0x1c6   : > { %2286 = vmatpush1.bf16.msra.mxu0 (!%p3274_p1), %v4961_v38 }
 0x1c7   : > { %2287 = vmatprep.subr.bf16.mxu0 (!%p3274_p1), %v4965_v60 }
 0x1ca   : > { %2288 = vmatpush1.bf16.msra.mxu0 (!%p3274_p1), %v4970_v28 }
 0x1cb   : > { %2289 = vmatprep.subr.bf16.mxu0 (!%p3274_p1), %v4977_v30 }
 0x1e0   : > { %v3376_v29 = vpop.f32.mrb[4].mxu1 }
 0x1e1   : > { %v3377_v52 = vpop.f32.mrb[5].mxu1 }
 0x1e2   : > { %v3378_v31 = vadd.f32 %v3377_v52, %v3376_v29  ;;  %v3379_v48 = vpop.f32.mrb[6].mxu1  ;;  %v3280_v29 = vcombine.low (!%p3274_p1), %v4457_v5, %v4463_v7  ;;  %v4121_v52 = vmov (!%p3274_p1), 0  }
 0x1e3   : > { %v3380_v27 = vpop.f32.mrb[7].mxu1  ;;  %2317 = vmatprep.mubr.bf16.mxu0 (!%p3274_p1), %v4121_v52  ;;  %v3283_v48 = vcombine.low (!%p3274_p1), %v4469_v9, %v4475_v11 }
 0x1e4   : > { %v1309_v26 = vadd.f32 %v3378_v31, %v896_v24  ;;  %v3281_v24 = vcombine.low (!%p3274_p1), %v4466_v8, %v4472_v10  ;;  %v3285_v31 = vcombine.high (!%p3274_p1), %v4478_v12, %v4484_v14  ;;  %v3284_v27 = vcombine.low (!%p3274_p1), %v4478_v12, %v4484_v14 }
 0x1e6   : > { %1312 = vst [vmem:[#allocation3 + $0x10] sm:$0xff] %v1309_v26  ;;  %2290 = vmatpush1.bf16.msra.mxu0 (!%p3274_p1), %v3281_v24  ;;  %v3288_v26 = vcombine.high (!%p3274_p1), %v4490_v16, %v4496_v18 }
 0x1e7   : > { %2291 = vmatprep.subr.bf16.mxu0 (!%p3274_p1), %v3285_v31 }
 0x1ea   : > { %2292 = vmatpush1.bf16.msra.mxu0 (!%p3274_p1), %v3284_v27 }
 0x1eb   : > { %2293 = vmatprep.subr.bf16.mxu0 (!%p3274_p1), %v3288_v26 }
 0x220   : > { %v1260_v25 = vpop.f32.mrb[0].mxu0 }
 0x221   : > { %v3542_v33 = vadd.f32 %v1260_v25, %v882_v21  ;;  %v1262_v37 = vpop.f32.mrb[1].mxu0  ;;  %v3289_v25 = vcombine.low (!%p3274_p1), %v4493_v17, %v4499_v19 }
 0x222   : > { %v3543_v39 = vadd.f32 %v1262_v37, %v886_v23  ;;  %v1264_v41 = vpop.f32.mrb[2].mxu0  ;;  %v5265_v37 = vld [vmem:[#allocation28_spill] sm:$0xff] (!%p3274_p1) }
 0x223   : > { %1310 = vst [vmem:[#allocation3] sm:$0xff] %v3542_v33  ;;  %v1265_v43 = vpop.f32.mrb[3].mxu0  ;;  %v3290_v33 = vcombine.low (!%p3274_p1), %v4502_v20, %v4508_v22 }
 0x224   : > { %1311 = vst [vmem:[#allocation3 + $0x8] sm:$0xff] %v3543_v39  ;;  %v5266_v39 = vld [vmem:[#allocation26_spill] sm:$0xff] (!%p3274_p1)  ;;  %v5267_v43 = vld [vmem:[#allocation25_spill] sm:$0xff] (!%p3274_p1) }
 0x225   : > { %v3294_v41 = vcombine.high (!%p3274_p1), %v5266_v39, %v5265_v37 }
 0x240   : > { %v3398_v45 = vpop.f32.mrb[4].mxu0 }
 0x241   : > { %v3399_v56 = vpop.f32.mrb[5].mxu0 }
 0x242   : > { %v3400_v47 = vadd.f32 %v3399_v56, %v3398_v45  ;;  %v3401_v49 = vpop.f32.mrb[6].mxu0  ;;  %v5268_v45 = vld [vmem:[#allocation24_spill] sm:$0xff] (!%p3274_p1) }
 0x243   : > { %v3402_v51 = vpop.f32.mrb[7].mxu0  ;;  %v3292_v56 = vcombine.low (!%p3274_p1), %v5268_v45, %v5267_v43  ;;  %v5269_v49 = vld [vmem:[#allocation32_spill] sm:$0xff] (!%p3274_p1) }
 0x244   : > { %v1725_v59 = vadd.f32 %v3400_v47, %v890_v35  ;;  %v4120_v35 = vmov (!%p3274_p1), 0.0   ;;  %v3293_v47 = vcombine.low (!%p3274_p1), %v5266_v39, %v5265_v37  ;;  %v5270_v51 = vld [vmem:[#allocation30_spill] sm:$0xff] (!%p3274_p1) }
 0x245   : > { %3462 = vmatprep.subr.bf16.mxu1 (!%p3274_p1), %v4120_v35  ;;  %3478 = vmatprep.mubr.msk.bf16.mxu1 (!%p3274_p1), %vm4122_vm0, %v4120_v35 }
 0x246   : > { %3463 = vmatpush3.bf16.msra.mxu1 (!%p3274_p1), %v3277_v42 }
 0x247   : > { %3464 = vmatprep.subr.bf16.mxu1 (!%p3274_p1), %v4120_v35 }
 0x24a   : > { %3465 = vmatpush3.bf16.msra.mxu1 (!%p3274_p1), %v3280_v29 }
 0x24b   : > { %3466 = vmatprep.subr.bf16.mxu1 (!%p3274_p1), %v4120_v35 }
 0x24e   : > { %3467 = vmatpush3.bf16.msra.mxu1 (!%p3274_p1), %v3283_v48 }
 0x24f   : > { %3468 = vmatprep.subr.bf16.mxu1 (!%p3274_p1), %v4120_v35 }
 0x252   : > { %3469 = vmatpush3.bf16.msra.mxu1 (!%p3274_p1), %v3286_v44 }
 0x253   : > { %3470 = vmatprep.subr.bf16.mxu1 (!%p3274_p1), %v4120_v35 }
 0x256   : > { %3471 = vmatpush3.bf16.msra.mxu1 (!%p3274_p1), %v3289_v25 }
 0x257   : > { %3472 = vmatprep.subr.bf16.mxu1 (!%p3274_p1), %v4120_v35 }
 0x25a   : > { %3473 = vmatpush3.bf16.msra.mxu1 (!%p3274_p1), %v3292_v56 }
 0x25b   : > { %3474 = vmatprep.subr.bf16.mxu1 (!%p3274_p1), %v4120_v35 }
 0x260   : > { %v3420_v53 = vpop.f32.mrb[8].mxu0  ;;  %2146 = sbr.rel (%p3274_p1) target bundleno = 1150 (0x47e), region = 64 }
 0x261   : > { %v2089_v55 = vpop.f32.mrb[8].mxu1  ;;  %v3421_v57 = vpop.f32.mrb[9].mxu0 }
 0x262   : > { %v3544_v61 = vadd.f32 %v2089_v55, %v882_v21  ;;  %v2091_v34 = vpop.f32.mrb[9].mxu1  ;;  %v3422_v40 = vadd.f32 %v3421_v57, %v3420_v53  ;;  %v3423_v63 = vpop.f32.mrb[10].mxu0  ;;  %v3287_v21 = vcombine.low (!%p3274_p1), %v4490_v16, %v4496_v18  ;;  %v3297_v53 = vcombine.high (!%p3274_p1), %v5270_v51, %v5269_v49  ;;  %v5271_v55 = vld [vmem:[#allocation29_spill] sm:$0xff] (!%p3274_p1)  ;;  %v5272_v57 = vld [vmem:[#allocation27_spill] sm:$0xff] (!%p3274_p1) }
 0x263   : > { %v3545_v46 = vadd.f32 %v2091_v34, %v886_v23  ;;  %v2093_v50 = vpop.f32.mrb[10].mxu1  ;;  %v3424_v54 = vpop.f32.mrb[11].mxu0  ;;  %v3291_v23 = vcombine.high (!%p3274_p1), %v4502_v20, %v4508_v22  ;;  %v5273_v34 = vld [vmem:[#allocation33_spill] sm:$0xff] (!%p3274_p1) }
 0x264   : > { %2140 = vst [vmem:[#allocation3 + $0x18] sm:$0xff] %v3544_v61  ;;  %v2138_v58 = vadd.f32 %v3422_v40, %v1725_v59  ;;  %v2094_v62 = vpop.f32.mrb[11].mxu1  ;;  %2294 = vmatpush1.bf16.msra.mxu0 (!%p3274_p1), %v3287_v21  ;;  %v3295_v59 = vcombine.low (!%p3274_p1), %v5272_v57, %v5271_v55  ;;  %v3296_v61 = vcombine.low (!%p3274_p1), %v5270_v51, %v5269_v49  ;;  %v5274_v40 = vld [vmem:[#allocation31_spill] sm:$0xff] (!%p3274_p1) }
 0x265   : > { %2141 = vst [vmem:[#allocation3 + $0x20] sm:$0xff] %v3545_v46  ;;  %2295 = vmatprep.subr.bf16.mxu0 (!%p3274_p1), %v3291_v23  ;;  %v3298_v63 = vcombine.low (!%p3274_p1), %v5274_v40, %v5273_v34  ;;  %v4123_v46 = vmov (!%p3274_p1), 0.0|0.0   ;;  %v2153_v50 = vld [vmem:[#allocation3] sm:$0xff] (!%p3274_p1)  ;;  %v2154_v62 = vld [vmem:[#allocation3 + $0x8] sm:$0xff] (!%p3274_p1) }
 0x266   : > { %2142 = vst [vmem:[#allocation3 + $0x28] sm:$0xff] %v2138_v58  ;;  %3475 = vmatpush3.bf16.msra.mxu1 (!%p3274_p1), %v3295_v59 }
 0x267   : > { %3476 = vmatprep.subr.bf16.mxu1 %v4120_v35 }
 0x268   : > { %2296 = vmatpush1.bf16.msra.mxu0 %v3290_v33 }
 0x269   : > { %2297 = vmatprep.subr.bf16.mxu0 %v3294_v41 }
 0x26a   : > { %3477 = vmatpush3.bf16.msra.mxu1 %v3298_v63 }
 0x26b   : > { %3482 = vmatprep.subr.bf16.mxu1 %v4120_v35 }
 0x26c   : > { %2298 = vmatpush1.bf16.msra.mxu0 %v3293_v47 }
 0x26d   : > { %2299 = vmatprep.subr.bf16.mxu0 %v3297_v53  ;;  %3479 = vmatmul.mubr.bf16.vlgmr.msra.gmra.mrb[0].mxu1 %v4123_v46 }
 0x26e   : > { %3483 = vmatpush3.bf16.msra.mxu1 %v3277_v42  ;;  %3498 = vmatprep.mubr.msk.bf16.mxu1 %vm4122_vm0, %v4120_v35 }
 0x26f   : > { %3484 = vmatprep.subr.bf16.mxu1 %v4120_v35 }
 0x270   : > { %2300 = vmatpush1.bf16.msra.mxu0 %v3296_v61 }
 0x271   : > { %2399 = vmatprep.subr.bf16.mxu0 %v3276_v36 }
 0x272   : > { %3485 = vmatpush3.bf16.msra.mxu1 %v3280_v29 }
 0x273   : > { %2318 = vmatmul.mubr.bf16.vlgmr.msra.gmra.mrb[0].mxu0 %v4123_v46  ;;  %3486 = vmatprep.subr.bf16.mxu1 %v4120_v35 }
 0x274   : > { %2400 = vmatpush1.bf16.msra.mxu0 %v4961_v38  ;;  %2431 = vmatprep.mubr.bf16.mxu0 %v4121_v52 }
 0x275   : > { %2401 = vmatprep.subr.bf16.mxu0 %v4965_v60 }
 0x276   : > { %3487 = vmatpush3.bf16.msra.mxu1 %v3283_v48 }
 0x277   : > { %3488 = vmatprep.subr.bf16.mxu1 %v4120_v35 }
 0x278   : > { %2402 = vmatpush1.bf16.msra.mxu0 %v4970_v28 }
 0x279   : > { %2403 = vmatprep.subr.bf16.mxu0 %v4977_v30 }
 0x27a   : > { %3489 = vmatpush3.bf16.msra.mxu1 %v3286_v44 }
 0x27b   : > { %3490 = vmatprep.subr.bf16.mxu1 %v4120_v35 }
 0x27c   : > { %2404 = vmatpush1.bf16.msra.mxu0 %v3281_v24 }
 0x27d   : > { %2405 = vmatprep.subr.bf16.mxu0 %v3285_v31 }
 0x27e   : > { %3491 = vmatpush3.bf16.msra.mxu1 %v3289_v25 }
 0x27f   : > { %3492 = vmatprep.subr.bf16.mxu1 %v4120_v35 }
 0x280   : > { %2406 = vmatpush1.bf16.msra.mxu0 %v3284_v27  ;;  %v5275_v27 = vld [vmem:[#allocation34_spill] sm:$0xff] }
 0x281   : > { %2407 = vmatprep.subr.bf16.mxu0 %v3288_v26  ;;  %v2384_v26 = vrot.slane %v5275_v27, %v4949_v32 }
 0x282   : > { %3493 = vmatpush3.bf16.msra.mxu1 %v3292_v56 }
 0x283   : > { %3494 = vmatprep.subr.bf16.mxu1 %v4120_v35 }
 0x284   : > { %2408 = vmatpush1.bf16.msra.mxu0 %v3287_v21 }
 0x285   : > { %2409 = vmatprep.subr.bf16.mxu0 %v3291_v23 }
 0x286   : > { %3495 = vmatpush3.bf16.msra.mxu1 %v3295_v59 }
 0x287   : > { %3496 = vmatprep.subr.bf16.mxu1 %v4120_v35 }
 0x288   : > { %2410 = vmatpush1.bf16.msra.mxu0 %v3290_v33  ;;  %v2155_v33 = vld [vmem:[#allocation3 + $0x10] sm:$0xff] }
 0x289   : > { %2411 = vmatprep.subr.bf16.mxu0 %v3294_v41 }
 0x28a   : > { %3497 = vmatpush3.bf16.msra.mxu1 %v3298_v63 }
 0x28c   : > { %2412 = vmatpush1.bf16.msra.mxu0 %v3293_v47 }
 0x28d   : > { %2413 = vmatprep.subr.bf16.mxu0 %v3297_v53  ;;  %v2396_v53 = vld [vmem:[#allocation3 + $0x18] sm:$0xff] }
 0x290   : > { %2414 = vmatpush1.bf16.msra.mxu0 %v3296_v61  ;;  %v2397_v61 = vld [vmem:[#allocation3 + $0x20] sm:$0xff] }
 0x340   : > { %v2360_v60 = vpop.f32.mrb[0].mxu1 }
 0x341   : > { %v3480_v30 = vpop.f32.mrb[1].mxu1  ;;  %v2386_v23 = vadd.f32 %v2384_v26, %v2360_v60 }
 0x342   : > { %v2363_v52 = vpop.f32.mrb[2].mxu1 }
 0x343   : > { %v3481_v24 = vpop.f32.mrb[3].mxu1  ;;  %v2398_v52 = vld [vmem:[#allocation3 + $0x28] sm:$0xff] }
 0x346   : > { %v2319_v54 = vpop.f32.mrb[0].mxu0 }
 0x347   : > { %v2366_v58 = vadd.f32 %v2319_v54, %v2153_v50  ;;  %v2321_v36 = vpop.f32.mrb[1].mxu0 }
 0x348   : > { %v2323_v38 = vpop.f32.mrb[2].mxu0  ;;  %v2367_v29 = vadd.f32 %v2321_v36, %v2154_v62 }
 0x349   : > { %v3299_v28 = vmul.f32 -1.442695, %v2366_v58  ;;  %v2324_v42 = vpop.f32.mrb[3].mxu0 }
 0x34a   : > { %v3300_v31 = vmul.f32 -1.442695, %v2367_v29 }
 0x34b   : > { %3831 = vpow2.f32 %v3299_v28 }
 0x34c   : > { %3833 = vpow2.f32 %v3300_v31 }
 0x355   : > { %v3832_v48 = vpop.eup %3831 }
 0x356   : > { %v2374_v35 = vadd.f32 1.0, %v3832_v48  ;;  %v3834_v44 = vpop.eup %3833 }
 0x357   : > { %v2375_v21 = vadd.f32 1.0, %v3834_v44 }
 0x358   : > { %3835 = vrcp.f32 %v2374_v35 }
 0x359   : > { %3837 = vrcp.f32 %v2375_v21 }
 0x362   : > { %v3836_v25 = vpop.eup %3835 }
 0x363   : > { %v2387_v37 = vmul.f32 %v3836_v25, %v2386_v23  ;;  %v3838_v41 = vpop.eup %3837 }
 0x364   : > { %v2390_v43 = vsub.f32 1.0, %v3838_v41  ;;  %v2392_v47 = vmul.f32 0.0, %v3838_v41 }
 0x365   : > { %v2388_v39 = vadd.f32 %v2387_v37, %v2155_v33 }
 0x367   : > { %3839 = vtanh.f32 %v2388_v39 }
 0x371   : > { %v3840_v45 = vpop.eup %3839 }
 0x372   : > { %v2391_v56 = vmul.f32 %v3840_v45, %v2390_v43 }
 0x374   : > { %v2393_v49 = vadd.f32 %v2392_v47, %v2391_v56 }
 0x376   : > { %v2394_v51 = vpack.c.bf16 %v2393_v49, %v2393_v49 }
 0x378   : > { %2395 = vst [vmem:[%s4954_s14] sm:$0xf] %v2394_v51  ;;  %2432 = vmatmul.mubr.bf16.vlgmr.msra.gmra.mrb[4].mxu0 %v2394_v51  ;;  %3499 = vmatmul.mubr.bf16.vlgmr.msra.gmra.mrb[4].mxu1 %v2394_v51 }
 0x44b   : > { %v2433_v55 = vpop.f32.mrb[4].mxu0  ;;  %v2474_v57 = vpop.f32.mrb[4].mxu1 }
 0x44c   : > { %v2480_v59 = vadd.f32 %v2433_v55, %v2396_v53  ;;  %v2435_v34 = vpop.f32.mrb[5].mxu0  ;;  %v3500_v40 = vpop.f32.mrb[5].mxu1  ;;  %v2494_v30 = vadd.f32 %v2474_v57, %v2384_v26 }
 0x44d   : > { %v2437_v63 = vpop.f32.mrb[6].mxu0  ;;  %v2477_v46 = vpop.f32.mrb[6].mxu1  ;;  %v2481_v62 = vadd.f32 %v2435_v34, %v2397_v61 }
 0x44e   : > { %v3301_v50 = vmul.f32 -1.442695, %v2480_v59  ;;  %v2438_v54 = vpop.f32.mrb[7].mxu0  ;;  %v3501_v58 = vpop.f32.mrb[7].mxu1 }
 0x44f   : > { %v3302_v36 = vmul.f32 -1.442695, %v2481_v62 }
 0x450   : > { %3841 = vpow2.f32 %v3301_v50 }
 0x451   : > { %3843 = vpow2.f32 %v3302_v36 }
 0x45a   : > { %v3842_v38 = vpop.eup %3841 }
 0x45b   : > { %v2488_v60 = vadd.f32 1.0, %v3842_v38  ;;  %v3844_v28 = vpop.eup %3843 }
 0x45c   : > { %v2489_v42 = vadd.f32 1.0, %v3844_v28 }
 0x45d   : > { %3845 = vrcp.f32 %v2488_v60 }
 0x45e   : > { %3847 = vrcp.f32 %v2489_v42 }
 0x467   : > { %v3846_v29 = vpop.eup %3845 }
 0x468   : > { %v2495_v24 = vmul.f32 %v3846_v29, %v2494_v30  ;;  %v3848_v48 = vpop.eup %3847 }
 0x469   : > { %v2498_v35 = vsub.f32 1.0, %v3848_v48  ;;  %v2500_v21 = vmul.f32 %v3848_v48, %v2393_v49 }
 0x46a   : > { %v2496_v31 = vadd.f32 %v2495_v24, %v2398_v52 }
 0x46c   : > { %3849 = vtanh.f32 %v2496_v31 }
 0x476   : > { %v3850_v27 = vpop.eup %3849 }
 0x477   : > { %v2499_v44 = vmul.f32 %v3850_v27, %v2498_v35 }
 0x479   : > { %v2501_v23 = vadd.f32 %v2500_v21, %v2499_v44 }
 0x47b   : > { %v2502_v25 = vpack.c.bf16 %v2501_v23, %v2501_v23 }
 0x47d   : > { %3303 = vst [vmem:[%s4954_s14 + $0x4] sm:$0xf] %v2502_v25 }
 0x47e PF: > { %p3304_p13 = scmp.ne.s32.totalorder %s4101_s21, 1 }
 0x47f   : > { %v3306_v26 = vcombine.high (!%p3304_p13), %v4442_v0, %v4448_v2  ;;  %v5050_v33 = vcombine.low (!%p3304_p13), %v4442_v0, %v4448_v2  ;;  %v5054_v37 = vcombine.high (!%p3304_p13), %v4454_v4, %v4460_v6  ;;  %v5059_v39 = vcombine.low (!%p3304_p13), %v4454_v4, %v4460_v6  ;;  %v5281_v56 = vld [vmem:[#allocation30_spill] sm:$0xff] (!%p3304_p13)  ;;  %v5284_v53 = vld [vmem:[#allocation33_spill] sm:$0xff] (!%p3304_p13)  ;;  %v5285_v55 = vld [vmem:[#allocation31_spill] sm:$0xff] (!%p3304_p13) }
 0x480   : > { %2509 = sbr.rel (%p3304_p13) target bundleno = 1708 (0x6ac), region = 72  ;;  %v3307_v41 = vcombine.low (!%p3304_p13), %v4445_v1, %v4451_v3  ;;  %v5066_v0 = vcombine.high (!%p3304_p13), %v4466_v8, %v4472_v10  ;;  %v4124_v2 = vmov (!%p3304_p13), 0.0   ;;  %v3310_v43 = vcombine.low (!%p3304_p13), %v4457_v5, %v4463_v7  ;;  %v5286_v52 = vld [vmem:[#allocation34_spill] sm:$0xff] (!%p3304_p13) }
 0x481   : > { %2650 = vmatprep.subr.bf16.mxu0 (!%p3304_p13), %v3306_v26  ;;  %3502 = vmatprep.subr.bf16.mxu1 (!%p3304_p13), %v4124_v2  ;;  %v4125_v45 = vmov (!%p3304_p13), 0   ;;  %v3311_v1 = vcombine.low (!%p3304_p13), %v4466_v8, %v4472_v10  ;;  %vm4126_vm1 = vmmov (!%p3304_p13), 0   ;;  %v3315_v3 = vcombine.high (!%p3304_p13), %v4478_v12, %v4484_v14 }
 0x482   : > { %2651 = vmatpush1.bf16.msra.mxu0 (!%p3304_p13), %v5050_v33  ;;  %3503 = vmatpush3.bf16.msra.mxu1 (!%p3304_p13), %v3307_v41  ;;  %v3313_v4 = vcombine.low (!%p3304_p13), %v4469_v9, %v4475_v11  ;;  %v3314_v5 = vcombine.low (!%p3304_p13), %v4478_v12, %v4484_v14  ;;  %v3318_v6 = vcombine.high (!%p3304_p13), %v4490_v16, %v4496_v18  ;;  %v5276_v12 = vld [vmem:[#allocation28_spill] sm:$0xff] (!%p3304_p13)  ;;  %v4127_v59 = vmov (!%p3304_p13), 0.0|0.0   ;;  %v2518_v61 = vld [vmem:[#allocation3 + $0x18] sm:$0xff] (!%p3304_p13) }
 0x483   : > { %2652 = vmatprep.subr.bf16.mxu0 (!%p3304_p13), %v5054_v37  ;;  %2682 = vmatprep.mubr.bf16.mxu0 (!%p3304_p13), %v4125_v45  ;;  %v3316_v7 = vcombine.low (!%p3304_p13), %v4481_v13, %v4487_v15  ;;  %v3317_v8 = vcombine.low (!%p3304_p13), %v4490_v16, %v4496_v18  ;;  %v3321_v9 = vcombine.high (!%p3304_p13), %v4502_v20, %v4508_v22  ;;  %v5277_v13 = vld [vmem:[#allocation26_spill] sm:$0xff] (!%p3304_p13)  ;;  %v5278_v15 = vld [vmem:[#allocation25_spill] sm:$0xff] (!%p3304_p13)  ;;  %v5279_v16 = vld [vmem:[#allocation24_spill] sm:$0xff] (!%p3304_p13) }
 0x484   : > { %3504 = vmatprep.subr.bf16.mxu1 (!%p3304_p13), %v4124_v2  ;;  %3518 = vmatprep.mubr.msk.bf16.mxu1 (!%p3304_p13), %vm4126_vm1, %v4124_v2  ;;  %v3319_v10 = vcombine.low (!%p3304_p13), %v4493_v17, %v4499_v19  ;;  %v3320_v11 = vcombine.low (!%p3304_p13), %v4502_v20, %v4508_v22  ;;  %v3324_v14 = vcombine.high (!%p3304_p13), %v5277_v13, %v5276_v12  ;;  %v5280_v19 = vld [vmem:[#allocation32_spill] sm:$0xff] (!%p3304_p13)  ;;  %v5282_v20 = vld [vmem:[#allocation29_spill] sm:$0xff] (!%p3304_p13)  ;;  %v5283_v22 = vld [vmem:[#allocation27_spill] sm:$0xff] (!%p3304_p13) }
 0x485   : > { %v3322_v18 = vcombine.low (!%p3304_p13), %v5279_v16, %v5278_v15  ;;  %v3323_v17 = vcombine.low (!%p3304_p13), %v5277_v13, %v5276_v12  ;;  %v3327_v47 = vcombine.high (!%p3304_p13), %v5281_v56, %v5280_v19  ;;  %v3325_v49 = vcombine.low (!%p3304_p13), %v5283_v22, %v5282_v20  ;;  %v2519_v63 = vld [vmem:[#allocation3 + $0x20] sm:$0xff] (!%p3304_p13)  ;;  %v2520_v44 = vld [vmem:[#allocation3 + $0x28] sm:$0xff] (!%p3304_p13) }
 0x486   : > { %2653 = vmatpush1.bf16.msra.mxu0 (!%p3304_p13), %v5059_v39  ;;  %3505 = vmatpush3.bf16.msra.mxu1 (!%p3304_p13), %v3310_v43  ;;  %v3326_v51 = vcombine.low (!%p3304_p13), %v5281_v56, %v5280_v19  ;;  %v3328_v57 = vcombine.low (!%p3304_p13), %v5285_v55, %v5284_v53  ;;  %v2749_v24 = vrot.slane (!%p3304_p13), %v5286_v52, %v4949_v32  ;;  %v2762_v32 = vld [vmem:[#allocation3] sm:$0xff] (!%p3304_p13) }
 0x487   : > { %2654 = vmatprep.subr.bf16.mxu0 %v5066_v0  ;;  %3506 = vmatprep.subr.bf16.mxu1 %v4124_v2 }
 0x48a   : > { %2655 = vmatpush1.bf16.msra.mxu0 %v3311_v1  ;;  %3507 = vmatpush3.bf16.msra.mxu1 %v3313_v4 }
 0x48b   : > { %2656 = vmatprep.subr.bf16.mxu0 %v3315_v3  ;;  %3508 = vmatprep.subr.bf16.mxu1 %v4124_v2 }
 0x48e   : > { %2657 = vmatpush1.bf16.msra.mxu0 %v3314_v5  ;;  %3509 = vmatpush3.bf16.msra.mxu1 %v3316_v7 }
 0x48f   : > { %2658 = vmatprep.subr.bf16.mxu0 %v3318_v6  ;;  %3510 = vmatprep.subr.bf16.mxu1 %v4124_v2 }
 0x492   : > { %2659 = vmatpush1.bf16.msra.mxu0 %v3317_v8  ;;  %3511 = vmatpush3.bf16.msra.mxu1 %v3319_v10 }
 0x493   : > { %2660 = vmatprep.subr.bf16.mxu0 %v3321_v9  ;;  %3512 = vmatprep.subr.bf16.mxu1 %v4124_v2 }
 0x496   : > { %2661 = vmatpush1.bf16.msra.mxu0 %v3320_v11  ;;  %3513 = vmatpush3.bf16.msra.mxu1 %v3322_v18 }
 0x497   : > { %2662 = vmatprep.subr.bf16.mxu0 %v3324_v14  ;;  %3514 = vmatprep.subr.bf16.mxu1 %v4124_v2 }
 0x49a   : > { %2663 = vmatpush1.bf16.msra.mxu0 %v3323_v17  ;;  %3515 = vmatpush3.bf16.msra.mxu1 %v3325_v49 }
 0x49b   : > { %2664 = vmatprep.subr.bf16.mxu0 %v3327_v47  ;;  %3516 = vmatprep.subr.bf16.mxu1 %v4124_v2 }
 0x49e   : > { %2665 = vmatpush1.bf16.msra.mxu0 %v3326_v51  ;;  %3517 = vmatpush3.bf16.msra.mxu1 %v3328_v57 }
 0x49f   : > { %2765 = vmatprep.subr.bf16.mxu0 %v3306_v26  ;;  %3522 = vmatprep.subr.bf16.mxu1 %v4124_v2 }
 0x4a1   : > { %2683 = vmatmul.mubr.bf16.vlgmr.msra.gmra.mrb[0].mxu0 %v4127_v59  ;;  %3519 = vmatmul.mubr.bf16.vlgmr.msra.gmra.mrb[0].mxu1 %v4127_v59 }
 0x4a2   : > { %2766 = vmatpush1.bf16.msra.mxu0 %v5050_v33  ;;  %2797 = vmatprep.mubr.bf16.mxu0 %v4125_v45 }
 0x4a3   : > { %2767 = vmatprep.subr.bf16.mxu0 %v5054_v37  ;;  %3523 = vmatpush3.bf16.msra.mxu1 %v3307_v41 }
 0x4a4   : > { %3538 = vmatprep.mubr.msk.bf16.mxu1 %vm4126_vm1, %v4124_v2  ;;  %3524 = vmatprep.subr.bf16.mxu1 %v4124_v2 }
 0x4a6   : > { %2768 = vmatpush1.bf16.msra.mxu0 %v5059_v39 }
 0x4a7   : > { %2769 = vmatprep.subr.bf16.mxu0 %v5066_v0  ;;  %3525 = vmatpush3.bf16.msra.mxu1 %v3310_v43 }
 0x4a8   : > { %3526 = vmatprep.subr.bf16.mxu1 %v4124_v2 }
 0x4aa   : > { %2770 = vmatpush1.bf16.msra.mxu0 %v3311_v1  ;;  %v2763_v1 = vld [vmem:[#allocation3 + $0x8] sm:$0xff] }
 0x4ab   : > { %2771 = vmatprep.subr.bf16.mxu0 %v3315_v3  ;;  %3527 = vmatpush3.bf16.msra.mxu1 %v3313_v4 }
 0x4ac   : > { %3528 = vmatprep.subr.bf16.mxu1 %v4124_v2 }
 0x4ae   : > { %2772 = vmatpush1.bf16.msra.mxu0 %v3314_v5 }
 0x4af   : > { %2773 = vmatprep.subr.bf16.mxu0 %v3318_v6  ;;  %3529 = vmatpush3.bf16.msra.mxu1 %v3316_v7 }
 0x4b0   : > { %3530 = vmatprep.subr.bf16.mxu1 %v4124_v2 }
 0x4b2   : > { %2774 = vmatpush1.bf16.msra.mxu0 %v3317_v8 }
 0x4b3   : > { %2775 = vmatprep.subr.bf16.mxu0 %v3321_v9  ;;  %3531 = vmatpush3.bf16.msra.mxu1 %v3319_v10 }
 0x4b4   : > { %3532 = vmatprep.subr.bf16.mxu1 %v4124_v2 }
 0x4b6   : > { %2776 = vmatpush1.bf16.msra.mxu0 %v3320_v11 }
 0x4b7   : > { %2777 = vmatprep.subr.bf16.mxu0 %v3324_v14  ;;  %3533 = vmatpush3.bf16.msra.mxu1 %v3322_v18 }
 0x4b8   : > { %3534 = vmatprep.subr.bf16.mxu1 %v4124_v2 }
 0x4ba   : > { %2778 = vmatpush1.bf16.msra.mxu0 %v3323_v17  ;;  %v2764_v17 = vld [vmem:[#allocation3 + $0x10] sm:$0xff] }
 0x4bb   : > { %2779 = vmatprep.subr.bf16.mxu0 %v3327_v47  ;;  %3535 = vmatpush3.bf16.msra.mxu1 %v3325_v49 }
 0x4bc   : > { %3536 = vmatprep.subr.bf16.mxu1 %v4124_v2 }
 0x4be   : > { %2780 = vmatpush1.bf16.msra.mxu0 %v3326_v51 }
 0x4bf   : > { %3537 = vmatpush3.bf16.msra.mxu1 %v3328_v57 }
 0x574   : > { %v2684_v34 = vpop.f32.mrb[0].mxu0  ;;  %v2725_v54 = vpop.f32.mrb[0].mxu1 }
 0x575   : > { %v2731_v40 = vadd.f32 %v2684_v34, %v2518_v61  ;;  %v2686_v46 = vpop.f32.mrb[1].mxu0  ;;  %v3520_v36 = vpop.f32.mrb[1].mxu1  ;;  %v2751_v35 = vadd.f32 %v2749_v24, %v2725_v54 }
 0x576   : > { %v2688_v50 = vpop.f32.mrb[2].mxu0  ;;  %v2732_v38 = vadd.f32 %v2686_v46, %v2519_v63  ;;  %v2728_v60 = vpop.f32.mrb[2].mxu1 }
 0x577   : > { %v3329_v58 = vmul.f32 -1.442695, %v2731_v40  ;;  %v2689_v62 = vpop.f32.mrb[3].mxu0  ;;  %v3521_v28 = vpop.f32.mrb[3].mxu1 }
 0x578   : > { %v3330_v42 = vmul.f32 -1.442695, %v2732_v38 }
 0x579   : > { %3851 = vpow2.f32 %v3329_v58 }
 0x57a   : > { %3853 = vpow2.f32 %v3330_v42 }
 0x583   : > { %v3852_v30 = vpop.eup %3851 }
 0x584   : > { %v2739_v29 = vadd.f32 1.0, %v3852_v30  ;;  %v3854_v31 = vpop.eup %3853 }
 0x585   : > { %v2740_v48 = vadd.f32 1.0, %v3854_v31 }
 0x586   : > { %3855 = vrcp.f32 %v2739_v29 }
 0x587   : > { %3857 = vrcp.f32 %v2740_v48 }
 0x590   : > { %v3856_v27 = vpop.eup %3855 }
 0x591   : > { %v2752_v21 = vmul.f32 %v3856_v27, %v2751_v35  ;;  %v3858_v25 = vpop.eup %3857 }
 0x592   : > { %v2755_v26 = vsub.f32 1.0, %v3858_v25  ;;  %v2757_v39 = vmul.f32 0.0, %v3858_v25 }
 0x593   : > { %v2753_v23 = vadd.f32 %v2752_v21, %v2520_v44 }
 0x595   : > { %3859 = vtanh.f32 %v2753_v23 }
 0x59f   : > { %v3860_v33 = vpop.eup %3859 }
 0x5a0   : > { %v2756_v37 = vmul.f32 %v3860_v33, %v2755_v26 }
 0x5a2   : > { %v2758_v41 = vadd.f32 %v2757_v39, %v2756_v37 }
 0x5a4   : > { %v2759_v0 = vpack.c.bf16 %v2758_v41, %v2758_v41 }
 0x5a6   : > { %3331 = vst [vmem:[%s4954_s14 + $0x4] sm:$0xf] %v2759_v0  ;;  %2798 = vmatmul.mubr.bf16.vlgmr.msra.gmra.mrb[4].mxu0 %v2759_v0  ;;  %3539 = vmatmul.mubr.bf16.vlgmr.msra.gmra.mrb[4].mxu1 %v2759_v0 }
 0x679   : > { %v2799_v2 = vpop.f32.mrb[4].mxu0  ;;  %v2840_v43 = vpop.f32.mrb[4].mxu1 }
 0x67a   : > { %v2846_v45 = vadd.f32 %v2799_v2, %v2762_v32  ;;  %v2801_v3 = vpop.f32.mrb[5].mxu0  ;;  %v3540_v4 = vpop.f32.mrb[5].mxu1  ;;  %v2860_v16 = vadd.f32 %v2840_v43, %v2749_v24 }
 0x67b   : > { %v2803_v5 = vpop.f32.mrb[6].mxu0  ;;  %v2843_v6 = vpop.f32.mrb[6].mxu1  ;;  %v2847_v10 = vadd.f32 %v2801_v3, %v2763_v1 }
 0x67c   : > { %v3332_v7 = vmul.f32 -1.442695, %v2846_v45  ;;  %v2804_v8 = vpop.f32.mrb[7].mxu0  ;;  %v3541_v9 = vpop.f32.mrb[7].mxu1 }
 0x67d   : > { %v3333_v11 = vmul.f32 -1.442695, %v2847_v10 }
 0x67e   : > { %3861 = vpow2.f32 %v3332_v7 }
 0x67f   : > { %3863 = vpow2.f32 %v3333_v11 }
 0x688   : > { %v3862_v12 = vpop.eup %3861 }
 0x689   : > { %v2854_v13 = vadd.f32 1.0, %v3862_v12  ;;  %v3864_v14 = vpop.eup %3863 }
 0x68a   : > { %v2855_v15 = vadd.f32 1.0, %v3864_v14 }
 0x68b   : > { %3865 = vrcp.f32 %v2854_v13 }
 0x68c   : > { %3867 = vrcp.f32 %v2855_v15 }
 0x695   : > { %v3866_v18 = vpop.eup %3865 }
 0x696   : > { %v2861_v19 = vmul.f32 %v3866_v18, %v2860_v16  ;;  %v3868_v47 = vpop.eup %3867 }
 0x697   : > { %v2864_v20 = vsub.f32 1.0, %v3868_v47  ;;  %v2866_v51 = vmul.f32 %v3868_v47, %v2758_v41 }
 0x698   : > { %v2862_v56 = vadd.f32 %v2861_v19, %v2764_v17 }
 0x69a   : > { %3869 = vtanh.f32 %v2862_v56 }
 0x6a4   : > { %v3870_v22 = vpop.eup %3869 }
 0x6a5   : > { %v2865_v49 = vmul.f32 %v3870_v22, %v2864_v20 }
 0x6a7   : > { %v2867_v53 = vadd.f32 %v2866_v51, %v2865_v49 }
 0x6a9   : > { %v2868_v55 = vpack.c.bf16 %v2867_v53, %v2867_v53 }
 0x6ab   : > { %2869 = vst [vmem:[%s4954_s14] sm:$0xf] %v2868_v55 }
 0x6ac PF: > { %s3335_s15 = sshll.u32 %s4101_s21, 6  ;;  %s2891_s1 = sshll.u32 %s4954_s14, 4  ;;  %s5141_s1 = int_to_ptr.vmem [resolvable:$true] %s2891_s1 }
 0x6ad   : > { %s5138_s8 = scalar_lea.hbm %s5195_s5, %s3335_s15  ;;  %s2872_s7 = scalar_lea.sflag [#allocation6], %s4421_s16 }
 0x6ae   : > { %s4019_s18 = scalar_lea.vmem %s5141_s1, 128  ;;  %p5287_p4 = scmp.ne.s32.totalorder %s5230_s6, 0 }
 0x6af   : > { %p4020_p3 = scmp.ne.s32.totalorder %s5141_s1, %s4019_s18  ;;  %s4128_s27 = smov [#allocation13]  }
 0x6b0   : > { %s4023_s26 = sshll.u32 %s4128_s27, 4  ;;  %s4024_s26 = int_to_ptr.vmem [resolvable:$false] %s4023_s26 }
 0x6b1   : > { %p4021_p6 = pnand %p4020_p3, %p5287_p4  ;;  %s4025_s21 = scalar_lea.vmem %s4024_s26, 256 }
 0x6b2   : > { %p4026_p12 = scmp.lt.s32.totalorder %s5141_s1, %s4024_s26  ;;  %p4027_p10 = scmp.lt.s32.totalorder %s4025_s21, %s4019_s18 }
 0x6b3   : > { %p4022_p8 = pneg %p4021_p6 }
 0x6b4   : > { %p4028_p5 = por %p4027_p10, %p4026_p12 }
 0x6b6   : > { %p4029_p9 = pnand %p4028_p5, %p4022_p8 }
 0x6b8   : > { %4032 = shalt.err (!%p4029_p9)
}
 0x6b9   : > { %s4033_s10 = scalar_lea.hbm %s5138_s8, 128  ;;  %s4037_s20 = scalar_lea.hbm %s5195_s5, 256 }
 0x6ba   : > { %p4034_p2 = scmp.ne.s32.totalorder %s5138_s8, %s4033_s10  ;;  %p4038_p0 = scmp.lt.u32.totalorder %s5138_s8, %s5195_s5 }
 0x6bb   : > { %p4039_p1 = scmp.lt.u32.totalorder %s4037_s20, %s4033_s10  ;;  %p4041_p3 = scmp.lt.u32.totalorder %s4033_s10, %s5138_s8 }
 0x6bc   : > { %p4035_p7 = pnand %p4034_p2, %p5287_p4 }
 0x6bd   : > { %p4040_p13 = por %p4039_p1, %p4038_p0 }
 0x6be   : > { %p4036_p11 = pneg %p4035_p7 }
 0x6bf   : > { %p4042_p6 = por %p4041_p3, %p4040_p13 }
 0x6c1   : > { %p4043_p8 = pnand %p4042_p6, %p4036_p11 }
 0x6c3   : > { %4046 = shalt.err (!%p4043_p8)
}
 0x6c4   : > { %s4129_s17 = smov 64   ;;  %s4130_s25 = smov 128  }
 0x6c5   : > { %s4131_s24 = smov 4  }
 0x6c6   : > { %3575 = dma.vmem_to_hbm [thread:$0]  (%p5287_p4), %s5141_s1, 128, %s5138_s8, %s2872_s7, %s4129_s17, %s4130_s25, %s4131_s24  }
 0x6c7 PF: > { %s5288_s11 = sld [smem:[#allocation18_spill]]  ;;  %s5289_s12 = sld [smem:[#allocation23_spill]] }
 0x6c8   : > { %s5290_s30 = sld [smem:[#allocation20_spill]] }
 0x6cd   : > { %s2906_s14 = sand.u32 1, %s5288_s11   ;;  %p5291_p12 = scmp.ne.s32.totalorder %s5289_s12, 0 }
 0x6ce   : > { %p5292_p10 = scmp.ge.s32.totalorder %s5290_s30, 2  ;;  %s2907_s15 = scalar_lea.sflag [#allocation6], %s2906_s14 }
 0x6d0   : > { %p3594_p5 = pnand %p5292_p10, %p5291_p12 }
 0x6d2   : > { %4084 = dma.done.wait (!%p3594_p5), %s2907_s15, 128  }
 0x6d3   : > { %4086 = vsyncadd (!%p3594_p5), %s2907_s15, 4294967168  ;;  %s27_s23 = sadd.s32 1, %s5290_s30   ;;  %s5293_s9 = sld [smem:[#allocation19_spill]] }
 0x6d4   : > { %p24_p9 = scmp.ge.s32.totalorder %s27_s23, 4   ;;  %s5294_s20 = sld [smem:[#allocation22_spill]] }
 0x6d5   : > { %s5295_s6 = sld [smem:[#allocation21_spill]]  ;;  %s5296_s18 = smov %s4093_s19 }
 0x6d6   : > { %s5298_s21 = smov %s4105_s22  ;;  %26 = sbr.rel (!%p24_p9) target bundleno = 13 (0xd), region = 157 }
 0x6d9   : > { %s5297_s19 = smov %s5293_s9 }
 0x6db   : > { %s5299_s22 = smov %s5295_s6 }
 0x6dd   :  { %2912 = vsyncpa [#allocation5], 1 }
 0x6de   :  { %2914 = vsyncpa [#allocation5 + $0x1], 1 }
 0x6df   :  { %2915 = vsyncpa [#allocation8], 1 }
 0x6e0   :  { %2917 = vsyncpa [#allocation8 + $0x1], 1 }
 0x6e1   :  { %2918 = vsyncpa [#allocation11], 1 }
 0x6e2   :  { %2920 = vsyncpa [#allocation11 + $0x1], 1 }
 0x6e3   :  { %2921 = vsyncpa [#allocation6], 1 }
 0x6e4   :  { %2923 = vsyncpa [#allocation6 + $0x1], 1 }

// kernel: pyramidal_encoder_pallas.4
= control target key start
LH: loop header
LB: loop body
LE: loop exit
PB: predicated region body
PF: predicated region fallthrough
CT: control target
= control target key end

     0   :  { %s8729_s0 = inlined_call_operand.hbm [shape: bf16[8,8,256], index: 0, kind: input, shape index: {}]   ;;  %s8730_s1 = inlined_call_operand.hbm [shape: bf16[2,512,384], index: 1, kind: input, shape index: {}]   ;;  %s8731_s2 = inlined_call_operand.hbm [shape: bf16[2,128,384], index: 2, kind: input, shape index: {}]   ;;  %s8732_s3 = inlined_call_operand.hbm [shape: f32[2,1,384], index: 3, kind: input, shape index: {}]   ;;  %s8733_s4 = inlined_call_operand.hbm [shape: f32[2,1,128], index: 4, kind: input, shape index: {}]   ;;  %s8734_s5 = inlined_call_operand.hbm [shape: bf16[4,8,256], index: 5, kind: output, shape index: {}]  }
   0x1   :  { %8769 = sst [smem:[#allocation44_spill]] %s8730_s1 }
   0x2   :  { %8770 = sst [smem:[#allocation45_spill]] %s8732_s3 }
   0x3   :  { %10 = vsyncpa [#allocation5], 0 }
   0x4   :  { %12 = vsyncpa [#allocation5 + $0x1], 0 }
   0x5   :  { %13 = vsyncpa [#allocation8], 0 }
   0x6   :  { %15 = vsyncpa [#allocation8 + $0x1], 0 }
   0x7   :  { %16 = vsyncpa [#allocation11], 0 }
   0x8   :  { %18 = vsyncpa [#allocation11 + $0x1], 0 }
   0x9   :  { %19 = vsyncpa [#allocation6], 0 }
   0xa   :  { %21 = vsyncpa [#allocation6 + $0x1], 0  ;;  %s6898_s18 = smov 0   ;;  %s6900_s19 = smov 0  }
   0xb   :  { %s6902_s20 = smov 0   ;;  %s6904_s21 = smov 0  }
   0xc   :  { %s6906_s22 = smov 0   ;;  %s6908_s23 = smov 0  }
   0xd LB: > { %8771 = sst [smem:[#allocation18_spill]] %s6825_s18  ;;  %s6929_s24 = sadd.s32 4294967295, %s6845_s23   ;;  %s6845_s23 = sphi %s6908_s23, %s27_s23   ;;  %s6841_s22 = sphi %s6906_s22, %s8873_s22   ;;  %s6837_s21 = sphi %s6904_s21, %s8872_s21   ;;  %s6833_s20 = sphi %s6902_s20, %s8868_s20   ;;  %s6829_s19 = sphi %s6900_s19, %s8871_s19   ;;  %s6825_s18 = sphi %s6898_s18, %s8870_s18  }
   0xe   : > { %8772 = sst [smem:[#allocation19_spill]] %s6833_s20  ;;  %s5156_s25 = sadd.s32 4294967294, %s6845_s23  }
   0xf   : > { %8773 = sst [smem:[#allocation20_spill]] %s6845_s23  ;;  %s39_s26 = sadd.s32 1, %s6841_s22 }
  0x10   : > { %s80_s27 = sadd.s32 1, %s6833_s20  ;;  %p41_p0 = scmp.ge.s32.totalorder %s39_s26, 2 }
  0x11   : > { %p87_p1 = scmp.ne.s32.totalorder %s6833_s20, %s6829_s19  ;;  %p8737_p2 = scmp.eq.s32.totalorder %s6845_s23, 0 }
  0x12   : > { %p93_p3 = scmp.ne.s32.totalorder %s6829_s19, %s6825_s18  ;;  %s8875_s26 = smov (%p41_p0, %s39_s26), 0 }
  0x13   : > { %8774 = sst [smem:[#allocation21_spill]] %s8875_s26  ;;  %p6943_p4 = por %p8737_p2, %p87_p1 }
  0x14   : > { %p8735_p5 = scmp.eq.s32.totalorder %s6929_s24, 0  ;;  %s77_s29 = ssub.s32 %s6841_s22, %s8875_s26 }
  0x15   : > { %p205_p6 = scmp.eq.s32.totalorder %s6929_s24, 1  ;;  %p78_p7 = scmp.eq.s32.totalorder %s77_s29, 0 }
  0x16   : > { %p6953_p8 = por %p8735_p5, %p93_p3  ;;  %p211_p10 = scmp.eq.s32.totalorder %s5156_s25, 1 }
  0x17   : > { %p6957_p9 = por %p205_p6, %p87_p1  ;;  %p8736_p13 = scmp.lt.s32.totalorder %s6845_s23, 2 }
  0x18   : > { %s8776_s30 = scalar_select %p6953_p8, 1, 0 }
  0x19   : > { %s8777_s6 = scalar_select %p6957_p9, 1, 0 }
  0x1a   : > { %s6962_s7 = scalar_select %p78_p7, %s6833_s20, %s80_s27  }
  0x1b   : > { %p6964_p11 = por %p211_p10, %p93_p3  ;;  %s8738_s9 = sand.u32 1, %s6845_s23  }
  0x1c   : > { %8778 = sst [smem:[#allocation22_spill]] %s6962_s7  ;;  %s6972_s10 = sand.u32 1, %s6833_s20  }
  0x1d   : > { %s8779_s8 = scalar_select %p6964_p11, 1, 0 }
  0x1e   : > { %s6082_s11 = smul.u32 768, %s6972_s10  ;;  %p6980_p0 = pnand %p8736_p13, %p6943_p4 }
  0x1f   : > { %8780 = sst [smem:[#allocation23_spill]] %s8779_s8  ;;  %s6083_s12 = smul.u32 12288, %s6841_s22 }
  0x20   : > { %s8781_s13 = scalar_select %p6980_p0, 1, 0 }
  0x21   : > { %s8782_s1 = sld [smem:[#allocation44_spill]]  ;;  %s261_s17 = scalar_lea.vmem [#allocation7], %s6082_s11 }
  0x22   : > { %s268_s25 = sshll.u32 %s261_s17, 4  ;;  %s6994_s27 = scalar_lea.sflag [#allocation8], %s8738_s9  ;;  %s6989_s25 = int_to_ptr.vmem [resolvable:$true] %s268_s25 }
  0x23   : > { %p7000_p4 = pneg %p6980_p0 }
  0x25   : > { %s8783_s29 = scalar_select %p7000_p4, 1, 0 }
  0x27   : > { %s6987_s16 = scalar_lea.hbm %s8782_s1, %s6083_s12  ;;  %s6612_s14 = scalar_lea.hbm %s8782_s1, 24576 }
  0x28   : > { %s6607_s28 = scalar_lea.hbm %s6987_s16, 12288  ;;  %p6613_p10 = scmp.lt.u32.totalorder %s6987_s16, %s8782_s1 }
  0x29   : > { %p6608_p3 = scmp.ne.s32.totalorder %s6987_s16, %s6607_s28  ;;  %p6614_p12 = scmp.lt.u32.totalorder %s6612_s14, %s6607_s28 }
  0x2a   : > { %p6616_p13 = scmp.lt.u32.totalorder %s6607_s28, %s6987_s16 }
  0x2b   : > { %p6610_p6 = pnand %p7000_p4, %p6608_p3  ;;  %p6615_p5 = por %p6614_p12, %p6613_p10 }
  0x2d   : > { %p6611_p7 = pneg %p6610_p6  ;;  %p6617_p2 = por %p6616_p13, %p6615_p5 }
  0x2f   : > { %p6618_p1 = pnand %p6617_p2, %p6611_p7 }
  0x31   : > { %6621 = shalt.err (!%p6618_p1)
}
  0x32   : > { %s6622_s9 = scalar_lea.vmem %s6989_s25, 12288  ;;  %s6847_s12 = smov [#allocation7]  }
  0x33   : > { %p6623_p3 = scmp.ne.s32.totalorder %s6989_s25, %s6622_s9  ;;  %s6627_s11 = sshll.u32 %s6847_s12, 4  ;;  %s6628_s11 = int_to_ptr.vmem [resolvable:$false] %s6627_s11 }
  0x34   : > { %s6629_s15 = scalar_lea.vmem %s6628_s11, 24576  ;;  %p6630_p9 = scmp.lt.s32.totalorder %s6989_s25, %s6628_s11 }
  0x35   : > { %p6625_p6 = pnand %p6623_p3, %p7000_p4  ;;  %p6631_p8 = scmp.lt.s32.totalorder %s6629_s15, %s6622_s9 }
  0x37   : > { %p6626_p11 = pneg %p6625_p6  ;;  %p6632_p12 = por %p6631_p8, %p6630_p9 }
  0x39   : > { %p6633_p10 = pnand %p6632_p12, %p6626_p11 }
  0x3b   : > { %6636 = shalt.err (!%p6633_p10)
}
  0x3c   : > { %s8742_s28 = smov 192   ;;  %s8743_s14 = smov 12  }
  0x3d   : > { %6111 = dma.hbm_to_vmem [thread:$0]  (!%p6980_p0), %s6987_s16, 12288, %s6989_s25, %s6994_s27, %s8742_s28, %s8742_s28, %s8743_s14  }
  0x3e   : > { %p333_p2 = scmp.lt.s32.totalorder %s6845_s23, 3  ;;  %s6086_s9 = smul.u32 3, %s6972_s10 }
  0x3f   : > { %p8784_p5 = scmp.ge.s32.totalorder %s6845_s23, 1  ;;  %s6087_s12 = smul.u32 48, %s6841_s22 }
  0x40   : > { %s8786_s3 = sld [smem:[#allocation45_spill]]  ;;  %s303_s26 = scalar_lea.vmem [#allocation10], %s6086_s9 }
  0x41   : > { %p7031_p8 = pnand %p8784_p5, %p333_p2  ;;  %s311_s7 = sshll.u32 %s303_s26, 4  ;;  %s312_s7 = int_to_ptr.vmem [resolvable:$true] %s311_s7 }
  0x42   : > { %s8787_s16 = sand.u32 1, %s6845_s23  }
  0x43   : > { %s8785_s17 = scalar_select %p7031_p8, 1, 0 }
  0x44   : > { %s7043_s25 = scalar_lea.sflag [#allocation11], %s8787_s16 }
  0x46   : > { %s7039_s1 = scalar_lea.hbm %s8786_s3, %s6087_s12  ;;  %s6642_s12 = scalar_lea.hbm %s8786_s3, 96 }
  0x47   : > { %s6637_s28 = scalar_lea.hbm %s7039_s1, 48  ;;  %p6643_p1 = scmp.lt.u32.totalorder %s7039_s1, %s8786_s3 }
  0x48   : > { %p6638_p9 = scmp.ne.s32.totalorder %s7039_s1, %s6637_s28  ;;  %p6644_p7 = scmp.lt.u32.totalorder %s6642_s12, %s6637_s28 }
  0x49   : > { %p6646_p6 = scmp.lt.u32.totalorder %s6637_s28, %s7039_s1 }
  0x4a   : > { %p6640_p11 = pnand %p6638_p9, %p7000_p4  ;;  %p6645_p3 = por %p6644_p7, %p6643_p1 }
  0x4c   : > { %p6641_p13 = pneg %p6640_p11  ;;  %p6647_p12 = por %p6646_p6, %p6645_p3 }
  0x4e   : > { %p6648_p10 = pnand %p6647_p12, %p6641_p13 }
  0x50   : > { %6651 = shalt.err (!%p6648_p10)
}
  0x51   : > { %s6652_s26 = scalar_lea.vmem %s312_s7, 48  ;;  %s6850_s9 = smov [#allocation10]  }
  0x52   : > { %p6653_p2 = scmp.ne.s32.totalorder %s312_s7, %s6652_s26  ;;  %s6657_s16 = sshll.u32 %s6850_s9, 4  ;;  %s6658_s16 = int_to_ptr.vmem [resolvable:$false] %s6657_s16 }
  0x53   : > { %s6659_s20 = scalar_lea.vmem %s6658_s16, 96  ;;  %p6660_p11 = scmp.lt.s32.totalorder %s312_s7, %s6658_s16 }
  0x54   : > { %p6655_p5 = pnand %p6653_p2, %p7000_p4  ;;  %p6661_p8 = scmp.lt.s32.totalorder %s6659_s20, %s6652_s26 }
  0x56   : > { %p6656_p9 = pneg %p6655_p5  ;;  %p6662_p0 = por %p6661_p8, %p6660_p11 }
  0x58   : > { %p6663_p1 = pnand %p6662_p0, %p6656_p9 }
  0x5a   : > { %6666 = shalt.err (!%p6663_p1)
}
  0x5b   : > { %p8788_p7 = scmp.ne.s32.totalorder %s8781_s13, 0  ;;  %s6851_s28 = smov [#allocation4]  }
  0x5c   : > { %s247_s14 = sshll.u32 %s6851_s28, 4  ;;  %p8789_p13 = scmp.eq.s32.totalorder %s6845_s23, 0  ;;  %s248_s14 = int_to_ptr.vmem [resolvable:$true] %s247_s14 }
  0x5d   : > { %6117 = dma.hbm_to_vmem [thread:$0]  (!%p8788_p7), %s7039_s1, 48, %s312_s7, %s7043_s25  }
  0x5e   : > { %p8790_p3 = scmp.lt.s32.totalorder %s6845_s23, 2  ;;  %s6667_s26 = scalar_lea.hbm %s8729_s0, 1024 }
  0x5f   : > { %p6668_p0 = scmp.ne.s32.totalorder %s8729_s0, %s6667_s26  ;;  %p6674_p2 = scmp.lt.u32.totalorder %s6667_s26, %s8729_s0 }
  0x60   : > { %p7067_p6 = pnand %p8790_p3, %p8789_p13 }
  0x62   : > { %p6669_p8 = pneg %p7067_p6 }
  0x64   : > { %p6670_p12 = pnand %p6669_p8, %p6668_p0 }
  0x66   : > { %p6671_p10 = pneg %p6670_p12 }
  0x68   : > { %p6676_p5 = pnand %p6674_p2, %p6671_p10 }
  0x6a   : > { %6679 = shalt.err (!%p6676_p5)
}
  0x6b   : > { %s6680_s20 = scalar_lea.vmem %s248_s14, 1024  ;;  %s6687_s28 = scalar_lea.vmem %s248_s14, 2048 }
  0x6c   : > { %p6681_p9 = scmp.ne.s32.totalorder %s248_s14, %s6680_s20  ;;  %p6688_p13 = scmp.lt.s32.totalorder %s248_s14, %s248_s14 }
  0x6d   : > { %p6689_p3 = scmp.lt.s32.totalorder %s6687_s28, %s6680_s20 }
  0x6e   : > { %p6683_p11 = pnand %p6681_p9, %p6669_p8 }
  0x6f   : > { %p6690_p7 = por %p6689_p3, %p6688_p13 }
  0x70   : > { %p6684_p1 = pneg %p6683_p11 }
  0x72   : > { %p6691_p4 = pnand %p6690_p7, %p6684_p1 }
  0x74   : > { %6694 = shalt.err (!%p6691_p4)
}
  0x75   : > { %s6852_s11 = smov 128   ;;  %s6853_s15 = smov 8  }
  0x76   : > { %6108 = dma.hbm_to_vmem [thread:$0]  (!%p7067_p6), %s8729_s0, 1024, %s248_s14, [#allocation5], %s6852_s11, %s6852_s11, %s6853_s15  }
  0x77   : > { %s6084_s16 = smul.u32 192, %s6972_s10  ;;  %s5163_s7 = sshll.u32 %s6841_s22, 4 }
  0x78   : > { %s6085_s1 = smul.u32 3072, %s6841_s22  ;;  %s7093_s3 = scalar_lea.hbm %s8733_s4, %s5163_s7 }
  0x79   : > { %s282_s12 = scalar_lea.vmem [#allocation9], %s6084_s16  ;;  %s321_s14 = scalar_lea.vmem [#allocation12], %s6972_s10 }
  0x7a   : > { %s7098_s18 = scalar_lea.hbm %s8731_s2, %s6085_s1  ;;  %s289_s26 = sshll.u32 %s282_s12, 4  ;;  %s7100_s26 = int_to_ptr.vmem [resolvable:$true] %s289_s26 }
  0x7b   : > { %s7103_s11 = sshll.u32 %s321_s14, 4  ;;  %s6695_s15 = scalar_lea.hbm %s7098_s18, 3072  ;;  %s329_s11 = int_to_ptr.vmem [resolvable:$true] %s7103_s11 }
  0x7c   : > { %p6696_p4 = scmp.ne.s32.totalorder %s7098_s18, %s6695_s15  ;;  %p8792_p7 = scmp.ne.s32.totalorder %s8783_s29, 0 }
  0x7d   : > { %s6700_s8 = scalar_lea.hbm %s8731_s2, 6144  ;;  %p6701_p8 = scmp.lt.u32.totalorder %s7098_s18, %s8731_s2 }
  0x7e   : > { %p6698_p6 = pnand %p6696_p4, %p8792_p7  ;;  %p6702_p12 = scmp.lt.u32.totalorder %s6700_s8, %s6695_s15 }
  0x7f   : > { %p6704_p2 = scmp.lt.u32.totalorder %s6695_s15, %s7098_s18 }
  0x80   : > { %p6699_p0 = pneg %p6698_p6  ;;  %p6703_p10 = por %p6702_p12, %p6701_p8 }
  0x82   : > { %p6705_p5 = por %p6704_p2, %p6703_p10 }
  0x84   : > { %p6706_p9 = pnand %p6705_p5, %p6699_p0 }
  0x86   : > { %6709 = shalt.err (!%p6706_p9)
}
  0x87   : > { %s6710_s10 = scalar_lea.vmem %s7100_s26, 3072  ;;  %s6854_s16 = smov [#allocation9]  }
  0x88   : > { %p6711_p11 = scmp.ne.s32.totalorder %s7100_s26, %s6710_s10  ;;  %s6715_s20 = sshll.u32 %s6854_s16, 4  ;;  %s6716_s20 = int_to_ptr.vmem [resolvable:$false] %s6715_s20 }
  0x89   : > { %s6717_s28 = scalar_lea.vmem %s6716_s20, 6144  ;;  %p6718_p3 = scmp.lt.s32.totalorder %s7100_s26, %s6716_s20 }
  0x8a   : > { %p6713_p1 = pnand %p6711_p11, %p8792_p7  ;;  %p6719_p4 = scmp.lt.s32.totalorder %s6717_s28, %s6710_s10 }
  0x8c   : > { %p6714_p13 = pneg %p6713_p1  ;;  %p6720_p6 = por %p6719_p4, %p6718_p3 }
  0x8e   : > { %p6721_p8 = pnand %p6720_p6, %p6714_p13 }
  0x90   : > { %6724 = shalt.err (!%p6721_p8)
}
  0x91   : > { %p8793_p0 = scmp.ne.s32.totalorder %s8781_s13, 0  ;;  %s8794_s12 = smov 12  }
  0x92   : > { %s8795_s14 = smov 192   ;;  %s6725_s15 = scalar_lea.hbm %s7093_s3, 16 }
  0x93   : > { %6114 = dma.hbm_to_vmem [thread:$0]  (!%p8793_p0), %s7098_s18, 3072, %s7100_s26, %s6994_s27, %s8795_s14, %s8795_s14, %s8794_s12  }
  0x94   : > { %p6726_p12 = scmp.ne.s32.totalorder %s7093_s3, %s6725_s15  ;;  %s6730_s8 = scalar_lea.hbm %s8733_s4, 32 }
  0x95   : > { %p6731_p5 = scmp.lt.u32.totalorder %s7093_s3, %s8733_s4  ;;  %p6732_p9 = scmp.lt.u32.totalorder %s6730_s8, %s6725_s15 }
  0x96   : > { %p6728_p10 = pnand %p6726_p12, %p8792_p7  ;;  %p6734_p1 = scmp.lt.u32.totalorder %s6725_s15, %s7093_s3 }
  0x97   : > { %p6733_p11 = por %p6732_p9, %p6731_p5 }
  0x98   : > { %p6729_p2 = pneg %p6728_p10 }
  0x99   : > { %p6735_p13 = por %p6734_p1, %p6733_p11 }
  0x9b   : > { %p6736_p3 = pnand %p6735_p13, %p6729_p2 }
  0x9d   : > { %6739 = shalt.err (!%p6736_p3)
}
  0x9e   : > { %s6740_s18 = scalar_lea.vmem %s329_s11, 16  ;;  %s6855_s27 = smov [#allocation12]  }
  0x9f   : > { %p6741_p4 = scmp.ne.s32.totalorder %s329_s11, %s6740_s18  ;;  %s6745_s26 = sshll.u32 %s6855_s27, 4  ;;  %s6746_s26 = int_to_ptr.vmem [resolvable:$false] %s6745_s26 }
  0xa0   : > { %s6747_s10 = scalar_lea.vmem %s6746_s26, 32  ;;  %p6748_p12 = scmp.lt.s32.totalorder %s329_s11, %s6746_s26 }
  0xa1   : > { %p6743_p6 = pnand %p6741_p4, %p8792_p7  ;;  %p6749_p10 = scmp.lt.s32.totalorder %s6747_s10, %s6740_s18 }
  0xa3   : > { %p6744_p8 = pneg %p6743_p6  ;;  %p6750_p0 = por %p6749_p10, %p6748_p12 }
  0xa5   : > { %p6751_p5 = pnand %p6750_p0, %p6744_p8 }
  0xa7   : > { %6754 = shalt.err (!%p6751_p5)
}
  0xa8   : > { %p8796_p9 = scmp.ne.s32.totalorder %s8781_s13, 0  ;;  %p8797_p2 = scmp.ne.s32.totalorder %s8785_s17, 0 }
  0xaa   : > { %6120 = dma.hbm_to_vmem [thread:$0]  (!%p8796_p9), %s7093_s3, 16, %s329_s11, %s7043_s25  }
  0xab   : > { %337 = sbr.rel (%p8797_p2) target bundleno = 2988 (0xbac), region = 40 }
  0xb2   : > { %p8798_p7 = scmp.eq.s32.totalorder %s6929_s24, 0 }
  0xb4   : > { %6808 = dma.done.wait (%p8798_p7), [#allocation5], 1024   ;;  %p8799_p11 = pmov %p8798_p7 }
  0xb5   : > { %s348_s29 = sand.u32 1, %s6929_s24   ;;  %s7157_s16 = sand.u32 1, %s6829_s19  }
  0xb6   : > { %6810 = vsyncadd (%p8799_p11), [#allocation5], 4294966272  ;;  %s6088_s13 = smul.u32 768, %s7157_s16  ;;  %s349_s20 = scalar_lea.sflag [#allocation8], %s348_s29 }
  0xb7   : > { %p8800_p0 = scmp.ne.s32.totalorder %s8776_s30, 0 }
  0xb8   : > { %s7160_s28 = scalar_lea.vmem [#allocation7], %s6088_s13 }
  0xb9   : > { %6812 = dma.done.wait (%p8800_p0), %s349_s20, 15360  }
  0xba   : > { %6814 = vsyncadd (%p8800_p0), %s349_s20, 4294951936  ;;  %s6089_s3 = smul.u32 192, %s7157_s16  ;;  %s367_s24 = scalar_lea.sflag [#allocation11], %s348_s29 }
  0xbb   : > { %s6090_s17 = smul.u32 3, %s7157_s16 }
  0xbc   : > { %s7168_s25 = scalar_lea.vmem [#allocation9], %s6089_s3 }
  0xbd   : > { %s7170_s11 = scalar_lea.vmem [#allocation10], %s6090_s17 }
  0xbe   : > { %6816 = dma.done.wait (%p8800_p0), %s367_s24, 64  }
  0xbf   : > { %6818 = vsyncadd (%p8800_p0), %s367_s24, 4294967232  ;;  %s5166_s12 = sshll.u32 %s7157_s16, 4  ;;  %v7178_v0 = vld [vmem:[%s7168_s25] sm:$0xff]  ;;  %v7181_v1 = vld [vmem:[%s7168_s25 + $0x8] sm:$0xf]  ;;  %s378_s30 = scalar_lea.vmem [#allocation12], %s7157_s16 }
  0xc0   : > { %v7184_v2 = vld [vmem:[%s7168_s25 + $0xc] sm:$0xff]  ;;  %v7187_v3 = vld [vmem:[%s7168_s25 + $0x14] sm:$0xf]  ;;  %v7190_v4 = vld [vmem:[%s7168_s25 + $0x18] sm:$0xff]  ;;  %s8153_s14 = scalar_lea.vmem [#allocation13], %s5166_s12  ;;  %p5574_p1 = scmp.ne.s32.totalorder %s6837_s21, 0 }
  0xc1   : > { %v7193_v5 = vld [vmem:[%s7168_s25 + $0x20] sm:$0xf]  ;;  %v7196_v6 = vld [vmem:[%s7168_s25 + $0x24] sm:$0xff]  ;;  %v7199_v7 = vld [vmem:[%s7168_s25 + $0x2c] sm:$0xf]  ;;  %vm6858_vm0 = vmmov (!%p5574_p1), 0  }
  0xc2   : > { %v7202_v8 = vld [vmem:[%s7168_s25 + $0x30] sm:$0xff]  ;;  %v7205_v9 = vld [vmem:[%s7168_s25 + $0x38] sm:$0xf]  ;;  %v7208_v10 = vld [vmem:[%s7168_s25 + $0x3c] sm:$0xff] }
  0xc3   : > { %8801 = vst [vmem:[#allocation24_spill] sm:$0xff] %v7205_v9  ;;  %v7211_v11 = vld [vmem:[%s7168_s25 + $0x44] sm:$0xf]  ;;  %v7214_v12 = vld [vmem:[%s7168_s25 + $0x48] sm:$0xff]  ;;  %v7217_v13 = vld [vmem:[%s7168_s25 + $0x50] sm:$0xf] }
  0xc4   : > { %8802 = vst [vmem:[#allocation25_spill] sm:$0xff] %v7217_v13  ;;  %v7220_v14 = vld [vmem:[%s7168_s25 + $0x54] sm:$0xff]  ;;  %v7223_v15 = vld [vmem:[%s7168_s25 + $0x5c] sm:$0xf]  ;;  %v7226_v16 = vld [vmem:[%s7168_s25 + $0x60] sm:$0xff] }
  0xc5   : > { %8803 = vst [vmem:[#allocation26_spill] sm:$0xff] %v7223_v15  ;;  %8804 = vst [vmem:[#allocation27_spill] sm:$0xff] %v7226_v16  ;;  %v7229_v17 = vld [vmem:[%s7168_s25 + $0x68] sm:$0xf]  ;;  %v7232_v18 = vld [vmem:[%s7168_s25 + $0x6c] sm:$0xff] }
  0xc6   : > { %8805 = vst [vmem:[#allocation28_spill] sm:$0xff] %v7229_v17  ;;  %8806 = vst [vmem:[#allocation29_spill] sm:$0xff] %v7232_v18  ;;  %v7235_v19 = vld [vmem:[%s7168_s25 + $0x74] sm:$0xf]  ;;  %v7238_v20 = vld [vmem:[%s7168_s25 + $0x78] sm:$0xff] }
  0xc7   : > { %8807 = vst [vmem:[#allocation30_spill] sm:$0xff] %v7235_v19  ;;  %8808 = vst [vmem:[#allocation31_spill] sm:$0xff] %v7238_v20  ;;  %v7241_v21 = vld [vmem:[%s7168_s25 + $0x80] sm:$0xf]  ;;  %v7244_v22 = vld [vmem:[%s7168_s25 + $0x84] sm:$0xff] }
  0xc8   : > { %8809 = vst [vmem:[#allocation32_spill] sm:$0xff] %v7241_v21  ;;  %8810 = vst [vmem:[#allocation33_spill] sm:$0xff] %v7244_v22  ;;  %v7247_v23 = vld [vmem:[%s7168_s25 + $0x8c] sm:$0xf]  ;;  %v7250_v24 = vld [vmem:[%s7168_s25 + $0x90] sm:$0xff] }
  0xc9   : > { %8811 = vst [vmem:[#allocation34_spill] sm:$0xff] %v7247_v23  ;;  %8812 = vst [vmem:[#allocation35_spill] sm:$0xff] %v7250_v24  ;;  %v7253_v25 = vld [vmem:[%s7168_s25 + $0x98] sm:$0xf]  ;;  %v7256_v26 = vld [vmem:[%s7168_s25 + $0x9c] sm:$0xff] }
  0xca   : > { %8813 = vst [vmem:[#allocation36_spill] sm:$0xff] %v7253_v25  ;;  %8814 = vst [vmem:[#allocation37_spill] sm:$0xff] %v7256_v26  ;;  %v7259_v27 = vld [vmem:[%s7168_s25 + $0xa4] sm:$0xf]  ;;  %v7262_v28 = vld [vmem:[%s7168_s25 + $0xa8] sm:$0xff] }
  0xcb   : > { %8815 = vst [vmem:[#allocation38_spill] sm:$0xff] %v7259_v27  ;;  %8816 = vst [vmem:[#allocation39_spill] sm:$0xff] %v7262_v28  ;;  %v7265_v29 = vld [vmem:[%s7168_s25 + $0xb0] sm:$0xf]  ;;  %v7268_v30 = vld [vmem:[%s7168_s25 + $0xb4] sm:$0xff] }
  0xcc   : > { %8817 = vst [vmem:[#allocation40_spill] sm:$0xff] %v7265_v29  ;;  %8818 = vst [vmem:[#allocation41_spill] sm:$0xff] %v7268_v30  ;;  %v7271_v31 = vld [vmem:[%s7168_s25 + $0xbc] sm:$0xf]  ;;  %v7274_v32 = vld [vmem:[%s378_s30] sm:$0x1] }
  0xcd   : > { %8819 = vst [vmem:[#allocation42_spill] sm:$0xff] %v7271_v31  ;;  %8820 = vst [vmem:[#allocation43_spill] sm:$0xff] %v7274_v32  ;;  %v7277_v33 = vld [vmem:[%s7160_s28 + $0x4] ss:$12 sps:$4 sm:$0xff]   ;;  %v6193_v34 = vld [vmem:[%s7160_s28 + $0xc8] ss:$12 sps:$4 sm:$0xff]  }
  0xce   : > { %797 = vmatprep.subr.bf16.mxu0 %v7277_v33  ;;  %v7282_v35 = vld [vmem:[%s7160_s28] ss:$12 sps:$4 sm:$0xff]   ;;  %5650 = vmatprep.subr.bf16.mxu1 %v6193_v34  ;;  %v6195_v36 = vld [vmem:[%s7160_s28 + $0x8] ss:$12 sps:$4 sm:$0xff]   ;;  %v7291_v39 = vld [vmem:[%s7160_s28 + $0x18] ss:$12 sps:$4 sm:$0xff]  }
  0xcf   : > { %798 = vmatpush1.bf16.msra.mxu0 %v7282_v35  ;;  %v7287_v37 = vld [vmem:[%s7160_s28 + $0x1c] ss:$12 sps:$4 sm:$0xff]   ;;  %5651 = vmatpush3.bf16.msra.mxu1 %v6195_v36  ;;  %v6198_v38 = vld [vmem:[%s7160_s28 + $0xe0] ss:$12 sps:$4 sm:$0xff]   ;;  %v6203_v42 = vld [vmem:[%s7160_s28 + $0xf8] ss:$12 sps:$4 sm:$0xff]  }
  0xd0   : > { %799 = vmatprep.subr.bf16.mxu0 %v7287_v37  ;;  %v6200_v40 = vld [vmem:[%s7160_s28 + $0x20] ss:$12 sps:$4 sm:$0xff]   ;;  %5652 = vmatprep.subr.bf16.mxu1 %v6198_v38  ;;  %v7301_v43 = vld [vmem:[%s7160_s28 + $0x30] ss:$12 sps:$4 sm:$0xff]   ;;  %v6205_v44 = vld [vmem:[%s7160_s28 + $0x38] ss:$12 sps:$4 sm:$0xff]  }
  0xd1   : > { %v7296_v41 = vld [vmem:[%s7160_s28 + $0x34] ss:$12 sps:$4 sm:$0xff]   ;;  %v7306_v45 = vld [vmem:[%s7160_s28 + $0x4c] ss:$12 sps:$4 sm:$0xff]   ;;  %v6208_v46 = vld [vmem:[%s7160_s28 + $0x110] ss:$12 sps:$4 sm:$0xff]  }
  0xd2   : > { %v7311_v47 = vld [vmem:[%s7160_s28 + $0x48] ss:$12 sps:$4 sm:$0xff]   ;;  %v6210_v48 = vld [vmem:[%s7160_s28 + $0x50] ss:$12 sps:$4 sm:$0xff]   ;;  %v7320_v51 = vld [vmem:[%s7160_s28 + $0x60] ss:$12 sps:$4 sm:$0xff]  }
  0xd3   : > { %800 = vmatpush1.bf16.msra.mxu0 %v7291_v39  ;;  %5653 = vmatpush3.bf16.msra.mxu1 %v6200_v40  ;;  %v7316_v49 = vld [vmem:[%s7160_s28 + $0x64] ss:$12 sps:$4 sm:$0xff]   ;;  %v6213_v50 = vld [vmem:[%s7160_s28 + $0x128] ss:$12 sps:$4 sm:$0xff]   ;;  %v6218_v54 = vld [vmem:[%s7160_s28 + $0x140] ss:$12 sps:$4 sm:$0xff]  }
  0xd4   : > { %801 = vmatprep.subr.bf16.mxu0 %v7296_v41  ;;  %5654 = vmatprep.subr.bf16.mxu1 %v6203_v42  ;;  %v6215_v52 = vld [vmem:[%s7160_s28 + $0x68] ss:$12 sps:$4 sm:$0xff]   ;;  %v7330_v55 = vld [vmem:[%s7160_s28 + $0x78] ss:$12 sps:$4 sm:$0xff]   ;;  %v6220_v56 = vld [vmem:[%s7160_s28 + $0x80] ss:$12 sps:$4 sm:$0xff]  }
  0xd5   : > { %v7326_v53 = vld [vmem:[%s7160_s28 + $0x7c] ss:$12 sps:$4 sm:$0xff]   ;;  %v7336_v57 = vld [vmem:[%s7160_s28 + $0x94] ss:$12 sps:$4 sm:$0xff]   ;;  %v6223_v58 = vld [vmem:[%s7160_s28 + $0x158] ss:$12 sps:$4 sm:$0xff]  }
  0xd6   : > { %v7341_v59 = vld [vmem:[%s7160_s28 + $0x90] ss:$12 sps:$4 sm:$0xff]   ;;  %v6225_v60 = vld [vmem:[%s7160_s28 + $0x98] ss:$12 sps:$4 sm:$0xff]   ;;  %v7350_v34 = vld [vmem:[%s7160_s28 + $0xa8] ss:$12 sps:$4 sm:$0xff]  }
  0xd7   : > { %802 = vmatpush1.bf16.msra.mxu0 %v7301_v43  ;;  %5655 = vmatpush3.bf16.msra.mxu1 %v6205_v44  ;;  %v7346_v61 = vld [vmem:[%s7160_s28 + $0xac] ss:$12 sps:$4 sm:$0xff]   ;;  %v6228_v62 = vld [vmem:[%s7160_s28 + $0x170] ss:$12 sps:$4 sm:$0xff]   ;;  %v469_v63 = vld [vmem:[#allocation4] sm:$0xff] }
  0xd8   : > { %803 = vmatprep.subr.bf16.mxu0 %v7306_v45  ;;  %5656 = vmatprep.subr.bf16.mxu1 %v6208_v46  ;;  %v5168_v36 = vcombine.high %v469_v63, %v469_v63  ;;  %v6230_v38 = vld [vmem:[%s7160_s28 + $0xb0] ss:$12 sps:$4 sm:$0xff]   ;;  %v6235_v42 = vld [vmem:[%s7160_s28 + $0x248] ss:$12 sps:$4 sm:$0xff]   ;;  %v7360_v44 = vcombine.low %v469_v63, %v469_v63  ;;  %v7363_v46 = vld [vmem:[%s7160_s28 + $0xc0] ss:$12 sps:$4 sm:$0xff]  }
  0xd9   : > { %v7356_v40 = vld [vmem:[%s7160_s28 + $0xc4] ss:$12 sps:$4 sm:$0xff]   ;;  %v7403_v32 = vld [vmem:[%s7160_s28 + $0x120] ss:$12 sps:$4 sm:$0xff]   ;;  %v7449_v26 = vld [vmem:[%s7160_s28 + $0x19c] ss:$12 sps:$4 sm:$0xff]  }
  0xda   : > { %870 = vmatprep.mubr.bf16.mxu1 %v5168_v36  ;;  %829 = vmatprep.mubr.bf16.mxu0 %v5168_v36  ;;  %v6247_v63 = vld [vmem:[%s7160_s28 + $0x1b8] ss:$12 sps:$4 sm:$0xff]   ;;  %v6260_v29 = vld [vmem:[%s7160_s28 + $0x2c0] ss:$12 sps:$4 sm:$0xff]   ;;  %v7424_v28 = vld [vmem:[%s7160_s28 + $0x150] ss:$12 sps:$4 sm:$0xff]  }
  0xdb   : > { %804 = vmatpush1.bf16.msra.mxu0 %v7311_v47  ;;  %5657 = vmatpush3.bf16.msra.mxu1 %v6210_v48  ;;  %v6237_v48 = vld [vmem:[%s7160_s28 + $0x188] ss:$12 sps:$4 sm:$0xff]   ;;  %v7389_v36 = vld [vmem:[%s7160_s28 + $0x10c] ss:$12 sps:$4 sm:$0xff]   ;;  %v6270_v21 = vld [vmem:[%s7160_s28 + $0x2f0] ss:$12 sps:$4 sm:$0xff]  }
  0xdc   : > { %805 = vmatprep.subr.bf16.mxu0 %v7316_v49  ;;  %5658 = vmatprep.subr.bf16.mxu1 %v6213_v50  ;;  %v7368_v50 = vld [vmem:[%s7160_s28 + $0xdc] ss:$12 sps:$4 sm:$0xff]   ;;  %v6262_v31 = vld [vmem:[%s7160_s28 + $0x200] ss:$12 sps:$4 sm:$0xff]   ;;  %v6265_v27 = vld [vmem:[%s7160_s28 + $0x2d8] ss:$12 sps:$4 sm:$0xff]  }
  0xdd   : > { %v5217_v25 = vld [vmem:[#allocation4 + $0x8] sm:$0xff]  ;;  %v6272_v23 = vld [vmem:[%s7160_s28 + $0x230] ss:$12 sps:$4 sm:$0xff]  }
  0xde   : > { %v7429_v30 = vld [vmem:[%s7160_s28 + $0x16c] ss:$12 sps:$4 sm:$0xff]   ;;  %v7439_v24 = vld [vmem:[%s7160_s28 + $0x184] ss:$12 sps:$4 sm:$0xff]   ;;  %v7857_v19 = vld [vmem:[%s7160_s28 + $0x168] ss:$12 sps:$4 sm:$0xff]  }
  0xdf   : > { %806 = vmatpush1.bf16.msra.mxu0 %v7320_v51  ;;  %5659 = vmatpush3.bf16.msra.mxu1 %v6215_v52  ;;  %v6240_v52 = vld [vmem:[%s7160_s28 + $0x260] ss:$12 sps:$4 sm:$0xff]   ;;  %v7960_v9 = vld [vmem:[%s7160_s28 + $0x228] ss:$12 sps:$4 sm:$0xff]  }
  0xe0   : > { %807 = vmatprep.subr.bf16.mxu0 %v7326_v53  ;;  %5660 = vmatprep.subr.bf16.mxu1 %v6218_v54  ;;  %v7372_v54 = vld [vmem:[%s7160_s28 + $0xd8] ss:$12 sps:$4 sm:$0xff]   ;;  %v6328_v17 = vld [vmem:[%s7160_s28 + $0x20] ss:$12 sps:$4 sm:$0xff]  }
  0xe1   : > { %v7955_v16 = vld [vmem:[%s7160_s28 + $0x22c] ss:$12 sps:$4 sm:$0xff]  }
  0xe3   : > { %808 = vmatpush1.bf16.msra.mxu0 %v7330_v55  ;;  %5661 = vmatpush3.bf16.msra.mxu1 %v6220_v56  ;;  %v6242_v56 = vld [vmem:[%s7160_s28 + $0x1a0] ss:$12 sps:$4 sm:$0xff]  }
  0xe4   : > { %809 = vmatprep.subr.bf16.mxu0 %v7336_v57  ;;  %5662 = vmatprep.subr.bf16.mxu1 %v6223_v58  ;;  %v7379_v58 = vld [vmem:[%s7160_s28 + $0xf4] ss:$12 sps:$4 sm:$0xff]  }
  0xe7   : > { %810 = vmatpush1.bf16.msra.mxu0 %v7341_v59  ;;  %5663 = vmatpush3.bf16.msra.mxu1 %v6225_v60  ;;  %v6245_v60 = vld [vmem:[%s7160_s28 + $0x278] ss:$12 sps:$4 sm:$0xff]  }
  0xe8   : > { %811 = vmatprep.subr.bf16.mxu0 %v7346_v61  ;;  %5664 = vmatprep.subr.bf16.mxu1 %v6228_v62  ;;  %v7383_v62 = vld [vmem:[%s7160_s28 + $0xf0] ss:$12 sps:$4 sm:$0xff]  }
  0xeb   : > { %812 = vmatpush1.bf16.msra.mxu0 %v7350_v34  ;;  %5665 = vmatpush3.bf16.msra.mxu1 %v6230_v38  ;;  %v6250_v38 = vld [vmem:[%s7160_s28 + $0x290] ss:$12 sps:$4 sm:$0xff]  }
  0xec   : > { %813 = vmatprep.subr.bf16.mxu0 %v7356_v40  ;;  %5672 = vmatprep.subr.bf16.mxu1 %v6235_v42  ;;  %v7394_v42 = vld [vmem:[%s7160_s28 + $0x108] ss:$12 sps:$4 sm:$0xff]  }
  0xee   : > { %871 = vmatmul.mubr.bf16.vlgmr.msra.gmra.mrb[0].mxu1 %v7360_v44 }
  0xef   : > { %814 = vmatpush1.bf16.msra.mxu0 %v7363_v46  ;;  %5673 = vmatpush3.bf16.msra.mxu1 %v6237_v48  ;;  %v6252_v48 = vld [vmem:[%s7160_s28 + $0x1d0] ss:$12 sps:$4 sm:$0xff]  }
  0xf0   : > { %815 = vmatprep.subr.bf16.mxu0 %v7368_v50  ;;  %5674 = vmatprep.subr.bf16.mxu1 %v6240_v52  ;;  %v7399_v52 = vld [vmem:[%s7160_s28 + $0x124] ss:$12 sps:$4 sm:$0xff]  }
  0xf3   : > { %816 = vmatpush1.bf16.msra.mxu0 %v7372_v54  ;;  %5675 = vmatpush3.bf16.msra.mxu1 %v6242_v56  ;;  %v6255_v56 = vld [vmem:[%s7160_s28 + $0x2a8] ss:$12 sps:$4 sm:$0xff]  }
  0xf4   : > { %817 = vmatprep.subr.bf16.mxu0 %v7379_v58  ;;  %5676 = vmatprep.subr.bf16.mxu1 %v6245_v60  ;;  %v6257_v60 = vld [vmem:[%s7160_s28 + $0x1e8] ss:$12 sps:$4 sm:$0xff]  }
  0xf7   : > { %818 = vmatpush1.bf16.msra.mxu0 %v7383_v62  ;;  %5677 = vmatpush3.bf16.msra.mxu1 %v6247_v63  ;;  %v7409_v63 = vld [vmem:[%s7160_s28 + $0x13c] ss:$12 sps:$4 sm:$0xff]  }
  0xf8   : > { %819 = vmatprep.subr.bf16.mxu0 %v7389_v36  ;;  %5678 = vmatprep.subr.bf16.mxu1 %v6250_v38  ;;  %v7414_v38 = vld [vmem:[%s7160_s28 + $0x138] ss:$12 sps:$4 sm:$0xff]  }
  0xfb   : > { %820 = vmatpush1.bf16.msra.mxu0 %v7394_v42  ;;  %5679 = vmatpush3.bf16.msra.mxu1 %v6252_v48  ;;  %v7419_v48 = vld [vmem:[%s7160_s28 + $0x154] ss:$12 sps:$4 sm:$0xff]  }
  0xfc   : > { %821 = vmatprep.subr.bf16.mxu0 %v7399_v52  ;;  %5680 = vmatprep.subr.bf16.mxu1 %v6255_v56  ;;  %v5219_v56 = vcombine.high %v5217_v25, %v5217_v25 }
  0xfe   : > { %1299 = vmatprep.mubr.bf16.mxu1 %v5219_v56 }
  0xff   : > { %822 = vmatpush1.bf16.msra.mxu0 %v7403_v32  ;;  %5681 = vmatpush3.bf16.msra.mxu1 %v6257_v60  ;;  %v6267_v60 = vld [vmem:[%s7160_s28 + $0x218] ss:$12 sps:$4 sm:$0xff]  }
 0x100   : > { %823 = vmatprep.subr.bf16.mxu0 %v7409_v63  ;;  %5682 = vmatprep.subr.bf16.mxu1 %v6260_v29  ;;  %v7434_v29 = vld [vmem:[%s7160_s28 + $0x168] ss:$12 sps:$4 sm:$0xff]  }
 0x103   : > { %824 = vmatpush1.bf16.msra.mxu0 %v7414_v38  ;;  %5683 = vmatpush3.bf16.msra.mxu1 %v6262_v31  ;;  %v7442_v31 = vcombine.low %v5217_v25, %v5217_v25  ;;  %v7466_v25 = vld [vmem:[%s7160_s28 + $0x1b0] ss:$12 sps:$4 sm:$0xff]  }
 0x104   : > { %825 = vmatprep.subr.bf16.mxu0 %v7419_v48  ;;  %5684 = vmatprep.subr.bf16.mxu1 %v6265_v27  ;;  %v7445_v27 = vld [vmem:[%s7160_s28 + $0x180] ss:$12 sps:$4 sm:$0xff]  }
 0x107   : > { %826 = vmatpush1.bf16.msra.mxu0 %v7424_v28  ;;  %5685 = vmatpush3.bf16.msra.mxu1 %v6267_v60 }
 0x108   : > { %827 = vmatprep.subr.bf16.mxu0 %v7429_v30  ;;  %5686 = vmatprep.subr.bf16.mxu1 %v6270_v21  ;;  %v7456_v21 = vld [vmem:[%s7160_s28 + $0x198] ss:$12 sps:$4 sm:$0xff]  }
 0x10b   : > { %828 = vmatpush1.bf16.msra.mxu0 %v7434_v29  ;;  %5687 = vmatpush3.bf16.msra.mxu1 %v6272_v23  ;;  %v7461_v23 = vld [vmem:[%s7160_s28 + $0x1b4] ss:$12 sps:$4 sm:$0xff]  }
 0x10c   : > { %1226 = vmatprep.subr.bf16.mxu0 %v7439_v24  ;;  %1642 = vmatprep.subr.bf16.mxu1 %v7277_v33  ;;  %v7471_v33 = vld [vmem:[%s7160_s28 + $0x1cc] ss:$12 sps:$4 sm:$0xff]  }
 0x10e   : > { %830 = vmatmul.mubr.bf16.vlgmr.msra.gmra.mrb[0].mxu0 %v7360_v44  ;;  %1300 = vmatmul.mubr.bf16.vlgmr.msra.gmra.mrb[4].mxu1 %v7442_v31 }
 0x10f   : > { %1227 = vmatpush1.bf16.msra.mxu0 %v7445_v27  ;;  %1643 = vmatpush1.bf16.msra.mxu1 %v7282_v35  ;;  %v7474_v35 = vld [vmem:[#allocation4 + $0x10] sm:$0xff] }
 0x110   : > { %1228 = vmatprep.subr.bf16.mxu0 %v7449_v26  ;;  %1644 = vmatprep.subr.bf16.mxu1 %v7287_v37  ;;  %v7478_v37 = vld [vmem:[%s7160_s28 + $0x1c8] ss:$12 sps:$4 sm:$0xff]   ;;  %v7482_v44 = vcombine.high %v7474_v35, %v7474_v35  ;;  %v5269_v60 = vcombine.low %v7474_v35, %v7474_v35  ;;  %v6339_v35 = vld [vmem:[%s7160_s28 + $0x170] ss:$12 sps:$4 sm:$0xff]  }
 0x111   : > { %1258 = vmatprep.mubr.bf16.mxu0 %v5219_v56  ;;  %v7508_v56 = vld [vmem:[%s7160_s28 + $0x214] ss:$12 sps:$4 sm:$0xff]  }
 0x112   : > { %1674 = vmatprep.mubr.bf16.mxu1 %v7482_v44 }
 0x113   : > { %1229 = vmatpush1.bf16.msra.mxu0 %v7456_v21  ;;  %1645 = vmatpush1.bf16.msra.mxu1 %v7291_v39  ;;  %v7487_v39 = vld [vmem:[%s7160_s28 + $0x1e4] ss:$12 sps:$4 sm:$0xff]  }
 0x114   : > { %1230 = vmatprep.subr.bf16.mxu0 %v7461_v23  ;;  %1646 = vmatprep.subr.bf16.mxu1 %v7296_v41  ;;  %v7493_v41 = vld [vmem:[%s7160_s28 + $0x1e0] ss:$12 sps:$4 sm:$0xff]  }
 0x117   : > { %1231 = vmatpush1.bf16.msra.mxu0 %v7466_v25  ;;  %1647 = vmatpush1.bf16.msra.mxu1 %v7301_v43  ;;  %v7498_v43 = vld [vmem:[%s7160_s28 + $0x1fc] ss:$12 sps:$4 sm:$0xff]  }
 0x118   : > { %1232 = vmatprep.subr.bf16.mxu0 %v7471_v33  ;;  %1648 = vmatprep.subr.bf16.mxu1 %v7306_v45  ;;  %v7503_v45 = vld [vmem:[%s7160_s28 + $0x1f8] ss:$12 sps:$4 sm:$0xff]  }
 0x11b   : > { %1233 = vmatpush1.bf16.msra.mxu0 %v7478_v37  ;;  %1649 = vmatpush1.bf16.msra.mxu1 %v7311_v47  ;;  %v7513_v47 = vld [vmem:[%s7160_s28 + $0x210] ss:$12 sps:$4 sm:$0xff]  }
 0x11c   : > { %1234 = vmatprep.subr.bf16.mxu0 %v7487_v39  ;;  %1650 = vmatprep.subr.bf16.mxu1 %v7316_v49  ;;  %v7518_v49 = vld [vmem:[%s7160_s28 + $0x22c] ss:$12 sps:$4 sm:$0xff]  }
 0x11f   : > { %1235 = vmatpush1.bf16.msra.mxu0 %v7493_v41  ;;  %1651 = vmatpush1.bf16.msra.mxu1 %v7320_v51  ;;  %v7523_v51 = vld [vmem:[%s7160_s28 + $0x228] ss:$12 sps:$4 sm:$0xff]  }
 0x120   : > { %1236 = vmatprep.subr.bf16.mxu0 %v7498_v43  ;;  %1652 = vmatprep.subr.bf16.mxu1 %v7326_v53  ;;  %v7528_v53 = vld [vmem:[%s7160_s28 + $0x244] ss:$12 sps:$4 sm:$0xff]  }
 0x123   : > { %1237 = vmatpush1.bf16.msra.mxu0 %v7503_v45  ;;  %1653 = vmatpush1.bf16.msra.mxu1 %v7330_v55  ;;  %v7533_v55 = vld [vmem:[%s7160_s28 + $0x240] ss:$12 sps:$4 sm:$0xff]  }
 0x124   : > { %1238 = vmatprep.subr.bf16.mxu0 %v7508_v56  ;;  %1654 = vmatprep.subr.bf16.mxu1 %v7336_v57  ;;  %v7538_v57 = vld [vmem:[%s7160_s28 + $0x25c] ss:$12 sps:$4 sm:$0xff]  }
 0x127   : > { %1239 = vmatpush1.bf16.msra.mxu0 %v7513_v47  ;;  %1655 = vmatpush1.bf16.msra.mxu1 %v7341_v59  ;;  %v7543_v59 = vld [vmem:[%s7160_s28 + $0x258] ss:$12 sps:$4 sm:$0xff]  }
 0x128   : > { %1240 = vmatprep.subr.bf16.mxu0 %v7518_v49  ;;  %1656 = vmatprep.subr.bf16.mxu1 %v7346_v61  ;;  %v7548_v61 = vld [vmem:[%s7160_s28 + $0x274] ss:$12 sps:$4 sm:$0xff]  }
 0x12b   : > { %1241 = vmatpush1.bf16.msra.mxu0 %v7523_v51  ;;  %1657 = vmatpush1.bf16.msra.mxu1 %v7350_v34  ;;  %v7553_v34 = vld [vmem:[%s7160_s28 + $0x270] ss:$12 sps:$4 sm:$0xff]  }
 0x12c   : > { %1242 = vmatprep.subr.bf16.mxu0 %v7528_v53  ;;  %1658 = vmatprep.subr.bf16.mxu1 %v7356_v40  ;;  %v7558_v40 = vld [vmem:[%s7160_s28 + $0x28c] ss:$12 sps:$4 sm:$0xff]  }
 0x12f   : > { %1243 = vmatpush1.bf16.msra.mxu0 %v7533_v55  ;;  %1659 = vmatpush1.bf16.msra.mxu1 %v7363_v46  ;;  %v7563_v46 = vld [vmem:[%s7160_s28 + $0x288] ss:$12 sps:$4 sm:$0xff]  }
 0x130   : > { %1244 = vmatprep.subr.bf16.mxu0 %v7538_v57  ;;  %1660 = vmatprep.subr.bf16.mxu1 %v7368_v50  ;;  %v7568_v50 = vld [vmem:[%s7160_s28 + $0x2a4] ss:$12 sps:$4 sm:$0xff]  }
 0x133   : > { %1245 = vmatpush1.bf16.msra.mxu0 %v7543_v59  ;;  %1661 = vmatpush1.bf16.msra.mxu1 %v7372_v54  ;;  %v7573_v54 = vld [vmem:[%s7160_s28 + $0x2a0] ss:$12 sps:$4 sm:$0xff]  }
 0x134   : > { %1246 = vmatprep.subr.bf16.mxu0 %v7548_v61  ;;  %1662 = vmatprep.subr.bf16.mxu1 %v7379_v58  ;;  %v7578_v58 = vld [vmem:[%s7160_s28 + $0x2bc] ss:$12 sps:$4 sm:$0xff]  }
 0x137   : > { %1247 = vmatpush1.bf16.msra.mxu0 %v7553_v34  ;;  %1663 = vmatpush1.bf16.msra.mxu1 %v7383_v62  ;;  %v7583_v62 = vld [vmem:[%s7160_s28 + $0x2b8] ss:$12 sps:$4 sm:$0xff]  }
 0x138   : > { %1248 = vmatprep.subr.bf16.mxu0 %v7558_v40  ;;  %1664 = vmatprep.subr.bf16.mxu1 %v7389_v36  ;;  %v7588_v36 = vld [vmem:[%s7160_s28 + $0x2d4] ss:$12 sps:$4 sm:$0xff]  }
 0x13b   : > { %1249 = vmatpush1.bf16.msra.mxu0 %v7563_v46  ;;  %1665 = vmatpush1.bf16.msra.mxu1 %v7394_v42  ;;  %v7593_v42 = vld [vmem:[%s7160_s28 + $0x2d0] ss:$12 sps:$4 sm:$0xff]  }
 0x13c   : > { %1250 = vmatprep.subr.bf16.mxu0 %v7568_v50  ;;  %1666 = vmatprep.subr.bf16.mxu1 %v7399_v52  ;;  %v7598_v52 = vld [vmem:[%s7160_s28 + $0x2ec] ss:$12 sps:$4 sm:$0xff]  }
 0x13f   : > { %1251 = vmatpush1.bf16.msra.mxu0 %v7573_v54  ;;  %1667 = vmatpush1.bf16.msra.mxu1 %v7403_v32  ;;  %v7603_v32 = vld [vmem:[%s7160_s28 + $0x2e8] ss:$12 sps:$4 sm:$0xff]  }
 0x140   : > { %1252 = vmatprep.subr.bf16.mxu0 %v7578_v58  ;;  %1668 = vmatprep.subr.bf16.mxu1 %v7409_v63  ;;  %v6325_v63 = vld [vmem:[%s7160_s28 + $0xc8] ss:$12 sps:$4 sm:$0xff]  }
 0x143   : > { %1253 = vmatpush1.bf16.msra.mxu0 %v7583_v62  ;;  %1669 = vmatpush1.bf16.msra.mxu1 %v7414_v38  ;;  %v6326_v38 = vld [vmem:[%s7160_s28 + $0x8] ss:$12 sps:$4 sm:$0xff]  }
 0x144   : > { %1254 = vmatprep.subr.bf16.mxu0 %v7588_v36  ;;  %1670 = vmatprep.subr.bf16.mxu1 %v7419_v48  ;;  %v7613_v48 = vld [vmem:[#allocation4 + $0x18] sm:$0xff] }
 0x147   : > { %1255 = vmatpush1.bf16.msra.mxu0 %v7593_v42  ;;  %1671 = vmatpush1.bf16.msra.mxu1 %v7424_v28  ;;  %v6327_v28 = vld [vmem:[%s7160_s28 + $0xe0] ss:$12 sps:$4 sm:$0xff]  }
 0x148   : > { %1256 = vmatprep.subr.bf16.mxu0 %v7598_v52  ;;  %1672 = vmatprep.subr.bf16.mxu1 %v7429_v30  ;;  %v5321_v30 = vcombine.high %v7613_v48, %v7613_v48 }
 0x14b   : > { %1257 = vmatpush1.bf16.msra.mxu0 %v7603_v32  ;;  %1673 = vmatpush1.bf16.msra.mxu1 %v7434_v29  ;;  %v6329_v29 = vld [vmem:[%s7160_s28 + $0xf8] ss:$12 sps:$4 sm:$0xff]  }
 0x14c   : > { %5694 = vmatprep.subr.bf16.mxu0 %v6325_v63  ;;  %2055 = vmatprep.subr.bf16.mxu1 %v7439_v24  ;;  %v6330_v24 = vld [vmem:[%s7160_s28 + $0x38] ss:$12 sps:$4 sm:$0xff]  }
 0x14d   : > { %v7699_v63 = vld [vmem:[%s7160_s28 + $0x18] ss:$12 sps:$4 sm:$0xff]  }
 0x14e   : > { %1259 = vmatmul.mubr.bf16.vlgmr.msra.gmra.mrb[0].mxu0 %v7442_v31  ;;  %1675 = vmatmul.mubr.bf16.vlgmr.msra.gmra.mrb[8].mxu1 %v5269_v60  ;;  %v6331_v31 = vld [vmem:[%s7160_s28 + $0x110] ss:$12 sps:$4 sm:$0xff]  }
 0x14f   : > { %5695 = vmatpush3.bf16.msra.mxu0 %v6326_v38  ;;  %2056 = vmatpush1.bf16.msra.mxu1 %v7445_v27  ;;  %v6332_v27 = vld [vmem:[%s7160_s28 + $0x50] ss:$12 sps:$4 sm:$0xff]  }
 0x150   : > { %5696 = vmatprep.subr.bf16.mxu0 %v6327_v28  ;;  %2057 = vmatprep.subr.bf16.mxu1 %v7449_v26  ;;  %v6333_v26 = vld [vmem:[%s7160_s28 + $0x128] ss:$12 sps:$4 sm:$0xff]   ;;  %v6372_v28 = vld [vmem:[%s7160_s28 + $0xf8] ss:$12 sps:$4 sm:$0xff]  }
 0x151   : > { %1715 = vmatprep.mubr.bf16.mxu0 %v7482_v44  ;;  %2087 = vmatprep.mubr.bf16.mxu1 %v5321_v30  ;;  %v6341_v44 = vld [vmem:[%s7160_s28 + $0x248] ss:$12 sps:$4 sm:$0xff]  }
 0x153   : > { %5697 = vmatpush3.bf16.msra.mxu0 %v6328_v17  ;;  %2058 = vmatpush1.bf16.msra.mxu1 %v7456_v21  ;;  %v6334_v17 = vld [vmem:[%s7160_s28 + $0x68] ss:$12 sps:$4 sm:$0xff]   ;;  %v6335_v21 = vld [vmem:[%s7160_s28 + $0x140] ss:$12 sps:$4 sm:$0xff]  }
 0x154   : > { %5698 = vmatprep.subr.bf16.mxu0 %v6329_v29  ;;  %2059 = vmatprep.subr.bf16.mxu1 %v7461_v23  ;;  %v6336_v23 = vld [vmem:[%s7160_s28 + $0x80] ss:$12 sps:$4 sm:$0xff]  }
 0x155   : > { %v7718_v29 = vld [vmem:[%s7160_s28 + $0x4c] ss:$12 sps:$4 sm:$0xff]  }
 0x157   : > { %5699 = vmatpush3.bf16.msra.mxu0 %v6330_v24  ;;  %2060 = vmatpush1.bf16.msra.mxu1 %v7466_v25  ;;  %v6337_v25 = vld [vmem:[%s7160_s28 + $0x158] ss:$12 sps:$4 sm:$0xff]   ;;  %v7721_v24 = vld [vmem:[%s7160_s28 + $0x48] ss:$12 sps:$4 sm:$0xff]  }
 0x158   : > { %5700 = vmatprep.subr.bf16.mxu0 %v6331_v31  ;;  %2061 = vmatprep.subr.bf16.mxu1 %v7471_v33  ;;  %v6338_v33 = vld [vmem:[%s7160_s28 + $0x98] ss:$12 sps:$4 sm:$0xff]   ;;  %v6377_v31 = vld [vmem:[%s7160_s28 + $0x110] ss:$12 sps:$4 sm:$0xff]  }
 0x15b   : > { %5701 = vmatpush3.bf16.msra.mxu0 %v6332_v27  ;;  %2062 = vmatpush1.bf16.msra.mxu1 %v7478_v37  ;;  %v6340_v37 = vld [vmem:[%s7160_s28 + $0xb0] ss:$12 sps:$4 sm:$0xff]  }
 0x15c   : > { %5702 = vmatprep.subr.bf16.mxu0 %v6333_v26  ;;  %2063 = vmatprep.subr.bf16.mxu1 %v7487_v39  ;;  %v6342_v39 = vld [vmem:[%s7160_s28 + $0x188] ss:$12 sps:$4 sm:$0xff]   ;;  %v6378_v27 = vld [vmem:[%s7160_s28 + $0x50] ss:$12 sps:$4 sm:$0xff]  }
 0x15d   : > { %v7728_v26 = vld [vmem:[%s7160_s28 + $0x64] ss:$12 sps:$4 sm:$0xff]  }
 0x15f   : > { %5703 = vmatpush3.bf16.msra.mxu0 %v6334_v17  ;;  %2064 = vmatpush1.bf16.msra.mxu1 %v7493_v41  ;;  %v6343_v41 = vld [vmem:[%s7160_s28 + $0x260] ss:$12 sps:$4 sm:$0xff]   ;;  %v6382_v17 = vld [vmem:[%s7160_s28 + $0x128] ss:$12 sps:$4 sm:$0xff]  }
 0x160   : > { %5704 = vmatprep.subr.bf16.mxu0 %v6335_v21  ;;  %2065 = vmatprep.subr.bf16.mxu1 %v7498_v43  ;;  %v6344_v43 = vld [vmem:[%s7160_s28 + $0x1a0] ss:$12 sps:$4 sm:$0xff]  }
 0x161   : > { %v7733_v21 = vld [vmem:[%s7160_s28 + $0x60] ss:$12 sps:$4 sm:$0xff]  }
 0x163   : > { %5705 = vmatpush3.bf16.msra.mxu0 %v6336_v23  ;;  %2066 = vmatpush1.bf16.msra.mxu1 %v7503_v45  ;;  %v6345_v45 = vld [vmem:[%s7160_s28 + $0x278] ss:$12 sps:$4 sm:$0xff]   ;;  %v6383_v23 = vld [vmem:[%s7160_s28 + $0x68] ss:$12 sps:$4 sm:$0xff]  }
 0x164   : > { %5706 = vmatprep.subr.bf16.mxu0 %v6337_v25  ;;  %2067 = vmatprep.subr.bf16.mxu1 %v7508_v56  ;;  %v6346_v56 = vld [vmem:[%s7160_s28 + $0x1b8] ss:$12 sps:$4 sm:$0xff]   ;;  %v7738_v25 = vld [vmem:[%s7160_s28 + $0x7c] ss:$12 sps:$4 sm:$0xff]  }
 0x167   : > { %5707 = vmatpush3.bf16.msra.mxu0 %v6338_v33  ;;  %2068 = vmatpush1.bf16.msra.mxu1 %v7513_v47  ;;  %v6347_v47 = vld [vmem:[%s7160_s28 + $0x290] ss:$12 sps:$4 sm:$0xff]   ;;  %v6387_v33 = vld [vmem:[%s7160_s28 + $0x140] ss:$12 sps:$4 sm:$0xff]  }
 0x168   : > { %5708 = vmatprep.subr.bf16.mxu0 %v6339_v35  ;;  %2069 = vmatprep.subr.bf16.mxu1 %v7518_v49  ;;  %v6348_v49 = vld [vmem:[%s7160_s28 + $0x1d0] ss:$12 sps:$4 sm:$0xff]   ;;  %v7743_v35 = vld [vmem:[%s7160_s28 + $0x78] ss:$12 sps:$4 sm:$0xff]  }
 0x16b   : > { %5709 = vmatpush3.bf16.msra.mxu0 %v6340_v37  ;;  %2070 = vmatpush1.bf16.msra.mxu1 %v7523_v51  ;;  %v6349_v51 = vld [vmem:[%s7160_s28 + $0x2a8] ss:$12 sps:$4 sm:$0xff]   ;;  %v6388_v37 = vld [vmem:[%s7160_s28 + $0x80] ss:$12 sps:$4 sm:$0xff]  }
 0x16c   : > { %5716 = vmatprep.subr.bf16.mxu0 %v6341_v44  ;;  %2071 = vmatprep.subr.bf16.mxu1 %v7528_v53  ;;  %v6350_v53 = vld [vmem:[%s7160_s28 + $0x1e8] ss:$12 sps:$4 sm:$0xff]  }
 0x16d   : > { %v7748_v44 = vld [vmem:[%s7160_s28 + $0x94] ss:$12 sps:$4 sm:$0xff]  }
 0x16e   : > { %1716 = vmatmul.mubr.bf16.vlgmr.msra.gmra.mrb[4].mxu0 %v5269_v60  ;;  %v6368_v60 = vld [vmem:[%s7160_s28 + $0x20] ss:$12 sps:$4 sm:$0xff]  }
 0x16f   : > { %5717 = vmatpush3.bf16.msra.mxu0 %v6342_v39  ;;  %2128 = vmatprep.mubr.bf16.mxu0 %v5321_v30  ;;  %v6373_v30 = vld [vmem:[%s7160_s28 + $0x38] ss:$12 sps:$4 sm:$0xff]  }
 0x170   : > { %2072 = vmatpush1.bf16.msra.mxu1 %v7533_v55  ;;  %5718 = vmatprep.subr.bf16.mxu0 %v6343_v41  ;;  %v6351_v55 = vld [vmem:[%s7160_s28 + $0x2c0] ss:$12 sps:$4 sm:$0xff]   ;;  %v6392_v39 = vld [vmem:[%s7160_s28 + $0x158] ss:$12 sps:$4 sm:$0xff]   ;;  %v7753_v41 = vld [vmem:[%s7160_s28 + $0x90] ss:$12 sps:$4 sm:$0xff]  }
 0x171   : > { %2073 = vmatprep.subr.bf16.mxu1 %v7538_v57  ;;  %v6352_v57 = vld [vmem:[%s7160_s28 + $0x200] ss:$12 sps:$4 sm:$0xff]  }
 0x173   : > { %5719 = vmatpush3.bf16.msra.mxu0 %v6344_v43  ;;  %v6393_v43 = vld [vmem:[%s7160_s28 + $0x98] ss:$12 sps:$4 sm:$0xff]  }
 0x174   : > { %2074 = vmatpush1.bf16.msra.mxu1 %v7543_v59  ;;  %5720 = vmatprep.subr.bf16.mxu0 %v6345_v45  ;;  %v6353_v59 = vld [vmem:[%s7160_s28 + $0x2d8] ss:$12 sps:$4 sm:$0xff]  }
 0x175   : > { %2075 = vmatprep.subr.bf16.mxu1 %v7548_v61  ;;  %v6354_v61 = vld [vmem:[%s7160_s28 + $0x218] ss:$12 sps:$4 sm:$0xff]  }
 0x176   : > { %v7758_v45 = vld [vmem:[%s7160_s28 + $0xac] ss:$12 sps:$4 sm:$0xff]  }
 0x177   : > { %5721 = vmatpush3.bf16.msra.mxu0 %v6346_v56  ;;  %v6397_v56 = vld [vmem:[%s7160_s28 + $0x170] ss:$12 sps:$4 sm:$0xff]  }
 0x178   : > { %2076 = vmatpush1.bf16.msra.mxu1 %v7553_v34  ;;  %5722 = vmatprep.subr.bf16.mxu0 %v6347_v47  ;;  %v6355_v34 = vld [vmem:[%s7160_s28 + $0x2f0] ss:$12 sps:$4 sm:$0xff]   ;;  %v7763_v47 = vld [vmem:[%s7160_s28 + $0xa8] ss:$12 sps:$4 sm:$0xff]  }
 0x179   : > { %2077 = vmatprep.subr.bf16.mxu1 %v7558_v40  ;;  %v6356_v40 = vld [vmem:[%s7160_s28 + $0x230] ss:$12 sps:$4 sm:$0xff]  }
 0x17b   : > { %5723 = vmatpush3.bf16.msra.mxu0 %v6348_v49  ;;  %v6398_v49 = vld [vmem:[%s7160_s28 + $0xb0] ss:$12 sps:$4 sm:$0xff]  }
 0x17c   : > { %2078 = vmatpush1.bf16.msra.mxu1 %v7563_v46  ;;  %5724 = vmatprep.subr.bf16.mxu0 %v6349_v51  ;;  %v7680_v46 = vld [vmem:[%s7160_s28 + $0x4] ss:$12 sps:$4 sm:$0xff]  }
 0x17d   : > { %2079 = vmatprep.subr.bf16.mxu1 %v7568_v50  ;;  %v6362_v50 = vld [vmem:[%s7160_s28 + $0xc8] ss:$12 sps:$4 sm:$0xff]   ;;  %v7768_v51 = vld [vmem:[%s7160_s28 + $0xc4] ss:$12 sps:$4 sm:$0xff]  }
 0x17f   : > { %5725 = vmatpush3.bf16.msra.mxu0 %v6350_v53  ;;  %v6404_v53 = vld [vmem:[%s7160_s28 + $0x248] ss:$12 sps:$4 sm:$0xff]  }
 0x180   : > { %2080 = vmatpush1.bf16.msra.mxu1 %v7573_v54  ;;  %5726 = vmatprep.subr.bf16.mxu0 %v6351_v55  ;;  %v7684_v54 = vld [vmem:[#allocation4 + $0x20] sm:$0xff]  ;;  %v7771_v55 = vld [vmem:[#allocation4 + $0x28] sm:$0xff] }
 0x181   : > { %2081 = vmatprep.subr.bf16.mxu1 %v7578_v58  ;;  %v7688_v58 = vld [vmem:[%s7160_s28] ss:$12 sps:$4 sm:$0xff]   ;;  %v5372_v38 = vcombine.high %v7684_v54, %v7684_v54 }
 0x183   : > { %5727 = vmatpush3.bf16.msra.mxu0 %v6352_v57  ;;  %v7776_v57 = vcombine.low %v7684_v54, %v7684_v54  ;;  %v7794_v54 = vld [vmem:[%s7160_s28 + $0xd8] ss:$12 sps:$4 sm:$0xff]  }
 0x184   : > { %2082 = vmatpush1.bf16.msra.mxu1 %v7583_v62  ;;  %5728 = vmatprep.subr.bf16.mxu0 %v6353_v59  ;;  %v5320_v62 = vcombine.low %v7613_v48, %v7613_v48  ;;  %v7711_v48 = vld [vmem:[%s7160_s28 + $0x30] ss:$12 sps:$4 sm:$0xff]   ;;  %v7779_v59 = vld [vmem:[%s7160_s28 + $0xc0] ss:$12 sps:$4 sm:$0xff]  }
 0x185   : > { %2083 = vmatprep.subr.bf16.mxu1 %v7588_v36  ;;  %v6363_v36 = vld [vmem:[%s7160_s28 + $0x8] ss:$12 sps:$4 sm:$0xff]  }
 0x187   : > { %5729 = vmatpush3.bf16.msra.mxu0 %v6354_v61  ;;  %v6405_v61 = vld [vmem:[%s7160_s28 + $0x188] ss:$12 sps:$4 sm:$0xff]  }
 0x188   : > { %2084 = vmatpush1.bf16.msra.mxu1 %v7593_v42  ;;  %5730 = vmatprep.subr.bf16.mxu0 %v6355_v34  ;;  %v7696_v42 = vld [vmem:[%s7160_s28 + $0x1c] ss:$12 sps:$4 sm:$0xff]  }
 0x189   : > { %2085 = vmatprep.subr.bf16.mxu1 %v7598_v52  ;;  %v6367_v52 = vld [vmem:[%s7160_s28 + $0xe0] ss:$12 sps:$4 sm:$0xff]   ;;  %v7784_v34 = vld [vmem:[%s7160_s28 + $0xdc] ss:$12 sps:$4 sm:$0xff]  }
 0x18b   : > { %5731 = vmatpush3.bf16.msra.mxu0 %v6356_v40  ;;  %v6409_v40 = vld [vmem:[%s7160_s28 + $0x260] ss:$12 sps:$4 sm:$0xff]  }
 0x18c   : > { %2086 = vmatpush1.bf16.msra.mxu1 %v7603_v32  ;;  %2472 = vmatprep.subr.bf16.mxu0 %v7680_v46  ;;  %v7708_v32 = vld [vmem:[%s7160_s28 + $0x34] ss:$12 sps:$4 sm:$0xff]  }
 0x18d   : > { %5738 = vmatprep.subr.bf16.mxu1 %v6362_v50  ;;  %v7789_v50 = vcombine.high %v7771_v55, %v7771_v55 }
 0x18e   : > { %2129 = vmatmul.mubr.bf16.vlgmr.msra.gmra.mrb[8].mxu0 %v5320_v62 }
 0x18f   : > { %2088 = vmatmul.mubr.bf16.vlgmr.msra.gmra.mrb[8].mxu1 %v5320_v62  ;;  %2473 = vmatpush1.bf16.msra.mxu0 %v7688_v58  ;;  %v6410_v62 = vld [vmem:[%s7160_s28 + $0x1a0] ss:$12 sps:$4 sm:$0xff]  }
 0x190   : > { %5739 = vmatpush3.bf16.msra.mxu1 %v6363_v36  ;;  %2474 = vmatprep.subr.bf16.mxu0 %v7696_v42  ;;  %v7799_v36 = vld [vmem:[%s7160_s28 + $0xf4] ss:$12 sps:$4 sm:$0xff]  }
 0x191   : > { %5740 = vmatprep.subr.bf16.mxu1 %v6367_v52  ;;  %2545 = vmatprep.mubr.bf16.mxu1 %v5372_v38  ;;  %v6414_v52 = vld [vmem:[%s7160_s28 + $0x278] ss:$12 sps:$4 sm:$0xff]  }
 0x192   : > { %2504 = vmatprep.mubr.bf16.mxu0 %v5372_v38  ;;  %v7805_v38 = vld [vmem:[%s7160_s28 + $0xf0] ss:$12 sps:$4 sm:$0xff]  }
 0x193   : > { %2475 = vmatpush1.bf16.msra.mxu0 %v7699_v63 }
 0x194   : > { %5741 = vmatpush3.bf16.msra.mxu1 %v6368_v60  ;;  %2476 = vmatprep.subr.bf16.mxu0 %v7708_v32  ;;  %v6415_v60 = vld [vmem:[%s7160_s28 + $0x1b8] ss:$12 sps:$4 sm:$0xff]  }
 0x195   : > { %5742 = vmatprep.subr.bf16.mxu1 %v6372_v28  ;;  %v7810_v28 = vld [vmem:[%s7160_s28 + $0x10c] ss:$12 sps:$4 sm:$0xff]  }
 0x197   : > { %2477 = vmatpush1.bf16.msra.mxu0 %v7711_v48 }
 0x198   : > { %5743 = vmatpush3.bf16.msra.mxu1 %v6373_v30  ;;  %2478 = vmatprep.subr.bf16.mxu0 %v7718_v29  ;;  %v6419_v30 = vld [vmem:[%s7160_s28 + $0x290] ss:$12 sps:$4 sm:$0xff]  }
 0x199   : > { %5744 = vmatprep.subr.bf16.mxu1 %v6377_v31  ;;  %v7815_v31 = vld [vmem:[%s7160_s28 + $0x108] ss:$12 sps:$4 sm:$0xff]  }
 0x19b   : > { %2479 = vmatpush1.bf16.msra.mxu0 %v7721_v24 }
 0x19c   : > { %5745 = vmatpush3.bf16.msra.mxu1 %v6378_v27  ;;  %2480 = vmatprep.subr.bf16.mxu0 %v7728_v26  ;;  %v6420_v27 = vld [vmem:[%s7160_s28 + $0x1d0] ss:$12 sps:$4 sm:$0xff]  }
 0x19d   : > { %5746 = vmatprep.subr.bf16.mxu1 %v6382_v17  ;;  %v7820_v17 = vld [vmem:[%s7160_s28 + $0x124] ss:$12 sps:$4 sm:$0xff]  }
 0x19f   : > { %2481 = vmatpush1.bf16.msra.mxu0 %v7733_v21 }
 0x1a0   : > { %5747 = vmatpush3.bf16.msra.mxu1 %v6383_v23  ;;  %2482 = vmatprep.subr.bf16.mxu0 %v7738_v25  ;;  %v6424_v23 = vld [vmem:[%s7160_s28 + $0x2a8] ss:$12 sps:$4 sm:$0xff]  }
 0x1a1   : > { %5748 = vmatprep.subr.bf16.mxu1 %v6387_v33  ;;  %v7825_v33 = vld [vmem:[%s7160_s28 + $0x120] ss:$12 sps:$4 sm:$0xff]  }
 0x1a3   : > { %2483 = vmatpush1.bf16.msra.mxu0 %v7743_v35 }
 0x1a4   : > { %5749 = vmatpush3.bf16.msra.mxu1 %v6388_v37  ;;  %2484 = vmatprep.subr.bf16.mxu0 %v7748_v44  ;;  %v6425_v37 = vld [vmem:[%s7160_s28 + $0x1e8] ss:$12 sps:$4 sm:$0xff]  }
 0x1a5   : > { %5750 = vmatprep.subr.bf16.mxu1 %v6392_v39  ;;  %v7830_v39 = vld [vmem:[%s7160_s28 + $0x13c] ss:$12 sps:$4 sm:$0xff]  }
 0x1a7   : > { %2485 = vmatpush1.bf16.msra.mxu0 %v7753_v41 }
 0x1a8   : > { %5751 = vmatpush3.bf16.msra.mxu1 %v6393_v43  ;;  %2486 = vmatprep.subr.bf16.mxu0 %v7758_v45  ;;  %v6429_v43 = vld [vmem:[%s7160_s28 + $0x2c0] ss:$12 sps:$4 sm:$0xff]  }
 0x1a9   : > { %5752 = vmatprep.subr.bf16.mxu1 %v6397_v56  ;;  %v7835_v56 = vld [vmem:[%s7160_s28 + $0x138] ss:$12 sps:$4 sm:$0xff]  }
 0x1ab   : > { %2487 = vmatpush1.bf16.msra.mxu0 %v7763_v47 }
 0x1ac   : > { %5753 = vmatpush3.bf16.msra.mxu1 %v6398_v49  ;;  %2488 = vmatprep.subr.bf16.mxu0 %v7768_v51  ;;  %v6430_v49 = vld [vmem:[%s7160_s28 + $0x200] ss:$12 sps:$4 sm:$0xff]  }
 0x1ad   : > { %5760 = vmatprep.subr.bf16.mxu1 %v6404_v53  ;;  %v7840_v53 = vld [vmem:[%s7160_s28 + $0x154] ss:$12 sps:$4 sm:$0xff]  }
 0x1af   : > { %2546 = vmatmul.mubr.bf16.vlgmr.msra.gmra.mrb[12].mxu1 %v7776_v57  ;;  %2489 = vmatpush1.bf16.msra.mxu0 %v7779_v59 }
 0x1b0   : > { %5761 = vmatpush3.bf16.msra.mxu1 %v6405_v61  ;;  %2490 = vmatprep.subr.bf16.mxu0 %v7784_v34  ;;  %v6434_v61 = vld [vmem:[%s7160_s28 + $0x2d8] ss:$12 sps:$4 sm:$0xff]  }
 0x1b1   : > { %5762 = vmatprep.subr.bf16.mxu1 %v6409_v40  ;;  %2958 = vmatprep.mubr.bf16.mxu1 %v7789_v50 }
 0x1b3   : > { %2491 = vmatpush1.bf16.msra.mxu0 %v7794_v54 }
 0x1b4   : > { %5763 = vmatpush3.bf16.msra.mxu1 %v6410_v62  ;;  %2492 = vmatprep.subr.bf16.mxu0 %v7799_v36 }
 0x1b5   : > { %5764 = vmatprep.subr.bf16.mxu1 %v6414_v52  ;;  %v7845_v52 = vld [vmem:[%s7160_s28 + $0x150] ss:$12 sps:$4 sm:$0xff]  }
 0x1b7   : > { %2493 = vmatpush1.bf16.msra.mxu0 %v7805_v38 }
 0x1b8   : > { %5765 = vmatpush3.bf16.msra.mxu1 %v6415_v60  ;;  %2494 = vmatprep.subr.bf16.mxu0 %v7810_v28 }
 0x1b9   : > { %5766 = vmatprep.subr.bf16.mxu1 %v6419_v30 }
 0x1bb   : > { %2495 = vmatpush1.bf16.msra.mxu0 %v7815_v31 }
 0x1bc   : > { %5767 = vmatpush3.bf16.msra.mxu1 %v6420_v27  ;;  %2496 = vmatprep.subr.bf16.mxu0 %v7820_v17  ;;  %v6435_v27 = vld [vmem:[%s7160_s28 + $0x218] ss:$12 sps:$4 sm:$0xff]  }
 0x1bd   : > { %5768 = vmatprep.subr.bf16.mxu1 %v6424_v23  ;;  %v7852_v23 = vld [vmem:[%s7160_s28 + $0x16c] ss:$12 sps:$4 sm:$0xff]  }
 0x1bf   : > { %2497 = vmatpush1.bf16.msra.mxu0 %v7825_v33 }
 0x1c0   : > { %5769 = vmatpush3.bf16.msra.mxu1 %v6425_v37  ;;  %2498 = vmatprep.subr.bf16.mxu0 %v7830_v39 }
 0x1c1   : > { %5770 = vmatprep.subr.bf16.mxu1 %v6429_v43  ;;  %v5666_v40 = vpop.f32.mrb[0].mxu1  ;;  %v6439_v43 = vld [vmem:[%s7160_s28 + $0x2f0] ss:$12 sps:$4 sm:$0xff]  }
 0x1c2   : > { %v5667_v62 = vpop.f32.mrb[1].mxu1 }
 0x1c3   : > { %2499 = vmatpush1.bf16.msra.mxu0 %v7835_v56  ;;  %v7847_v60 = vadd.f32 %v5667_v62, %v5666_v40  ;;  %v5669_v30 = vpop.f32.mrb[2].mxu1  ;;  %v6440_v40 = vld [vmem:[%s7160_s28 + $0x230] ss:$12 sps:$4 sm:$0xff]   ;;  %v7867_v62 = vcombine.low %v7771_v55, %v7771_v55  ;;  %v7887_v55 = vld [vmem:[%s7160_s28 + $0x198] ss:$12 sps:$4 sm:$0xff]  }
 0x1c4   : > { %5771 = vmatpush3.bf16.msra.mxu1 %v6430_v49  ;;  %2500 = vmatprep.subr.bf16.mxu0 %v7840_v53  ;;  %v5670_v37 = vpop.f32.mrb[3].mxu1  ;;  %v7862_v49 = vld [vmem:[%s7160_s28 + $0x184] ss:$12 sps:$4 sm:$0xff]  }
 0x1c5   : > { %5772 = vmatprep.subr.bf16.mxu1 %v6434_v61  ;;  %v7870_v61 = vld [vmem:[%s7160_s28 + $0x180] ss:$12 sps:$4 sm:$0xff]   ;;  %v7872_v30 = vld [vmem:[#allocation4 + $0x30] sm:$0xff] }
 0x1c6   : > { %v7882_v37 = vcombine.high %v7872_v30, %v7872_v30 }
 0x1c7   : > { %2501 = vmatpush1.bf16.msra.mxu0 %v7845_v52 }
 0x1c8   : > { %5773 = vmatpush3.bf16.msra.mxu1 %v6435_v27  ;;  %2502 = vmatprep.subr.bf16.mxu0 %v7852_v23  ;;  %v7876_v27 = vld [vmem:[%s7160_s28 + $0x19c] ss:$12 sps:$4 sm:$0xff]  }
 0x1c9   : > { %5774 = vmatprep.subr.bf16.mxu1 %v6439_v43  ;;  %v7892_v43 = vld [vmem:[%s7160_s28 + $0x1b4] ss:$12 sps:$4 sm:$0xff]  }
 0x1cb   : > { %2503 = vmatpush1.bf16.msra.mxu0 %v7857_v19 }
 0x1cc   : > { %5775 = vmatpush3.bf16.msra.mxu1 %v6440_v40  ;;  %2885 = vmatprep.subr.bf16.mxu0 %v7862_v49  ;;  %v7921_v40 = vld [vmem:[%s7160_s28 + $0x1e0] ss:$12 sps:$4 sm:$0xff]  }
 0x1cd   : > { %3302 = vmatprep.subr.bf16.mxu1 %v7680_v46  ;;  %v7899_v46 = vld [vmem:[%s7160_s28 + $0x1b0] ss:$12 sps:$4 sm:$0xff]  }
 0x1ce   : > { %2505 = vmatmul.mubr.bf16.vlgmr.msra.gmra.mrb[12].mxu0 %v7776_v57  ;;  %v879_v57 = vlaneseq }
 0x1cf   : > { %2959 = vmatmul.mubr.bf16.vlgmr.msra.gmra.mrb[16].mxu1 %v7867_v62  ;;  %2886 = vmatpush1.bf16.msra.mxu0 %v7870_v61 }
 0x1d0   : > { %3303 = vmatpush1.bf16.msra.mxu1 %v7688_v58  ;;  %2887 = vmatprep.subr.bf16.mxu0 %v7876_v27  ;;  %v7904_v58 = vld [vmem:[%s7160_s28 + $0x1cc] ss:$12 sps:$4 sm:$0xff]  }
 0x1d1   : > { %3304 = vmatprep.subr.bf16.mxu1 %v7696_v42  ;;  %2917 = vmatprep.mubr.bf16.mxu0 %v7789_v50  ;;  %v7909_v42 = vld [vmem:[%s7160_s28 + $0x1c8] ss:$12 sps:$4 sm:$0xff]   ;;  %v7911_v50 = vshrl.u32 %v879_v57, 7 }
 0x1d2   : > { %3334 = vmatprep.mubr.bf16.mxu1 %v7882_v37  ;;  %v7927_v57 = vld [vmem:[%s7160_s28 + $0x1fc] ss:$12 sps:$4 sm:$0xff]  }
 0x1d3   : > { %2888 = vmatpush1.bf16.msra.mxu0 %v7887_v55 }
 0x1d4   : > { %3305 = vmatpush1.bf16.msra.mxu1 %v7699_v63  ;;  %2889 = vmatprep.subr.bf16.mxu0 %v7892_v43  ;;  %v7916_v63 = vld [vmem:[%s7160_s28 + $0x1e4] ss:$12 sps:$4 sm:$0xff]  }
 0x1d5   : > { %3306 = vmatprep.subr.bf16.mxu1 %v7708_v32  ;;  %v889_v32 = vsub.s32 2, %v7911_v50 }
 0x1d7   : > { %2890 = vmatpush1.bf16.msra.mxu0 %v7899_v46 }
 0x1d8   : > { %3307 = vmatpush1.bf16.msra.mxu1 %v7711_v48  ;;  %2891 = vmatprep.subr.bf16.mxu0 %v7904_v58  ;;  %v7930_v48 = vld [vmem:[%s7170_s11] sm:$0x7] }
 0x1d9   : > { %3308 = vmatprep.subr.bf16.mxu1 %v7718_v29  ;;  %v7935_v29 = vld [vmem:[%s7160_s28 + $0x1f8] ss:$12 sps:$4 sm:$0xff]   ;;  %v7938_v20 = vrot.slane %v7930_v48, %v889_v32 }
 0x1db   : > { %2892 = vmatpush1.bf16.msra.mxu0 %v7909_v42  ;;  %v896_v32 = vadd.f32 %v7847_v60, %v7938_v20  ;;  %v6498_v60 = vld [vmem:[%s7160_s28 + $0x38] ss:$12 sps:$4 sm:$0xff]  }
 0x1dc   : > { %3309 = vmatpush1.bf16.msra.mxu1 %v7721_v24  ;;  %2893 = vmatprep.subr.bf16.mxu0 %v7916_v63  ;;  %v7943_v24 = vld [vmem:[%s7160_s28 + $0x214] ss:$12 sps:$4 sm:$0xff]  }
 0x1dd   : > { %3310 = vmatprep.subr.bf16.mxu1 %v7728_v26  ;;  %v7948_v26 = vld [vmem:[%s7160_s28 + $0x210] ss:$12 sps:$4 sm:$0xff]  }
 0x1df   : > { %2894 = vmatpush1.bf16.msra.mxu0 %v7921_v40 }
 0x1e0   : > { %3311 = vmatpush1.bf16.msra.mxu1 %v7733_v21  ;;  %2895 = vmatprep.subr.bf16.mxu0 %v7927_v57 }
 0x1e1   : > { %3312 = vmatprep.subr.bf16.mxu1 %v7738_v25  ;;  %v5688_v22 = vpop.f32.mrb[4].mxu1 }
 0x1e2   : > { %v5689_v13 = vpop.f32.mrb[5].mxu1 }
 0x1e3   : > { %2896 = vmatpush1.bf16.msra.mxu0 %v7935_v29  ;;  %v5690_v15 = vadd.f32 %v5689_v13, %v5688_v22  ;;  %v5691_v21 = vpop.f32.mrb[6].mxu1  ;;  %v7965_v13 = vld [vmem:[%s7160_s28 + $0x244] ss:$12 sps:$4 sm:$0xff]   ;;  %v7970_v22 = vld [vmem:[%s7160_s28 + $0x240] ss:$12 sps:$4 sm:$0xff]  }
 0x1e4   : > { %3313 = vmatpush1.bf16.msra.mxu1 %v7743_v35  ;;  %2897 = vmatprep.subr.bf16.mxu0 %v7943_v24  ;;  %v5692_v25 = vpop.f32.mrb[7].mxu1  ;;  %v7985_v35 = vld [vmem:[%s7160_s28 + $0x274] ss:$12 sps:$4 sm:$0xff]  }
 0x1e5   : > { %3314 = vmatprep.subr.bf16.mxu1 %v7748_v44  ;;  %v1309_v18 = vadd.f32 %v5690_v15, %v896_v32  ;;  %v7975_v15 = vld [vmem:[%s7160_s28 + $0x25c] ss:$12 sps:$4 sm:$0xff]  }
 0x1e6   : > { %v7990_v44 = vld [vmem:[%s7160_s28 + $0x270] ss:$12 sps:$4 sm:$0xff]  }
 0x1e7   : > { %2898 = vmatpush1.bf16.msra.mxu0 %v7948_v26  ;;  %1312 = vst [vmem:[#allocation3 + $0x10] sm:$0xff] %v1309_v18  ;;  %v7980_v18 = vld [vmem:[%s7160_s28 + $0x258] ss:$12 sps:$4 sm:$0xff]   ;;  %v6507_v25 = vld [vmem:[%s7160_s28 + $0x170] ss:$12 sps:$4 sm:$0xff]  }
 0x1e8   : > { %3315 = vmatpush1.bf16.msra.mxu1 %v7753_v41  ;;  %2899 = vmatprep.subr.bf16.mxu0 %v7955_v16  ;;  %v7995_v41 = vld [vmem:[%s7160_s28 + $0x28c] ss:$12 sps:$4 sm:$0xff]  }
 0x1e9   : > { %3316 = vmatprep.subr.bf16.mxu1 %v7758_v45  ;;  %v8000_v45 = vld [vmem:[%s7160_s28 + $0x288] ss:$12 sps:$4 sm:$0xff]  }
 0x1eb   : > { %2900 = vmatpush1.bf16.msra.mxu0 %v7960_v9 }
 0x1ec   : > { %3317 = vmatpush1.bf16.msra.mxu1 %v7763_v47  ;;  %2901 = vmatprep.subr.bf16.mxu0 %v7965_v13  ;;  %v8005_v47 = vld [vmem:[%s7160_s28 + $0x2a4] ss:$12 sps:$4 sm:$0xff]  }
 0x1ed   : > { %3318 = vmatprep.subr.bf16.mxu1 %v7768_v51  ;;  %v8010_v51 = vld [vmem:[%s7160_s28 + $0x2a0] ss:$12 sps:$4 sm:$0xff]  }
 0x1ef   : > { %2902 = vmatpush1.bf16.msra.mxu0 %v7970_v22 }
 0x1f0   : > { %3319 = vmatpush1.bf16.msra.mxu1 %v7779_v59  ;;  %2903 = vmatprep.subr.bf16.mxu0 %v7975_v15  ;;  %v8015_v59 = vld [vmem:[%s7160_s28 + $0x2bc] ss:$12 sps:$4 sm:$0xff]  }
 0x1f1   : > { %3320 = vmatprep.subr.bf16.mxu1 %v7784_v34  ;;  %v8020_v34 = vld [vmem:[%s7160_s28 + $0x2b8] ss:$12 sps:$4 sm:$0xff]  }
 0x1f3   : > { %2904 = vmatpush1.bf16.msra.mxu0 %v7980_v18 }
 0x1f4   : > { %3321 = vmatpush1.bf16.msra.mxu1 %v7794_v54  ;;  %2905 = vmatprep.subr.bf16.mxu0 %v7985_v35  ;;  %v8025_v54 = vld [vmem:[%s7160_s28 + $0x2d4] ss:$12 sps:$4 sm:$0xff]  }
 0x1f5   : > { %3322 = vmatprep.subr.bf16.mxu1 %v7799_v36  ;;  %v8030_v36 = vld [vmem:[%s7160_s28 + $0x2d0] ss:$12 sps:$4 sm:$0xff]  }
 0x1f7   : > { %2906 = vmatpush1.bf16.msra.mxu0 %v7990_v44 }
 0x1f8   : > { %3323 = vmatpush1.bf16.msra.mxu1 %v7805_v38  ;;  %2907 = vmatprep.subr.bf16.mxu0 %v7995_v41  ;;  %v8035_v38 = vld [vmem:[%s7160_s28 + $0x2ec] ss:$12 sps:$4 sm:$0xff]  }
 0x1f9   : > { %3324 = vmatprep.subr.bf16.mxu1 %v7810_v28  ;;  %v8040_v28 = vld [vmem:[%s7160_s28 + $0x2e8] ss:$12 sps:$4 sm:$0xff]  }
 0x1fb   : > { %2908 = vmatpush1.bf16.msra.mxu0 %v8000_v45 }
 0x1fc   : > { %3325 = vmatpush1.bf16.msra.mxu1 %v7815_v31  ;;  %2909 = vmatprep.subr.bf16.mxu0 %v8005_v47  ;;  %v6493_v31 = vld [vmem:[%s7160_s28 + $0xc8] ss:$12 sps:$4 sm:$0xff]  }
 0x1fd   : > { %3326 = vmatprep.subr.bf16.mxu1 %v7820_v17  ;;  %v8049_v17 = vcombine.low %v7872_v30, %v7872_v30  ;;  %v6502_v30 = vld [vmem:[%s7160_s28 + $0x68] ss:$12 sps:$4 sm:$0xff]  }
 0x1ff   : > { %2910 = vmatpush1.bf16.msra.mxu0 %v8010_v51 }
 0x200   : > { %3327 = vmatpush1.bf16.msra.mxu1 %v7825_v33  ;;  %2911 = vmatprep.subr.bf16.mxu0 %v8015_v59  ;;  %v6494_v33 = vld [vmem:[%s7160_s28 + $0x8] ss:$12 sps:$4 sm:$0xff]  }
 0x201   : > { %3328 = vmatprep.subr.bf16.mxu1 %v7830_v39  ;;  %v8052_v39 = vld [vmem:[#allocation4 + $0x38] sm:$0xff] }
 0x203   : > { %2912 = vmatpush1.bf16.msra.mxu0 %v8020_v34 }
 0x204   : > { %3329 = vmatpush1.bf16.msra.mxu1 %v7835_v56  ;;  %2913 = vmatprep.subr.bf16.mxu0 %v8025_v54  ;;  %v6495_v56 = vld [vmem:[%s7160_s28 + $0xe0] ss:$12 sps:$4 sm:$0xff]  }
 0x205   : > { %3330 = vmatprep.subr.bf16.mxu1 %v7840_v53  ;;  %v8060_v53 = vcombine.high %v8052_v39, %v8052_v39 }
 0x207   : > { %2914 = vmatpush1.bf16.msra.mxu0 %v8030_v36 }
 0x208   : > { %3331 = vmatpush1.bf16.msra.mxu1 %v7845_v52  ;;  %2915 = vmatprep.subr.bf16.mxu0 %v8035_v38  ;;  %v6496_v52 = vld [vmem:[%s7160_s28 + $0x20] ss:$12 sps:$4 sm:$0xff]  }
 0x209   : > { %3332 = vmatprep.subr.bf16.mxu1 %v7852_v23  ;;  %v6499_v23 = vld [vmem:[%s7160_s28 + $0x110] ss:$12 sps:$4 sm:$0xff]  }
 0x20b   : > { %2916 = vmatpush1.bf16.msra.mxu0 %v8040_v28 }
 0x20c   : > { %3333 = vmatpush1.bf16.msra.mxu1 %v7857_v19  ;;  %5782 = vmatprep.subr.bf16.mxu0 %v6493_v31  ;;  %v6497_v19 = vld [vmem:[%s7160_s28 + $0xf8] ss:$12 sps:$4 sm:$0xff]   ;;  %v6509_v31 = vld [vmem:[%s7160_s28 + $0x248] ss:$12 sps:$4 sm:$0xff]  }
 0x20d   : > { %3715 = vmatprep.subr.bf16.mxu1 %v7862_v49  ;;  %v6500_v49 = vld [vmem:[%s7160_s28 + $0x50] ss:$12 sps:$4 sm:$0xff]  }
 0x20e   : > { %2918 = vmatmul.mubr.bf16.vlgmr.msra.gmra.mrb[12].mxu0 %v7867_v62  ;;  %v6501_v62 = vld [vmem:[%s7160_s28 + $0x128] ss:$12 sps:$4 sm:$0xff]  }
 0x20f   : > { %3335 = vmatmul.mubr.bf16.vlgmr.msra.gmra.mrb[20].mxu1 %v8049_v17  ;;  %5783 = vmatpush3.bf16.msra.mxu0 %v6494_v33  ;;  %v6511_v33 = vld [vmem:[%s7160_s28 + $0x260] ss:$12 sps:$4 sm:$0xff]  }
 0x210   : > { %3716 = vmatpush1.bf16.msra.mxu1 %v7870_v61  ;;  %5784 = vmatprep.subr.bf16.mxu0 %v6495_v56  ;;  %v8078_v61 = vsub.s32 0, %v7911_v50 }
 0x211   : > { %3717 = vmatprep.subr.bf16.mxu1 %v7876_v27  ;;  %3375 = vmatprep.mubr.bf16.mxu0 %v7882_v37  ;;  %v885_v27 = vsub.s32 1, %v7911_v50  ;;  %v6503_v37 = vld [vmem:[%s7160_s28 + $0x140] ss:$12 sps:$4 sm:$0xff]  }
 0x212   : > { %3747 = vmatprep.mubr.bf16.mxu1 %v8060_v53 }
 0x213   : > { %5785 = vmatpush3.bf16.msra.mxu0 %v6496_v52 }
 0x214   : > { %3718 = vmatpush1.bf16.msra.mxu1 %v7887_v55  ;;  %5786 = vmatprep.subr.bf16.mxu0 %v6497_v19  ;;  %v8087_v55 = vrot.slane %v7930_v48, %v8078_v61 }
 0x215   : > { %3719 = vmatprep.subr.bf16.mxu1 %v7892_v43  ;;  %v8090_v43 = vrot.slane %v7930_v48, %v885_v27  ;;  %v6506_v48 = vld [vmem:[%s7160_s28 + $0x98] ss:$12 sps:$4 sm:$0xff]  }
 0x217   : > { %5787 = vmatpush3.bf16.msra.mxu0 %v6498_v60 }
 0x218   : > { %3720 = vmatpush1.bf16.msra.mxu1 %v7899_v46  ;;  %5788 = vmatprep.subr.bf16.mxu0 %v6499_v23  ;;  %v6504_v46 = vld [vmem:[%s7160_s28 + $0x80] ss:$12 sps:$4 sm:$0xff]  }
 0x219   : > { %3721 = vmatprep.subr.bf16.mxu1 %v7904_v58  ;;  %v6505_v58 = vld [vmem:[%s7160_s28 + $0x158] ss:$12 sps:$4 sm:$0xff]  }
 0x21b   : > { %5789 = vmatpush3.bf16.msra.mxu0 %v6500_v49 }
 0x21c   : > { %3722 = vmatpush1.bf16.msra.mxu1 %v7909_v42  ;;  %5790 = vmatprep.subr.bf16.mxu0 %v6501_v62 }
 0x21d   : > { %3723 = vmatprep.subr.bf16.mxu1 %v7916_v63 }
 0x21f   : > { %5791 = vmatpush3.bf16.msra.mxu0 %v6502_v30 }
 0x220   : > { %3724 = vmatpush1.bf16.msra.mxu1 %v7921_v40  ;;  %5792 = vmatprep.subr.bf16.mxu0 %v6503_v37 }
 0x221   : > { %v1260_v42 = vpop.f32.mrb[0].mxu0  ;;  %3725 = vmatprep.subr.bf16.mxu1 %v7927_v57  ;;  %v6508_v57 = vld [vmem:[%s7160_s28 + $0xb0] ss:$12 sps:$4 sm:$0xff]  }
 0x222   : > { %v6058_v50 = vadd.f32 %v1260_v42, %v8087_v55  ;;  %v1262_v63 = vpop.f32.mrb[1].mxu0 }
 0x223   : > { %v6059_v32 = vadd.f32 %v1262_v63, %v8090_v43  ;;  %v1264_v21 = vpop.f32.mrb[2].mxu0  ;;  %5793 = vmatpush3.bf16.msra.mxu0 %v6504_v46 }
 0x224   : > { %1310 = vst [vmem:[#allocation3] sm:$0xff] %v6058_v50  ;;  %3726 = vmatpush1.bf16.msra.mxu1 %v7935_v29  ;;  %v1265_v40 = vpop.f32.mrb[3].mxu0  ;;  %5794 = vmatprep.subr.bf16.mxu0 %v6505_v58  ;;  %v6510_v29 = vld [vmem:[%s7160_s28 + $0x188] ss:$12 sps:$4 sm:$0xff]  }
 0x225   : > { %1311 = vst [vmem:[#allocation3 + $0x8] sm:$0xff] %v6059_v32  ;;  %3727 = vmatprep.subr.bf16.mxu1 %v7943_v24  ;;  %v6512_v24 = vld [vmem:[%s7160_s28 + $0x1a0] ss:$12 sps:$4 sm:$0xff]  }
 0x227   : > { %5795 = vmatpush3.bf16.msra.mxu0 %v6506_v48 }
 0x228   : > { %3728 = vmatpush1.bf16.msra.mxu1 %v7948_v26  ;;  %5796 = vmatprep.subr.bf16.mxu0 %v6507_v25  ;;  %v6515_v26 = vld [vmem:[%s7160_s28 + $0x290] ss:$12 sps:$4 sm:$0xff]  }
 0x229   : > { %3729 = vmatprep.subr.bf16.mxu1 %v7955_v16  ;;  %v6513_v16 = vld [vmem:[%s7160_s28 + $0x278] ss:$12 sps:$4 sm:$0xff]  }
 0x22b   : > { %5797 = vmatpush3.bf16.msra.mxu0 %v6508_v57 }
 0x22c   : > { %3730 = vmatpush1.bf16.msra.mxu1 %v7960_v9  ;;  %5804 = vmatprep.subr.bf16.mxu0 %v6509_v31  ;;  %v6514_v9 = vld [vmem:[%s7160_s28 + $0x1b8] ss:$12 sps:$4 sm:$0xff]  }
 0x22d   : > { %3731 = vmatprep.subr.bf16.mxu1 %v7965_v13  ;;  %v6516_v13 = vld [vmem:[%s7160_s28 + $0x1d0] ss:$12 sps:$4 sm:$0xff]  }
 0x22e   : > { %3376 = vmatmul.mubr.bf16.vlgmr.msra.gmra.mrb[16].mxu0 %v8049_v17 }
 0x22f   : > { %5805 = vmatpush3.bf16.msra.mxu0 %v6510_v29  ;;  %3788 = vmatprep.mubr.bf16.mxu0 %v8060_v53 }
 0x230   : > { %3732 = vmatpush1.bf16.msra.mxu1 %v7970_v22  ;;  %5806 = vmatprep.subr.bf16.mxu0 %v6511_v33  ;;  %v6517_v22 = vld [vmem:[%s7160_s28 + $0x2a8] ss:$12 sps:$4 sm:$0xff]  }
 0x231   : > { %3733 = vmatprep.subr.bf16.mxu1 %v7975_v15  ;;  %v6518_v15 = vld [vmem:[%s7160_s28 + $0x1e8] ss:$12 sps:$4 sm:$0xff]  }
 0x233   : > { %5807 = vmatpush3.bf16.msra.mxu0 %v6512_v24 }
 0x234   : > { %3734 = vmatpush1.bf16.msra.mxu1 %v7980_v18  ;;  %5808 = vmatprep.subr.bf16.mxu0 %v6513_v16  ;;  %v6519_v18 = vld [vmem:[%s7160_s28 + $0x2c0] ss:$12 sps:$4 sm:$0xff]  }
 0x235   : > { %3735 = vmatprep.subr.bf16.mxu1 %v7985_v35  ;;  %v6520_v35 = vld [vmem:[%s7160_s28 + $0x200] ss:$12 sps:$4 sm:$0xff]  }
 0x237   : > { %5809 = vmatpush3.bf16.msra.mxu0 %v6514_v9 }
 0x238   : > { %3736 = vmatpush1.bf16.msra.mxu1 %v7990_v44  ;;  %5810 = vmatprep.subr.bf16.mxu0 %v6515_v26  ;;  %v6521_v44 = vld [vmem:[%s7160_s28 + $0x2d8] ss:$12 sps:$4 sm:$0xff]  }
 0x239   : > { %3737 = vmatprep.subr.bf16.mxu1 %v7995_v41 }
 0x23b   : > { %5811 = vmatpush3.bf16.msra.mxu0 %v6516_v13 }
 0x23c   : > { %3738 = vmatpush1.bf16.msra.mxu1 %v8000_v45  ;;  %5812 = vmatprep.subr.bf16.mxu0 %v6517_v22  ;;  %v6522_v45 = vld [vmem:[%s7160_s28 + $0x218] ss:$12 sps:$4 sm:$0xff]  }
 0x23d   : > { %3739 = vmatprep.subr.bf16.mxu1 %v8005_v47  ;;  %v6523_v47 = vld [vmem:[%s7160_s28 + $0x2f0] ss:$12 sps:$4 sm:$0xff]  }
 0x23f   : > { %5813 = vmatpush3.bf16.msra.mxu0 %v6518_v15 }
 0x240   : > { %3740 = vmatpush1.bf16.msra.mxu1 %v8010_v51  ;;  %5814 = vmatprep.subr.bf16.mxu0 %v6519_v18  ;;  %v6524_v51 = vld [vmem:[%s7160_s28 + $0x230] ss:$12 sps:$4 sm:$0xff]  }
 0x241   : > { %v5710_v17 = vpop.f32.mrb[4].mxu0  ;;  %3741 = vmatprep.subr.bf16.mxu1 %v8015_v59  ;;  %v5524_v59 = vcombine.low %v8052_v39, %v8052_v39 }
 0x242   : > { %v5711_v41 = vpop.f32.mrb[5].mxu0 }
 0x243   : > { %v5712_v56 = vadd.f32 %v5711_v41, %v5710_v17  ;;  %v5713_v53 = vpop.f32.mrb[6].mxu0  ;;  %5815 = vmatpush3.bf16.msra.mxu0 %v6520_v35 }
 0x244   : > { %3742 = vmatpush1.bf16.msra.mxu1 %v8020_v34  ;;  %v5714_v52 = vpop.f32.mrb[7].mxu0  ;;  %5816 = vmatprep.subr.bf16.mxu0 %v6521_v44 }
 0x245   : > { %3743 = vmatprep.subr.bf16.mxu1 %v8025_v54  ;;  %v1725_v54 = vadd.f32 %v5712_v56, %v7938_v20 }
 0x247   : > { %5817 = vmatpush3.bf16.msra.mxu0 %v6522_v45 }
 0x248   : > { %3744 = vmatpush1.bf16.msra.mxu1 %v8030_v36  ;;  %5818 = vmatprep.subr.bf16.mxu0 %v6523_v47 }
 0x249   : > { %3745 = vmatprep.subr.bf16.mxu1 %v8035_v38 }
 0x24b   : > { %5819 = vmatpush3.bf16.msra.mxu0 %v6524_v51 }
 0x24c   : > { %3746 = vmatpush1.bf16.msra.mxu1 %v8040_v28 }
 0x24e   : > { %3789 = vmatmul.mubr.bf16.vlgmr.msra.gmra.mrb[20].mxu0 %v5524_v59 }
 0x24f   : > { %3748 = vmatmul.mubr.bf16.vlgmr.msra.gmra.mrb[20].mxu1 %v5524_v59 }
 0x261   : > { %v5732_v34 = vpop.f32.mrb[8].mxu0 }
 0x262   : > { %v2089_v19 = vpop.f32.mrb[8].mxu1  ;;  %v5733_v60 = vpop.f32.mrb[9].mxu0 }
 0x263   : > { %v6060_v23 = vadd.f32 %v2089_v19, %v8087_v55  ;;  %v2091_v49 = vpop.f32.mrb[9].mxu1  ;;  %v5734_v36 = vadd.f32 %v5733_v60, %v5732_v34  ;;  %v5735_v62 = vpop.f32.mrb[10].mxu0  ;;  %v8172_v60 = vcombine.low (!%p5574_p1), %v7190_v4, %v7196_v6 }
 0x264   : > { %v6061_v38 = vadd.f32 %v2091_v49, %v8090_v43  ;;  %v2093_v30 = vpop.f32.mrb[10].mxu1  ;;  %v5736_v27 = vpop.f32.mrb[11].mxu0  ;;  %v6856_v49 = vmov (!%p5574_p1), 0.0   ;;  %v6857_v62 = vmov (!%p5574_p1), 0  }
 0x265   : > { %2140 = vst [vmem:[#allocation3 + $0x18] sm:$0xff] %v6060_v23  ;;  %v2138_v39 = vadd.f32 %v5734_v36, %v1725_v54  ;;  %v2094_v37 = vpop.f32.mrb[11].mxu1  ;;  %v8176_v54 = vcombine.low (!%p5574_p1), %v7181_v1, %v7187_v3  ;;  %v8181_v23 = vcombine.high (!%p5574_p1), %v7202_v8, %v7208_v10  ;;  %5898 = vmatprep.subr.bf16.mxu1 (!%p5574_p1), %v6856_v49  ;;  %v8821_v27 = vld [vmem:[#allocation24_spill] sm:$0xff] (!%p5574_p1) }
 0x266   : > { %2141 = vst [vmem:[#allocation3 + $0x20] sm:$0xff] %v6061_v38  ;;  %v8187_v36 = vcombine.low (!%p5574_p1), %v7193_v5, %v7199_v7  ;;  %3977 = vmatprep.mubr.bf16.mxu0 (!%p5574_p1), %v6857_v62  ;;  %v8194_v38 = vcombine.low (!%p5574_p1), %v7202_v8, %v7208_v10  ;;  %5914 = vmatprep.mubr.msk.bf16.mxu1 (!%p5574_p1), %vm6858_vm0, %v6856_v49 }
 0x267   : > { %2142 = vst [vmem:[#allocation3 + $0x28] sm:$0xff] %v2138_v39  ;;  %5899 = vmatpush3.bf16.msra.mxu1 (!%p5574_p1), %v8176_v54  ;;  %v8201_v30 = vcombine.high (!%p5574_p1), %v7214_v12, %v7220_v14  ;;  %v8206_v39 = vcombine.low (!%p5574_p1), %v8821_v27, %v7211_v11  ;;  %v8212_v37 = vcombine.low (!%p5574_p1), %v7214_v12, %v7220_v14 }
 0x268   : > { %5900 = vmatprep.subr.bf16.mxu1 (!%p5574_p1), %v6856_v49 }
 0x26b   : > { %5901 = vmatpush3.bf16.msra.mxu1 (!%p5574_p1), %v8187_v36 }
 0x26c   : > { %5902 = vmatprep.subr.bf16.mxu1 (!%p5574_p1), %v6856_v49 }
 0x26f   : > { %5903 = vmatpush3.bf16.msra.mxu1 (!%p5574_p1), %v8206_v39 }
 0x270   : > { %5904 = vmatprep.subr.bf16.mxu1 (!%p5574_p1), %v6856_v49 }
 0x282   : > { %v5754_v28 = vpop.f32.mrb[12].mxu1 }
 0x283   : > { %v5755_v46 = vpop.f32.mrb[13].mxu1 }
 0x284   : > { %v5756_v58 = vadd.f32 %v5755_v46, %v5754_v28  ;;  %v5757_v42 = vpop.f32.mrb[14].mxu1  ;;  %v8822_v28 = vld [vmem:[#allocation29_spill] sm:$0xff] (!%p5574_p1)  ;;  %v8823_v46 = vld [vmem:[#allocation27_spill] sm:$0xff] (!%p5574_p1) }
 0x285   : > { %v5758_v50 = vpop.f32.mrb[15].mxu1  ;;  %v8824_v42 = vld [vmem:[#allocation26_spill] sm:$0xff] (!%p5574_p1) }
 0x286   : > { %v2555_v21 = vadd.f32 %v5756_v58, %v7938_v20  ;;  %v8217_v58 = vcombine.high (!%p5574_p1), %v8823_v46, %v8822_v28  ;;  %v8825_v50 = vld [vmem:[#allocation25_spill] sm:$0xff] (!%p5574_p1) }
 0x2a2   : > { %v5776_v63 = vpop.f32.mrb[16].mxu1 }
 0x2a3   : > { %v5777_v32 = vpop.f32.mrb[17].mxu1 }
 0x2a4   : > { %v5778_v48 = vadd.f32 %v5777_v32, %v5776_v63  ;;  %v5779_v40 = vpop.f32.mrb[18].mxu1  ;;  %v8222_v63 = vcombine.low (!%p5574_p1), %v8825_v50, %v8824_v42  ;;  %v8228_v32 = vcombine.low (!%p5574_p1), %v8823_v46, %v8822_v28 }
 0x2a5   : > { %v5780_v25 = vpop.f32.mrb[19].mxu1 }
 0x2a6   : > { %v2968_v57 = vadd.f32 %v5778_v48, %v2555_v21  ;;  %v8826_v21 = vld [vmem:[#allocation33_spill] sm:$0xff] (!%p5574_p1)  ;;  %v8827_v48 = vld [vmem:[#allocation31_spill] sm:$0xff] (!%p5574_p1)  ;;  %5905 = vmatpush3.bf16.msra.mxu1 (!%p5574_p1), %v8222_v63  ;;  %v8828_v25 = vld [vmem:[#allocation30_spill] sm:$0xff] (!%p5574_p1) }
 0x2a7   : > { %v8233_v40 = vcombine.high (!%p5574_p1), %v8827_v48, %v8826_v21  ;;  %5906 = vmatprep.subr.bf16.mxu1 (!%p5574_p1), %v6856_v49 }
 0x2a8   : > { %2972 = vst [vmem:[#allocation3 + $0x40] sm:$0xff] %v2968_v57  ;;  %v8829_v57 = vld [vmem:[#allocation28_spill] sm:$0xff] (!%p5574_p1) }
 0x2e1   : > { %v2919_v31 = vpop.f32.mrb[12].mxu0 }
 0x2e2   : > { %v6062_v29 = vadd.f32 %v2919_v31, %v8087_v55  ;;  %v2921_v33 = vpop.f32.mrb[13].mxu0  ;;  %v8238_v31 = vcombine.low (!%p5574_p1), %v8829_v57, %v8828_v25 }
 0x2e3   : > { %v6063_v24 = vadd.f32 %v2921_v33, %v8090_v43  ;;  %v2923_v16 = vpop.f32.mrb[14].mxu0  ;;  %v8830_v33 = vld [vmem:[#allocation37_spill] sm:$0xff] (!%p5574_p1) }
 0x2e4   : > { %2970 = vst [vmem:[#allocation3 + $0x30] sm:$0xff] %v6062_v29  ;;  %v2924_v9 = vpop.f32.mrb[15].mxu0  ;;  %v8244_v29 = vcombine.low (!%p5574_p1), %v8827_v48, %v8826_v21  ;;  %5907 = vmatpush3.bf16.msra.mxu1 (!%p5574_p1), %v8238_v31 }
 0x2e5   : > { %2971 = vst [vmem:[#allocation3 + $0x38] sm:$0xff] %v6063_v24  ;;  %v8831_v24 = vld [vmem:[#allocation35_spill] sm:$0xff] (!%p5574_p1)  ;;  %v8832_v9 = vld [vmem:[#allocation34_spill] sm:$0xff] (!%p5574_p1)  ;;  %5908 = vmatprep.subr.bf16.mxu1 (!%p5574_p1), %v6856_v49 }
 0x2e6   : > { %v8249_v16 = vcombine.high (!%p5574_p1), %v8831_v24, %v8830_v33 }
 0x301   : > { %v5798_v26 = vpop.f32.mrb[16].mxu0 }
 0x302   : > { %v5799_v13 = vpop.f32.mrb[17].mxu0 }
 0x303   : > { %v5800_v22 = vadd.f32 %v5799_v13, %v5798_v26  ;;  %v5801_v15 = vpop.f32.mrb[18].mxu0  ;;  %v8833_v26 = vld [vmem:[#allocation32_spill] sm:$0xff] (!%p5574_p1) }
 0x304   : > { %v5802_v18 = vpop.f32.mrb[19].mxu0  ;;  %v8254_v13 = vcombine.low (!%p5574_p1), %v8833_v26, %v8832_v9  ;;  %v8834_v15 = vld [vmem:[#allocation41_spill] sm:$0xff] (!%p5574_p1)  ;;  %v8840_v26 = vld [vmem:[#allocation43_spill] sm:$0xff] (!%p5574_p1) }
 0x305   : > { %v3385_v41 = vadd.f32 %v5800_v22, %v7938_v20  ;;  %v8158_v20 = vcombine.high (!%p5574_p1), %v7178_v0, %v7184_v2  ;;  %v8260_v22 = vcombine.low (!%p5574_p1), %v8831_v24, %v8830_v33  ;;  %v8835_v18 = vld [vmem:[#allocation39_spill] sm:$0xff] (!%p5574_p1) }
 0x306   : > { %5909 = vmatpush3.bf16.msra.mxu1 (!%p5574_p1), %v8254_v13 }
 0x307   : > { %3945 = vmatprep.subr.bf16.mxu0 (!%p5574_p1), %v8158_v20  ;;  %5910 = vmatprep.subr.bf16.mxu1 (!%p5574_p1), %v6856_v49 }
 0x321   : > { %v5820_v35 = vpop.f32.mrb[20].mxu0  ;;  %3806 = sbr.rel (%p5574_p1) target bundleno = 1881 (0x759), region = 64 }
 0x322   : > { %v3749_v44 = vpop.f32.mrb[20].mxu1  ;;  %v5821_v17 = vpop.f32.mrb[21].mxu0 }
 0x323   : > { %v6064_v56 = vadd.f32 %v3749_v44, %v8087_v55  ;;  %v3751_v53 = vpop.f32.mrb[21].mxu1  ;;  %v5822_v45 = vadd.f32 %v5821_v17, %v5820_v35  ;;  %v5823_v52 = vpop.f32.mrb[22].mxu0  ;;  %v8162_v55 = vcombine.low (!%p5574_p1), %v7178_v0, %v7184_v2  ;;  %v8265_v35 = vcombine.high (!%p5574_p1), %v8835_v18, %v8834_v15  ;;  %v8836_v44 = vld [vmem:[#allocation38_spill] sm:$0xff] (!%p5574_p1)  ;;  %v8837_v17 = vld [vmem:[#allocation36_spill] sm:$0xff] (!%p5574_p1) }
 0x324   : > { %v6065_v47 = vadd.f32 %v3751_v53, %v8090_v43  ;;  %v3753_v51 = vpop.f32.mrb[22].mxu1  ;;  %v5824_v59 = vpop.f32.mrb[23].mxu0  ;;  %v8166_v43 = vcombine.high (!%p5574_p1), %v7190_v4, %v7196_v6  ;;  %v8838_v53 = vld [vmem:[#allocation42_spill] sm:$0xff] (!%p5574_p1) }
 0x325   : > { %3800 = vst [vmem:[#allocation3 + $0x48] sm:$0xff] %v6064_v56  ;;  %v3798_v34 = vadd.f32 %v5822_v45, %v3385_v41  ;;  %v3754_v19 = vpop.f32.mrb[23].mxu1  ;;  %3946 = vmatpush1.bf16.msra.mxu0 (!%p5574_p1), %v8162_v55  ;;  %v8270_v41 = vcombine.low (!%p5574_p1), %v8837_v17, %v8836_v44  ;;  %v8276_v56 = vcombine.low (!%p5574_p1), %v8835_v18, %v8834_v15  ;;  %v8839_v45 = vld [vmem:[#allocation40_spill] sm:$0xff] (!%p5574_p1)  ;;  %v3813_v51 = vld [vmem:[#allocation3] sm:$0xff] (!%p5574_p1) }
 0x326   : > { %3801 = vst [vmem:[#allocation3 + $0x50] sm:$0xff] %v6065_v47  ;;  %3947 = vmatprep.subr.bf16.mxu0 (!%p5574_p1), %v8166_v43  ;;  %v8282_v52 = vcombine.low (!%p5574_p1), %v8839_v45, %v8838_v53  ;;  %v6859_v47 = vmov (!%p5574_p1), 0.0|0.0   ;;  %v3814_v19 = vld [vmem:[#allocation3 + $0x8] sm:$0xff] (!%p5574_p1)  ;;  %v8326_v15 = vrot.slane (!%p5574_p1), %v8840_v26, %v8078_v61  ;;  %v3815_v45 = vld [vmem:[#allocation3 + $0x10] sm:$0xff] (!%p5574_p1) }
 0x327   : > { %3802 = vst [vmem:[#allocation3 + $0x58] sm:$0xff] %v3798_v34  ;;  %5911 = vmatpush3.bf16.msra.mxu1 (!%p5574_p1), %v8270_v41 }
 0x328   : > { %5912 = vmatprep.subr.bf16.mxu1 %v6856_v49 }
 0x329   : > { %3948 = vmatpush1.bf16.msra.mxu0 %v8172_v60 }
 0x32a   : > { %3949 = vmatprep.subr.bf16.mxu0 %v8181_v23 }
 0x32b   : > { %5913 = vmatpush3.bf16.msra.mxu1 %v8282_v52 }
 0x32c   : > { %5918 = vmatprep.subr.bf16.mxu1 %v6856_v49 }
 0x32d   : > { %3950 = vmatpush1.bf16.msra.mxu0 %v8194_v38 }
 0x32e   : > { %3951 = vmatprep.subr.bf16.mxu0 %v8201_v30  ;;  %5915 = vmatmul.mubr.bf16.vlgmr.msra.gmra.mrb[0].mxu1 %v6859_v47 }
 0x32f   : > { %5919 = vmatpush3.bf16.msra.mxu1 %v8176_v54  ;;  %5934 = vmatprep.mubr.msk.bf16.mxu1 %vm6858_vm0, %v6856_v49 }
 0x330   : > { %5920 = vmatprep.subr.bf16.mxu1 %v6856_v49 }
 0x331   : > { %3952 = vmatpush1.bf16.msra.mxu0 %v8212_v37 }
 0x332   : > { %3953 = vmatprep.subr.bf16.mxu0 %v8217_v58 }
 0x333   : > { %5921 = vmatpush3.bf16.msra.mxu1 %v8187_v36 }
 0x334   : > { %5922 = vmatprep.subr.bf16.mxu1 %v6856_v49 }
 0x335   : > { %3954 = vmatpush1.bf16.msra.mxu0 %v8228_v32 }
 0x336   : > { %3955 = vmatprep.subr.bf16.mxu0 %v8233_v40 }
 0x337   : > { %5923 = vmatpush3.bf16.msra.mxu1 %v8206_v39 }
 0x338   : > { %5924 = vmatprep.subr.bf16.mxu1 %v6856_v49 }
 0x339   : > { %3956 = vmatpush1.bf16.msra.mxu0 %v8244_v29 }
 0x33a   : > { %3957 = vmatprep.subr.bf16.mxu0 %v8249_v16 }
 0x33b   : > { %5925 = vmatpush3.bf16.msra.mxu1 %v8222_v63 }
 0x33c   : > { %5926 = vmatprep.subr.bf16.mxu1 %v6856_v49 }
 0x33d   : > { %3958 = vmatpush1.bf16.msra.mxu0 %v8260_v22 }
 0x33e   : > { %3959 = vmatprep.subr.bf16.mxu0 %v8265_v35 }
 0x33f   : > { %5927 = vmatpush3.bf16.msra.mxu1 %v8238_v31 }
 0x340   : > { %5928 = vmatprep.subr.bf16.mxu1 %v6856_v49 }
 0x341   : > { %3960 = vmatpush1.bf16.msra.mxu0 %v8276_v56 }
 0x342   : > { %4059 = vmatprep.subr.bf16.mxu0 %v8158_v20 }
 0x343   : > { %5929 = vmatpush3.bf16.msra.mxu1 %v8254_v13 }
 0x344   : > { %3978 = vmatmul.mubr.bf16.vlgmr.msra.gmra.mrb[0].mxu0 %v6859_v47  ;;  %5930 = vmatprep.subr.bf16.mxu1 %v6856_v49 }
 0x345   : > { %4060 = vmatpush1.bf16.msra.mxu0 %v8162_v55  ;;  %4091 = vmatprep.mubr.bf16.mxu0 %v6857_v62 }
 0x346   : > { %4061 = vmatprep.subr.bf16.mxu0 %v8166_v43 }
 0x347   : > { %5931 = vmatpush3.bf16.msra.mxu1 %v8270_v41 }
 0x348   : > { %5932 = vmatprep.subr.bf16.mxu1 %v6856_v49 }
 0x349   : > { %4062 = vmatpush1.bf16.msra.mxu0 %v8172_v60 }
 0x34a   : > { %4063 = vmatprep.subr.bf16.mxu0 %v8181_v23 }
 0x34b   : > { %5933 = vmatpush3.bf16.msra.mxu1 %v8282_v52 }
 0x34c   : > { %5938 = vmatprep.subr.bf16.mxu1 %v6856_v49 }
 0x34d   : > { %4064 = vmatpush1.bf16.msra.mxu0 %v8194_v38 }
 0x34e   : > { %4065 = vmatprep.subr.bf16.mxu0 %v8201_v30 }
 0x351   : > { %4066 = vmatpush1.bf16.msra.mxu0 %v8212_v37 }
 0x352   : > { %4067 = vmatprep.subr.bf16.mxu0 %v8217_v58 }
 0x355   : > { %4068 = vmatpush1.bf16.msra.mxu0 %v8228_v32 }
 0x356   : > { %4069 = vmatprep.subr.bf16.mxu0 %v8233_v40 }
 0x359   : > { %4070 = vmatpush1.bf16.msra.mxu0 %v8244_v29 }
 0x35a   : > { %4071 = vmatprep.subr.bf16.mxu0 %v8249_v16 }
 0x35d   : > { %4072 = vmatpush1.bf16.msra.mxu0 %v8260_v22 }
 0x35e   : > { %4073 = vmatprep.subr.bf16.mxu0 %v8265_v35 }
 0x361   : > { %4074 = vmatpush1.bf16.msra.mxu0 %v8276_v56 }
 0x362   : > { %4168 = vmatprep.subr.bf16.mxu0 %v8158_v20 }
 0x401   : > { %v4020_v46 = vpop.f32.mrb[0].mxu1 }
 0x402   : > { %v5916_v21 = vpop.f32.mrb[1].mxu1  ;;  %v4046_v17 = vadd.f32 %v8326_v15, %v4020_v46  ;;  %v4056_v46 = vld [vmem:[#allocation3 + $0x18] sm:$0xff] }
 0x403   : > { %v4023_v25 = vpop.f32.mrb[2].mxu1 }
 0x404   : > { %v5917_v57 = vpop.f32.mrb[3].mxu1 }
 0x405   : > { %v4057_v57 = vld [vmem:[#allocation3 + $0x20] sm:$0xff] }
 0x417   : > { %v3979_v59 = vpop.f32.mrb[0].mxu0 }
 0x418   : > { %v4026_v34 = vadd.f32 %v3979_v59, %v3813_v51  ;;  %v3981_v27 = vpop.f32.mrb[1].mxu0 }
 0x419   : > { %v3983_v28 = vpop.f32.mrb[2].mxu0  ;;  %v4027_v48 = vadd.f32 %v3981_v27, %v3814_v19 }
 0x41a   : > { %v5599_v42 = vmul.f32 -1.442695, %v4026_v34  ;;  %v3984_v50 = vpop.f32.mrb[3].mxu0 }
 0x41b   : > { %v5600_v33 = vmul.f32 -1.442695, %v4027_v48 }
 0x41c   : > { %6527 = vpow2.f32 %v5599_v42 }
 0x41d   : > { %6529 = vpow2.f32 %v5600_v33 }
 0x426   : > { %v6528_v24 = vpop.eup %6527 }
 0x427   : > { %v4034_v9 = vadd.f32 1.0, %v6528_v24  ;;  %v6530_v18 = vpop.eup %6529 }
 0x428   : > { %v4035_v44 = vadd.f32 1.0, %v6530_v18 }
 0x429   : > { %6531 = vrcp.f32 %v4034_v9 }
 0x42a   : > { %6533 = vrcp.f32 %v4035_v44 }
 0x433   : > { %v6532_v53 = vpop.eup %6531 }
 0x434   : > { %v4047_v47 = vmul.f32 %v6532_v53, %v4046_v17  ;;  %v6534_v59 = vpop.eup %6533 }
 0x435   : > { %v4050_v34 = vsub.f32 1.0, %v6534_v59  ;;  %v4052_v28 = vmul.f32 0.0, %v6534_v59 }
 0x436   : > { %v4048_v51 = vadd.f32 %v4047_v47, %v3815_v45 }
 0x438   : > { %6535 = vtanh.f32 %v4048_v51 }
 0x442   : > { %v6536_v19 = vpop.eup %6535 }
 0x443   : > { %v4051_v27 = vmul.f32 %v6536_v19, %v4050_v34 }
 0x445   : > { %v8329_v42 = vadd.f32 %v4052_v28, %v4051_v27  ;;  %v4058_v27 = vld [vmem:[#allocation3 + $0x28] sm:$0xff] }
 0x447   : > { %v4054_v50 = vpack.c.bf16 %v8329_v42, %v8329_v42 }
 0x449   : > { %4055 = vst [vmem:[%s8153_s14] sm:$0xf] %v4054_v50  ;;  %4092 = vmatmul.mubr.bf16.vlgmr.msra.gmra.mrb[4].mxu0 %v4054_v50  ;;  %5935 = vmatmul.mubr.bf16.vlgmr.msra.gmra.mrb[4].mxu1 %v4054_v50 }
 0x44a   : > { %4169 = vmatpush1.bf16.msra.mxu0 %v8162_v55  ;;  %5939 = vmatpush3.bf16.msra.mxu1 %v8176_v54 }
 0x44b   : > { %4170 = vmatprep.subr.bf16.mxu0 %v8166_v43  ;;  %5940 = vmatprep.subr.bf16.mxu1 %v6856_v49 }
 0x44c   : > { %4200 = vmatprep.mubr.bf16.mxu0 %v6857_v62  ;;  %5954 = vmatprep.mubr.msk.bf16.mxu1 %vm6858_vm0, %v6856_v49 }
 0x44e   : > { %4171 = vmatpush1.bf16.msra.mxu0 %v8172_v60  ;;  %5941 = vmatpush3.bf16.msra.mxu1 %v8187_v36 }
 0x44f   : > { %4172 = vmatprep.subr.bf16.mxu0 %v8181_v23  ;;  %5942 = vmatprep.subr.bf16.mxu1 %v6856_v49 }
 0x452   : > { %4173 = vmatpush1.bf16.msra.mxu0 %v8194_v38  ;;  %5943 = vmatpush3.bf16.msra.mxu1 %v8206_v39 }
 0x453   : > { %4174 = vmatprep.subr.bf16.mxu0 %v8201_v30  ;;  %5944 = vmatprep.subr.bf16.mxu1 %v6856_v49 }
 0x456   : > { %4175 = vmatpush1.bf16.msra.mxu0 %v8212_v37  ;;  %5945 = vmatpush3.bf16.msra.mxu1 %v8222_v63 }
 0x457   : > { %4176 = vmatprep.subr.bf16.mxu0 %v8217_v58  ;;  %5946 = vmatprep.subr.bf16.mxu1 %v6856_v49 }
 0x45a   : > { %4177 = vmatpush1.bf16.msra.mxu0 %v8228_v32  ;;  %5947 = vmatpush3.bf16.msra.mxu1 %v8238_v31 }
 0x45b   : > { %4178 = vmatprep.subr.bf16.mxu0 %v8233_v40  ;;  %5948 = vmatprep.subr.bf16.mxu1 %v6856_v49 }
 0x45e   : > { %4179 = vmatpush1.bf16.msra.mxu0 %v8244_v29  ;;  %5949 = vmatpush3.bf16.msra.mxu1 %v8254_v13 }
 0x45f   : > { %4180 = vmatprep.subr.bf16.mxu0 %v8249_v16  ;;  %5950 = vmatprep.subr.bf16.mxu1 %v6856_v49 }
 0x462   : > { %4181 = vmatpush1.bf16.msra.mxu0 %v8260_v22  ;;  %5951 = vmatpush3.bf16.msra.mxu1 %v8270_v41 }
 0x463   : > { %4182 = vmatprep.subr.bf16.mxu0 %v8265_v35  ;;  %5952 = vmatprep.subr.bf16.mxu1 %v6856_v49 }
 0x466   : > { %4183 = vmatpush1.bf16.msra.mxu0 %v8276_v56  ;;  %5953 = vmatpush3.bf16.msra.mxu1 %v8282_v52 }
 0x467   : > { %4277 = vmatprep.subr.bf16.mxu0 %v8158_v20  ;;  %5958 = vmatprep.subr.bf16.mxu1 %v6856_v49 }
 0x51c   : > { %v4093_v21 = vpop.f32.mrb[4].mxu0  ;;  %v4134_v48 = vpop.f32.mrb[4].mxu1 }
 0x51d   : > { %v4140_v25 = vadd.f32 %v4093_v21, %v4056_v46  ;;  %v4095_v33 = vpop.f32.mrb[5].mxu0  ;;  %v5936_v24 = vpop.f32.mrb[5].mxu1  ;;  %v4154_v34 = vadd.f32 %v4134_v48, %v8326_v15 }
 0x51e   : > { %v4097_v9 = vpop.f32.mrb[6].mxu0  ;;  %v4137_v26 = vpop.f32.mrb[6].mxu1  ;;  %v4141_v53 = vadd.f32 %v4095_v33, %v4057_v57 }
 0x51f   : > { %v5601_v18 = vmul.f32 -1.442695, %v4140_v25  ;;  %v4098_v44 = vpop.f32.mrb[7].mxu0  ;;  %v5937_v17 = vpop.f32.mrb[7].mxu1 }
 0x520   : > { %v5602_v45 = vmul.f32 -1.442695, %v4141_v53  ;;  %v4274_v17 = vld [vmem:[#allocation3 + $0x48] sm:$0xff] }
 0x521   : > { %6537 = vpow2.f32 %v5601_v18 }
 0x522   : > { %6539 = vpow2.f32 %v5602_v45 }
 0x52b   : > { %v6538_v47 = vpop.eup %6537 }
 0x52c   : > { %v4148_v20 = vadd.f32 1.0, %v6538_v47  ;;  %v6540_v51 = vpop.eup %6539 }
 0x52d   : > { %v4149_v59 = vadd.f32 1.0, %v6540_v51 }
 0x52e   : > { %6541 = vrcp.f32 %v4148_v20  ;;  %v4275_v20 = vld [vmem:[#allocation3 + $0x50] sm:$0xff] }
 0x52f   : > { %6543 = vrcp.f32 %v4149_v59 }
 0x538   : > { %v6542_v19 = vpop.eup %6541 }
 0x539   : > { %v4155_v28 = vmul.f32 %v6542_v19, %v4154_v34  ;;  %v6544_v46 = vpop.eup %6543 }
 0x53a   : > { %v4158_v21 = vsub.f32 1.0, %v6544_v46  ;;  %v4160_v33 = vmul.f32 %v6544_v46, %v8329_v42 }
 0x53b   : > { %v4156_v50 = vadd.f32 %v4155_v28, %v4058_v27 }
 0x53d   : > { %6545 = vtanh.f32 %v4156_v50 }
 0x547   : > { %v6546_v25 = vpop.eup %6545 }
 0x548   : > { %v4159_v57 = vmul.f32 %v6546_v25, %v4158_v21 }
 0x54a   : > { %v8371_v24 = vadd.f32 %v4160_v33, %v4159_v57 }
 0x54c   : > { %v4162_v9 = vpack.c.bf16 %v8371_v24, %v8371_v24 }
 0x54e   : > { %5603 = vst [vmem:[%s8153_s14 + $0x4] sm:$0xf] %v4162_v9  ;;  %4201 = vmatmul.mubr.bf16.vlgmr.msra.gmra.mrb[8].mxu0 %v4162_v9  ;;  %5955 = vmatmul.mubr.bf16.vlgmr.msra.gmra.mrb[8].mxu1 %v4162_v9 }
 0x54f   : > { %4278 = vmatpush1.bf16.msra.mxu0 %v8162_v55  ;;  %5959 = vmatpush3.bf16.msra.mxu1 %v8176_v54  ;;  %v4165_v55 = vld [vmem:[#allocation3 + $0x30] sm:$0xff] }
 0x550   : > { %4279 = vmatprep.subr.bf16.mxu0 %v8166_v43  ;;  %5960 = vmatprep.subr.bf16.mxu1 %v6856_v49 }
 0x551   : > { %4309 = vmatprep.mubr.bf16.mxu0 %v6857_v62  ;;  %5974 = vmatprep.mubr.msk.bf16.mxu1 %vm6858_vm0, %v6856_v49 }
 0x553   : > { %4280 = vmatpush1.bf16.msra.mxu0 %v8172_v60  ;;  %5961 = vmatpush3.bf16.msra.mxu1 %v8187_v36 }
 0x554   : > { %4281 = vmatprep.subr.bf16.mxu0 %v8181_v23  ;;  %5962 = vmatprep.subr.bf16.mxu1 %v6856_v49  ;;  %v4166_v23 = vld [vmem:[#allocation3 + $0x38] sm:$0xff] }
 0x557   : > { %4282 = vmatpush1.bf16.msra.mxu0 %v8194_v38  ;;  %5963 = vmatpush3.bf16.msra.mxu1 %v8206_v39 }
 0x558   : > { %4283 = vmatprep.subr.bf16.mxu0 %v8201_v30  ;;  %5964 = vmatprep.subr.bf16.mxu1 %v6856_v49 }
 0x55b   : > { %4284 = vmatpush1.bf16.msra.mxu0 %v8212_v37  ;;  %5965 = vmatpush3.bf16.msra.mxu1 %v8222_v63 }
 0x55c   : > { %4285 = vmatprep.subr.bf16.mxu0 %v8217_v58  ;;  %5966 = vmatprep.subr.bf16.mxu1 %v6856_v49 }
 0x55f   : > { %4286 = vmatpush1.bf16.msra.mxu0 %v8228_v32  ;;  %5967 = vmatpush3.bf16.msra.mxu1 %v8238_v31 }
 0x560   : > { %4287 = vmatprep.subr.bf16.mxu0 %v8233_v40  ;;  %5968 = vmatprep.subr.bf16.mxu1 %v6856_v49 }
 0x563   : > { %4288 = vmatpush1.bf16.msra.mxu0 %v8244_v29  ;;  %5969 = vmatpush3.bf16.msra.mxu1 %v8254_v13 }
 0x564   : > { %4289 = vmatprep.subr.bf16.mxu0 %v8249_v16  ;;  %5970 = vmatprep.subr.bf16.mxu1 %v6856_v49 }
 0x567   : > { %4290 = vmatpush1.bf16.msra.mxu0 %v8260_v22  ;;  %5971 = vmatpush3.bf16.msra.mxu1 %v8270_v41  ;;  %v4167_v22 = vld [vmem:[#allocation3 + $0x40] sm:$0xff] }
 0x568   : > { %4291 = vmatprep.subr.bf16.mxu0 %v8265_v35  ;;  %5972 = vmatprep.subr.bf16.mxu1 %v6856_v49 }
 0x56b   : > { %4292 = vmatpush1.bf16.msra.mxu0 %v8276_v56  ;;  %5973 = vmatpush3.bf16.msra.mxu1 %v8282_v52 }
 0x621   : > { %v4202_v43 = vpop.f32.mrb[8].mxu0  ;;  %v4243_v60 = vpop.f32.mrb[8].mxu1 }
 0x622   : > { %v4249_v54 = vadd.f32 %v4202_v43, %v4165_v55  ;;  %v4204_v36 = vpop.f32.mrb[9].mxu0  ;;  %v5956_v62 = vpop.f32.mrb[9].mxu1  ;;  %v4263_v16 = vadd.f32 %v4243_v60, %v8326_v15  ;;  %v4276_v43 = vld [vmem:[#allocation3 + $0x58] sm:$0xff] }
 0x623   : > { %v4206_v38 = vpop.f32.mrb[10].mxu0  ;;  %v4246_v30 = vpop.f32.mrb[10].mxu1  ;;  %v4250_v63 = vadd.f32 %v4204_v36, %v4166_v23 }
 0x624   : > { %v5604_v39 = vmul.f32 -1.442695, %v4249_v54  ;;  %v4207_v37 = vpop.f32.mrb[11].mxu0  ;;  %v5957_v58 = vpop.f32.mrb[11].mxu1 }
 0x625   : > { %v5605_v32 = vmul.f32 -1.442695, %v4250_v63 }
 0x626   : > { %6547 = vpow2.f32 %v5604_v39 }
 0x627   : > { %6549 = vpow2.f32 %v5605_v32 }
 0x630   : > { %v6548_v49 = vpop.eup %6547 }
 0x631   : > { %v4257_v40 = vadd.f32 1.0, %v6548_v49  ;;  %v6550_v31 = vpop.eup %6549 }
 0x632   : > { %v4258_v29 = vadd.f32 1.0, %v6550_v31 }
 0x633   : > { %6551 = vrcp.f32 %v4257_v40 }
 0x634   : > { %6553 = vrcp.f32 %v4258_v29 }
 0x63d   : > { %v6552_v13 = vpop.eup %6551 }
 0x63e   : > { %v4264_v35 = vmul.f32 %v6552_v13, %v4263_v16  ;;  %v6554_v56 = vpop.eup %6553 }
 0x63f   : > { %v4267_v52 = vsub.f32 1.0, %v6554_v56  ;;  %v4269_v26 = vmul.f32 %v6554_v56, %v8371_v24 }
 0x640   : > { %v4265_v41 = vadd.f32 %v4264_v35, %v4167_v22 }
 0x642   : > { %6555 = vtanh.f32 %v4265_v41 }
 0x64c   : > { %v6556_v42 = vpop.eup %6555 }
 0x64d   : > { %v4268_v48 = vmul.f32 %v6556_v42, %v4267_v52 }
 0x64f   : > { %v4270_v18 = vadd.f32 %v4269_v26, %v4268_v48 }
 0x651   : > { %v4271_v44 = vpack.c.bf16 %v4270_v18, %v4270_v18 }
 0x653   : > { %5606 = vst [vmem:[%s8153_s14 + $0x8] sm:$0xf] %v4271_v44  ;;  %4310 = vmatmul.mubr.bf16.vlgmr.msra.gmra.mrb[12].mxu0 %v4271_v44  ;;  %5975 = vmatmul.mubr.bf16.vlgmr.msra.gmra.mrb[12].mxu1 %v4271_v44 }
 0x726   : > { %v4311_v53 = vpop.f32.mrb[12].mxu0  ;;  %v4352_v45 = vpop.f32.mrb[12].mxu1 }
 0x727   : > { %v4358_v47 = vadd.f32 %v4311_v53, %v4274_v17  ;;  %v4313_v51 = vpop.f32.mrb[13].mxu0  ;;  %v5976_v59 = vpop.f32.mrb[13].mxu1  ;;  %v4372_v9 = vadd.f32 %v4352_v45, %v8326_v15 }
 0x728   : > { %v4315_v34 = vpop.f32.mrb[14].mxu0  ;;  %v4355_v19 = vpop.f32.mrb[14].mxu1  ;;  %v4359_v46 = vadd.f32 %v4313_v51, %v4275_v20 }
 0x729   : > { %v5607_v27 = vmul.f32 -1.442695, %v4358_v47  ;;  %v4316_v28 = vpop.f32.mrb[15].mxu0  ;;  %v5977_v50 = vpop.f32.mrb[15].mxu1 }
 0x72a   : > { %v5608_v21 = vmul.f32 -1.442695, %v4359_v46 }
 0x72b   : > { %6557 = vpow2.f32 %v5607_v27 }
 0x72c   : > { %6559 = vpow2.f32 %v5608_v21 }
 0x735   : > { %v6558_v25 = vpop.eup %6557 }
 0x736   : > { %v4366_v57 = vadd.f32 1.0, %v6558_v25  ;;  %v6560_v33 = vpop.eup %6559 }
 0x737   : > { %v4367_v24 = vadd.f32 1.0, %v6560_v33 }
 0x738   : > { %6561 = vrcp.f32 %v4366_v57 }
 0x739   : > { %6563 = vrcp.f32 %v4367_v24 }
 0x742   : > { %v6562_v55 = vpop.eup %6561 }
 0x743   : > { %v4373_v60 = vmul.f32 %v6562_v55, %v4372_v9  ;;  %v6564_v23 = vpop.eup %6563 }
 0x744   : > { %v4376_v36 = vsub.f32 1.0, %v6564_v23  ;;  %v4378_v30 = vmul.f32 %v6564_v23, %v4270_v18 }
 0x745   : > { %v4374_v54 = vadd.f32 %v4373_v60, %v4276_v43 }
 0x747   : > { %6565 = vtanh.f32 %v4374_v54 }
 0x751   : > { %v6566_v62 = vpop.eup %6565 }
 0x752   : > { %v4377_v38 = vmul.f32 %v6566_v62, %v4376_v36 }
 0x754   : > { %v4379_v39 = vadd.f32 %v4378_v30, %v4377_v38 }
 0x756   : > { %v4380_v37 = vpack.c.bf16 %v4379_v39, %v4379_v39 }
 0x758   : > { %5609 = vst [vmem:[%s8153_s14 + $0xc] sm:$0xf] %v4380_v37 }
 0x759 PF: > { %p5610_p13 = scmp.ne.s32.totalorder %s6837_s21, 1 }
 0x75a   : > { %v8417_v15 = vcombine.high (!%p5610_p13), %v7178_v0, %v7184_v2  ;;  %v8421_v58 = vcombine.low (!%p5610_p13), %v7178_v0, %v7184_v2  ;;  %v8425_v63 = vcombine.high (!%p5610_p13), %v7190_v4, %v7196_v6  ;;  %v8431_v32 = vcombine.low (!%p5610_p13), %v7190_v4, %v7196_v6  ;;  %v8844_v29 = vld [vmem:[#allocation26_spill] sm:$0xff] (!%p5610_p13)  ;;  %v8845_v16 = vld [vmem:[#allocation25_spill] sm:$0xff] (!%p5610_p13)  ;;  %v8847_v13 = vld [vmem:[#allocation31_spill] sm:$0xff] (!%p5610_p13) }
 0x75b   : > { %4387 = sbr.rel (%p5610_p13) target bundleno = 2961 (0xb91), region = 72  ;;  %v8435_v49 = vcombine.low (!%p5610_p13), %v7181_v1, %v7187_v3  ;;  %v8440_v0 = vcombine.high (!%p5610_p13), %v7202_v8, %v7208_v10  ;;  %v6860_v2 = vmov (!%p5610_p13), 0.0   ;;  %v8446_v40 = vcombine.low (!%p5610_p13), %v7193_v5, %v7199_v7  ;;  %v8841_v5 = vld [vmem:[#allocation24_spill] sm:$0xff] (!%p5610_p13)  ;;  %v8848_v35 = vld [vmem:[#allocation30_spill] sm:$0xff] (!%p5610_p13)  ;;  %v8850_v42 = vld [vmem:[#allocation37_spill] sm:$0xff] (!%p5610_p13) }
 0x75c   : > { %4528 = vmatprep.subr.bf16.mxu0 (!%p5610_p13), %v8417_v15  ;;  %5978 = vmatprep.subr.bf16.mxu1 (!%p5610_p13), %v6860_v2  ;;  %v6861_v4 = vmov (!%p5610_p13), 0   ;;  %v8453_v1 = vcombine.low (!%p5610_p13), %v7202_v8, %v7208_v10  ;;  %vm6862_vm1 = vmmov (!%p5610_p13), 0   ;;  %v8460_v3 = vcombine.high (!%p5610_p13), %v7214_v12, %v7220_v14  ;;  %v8842_v8 = vld [vmem:[#allocation29_spill] sm:$0xff] (!%p5610_p13)  ;;  %v8843_v10 = vld [vmem:[#allocation27_spill] sm:$0xff] (!%p5610_p13)  ;;  %v8849_v41 = vld [vmem:[#allocation28_spill] sm:$0xff] (!%p5610_p13) }
 0x75d   : > { %4529 = vmatpush1.bf16.msra.mxu0 (!%p5610_p13), %v8421_v58  ;;  %5979 = vmatpush3.bf16.msra.mxu1 (!%p5610_p13), %v8435_v49  ;;  %v8465_v6 = vcombine.low (!%p5610_p13), %v8841_v5, %v7211_v11  ;;  %v8471_v7 = vcombine.low (!%p5610_p13), %v7214_v12, %v7220_v14  ;;  %v8476_v31 = vcombine.high (!%p5610_p13), %v8843_v10, %v8842_v8  ;;  %v8846_v14 = vld [vmem:[#allocation33_spill] sm:$0xff] (!%p5610_p13)  ;;  %v8851_v48 = vld [vmem:[#allocation35_spill] sm:$0xff] (!%p5610_p13)  ;;  %v8852_v18 = vld [vmem:[#allocation34_spill] sm:$0xff] (!%p5610_p13)  ;;  %v6863_v46 = vmov (!%p5610_p13), 0.0|0.0  }
 0x75e   : > { %4530 = vmatprep.subr.bf16.mxu0 (!%p5610_p13), %v8425_v63  ;;  %4560 = vmatprep.mubr.bf16.mxu0 (!%p5610_p13), %v6861_v4  ;;  %v8481_v11 = vcombine.low (!%p5610_p13), %v8845_v16, %v8844_v29  ;;  %v8487_v12 = vcombine.low (!%p5610_p13), %v8843_v10, %v8842_v8  ;;  %v8492_v22 = vcombine.high (!%p5610_p13), %v8847_v13, %v8846_v14  ;;  %v8853_v44 = vld [vmem:[#allocation32_spill] sm:$0xff] (!%p5610_p13)  ;;  %v8854_v45 = vld [vmem:[#allocation41_spill] sm:$0xff] (!%p5610_p13)  ;;  %v8855_v47 = vld [vmem:[#allocation39_spill] sm:$0xff] (!%p5610_p13) }
 0x75f   : > { %5980 = vmatprep.subr.bf16.mxu1 (!%p5610_p13), %v6860_v2  ;;  %5994 = vmatprep.mubr.msk.bf16.mxu1 (!%p5610_p13), %vm6862_vm1, %v6860_v2  ;;  %v8497_v56 = vcombine.low (!%p5610_p13), %v8849_v41, %v8848_v35  ;;  %v8503_v52 = vcombine.low (!%p5610_p13), %v8847_v13, %v8846_v14  ;;  %v8508_v26 = vcombine.high (!%p5610_p13), %v8851_v48, %v8850_v42  ;;  %v8856_v51 = vld [vmem:[#allocation38_spill] sm:$0xff] (!%p5610_p13)  ;;  %v8857_v59 = vld [vmem:[#allocation36_spill] sm:$0xff] (!%p5610_p13)  ;;  %v4397_v33 = vld [vmem:[#allocation3 + $0x50] sm:$0xff] (!%p5610_p13) }
 0x760   : > { %v8513_v17 = vcombine.low (!%p5610_p13), %v8853_v44, %v8852_v18  ;;  %v8519_v53 = vcombine.low (!%p5610_p13), %v8851_v48, %v8850_v42  ;;  %v8524_v20 = vcombine.high (!%p5610_p13), %v8855_v47, %v8854_v45  ;;  %v8529_v34 = vcombine.low (!%p5610_p13), %v8857_v59, %v8856_v51  ;;  %v8858_v27 = vld [vmem:[#allocation42_spill] sm:$0xff] (!%p5610_p13)  ;;  %v8859_v28 = vld [vmem:[#allocation40_spill] sm:$0xff] (!%p5610_p13)  ;;  %v8860_v37 = vld [vmem:[#allocation43_spill] sm:$0xff] (!%p5610_p13) }
 0x761   : > { %4531 = vmatpush1.bf16.msra.mxu0 (!%p5610_p13), %v8431_v32  ;;  %5981 = vmatpush3.bf16.msra.mxu1 (!%p5610_p13), %v8446_v40  ;;  %v8535_v19 = vcombine.low (!%p5610_p13), %v8855_v47, %v8854_v45  ;;  %v8541_v50 = vcombine.low (!%p5610_p13), %v8859_v28, %v8858_v27  ;;  %v4396_v21 = vld [vmem:[#allocation3 + $0x48] sm:$0xff] (!%p5610_p13)  ;;  %v8585_v5 = vrot.slane (!%p5610_p13), %v8860_v37, %v8078_v61  ;;  %v4398_v14 = vld [vmem:[#allocation3 + $0x58] sm:$0xff] (!%p5610_p13)  ;;  %v4640_v47 = vld [vmem:[#allocation3 + $0x30] sm:$0xff] (!%p5610_p13) }
 0x762   : > { %4532 = vmatprep.subr.bf16.mxu0 %v8440_v0  ;;  %5982 = vmatprep.subr.bf16.mxu1 %v6860_v2  ;;  %v4641_v28 = vld [vmem:[#allocation3 + $0x38] sm:$0xff] }
 0x765   : > { %4533 = vmatpush1.bf16.msra.mxu0 %v8453_v1  ;;  %5983 = vmatpush3.bf16.msra.mxu1 %v8465_v6 }
 0x766   : > { %4534 = vmatprep.subr.bf16.mxu0 %v8460_v3  ;;  %5984 = vmatprep.subr.bf16.mxu1 %v6860_v2 }
 0x769   : > { %4535 = vmatpush1.bf16.msra.mxu0 %v8471_v7  ;;  %5985 = vmatpush3.bf16.msra.mxu1 %v8481_v11 }
 0x76a   : > { %4536 = vmatprep.subr.bf16.mxu0 %v8476_v31  ;;  %5986 = vmatprep.subr.bf16.mxu1 %v6860_v2 }
 0x76d   : > { %4537 = vmatpush1.bf16.msra.mxu0 %v8487_v12  ;;  %5987 = vmatpush3.bf16.msra.mxu1 %v8497_v56 }
 0x76e   : > { %4538 = vmatprep.subr.bf16.mxu0 %v8492_v22  ;;  %5988 = vmatprep.subr.bf16.mxu1 %v6860_v2 }
 0x771   : > { %4539 = vmatpush1.bf16.msra.mxu0 %v8503_v52  ;;  %5989 = vmatpush3.bf16.msra.mxu1 %v8513_v17 }
 0x772   : > { %4540 = vmatprep.subr.bf16.mxu0 %v8508_v26  ;;  %5990 = vmatprep.subr.bf16.mxu1 %v6860_v2 }
 0x775   : > { %4541 = vmatpush1.bf16.msra.mxu0 %v8519_v53  ;;  %5991 = vmatpush3.bf16.msra.mxu1 %v8529_v34 }
 0x776   : > { %4542 = vmatprep.subr.bf16.mxu0 %v8524_v20  ;;  %5992 = vmatprep.subr.bf16.mxu1 %v6860_v2 }
 0x779   : > { %4543 = vmatpush1.bf16.msra.mxu0 %v8535_v19  ;;  %5993 = vmatpush3.bf16.msra.mxu1 %v8541_v50 }
 0x77a   : > { %4643 = vmatprep.subr.bf16.mxu0 %v8417_v15  ;;  %5998 = vmatprep.subr.bf16.mxu1 %v6860_v2 }
 0x77c   : > { %4561 = vmatmul.mubr.bf16.vlgmr.msra.gmra.mrb[0].mxu0 %v6863_v46  ;;  %5995 = vmatmul.mubr.bf16.vlgmr.msra.gmra.mrb[0].mxu1 %v6863_v46 }
 0x77d   : > { %4644 = vmatpush1.bf16.msra.mxu0 %v8421_v58  ;;  %4675 = vmatprep.mubr.bf16.mxu0 %v6861_v4 }
 0x77e   : > { %4645 = vmatprep.subr.bf16.mxu0 %v8425_v63  ;;  %5999 = vmatpush3.bf16.msra.mxu1 %v8435_v49 }
 0x77f   : > { %6014 = vmatprep.mubr.msk.bf16.mxu1 %vm6862_vm1, %v6860_v2  ;;  %6000 = vmatprep.subr.bf16.mxu1 %v6860_v2 }
 0x781   : > { %4646 = vmatpush1.bf16.msra.mxu0 %v8431_v32 }
 0x782   : > { %4647 = vmatprep.subr.bf16.mxu0 %v8440_v0  ;;  %6001 = vmatpush3.bf16.msra.mxu1 %v8446_v40 }
 0x783   : > { %6002 = vmatprep.subr.bf16.mxu1 %v6860_v2 }
 0x785   : > { %4648 = vmatpush1.bf16.msra.mxu0 %v8453_v1 }
 0x786   : > { %4649 = vmatprep.subr.bf16.mxu0 %v8460_v3  ;;  %6003 = vmatpush3.bf16.msra.mxu1 %v8465_v6 }
 0x787   : > { %6004 = vmatprep.subr.bf16.mxu1 %v6860_v2 }
 0x789   : > { %4650 = vmatpush1.bf16.msra.mxu0 %v8471_v7 }
 0x78a   : > { %4651 = vmatprep.subr.bf16.mxu0 %v8476_v31  ;;  %6005 = vmatpush3.bf16.msra.mxu1 %v8481_v11 }
 0x78b   : > { %6006 = vmatprep.subr.bf16.mxu1 %v6860_v2 }
 0x78d   : > { %4652 = vmatpush1.bf16.msra.mxu0 %v8487_v12 }
 0x78e   : > { %4653 = vmatprep.subr.bf16.mxu0 %v8492_v22  ;;  %6007 = vmatpush3.bf16.msra.mxu1 %v8497_v56 }
 0x78f   : > { %6008 = vmatprep.subr.bf16.mxu1 %v6860_v2 }
 0x791   : > { %4654 = vmatpush1.bf16.msra.mxu0 %v8503_v52 }
 0x792   : > { %4655 = vmatprep.subr.bf16.mxu0 %v8508_v26  ;;  %6009 = vmatpush3.bf16.msra.mxu1 %v8513_v17 }
 0x793   : > { %6010 = vmatprep.subr.bf16.mxu1 %v6860_v2 }
 0x795   : > { %4656 = vmatpush1.bf16.msra.mxu0 %v8519_v53 }
 0x796   : > { %4657 = vmatprep.subr.bf16.mxu0 %v8524_v20  ;;  %6011 = vmatpush3.bf16.msra.mxu1 %v8529_v34 }
 0x797   : > { %6012 = vmatprep.subr.bf16.mxu1 %v6860_v2 }
 0x799   : > { %4658 = vmatpush1.bf16.msra.mxu0 %v8535_v19 }
 0x79a   : > { %4752 = vmatprep.subr.bf16.mxu0 %v8417_v15  ;;  %6013 = vmatpush3.bf16.msra.mxu1 %v8541_v50 }
 0x79b   : > { %6018 = vmatprep.subr.bf16.mxu1 %v6860_v2 }
 0x84f   : > { %v4562_v25 = vpop.f32.mrb[0].mxu0  ;;  %v4603_v55 = vpop.f32.mrb[0].mxu1 }
 0x850   : > { %v4609_v57 = vadd.f32 %v4562_v25, %v4396_v21  ;;  %v4564_v24 = vpop.f32.mrb[1].mxu0  ;;  %v5996_v54 = vpop.f32.mrb[1].mxu1  ;;  %v4629_v29 = vadd.f32 %v8585_v5, %v4603_v55 }
 0x851   : > { %v4566_v9 = vpop.f32.mrb[2].mxu0  ;;  %v4610_v23 = vadd.f32 %v4564_v24, %v4397_v33  ;;  %v4606_v36 = vpop.f32.mrb[2].mxu1 }
 0x852   : > { %v5635_v43 = vmul.f32 -1.442695, %v4609_v57  ;;  %v4567_v60 = vpop.f32.mrb[3].mxu0  ;;  %v5997_v62 = vpop.f32.mrb[3].mxu1 }
 0x853   : > { %v5636_v38 = vmul.f32 -1.442695, %v4610_v23 }
 0x854   : > { %6567 = vpow2.f32 %v5635_v43 }
 0x855   : > { %6569 = vpow2.f32 %v5636_v38  ;;  %v4642_v38 = vld [vmem:[#allocation3 + $0x40] sm:$0xff] }
 0x85e   : > { %v6568_v30 = vpop.eup %6567 }
 0x85f   : > { %v4617_v39 = vadd.f32 1.0, %v6568_v30  ;;  %v6570_v8 = vpop.eup %6569 }
 0x860   : > { %v4618_v10 = vadd.f32 1.0, %v6570_v8 }
 0x861   : > { %6571 = vrcp.f32 %v4617_v39 }
 0x862   : > { %6573 = vrcp.f32 %v4618_v10 }
 0x86b   : > { %v6572_v16 = vpop.eup %6571 }
 0x86c   : > { %v4630_v13 = vmul.f32 %v6572_v16, %v4629_v29  ;;  %v6574_v41 = vpop.eup %6573 }
 0x86d   : > { %v4633_v42 = vsub.f32 1.0, %v6574_v41  ;;  %v4635_v44 = vmul.f32 0.0, %v6574_v41 }
 0x86e   : > { %v4631_v35 = vadd.f32 %v4630_v13, %v4398_v14 }
 0x870   : > { %6575 = vtanh.f32 %v4631_v35 }
 0x87a   : > { %v6576_v48 = vpop.eup %6575 }
 0x87b   : > { %v4634_v18 = vmul.f32 %v6576_v48, %v4633_v42 }
 0x87d   : > { %v8588_v45 = vadd.f32 %v4635_v44, %v4634_v18  ;;  %v4858_v44 = vld [vmem:[#allocation3] sm:$0xff] }
 0x87f   : > { %v4637_v61 = vpack.c.bf16 %v8588_v45, %v8588_v45 }
 0x881   : > { %5637 = vst [vmem:[%s8153_s14 + $0xc] sm:$0xf] %v4637_v61  ;;  %4676 = vmatmul.mubr.bf16.vlgmr.msra.gmra.mrb[4].mxu0 %v4637_v61  ;;  %6015 = vmatmul.mubr.bf16.vlgmr.msra.gmra.mrb[4].mxu1 %v4637_v61 }
 0x882   : > { %4753 = vmatpush1.bf16.msra.mxu0 %v8421_v58  ;;  %6019 = vmatpush3.bf16.msra.mxu1 %v8435_v49 }
 0x883   : > { %4754 = vmatprep.subr.bf16.mxu0 %v8425_v63  ;;  %6020 = vmatprep.subr.bf16.mxu1 %v6860_v2 }
 0x884   : > { %4784 = vmatprep.mubr.bf16.mxu0 %v6861_v4  ;;  %6034 = vmatprep.mubr.msk.bf16.mxu1 %vm6862_vm1, %v6860_v2 }
 0x886   : > { %4755 = vmatpush1.bf16.msra.mxu0 %v8431_v32  ;;  %6021 = vmatpush3.bf16.msra.mxu1 %v8446_v40 }
 0x887   : > { %4756 = vmatprep.subr.bf16.mxu0 %v8440_v0  ;;  %6022 = vmatprep.subr.bf16.mxu1 %v6860_v2 }
 0x88a   : > { %4757 = vmatpush1.bf16.msra.mxu0 %v8453_v1  ;;  %6023 = vmatpush3.bf16.msra.mxu1 %v8465_v6 }
 0x88b   : > { %4758 = vmatprep.subr.bf16.mxu0 %v8460_v3  ;;  %6024 = vmatprep.subr.bf16.mxu1 %v6860_v2 }
 0x88e   : > { %4759 = vmatpush1.bf16.msra.mxu0 %v8471_v7  ;;  %6025 = vmatpush3.bf16.msra.mxu1 %v8481_v11 }
 0x88f   : > { %4760 = vmatprep.subr.bf16.mxu0 %v8476_v31  ;;  %6026 = vmatprep.subr.bf16.mxu1 %v6860_v2 }
 0x892   : > { %4761 = vmatpush1.bf16.msra.mxu0 %v8487_v12  ;;  %6027 = vmatpush3.bf16.msra.mxu1 %v8497_v56 }
 0x893   : > { %4762 = vmatprep.subr.bf16.mxu0 %v8492_v22  ;;  %6028 = vmatprep.subr.bf16.mxu1 %v6860_v2 }
 0x896   : > { %4763 = vmatpush1.bf16.msra.mxu0 %v8503_v52  ;;  %6029 = vmatpush3.bf16.msra.mxu1 %v8513_v17 }
 0x897   : > { %4764 = vmatprep.subr.bf16.mxu0 %v8508_v26  ;;  %6030 = vmatprep.subr.bf16.mxu1 %v6860_v2 }
 0x89a   : > { %4765 = vmatpush1.bf16.msra.mxu0 %v8519_v53  ;;  %6031 = vmatpush3.bf16.msra.mxu1 %v8529_v34 }
 0x89b   : > { %4766 = vmatprep.subr.bf16.mxu0 %v8524_v20  ;;  %6032 = vmatprep.subr.bf16.mxu1 %v6860_v2 }
 0x89e   : > { %4767 = vmatpush1.bf16.msra.mxu0 %v8535_v19  ;;  %6033 = vmatpush3.bf16.msra.mxu1 %v8541_v50 }
 0x89f   : > { %4861 = vmatprep.subr.bf16.mxu0 %v8417_v15  ;;  %6038 = vmatprep.subr.bf16.mxu1 %v6860_v2 }
 0x954   : > { %v4677_v51 = vpop.f32.mrb[4].mxu0  ;;  %v4718_v59 = vpop.f32.mrb[4].mxu1 }
 0x955   : > { %v4724_v27 = vadd.f32 %v4677_v51, %v4640_v47  ;;  %v4679_v46 = vpop.f32.mrb[5].mxu0  ;;  %v6016_v21 = vpop.f32.mrb[5].mxu1  ;;  %v4738_v36 = vadd.f32 %v4718_v59, %v8585_v5  ;;  %v4859_v51 = vld [vmem:[#allocation3 + $0x8] sm:$0xff] }
 0x956   : > { %v4681_v25 = vpop.f32.mrb[6].mxu0  ;;  %v4721_v57 = vpop.f32.mrb[6].mxu1  ;;  %v4725_v55 = vadd.f32 %v4679_v46, %v4641_v28 }
 0x957   : > { %v5638_v33 = vmul.f32 -1.442695, %v4724_v27  ;;  %v4682_v24 = vpop.f32.mrb[7].mxu0  ;;  %v6017_v9 = vpop.f32.mrb[7].mxu1 }
 0x958   : > { %v5639_v43 = vmul.f32 -1.442695, %v4725_v55 }
 0x959   : > { %6577 = vpow2.f32 %v5638_v33 }
 0x95a   : > { %6579 = vpow2.f32 %v5639_v43 }
 0x963   : > { %v6578_v60 = vpop.eup %6577 }
 0x964   : > { %v4732_v15 = vadd.f32 1.0, %v6578_v60  ;;  %v6580_v54 = vpop.eup %6579 }
 0x965   : > { %v4733_v23 = vadd.f32 1.0, %v6580_v54 }
 0x966   : > { %6581 = vrcp.f32 %v4732_v15 }
 0x967   : > { %6583 = vrcp.f32 %v4733_v23  ;;  %v4860_v23 = vld [vmem:[#allocation3 + $0x10] sm:$0xff] }
 0x970   : > { %v6582_v62 = vpop.eup %6581 }
 0x971   : > { %v4739_v30 = vmul.f32 %v6582_v62, %v4738_v36  ;;  %v6584_v37 = vpop.eup %6583 }
 0x972   : > { %v4742_v8 = vsub.f32 1.0, %v6584_v37  ;;  %v4744_v16 = vmul.f32 %v6584_v37, %v8588_v45 }
 0x973   : > { %v4740_v39 = vadd.f32 %v4739_v30, %v4642_v38 }
 0x975   : > { %6585 = vtanh.f32 %v4740_v39 }
 0x97f   : > { %v6586_v10 = vpop.eup %6585 }
 0x980   : > { %v4743_v29 = vmul.f32 %v6586_v10, %v4742_v8 }
 0x982   : > { %v8630_v14 = vadd.f32 %v4744_v16, %v4743_v29 }
 0x984   : > { %v4746_v13 = vpack.c.bf16 %v8630_v14, %v8630_v14 }
 0x986   : > { %5640 = vst [vmem:[%s8153_s14 + $0x8] sm:$0xf] %v4746_v13  ;;  %4785 = vmatmul.mubr.bf16.vlgmr.msra.gmra.mrb[8].mxu0 %v4746_v13  ;;  %6035 = vmatmul.mubr.bf16.vlgmr.msra.gmra.mrb[8].mxu1 %v4746_v13 }
 0x987   : > { %4862 = vmatpush1.bf16.msra.mxu0 %v8421_v58  ;;  %6039 = vmatpush3.bf16.msra.mxu1 %v8435_v49  ;;  %v4749_v58 = vld [vmem:[#allocation3 + $0x18] sm:$0xff] }
 0x988   : > { %4863 = vmatprep.subr.bf16.mxu0 %v8425_v63  ;;  %6040 = vmatprep.subr.bf16.mxu1 %v6860_v2 }
 0x989   : > { %4893 = vmatprep.mubr.bf16.mxu0 %v6861_v4  ;;  %6054 = vmatprep.mubr.msk.bf16.mxu1 %vm6862_vm1, %v6860_v2 }
 0x98b   : > { %4864 = vmatpush1.bf16.msra.mxu0 %v8431_v32  ;;  %6041 = vmatpush3.bf16.msra.mxu1 %v8446_v40 }
 0x98c   : > { %4865 = vmatprep.subr.bf16.mxu0 %v8440_v0  ;;  %6042 = vmatprep.subr.bf16.mxu1 %v6860_v2  ;;  %v4750_v0 = vld [vmem:[#allocation3 + $0x20] sm:$0xff] }
 0x98f   : > { %4866 = vmatpush1.bf16.msra.mxu0 %v8453_v1  ;;  %6043 = vmatpush3.bf16.msra.mxu1 %v8465_v6 }
 0x990   : > { %4867 = vmatprep.subr.bf16.mxu0 %v8460_v3  ;;  %6044 = vmatprep.subr.bf16.mxu1 %v6860_v2 }
 0x993   : > { %4868 = vmatpush1.bf16.msra.mxu0 %v8471_v7  ;;  %6045 = vmatpush3.bf16.msra.mxu1 %v8481_v11 }
 0x994   : > { %4869 = vmatprep.subr.bf16.mxu0 %v8476_v31  ;;  %6046 = vmatprep.subr.bf16.mxu1 %v6860_v2 }
 0x997   : > { %4870 = vmatpush1.bf16.msra.mxu0 %v8487_v12  ;;  %6047 = vmatpush3.bf16.msra.mxu1 %v8497_v56 }
 0x998   : > { %4871 = vmatprep.subr.bf16.mxu0 %v8492_v22  ;;  %6048 = vmatprep.subr.bf16.mxu1 %v6860_v2 }
 0x99b   : > { %4872 = vmatpush1.bf16.msra.mxu0 %v8503_v52  ;;  %6049 = vmatpush3.bf16.msra.mxu1 %v8513_v17 }
 0x99c   : > { %4873 = vmatprep.subr.bf16.mxu0 %v8508_v26  ;;  %6050 = vmatprep.subr.bf16.mxu1 %v6860_v2 }
 0x99f   : > { %4874 = vmatpush1.bf16.msra.mxu0 %v8519_v53  ;;  %6051 = vmatpush3.bf16.msra.mxu1 %v8529_v34  ;;  %v4751_v53 = vld [vmem:[#allocation3 + $0x28] sm:$0xff] }
 0x9a0   : > { %4875 = vmatprep.subr.bf16.mxu0 %v8524_v20  ;;  %6052 = vmatprep.subr.bf16.mxu1 %v6860_v2 }
 0x9a3   : > { %4876 = vmatpush1.bf16.msra.mxu0 %v8535_v19  ;;  %6053 = vmatpush3.bf16.msra.mxu1 %v8541_v50 }
 0xa59   : > { %v4786_v63 = vpop.f32.mrb[8].mxu0  ;;  %v4827_v32 = vpop.f32.mrb[8].mxu1 }
 0xa5a   : > { %v4833_v49 = vadd.f32 %v4786_v63, %v4749_v58  ;;  %v4788_v40 = vpop.f32.mrb[9].mxu0  ;;  %v6036_v4 = vpop.f32.mrb[9].mxu1  ;;  %v4847_v26 = vadd.f32 %v4827_v32, %v8585_v5 }
 0xa5b   : > { %v4790_v1 = vpop.f32.mrb[10].mxu0  ;;  %v4830_v3 = vpop.f32.mrb[10].mxu1  ;;  %v4834_v11 = vadd.f32 %v4788_v40, %v4750_v0 }
 0xa5c   : > { %v5641_v6 = vmul.f32 -1.442695, %v4833_v49  ;;  %v4791_v7 = vpop.f32.mrb[11].mxu0  ;;  %v6037_v31 = vpop.f32.mrb[11].mxu1 }
 0xa5d   : > { %v5642_v12 = vmul.f32 -1.442695, %v4834_v11 }
 0xa5e   : > { %6587 = vpow2.f32 %v5641_v6 }
 0xa5f   : > { %6589 = vpow2.f32 %v5642_v12 }
 0xa68   : > { %v6588_v2 = vpop.eup %6587 }
 0xa69   : > { %v4841_v22 = vadd.f32 1.0, %v6588_v2  ;;  %v6590_v56 = vpop.eup %6589 }
 0xa6a   : > { %v4842_v52 = vadd.f32 1.0, %v6590_v56 }
 0xa6b   : > { %6591 = vrcp.f32 %v4841_v22 }
 0xa6c   : > { %6593 = vrcp.f32 %v4842_v52 }
 0xa75   : > { %v6592_v17 = vpop.eup %6591 }
 0xa76   : > { %v4848_v20 = vmul.f32 %v6592_v17, %v4847_v26  ;;  %v6594_v19 = vpop.eup %6593 }
 0xa77   : > { %v4851_v50 = vsub.f32 1.0, %v6594_v19  ;;  %v4853_v42 = vmul.f32 %v6594_v19, %v8630_v14 }
 0xa78   : > { %v4849_v34 = vadd.f32 %v4848_v20, %v4751_v53 }
 0xa7a   : > { %6595 = vtanh.f32 %v4849_v34 }
 0xa84   : > { %v6596_v35 = vpop.eup %6595 }
 0xa85   : > { %v4852_v41 = vmul.f32 %v6596_v35, %v4851_v50 }
 0xa87   : > { %v4854_v48 = vadd.f32 %v4853_v42, %v4852_v41 }
 0xa89   : > { %v4855_v18 = vpack.c.bf16 %v4854_v48, %v4854_v48 }
 0xa8b   : > { %5643 = vst [vmem:[%s8153_s14 + $0x4] sm:$0xf] %v4855_v18  ;;  %4894 = vmatmul.mubr.bf16.vlgmr.msra.gmra.mrb[12].mxu0 %v4855_v18  ;;  %6055 = vmatmul.mubr.bf16.vlgmr.msra.gmra.mrb[12].mxu1 %v4855_v18 }
 0xb5e   : > { %v4895_v45 = vpop.f32.mrb[12].mxu0  ;;  %v4936_v61 = vpop.f32.mrb[12].mxu1 }
 0xb5f   : > { %v4942_v47 = vadd.f32 %v4895_v45, %v4858_v44  ;;  %v4897_v59 = vpop.f32.mrb[13].mxu0  ;;  %v6056_v27 = vpop.f32.mrb[13].mxu1  ;;  %v4956_v15 = vadd.f32 %v4936_v61, %v8585_v5 }
 0xb60   : > { %v4899_v28 = vpop.f32.mrb[14].mxu0  ;;  %v4939_v46 = vpop.f32.mrb[14].mxu1  ;;  %v4943_v33 = vadd.f32 %v4897_v59, %v4859_v51 }
 0xb61   : > { %v5644_v21 = vmul.f32 -1.442695, %v4942_v47  ;;  %v4900_v25 = vpop.f32.mrb[15].mxu0  ;;  %v6057_v57 = vpop.f32.mrb[15].mxu1 }
 0xb62   : > { %v5645_v24 = vmul.f32 -1.442695, %v4943_v33 }
 0xb63   : > { %6597 = vpow2.f32 %v5644_v21 }
 0xb64   : > { %6599 = vpow2.f32 %v5645_v24 }
 0xb6d   : > { %v6598_v9 = vpop.eup %6597 }
 0xb6e   : > { %v4950_v55 = vadd.f32 1.0, %v6598_v9  ;;  %v6600_v43 = vpop.eup %6599 }
 0xb6f   : > { %v4951_v60 = vadd.f32 1.0, %v6600_v43 }
 0xb70   : > { %6601 = vrcp.f32 %v4950_v55 }
 0xb71   : > { %6603 = vrcp.f32 %v4951_v60 }
 0xb7a   : > { %v6602_v54 = vpop.eup %6601 }
 0xb7b   : > { %v4957_v36 = vmul.f32 %v6602_v54, %v4956_v15  ;;  %v6604_v38 = vpop.eup %6603 }
 0xb7c   : > { %v4960_v30 = vsub.f32 1.0, %v6604_v38  ;;  %v4962_v8 = vmul.f32 %v6604_v38, %v4854_v48 }
 0xb7d   : > { %v4958_v62 = vadd.f32 %v4957_v36, %v4860_v23 }
 0xb7f   : > { %6605 = vtanh.f32 %v4958_v62 }
 0xb89   : > { %v6606_v39 = vpop.eup %6605 }
 0xb8a   : > { %v4961_v37 = vmul.f32 %v6606_v39, %v4960_v30 }
 0xb8c   : > { %v4963_v10 = vadd.f32 %v4962_v8, %v4961_v37 }
 0xb8e   : > { %v4964_v29 = vpack.c.bf16 %v4963_v10, %v4963_v10 }
 0xb90   : > { %4965 = vst [vmem:[%s8153_s14] sm:$0xf] %v4964_v29 }
 0xb91 PF: > { %s5647_s15 = sshll.u32 %s6837_s21, 6  ;;  %s4987_s1 = sshll.u32 %s8153_s14, 4  ;;  %s8680_s1 = int_to_ptr.vmem [resolvable:$true] %s4987_s1 }
 0xb92   : > { %s8677_s8 = scalar_lea.hbm %s8734_s5, %s5647_s15  ;;  %s4968_s7 = scalar_lea.sflag [#allocation6], %s7157_s16 }
 0xb93   : > { %s6755_s18 = scalar_lea.vmem %s8680_s1, 256  ;;  %p8861_p4 = scmp.ne.s32.totalorder %s8777_s6, 0 }
 0xb94   : > { %p6756_p3 = scmp.ne.s32.totalorder %s8680_s1, %s6755_s18  ;;  %s6864_s27 = smov [#allocation13]  }
 0xb95   : > { %s6759_s26 = sshll.u32 %s6864_s27, 4  ;;  %s6760_s26 = int_to_ptr.vmem [resolvable:$false] %s6759_s26 }
 0xb96   : > { %p6757_p6 = pnand %p6756_p3, %p8861_p4  ;;  %s6761_s21 = scalar_lea.vmem %s6760_s26, 512 }
 0xb97   : > { %p6762_p12 = scmp.lt.s32.totalorder %s8680_s1, %s6760_s26  ;;  %p6763_p10 = scmp.lt.s32.totalorder %s6761_s21, %s6755_s18 }
 0xb98   : > { %p6758_p8 = pneg %p6757_p6 }
 0xb99   : > { %p6764_p5 = por %p6763_p10, %p6762_p12 }
 0xb9b   : > { %p6765_p9 = pnand %p6764_p5, %p6758_p8 }
 0xb9d   : > { %6768 = shalt.err (!%p6765_p9)
}
 0xb9e   : > { %s6769_s10 = scalar_lea.hbm %s8677_s8, 256  ;;  %s6773_s20 = scalar_lea.hbm %s8734_s5, 512 }
 0xb9f   : > { %p6770_p2 = scmp.ne.s32.totalorder %s8677_s8, %s6769_s10  ;;  %p6774_p0 = scmp.lt.u32.totalorder %s8677_s8, %s8734_s5 }
 0xba0   : > { %p6775_p1 = scmp.lt.u32.totalorder %s6773_s20, %s6769_s10  ;;  %p6777_p3 = scmp.lt.u32.totalorder %s6769_s10, %s8677_s8 }
 0xba1   : > { %p6771_p7 = pnand %p6770_p2, %p8861_p4 }
 0xba2   : > { %p6776_p13 = por %p6775_p1, %p6774_p0 }
 0xba3   : > { %p6772_p11 = pneg %p6771_p7 }
 0xba4   : > { %p6778_p6 = por %p6777_p3, %p6776_p13 }
 0xba6   : > { %p6779_p8 = pnand %p6778_p6, %p6772_p11 }
 0xba8   : > { %6782 = shalt.err (!%p6779_p8)
}
 0xba9   : > { %s6865_s17 = smov 64   ;;  %s6866_s25 = smov 128  }
 0xbaa   : > { %s6867_s24 = smov 4  }
 0xbab   : > { %6103 = dma.vmem_to_hbm [thread:$0]  (%p8861_p4), %s8680_s1, 256, %s8677_s8, %s4968_s7, %s6865_s17, %s6866_s25, %s6867_s24  }
 0xbac PF: > { %s8862_s11 = sld [smem:[#allocation18_spill]]  ;;  %s8863_s12 = sld [smem:[#allocation23_spill]] }
 0xbad   : > { %s8864_s30 = sld [smem:[#allocation20_spill]] }
 0xbb2   : > { %s5002_s14 = sand.u32 1, %s8862_s11   ;;  %p8865_p12 = scmp.ne.s32.totalorder %s8863_s12, 0 }
 0xbb3   : > { %p8866_p10 = scmp.ge.s32.totalorder %s8864_s30, 2  ;;  %s5003_s15 = scalar_lea.sflag [#allocation6], %s5002_s14 }
 0xbb5   : > { %p6122_p5 = pnand %p8866_p10, %p8865_p12 }
 0xbb7   : > { %6820 = dma.done.wait (!%p6122_p5), %s5003_s15, 256  }
 0xbb8   : > { %6822 = vsyncadd (!%p6122_p5), %s5003_s15, 4294967040  ;;  %s27_s23 = sadd.s32 1, %s8864_s30   ;;  %s8867_s9 = sld [smem:[#allocation19_spill]] }
 0xbb9   : > { %p24_p9 = scmp.ge.s32.totalorder %s27_s23, 4   ;;  %s8868_s20 = sld [smem:[#allocation22_spill]] }
 0xbba   : > { %s8869_s6 = sld [smem:[#allocation21_spill]]  ;;  %s8870_s18 = smov %s6829_s19 }
 0xbbb   : > { %s8872_s21 = smov %s6841_s22  ;;  %26 = sbr.rel (!%p24_p9) target bundleno = 13 (0xd), region = 167 }
 0xbbe   : > { %s8871_s19 = smov %s8867_s9 }
 0xbc0   : > { %s8873_s22 = smov %s8869_s6 }
 0xbc2   :  { %5008 = vsyncpa [#allocation5], 1 }
 0xbc3   :  { %5010 = vsyncpa [#allocation5 + $0x1], 1 }
 0xbc4   :  { %5011 = vsyncpa [#allocation8], 1 }
 0xbc5   :  { %5013 = vsyncpa [#allocation8 + $0x1], 1 }
 0xbc6   :  { %5014 = vsyncpa [#allocation11], 1 }
 0xbc7   :  { %5016 = vsyncpa [#allocation11 + $0x1], 1 }
 0xbc8   :  { %5017 = vsyncpa [#allocation6], 1 }
 0xbc9   :  { %5019 = vsyncpa [#allocation6 + $0x1], 1 }

</bundles_post_ra>
